<compile_context>
chip_gen: v7x
topology: tpu7x:2x2x1
jax: 0.10.0
libtpu: 0.0.40
codegen_flags: <defaults>
</compile_context>

<pallas_src>
import math
from functools import partial

import jax
import jax.numpy as jnp
from jax.experimental import pallas as pl
from jax.experimental.pallas import tpu as pltpu


# ----------------------------------------------------------------------------
# Fused batched matmul + bias + activation Pallas kernel (the single hot path).
#   y[e] = act(x[e] @ w[e] + b[e]);  x:(E,M,K) bf16, w:(E,K,N) bf16 -> f32 out.
# Grid = (E, M-tiles, K-tiles); K is the innermost reduction axis with an f32
# VMEM accumulator; bias + activation run only on the last K step.
# ----------------------------------------------------------------------------
def _bmm_kernel(x_ref, w_ref, b_ref, o_ref, acc_ref, *, act, slope):
    k = pl.program_id(2)

    @pl.when(k == 0)
    def _():
        acc_ref[...] = jnp.zeros_like(acc_ref)

    acc_ref[...] += jnp.dot(x_ref[0], w_ref[0], preferred_element_type=jnp.float32)

    @pl.when(k == pl.num_programs(2) - 1)
    def _():
        y = acc_ref[...] + b_ref[0]          # f32 bias / activation math (v5e-friendly)
        if act == "leaky":
            y = jnp.where(y >= 0, y, slope * y)
        elif act == "sigmoid":
            y = jax.nn.sigmoid(y)
        o_ref[0] = y.astype(o_ref.dtype)


def _pick_tile(d, cap, align):
    """Largest tile <= cap that divides d and is aligned; fall back to the full dim."""
    if d <= cap:
        return d
    t = (cap // align) * align
    while t > align and d % t != 0:
        t -= align
    return t if (t > 0 and d % t == 0) else d


def bmm_bias_act(x, w, b, act="none", slope=0.2, tm_max=1024, tk_max=4096):
    """Batched fused matmul: x:(E,M,K), w:(E,K,N), b:(E,N) -> (E,M,N) f32."""
    E, M, K = x.shape
    N = w.shape[-1]
    assert w.shape == (E, K, N) and b.shape == (E, N)
    tm = _pick_tile(M, tm_max, 8)
    tk = _pick_tile(K, tk_max, 128)
    assert M % tm == 0 and K % tk == 0       # no silently-dropped remainder rows
    grid = (E, M // tm, K // tk)
    return pl.pallas_call(
        partial(_bmm_kernel, act=act, slope=slope),
        out_shape=jax.ShapeDtypeStruct((E, M, N), jnp.float32),
        grid=grid,
        in_specs=[
            pl.BlockSpec((1, tm, tk), lambda e, i, k: (e, i, k)),
            pl.BlockSpec((1, tk, N), lambda e, i, k: (e, k, 0)),
            pl.BlockSpec((1, 1, N), lambda e, i, k: (e, 0, 0)),
        ],
        out_specs=pl.BlockSpec((1, tm, N), lambda e, i, k: (e, i, 0)),
        scratch_shapes=[pltpu.VMEM((tm, N), jnp.float32)],
        compiler_params=pltpu.CompilerParams(
            dimension_semantics=("parallel", "parallel", "arbitrary"),
            vmem_limit_bytes=32 * 1024 * 1024,
        ),
    )(x.astype(jnp.bfloat16), w.astype(jnp.bfloat16),
      b.reshape(E, 1, N).astype(jnp.float32))


def mm_bias_act(x, w, b, **kw):
    """2-D convenience wrapper (E=1)."""
    return bmm_bias_act(x[None], w[None], b[None], **kw)[0]


# ----------------------------------------------------------------------------
# Sequential Pallas kernels (single block, f32): RNN hidden recurrence, state-model
# recurrence, and the small 2-layer Gaussian MLP.  Batch dims are padded to 8 sublanes
# by the callers.
# ----------------------------------------------------------------------------
def _rnn_kernel(xs_ref, wh_ref, h_ref):
    # xs_ref: (T, Bp, H) pre-projected inputs (x @ Wx + b hoisted outside); the
    # sequential kernel only carries the unavoidable h @ Wh dependency.
    T = xs_ref.shape[0]
    wh = wh_ref[...]
    h = jnp.zeros(xs_ref.shape[1:], jnp.float32)
    for t in range(T):                       # static trip count (frames_per_clip), unrolled
        h = jnp.tanh(xs_ref[t] + jnp.dot(h, wh, preferred_element_type=jnp.float32))
        h_ref[t] = h


def _state_kernel(s0_ref, g_ref, ws_ref, wg_ref, b_ref, s_ref):
    # s_0 = s0 ; s_i = s_{i-1} @ Ws + g_i @ Wg + b   (g_0 unused, matching the
    # reference recurrence which starts at i=1).
    T = g_ref.shape[0]
    ws, wg, b = ws_ref[...], wg_ref[...], b_ref[...]
    h = s0_ref[...]
    s_ref[0] = h
    for t in range(1, T):
        h = (jnp.dot(h, ws, preferred_element_type=jnp.float32)
             + jnp.dot(g_ref[t], wg, preferred_element_type=jnp.float32) + b)
        s_ref[t] = h


def _gauss_mlp_kernel(x_ref, w1_ref, b1_ref, w2_ref, b2_ref, o_ref, *, slope):
    h = jnp.dot(x_ref[...], w1_ref[...], preferred_element_type=jnp.float32) + b1_ref[...]
    h = jnp.where(h >= 0, h, slope * h)
    o_ref[...] = jnp.dot(h, w2_ref[...], preferred_element_type=jnp.float32) + b2_ref[...]


# ----------------------------------------------------------------------------
# Conv plumbing (NHWC, layout glue only -- all contractions go through bmm_bias_act).
# ----------------------------------------------------------------------------
def _im2col_nhwc(x, k, stride, pad):
    """x: (N,H,W,C) -> (N*OH*OW, k*k*C) patch matrix, column order (kh, kw, C).
    Strided slices + one concat along the lane dim; no stack/transpose churn."""
    N, H, W, C = x.shape
    xp = jnp.pad(x, ((0, 0), (pad, pad), (pad, pad), (0, 0)))
    OH = (H + 2 * pad - k) // stride + 1
    OW = (W + 2 * pad - k) // stride + 1
    cols = [xp[:, kh:kh + stride * OH:stride, kw:kw + stride * OW:stride, :]
            for kh in range(k) for kw in range(k)]
    patches = jnp.concatenate(cols, axis=-1)          # (N, OH, OW, k*k*C)
    return patches.reshape(N * OH * OW, k * k * C), OH, OW


def _col2im_deconv(y, k, stride, pad, cout):
    """Scatter-add the deconv GEMM output back onto the ConvTranspose2d output grid.
    y: (N, IH, IW, k, k, cout) -> (N, OH, OW, cout). Bias/activation applied later."""
    N, IH, IW = y.shape[:3]
    Hp, Wp = stride * (IH - 1) + k, stride * (IW - 1) + k
    out = jnp.zeros((N, Hp, Wp, cout), y.dtype)
    for kh in range(k):
        for kw in range(k):
            out = out.at[:, kh:kh + stride * IH:stride,
                         kw:kw + stride * IW:stride, :].add(y[:, :, :, kh, kw, :])
    OH, OW = Hp - 2 * pad, Wp - 2 * pad
    return out[:, pad:pad + OH, pad:pad + OW, :]


# ----------------------------------------------------------------------------
# Sub-module apply functions.
# ----------------------------------------------------------------------------
def gm_recurrent_apply(p, x, key, tau, n_clusters, gd):
    # TODO(synk): GM_Recurrent source unavailable; assumed tanh-RNN + linear heads
    # producing (g, mu, logvar, hard-gumbel one_hot, log-probs).
    B, T, Din = x.shape
    H = p["wh"].shape[0]
    # Hoisted input projection (+bias): one batched matmul feeds the recurrence.
    xs = mm_bias_act(x.reshape(B * T, Din), p["wx"], p["b"]).reshape(B, T, H)
    Bp = 8                                            # pad batch to a full sublane group
    xs_t = jnp.zeros((T, Bp, H), jnp.float32).at[:, :B].set(jnp.transpose(xs, (1, 0, 2)))
    hs_t = pl.pallas_call(
        _rnn_kernel, out_shape=jax.ShapeDtypeStruct((T, Bp, H), jnp.float32)
    )(xs_t, p["wh"])
    hs = jnp.transpose(hs_t[:, :B], (1, 0, 2)).reshape(B * T, H)
    # Fused heads: [mu | logvar | cluster logits] in one lane-dense matmul.
    heads = mm_bias_act(hs, p["w_heads"], p["b_heads"])
    mu, logvar, logits = heads[:, :gd], heads[:, gd:2 * gd], heads[:, 2 * gd:]
    k1, k2 = jax.random.split(key)
    eps = jax.random.normal(k1, mu.shape, jnp.float32)
    g = mu + eps * jnp.exp(0.5 * logvar)
    u = jax.random.uniform(k2, logits.shape, jnp.float32, 1e-6, 1.0 - 1e-6)
    gumbel = -jnp.log(-jnp.log(u))
    # TODO(synk): hard Gumbel-softmax sample only; straight-through gradient trick not
    # wired (forward values are what the reference produces).
    one_hot = jax.nn.one_hot(jnp.argmax((logits + gumbel) / tau, axis=-1),
                             n_clusters, dtype=jnp.float32)
    prob1 = jax.nn.log_softmax(logits, axis=-1)
    rs = lambda a: a.reshape(B, T, -1)
    return rs(g), rs(mu), rs(logvar), rs(one_hot), rs(prob1)


def gaussian_mlp_apply(p, x, key, out_dim, slope=0.2):
    # TODO(synk): Gaussian_MLP source unavailable; assumed 2-layer MLP -> (mu, logvar),
    # fused into a single Pallas kernel.
    B, Din = x.shape
    Bp = 8
    x_pad = jnp.zeros((Bp, Din), jnp.float32).at[:B].set(x)
    stats = pl.pallas_call(
        partial(_gauss_mlp_kernel, slope=slope),
        out_shape=jax.ShapeDtypeStruct((Bp, p["w2"].shape[1]), jnp.float32),
    )(x_pad, p["w1"], p["b1"].reshape(1, -1), p["w2"], p["b2"].reshape(1, -1))[:B]
    mu, logvar = stats[:, :out_dim], stats[:, out_dim:]
    eps = jax.random.normal(key, mu.shape, jnp.float32)
    return mu + eps * jnp.exp(0.5 * logvar), mu, logvar


# ----------------------------------------------------------------------------
# DBE forward.
# ----------------------------------------------------------------------------
def dbe_forward(params, cfg, x1, x2, n_past, n_future, noise_key):
    B, F = x1.shape[0], x1.shape[1]
    fpc = cfg["frames_per_clip"]
    assert fpc == n_past + n_future and F == fpc
    pose, ctd = cfg["pose"], cfg["content"]
    sd, gd, nc = cfg["state_dim"], cfg["gaussian_dim"], cfg["n_clusters"]
    ech = cfg["encoder_ps"]["channels"][0]            # 256
    k_post, k_s0 = jax.random.split(noise_key)

    # NCHW -> NHWC once at the module boundary; everything below stays NHWC.
    C, Himg, Wimg = x1.shape[2], x1.shape[3], x1.shape[4]
    x1h = jnp.transpose(x1, (0, 1, 3, 4, 2)).reshape(B * fpc, Himg, Wimg, C)
    x2h = jnp.transpose(x2, (0, 1, 3, 4, 2)).reshape(B * fpc, Himg, Wimg, C)

    # --- all four encoders (pose x2 + content x2) in ONE batched Pallas matmul.
    # Content encoders are evaluated over all fpc frames and sliced to the first
    # n_past (per-frame convs, identical results), so enc1/enc2/enc1_ct/enc2_ct
    # share a single grid with one weight per grid step.
    cols1, OH, OW = _im2col_nhwc(x1h, k=4, stride=2, pad=1)      # (B*fpc*64, 48)
    cols2, _, _ = _im2col_nhwc(x2h, k=4, stride=2, pad=1)
    enc_in = jnp.stack([cols1, cols2, cols1, cols2], axis=0)     # [enc1, enc2, enc1_ct, enc2_ct]
    enc_out = bmm_bias_act(enc_in, params["enc_w"], params["enc_b"],
                           act="leaky", slope=0.2)               # (4, B*fpc*64, 256)
    npos = OH * OW                                               # 64

    p1f, p2f = enc_out[0], enc_out[1]                            # pose features (rows x 256)
    c1f = enc_out[2].reshape(B, fpc, npos, ech)[:, :n_past].reshape(B * n_past * npos, ech)
    c2f = enc_out[3].reshape(B, fpc, npos, ech)[:, :n_past].reshape(B * n_past * npos, ech)

    # --- content: 1x1 ct_fuse (straight_through branch) + LeakyReLU(0.2)
    c = mm_bias_act(jnp.concatenate([c1f, c2f], axis=-1),
                    params["ct_fuse_w"], params["ct_fuse_b"],
                    act="leaky", slope=0.2)                      # (B*n_past*64, ctd)
    c = c.reshape(B, n_past, OH, OW, ctd)
    # Last past content is reused for the last past frame AND every future frame so the
    # content stream covers all fpc frames (fixes the reference's off-by-one which gave
    # fpc-1 frames and could not be concatenated with the fpc-frame state stream).
    c = jnp.concatenate([c[:, :-1], jnp.repeat(c[:, -1:], n_future + 1, axis=1)], axis=1)

    # --- pose: view_fuse = Conv2d(512, pose, kernel=8) over the full 8x8 map, i.e. one
    # (B*fpc, 64*512) x (64*512, pose) matmul with the K axis tiled in the grid so the
    # 1MB bf16 weight streams in chunks instead of one monolithic block.
    pf = jnp.concatenate([p1f.reshape(B * fpc, npos, ech),
                          p2f.reshape(B * fpc, npos, ech)], axis=-1)   # (B*fpc, 64, 512)
    p = mm_bias_act(pf.reshape(B * fpc, npos * 2 * ech),
                    params["view_fuse_w"], params["view_fuse_b"],
                    act="leaky", slope=0.2).reshape(B, fpc, pose)

    # --- posterior over the pose sequence (ct_cond == False)
    g, mu, logvar, one_hot, prob1 = gm_recurrent_apply(params["posterior"], p, k_post,
                                                       cfg["tau"], nc, gd)
    cents = jnp.einsum("btk,kd->btd", one_hot, params["centroids"])
    g = g + cents                                                # different_vars == False

    # --- initial state + sequential state-model recurrence
    s0, mu_s0, logvar_s0 = gaussian_mlp_apply(params["init_state"],
                                              p[:, :n_past].reshape(B, n_past * pose),
                                              k_s0, sd)
    Bp = 8
    s0_pad = jnp.zeros((Bp, sd), jnp.float32).at[:B].set(s0)
    g_pad = jnp.zeros((fpc, Bp, gd), jnp.float32).at[:, :B].set(jnp.transpose(g, (1, 0, 2)))
    s_t = pl.pallas_call(
        _state_kernel, out_shape=jax.ShapeDtypeStruct((fpc, Bp, sd), jnp.float32)
    )(s0_pad, g_pad, params["state_ws"], params["state_wg"],
      params["state_b"].reshape(1, sd))
    s = jnp.transpose(s_t[:, :B], (1, 0, 2))                     # (B, fpc, sd)

    # --- cluster prior (independent_cluster == False)
    pre = mm_bias_act(s[:, :-1].reshape(B * (fpc - 1), sd),
                      params["c_net_w"], params["c_net_b"])
    prob2 = jax.nn.log_softmax(pre, axis=-1).reshape(B, fpc - 1, nc)

    # --- combine (1x1 ConvTranspose == per-position linear) + LeakyReLU(0.2)
    s_sp = jnp.broadcast_to(s.reshape(B * fpc, 1, sd), (B * fpc, npos, sd))
    comb_in = jnp.concatenate([s_sp, c.reshape(B * fpc, npos, ctd)], axis=-1)
    comb = mm_bias_act(comb_in.reshape(B * fpc * npos, sd + ctd),
                       params["combine_w"], params["combine_b"],
                       act="leaky", slope=0.2)                   # (B*fpc*64, 512)

    # --- both decoders in ONE batched GEMM + col2im (no zero-inserted deconv im2col)
    dec_in = jnp.stack([comb[:, :ech], comb[:, ech:]], axis=0)   # (2, B*fpc*64, 256)
    dec_cols = bmm_bias_act(dec_in, params["dec_w"],
                            jnp.zeros((2, params["dec_w"].shape[-1]), jnp.float32))
    C_img = params["dec_b"].shape[-1]
    y = dec_cols.reshape(2 * B * fpc, OH, OW, 4, 4, C_img)
    dec = _col2im_deconv(y, k=4, stride=2, pad=1, cout=C_img)    # (2*B*fpc, 16, 16, C)
    # TODO(synk): per-pixel bias + sigmoid epilogue kept as tiny JAX elementwise glue.
    dec = jax.nn.sigmoid(dec.reshape(2, B, fpc, 2 * OH, 2 * OW, C_img)
                         + params["dec_b"].reshape(2, 1, 1, 1, 1, C_img))
    d1 = jnp.transpose(dec[0], (0, 1, 4, 2, 3))                  # back to NCHW
    d2 = jnp.transpose(dec[1], (0, 1, 4, 2, 3))
    return (d1, d2), (mu, logvar), (mu_s0, logvar_s0), (prob1[:, 1:], prob2)


# ----------------------------------------------------------------------------
# Deterministic parameter init (weights stored directly in matmul layout).
# ----------------------------------------------------------------------------
def init_params(key, cfg):
    keys = iter(jax.random.split(key, 64))

    def nrm(shape, scale):
        return scale * jax.random.normal(next(keys), shape, jnp.float32)

    def sc(fan_in):
        return 1.0 / math.sqrt(fan_in)

    pose, ctd = cfg["pose"], cfg["content"]
    sd, gd, nc = cfg["state_dim"], cfg["gaussian_dim"], cfg["n_clusters"]
    c_img = cfg["encoder_ps"]["input_size"][-1]
    ech = cfg["encoder_ps"]["channels"][0]            # 256
    rnn_h = 32
    enc_k = c_img * 4 * 4                             # im2col K = C*kh*kw = 48
    dec_n = c_img * 4 * 4                             # deconv GEMM N = kh*kw*Cout = 48
    return {
        # encoders: [enc1, enc2, enc1_ct, enc2_ct], conv weight in (kh,kw,C)->Cout layout
        "enc_w": nrm((4, enc_k, ech), sc(enc_k)),
        "enc_b": jnp.zeros((4, ech), jnp.float32),
        "ct_fuse_w": nrm((2 * ech, ctd), sc(2 * ech)),
        "ct_fuse_b": jnp.zeros((ctd,), jnp.float32),
        "view_fuse_w": nrm((8 * 8 * 2 * ech, pose), sc(8 * 8 * 2 * ech)),
        "view_fuse_b": jnp.zeros((pose,), jnp.float32),
        "combine_w": nrm((sd + ctd, 2 * ech), sc(sd + ctd)),
        "combine_b": jnp.zeros((2 * ech,), jnp.float32),
        # decoders: ConvTranspose weight stored as (Cin, kh*kw*Cout) for the GEMM+col2im path
        "dec_w": nrm((2, ech, dec_n), sc(ech)),
        "dec_b": jnp.zeros((2, c_img), jnp.float32),
        "posterior": {
            "wx": nrm((pose, rnn_h), sc(pose)),
            "b": jnp.zeros((rnn_h,), jnp.float32),
            "wh": nrm((rnn_h, rnn_h), sc(rnn_h)),
            # fused heads [mu | logvar | cluster logits]
            "w_heads": nrm((rnn_h, 2 * gd + nc), sc(rnn_h)),
            "b_heads": jnp.zeros((2 * gd + nc,), jnp.float32),
        },
        "init_state": {
            "w1": nrm((pose * cfg["n_past"], 32), sc(pose * cfg["n_past"])),
            "b1": jnp.zeros((32,), jnp.float32),
            "w2": nrm((32, 2 * sd), sc(32)),
            "b2": jnp.zeros((2 * sd,), jnp.float32),
        },
        # nn.init.normal_(0, 0.01) on state_model weight, zero bias:
        "state_ws": nrm((sd, sd), 0.01),
        "state_wg": nrm((gd, sd), 0.01),
        "state_b": jnp.zeros((sd,), jnp.float32),
        "centroids": nrm((nc, gd), 1.0),
        "c_net_w": nrm((sd, nc), sc(sd)),
        "c_net_b": jnp.zeros((nc,), jnp.float32),
    }


def make_config():
    return {
        "pose": 16, "content": 16, "state_dim": 16, "frames_per_clip": 4,
        "independent_cluster": False, "different_vars": False, "first_frame": False,
        "ct_cond": False, "straight_through": True, "context_substraction": False,
        "gaussian_dim": 16, "n_clusters": 4, "rnn_layers": 1, "tau": 1.0,
        "bidirectional": False, "n_past": 2, "cond_dim": 8,
        "encoder_ps": {"blocks": 1, "channels": [256], "input_size": [16, 16, 3],
                       "down": "conv", "mean_pool": True,
                       "last_conv_size": [256, 8, 8], "pool": False},
        "encoder_ct": {"blocks": 1, "channels": [256], "input_size": [16, 16, 3],
                       "down": "conv", "mean_pool": True,
                       "last_conv_size": [256, 8, 8], "pool": False},
        "decoder": {"blocks": 1, "channels": [3],
                    "first_deconv_size": [256, 8, 8], "up": "deconv"},
    }


if __name__ == "__main__":
    cfg = make_config()
    n_past = cfg["n_past"]
    n_future = cfg["frames_per_clip"] - n_past
    B, fpc, C, H, W = 2, cfg["frames_per_clip"], 3, 16, 16

    key = jax.random.PRNGKey(0)
    kx1, kx2, knoise = jax.random.split(key, 3)
    x1 = jax.random.uniform(kx1, (B, fpc, C, H, W), jnp.float32)
    x2 = jax.random.uniform(kx2, (B, fpc, C, H, W), jnp.float32)
    params = init_params(jax.random.PRNGKey(42), cfg)

    fwd = jax.jit(lambda prm, a, b, k: dbe_forward(prm, cfg, a, b, n_past, n_future, k))
    out = fwd(params, x1, x2, knoise)
    (p1, p2), (mu, logvar), (mu_s0, logvar_s0), (prob1, prob2) = out
    jax.block_until_ready((p1, p2, mu, logvar, mu_s0, logvar_s0, prob1, prob2))

    assert p1.shape == (B, fpc, C, H, W) and p2.shape == (B, fpc, C, H, W)
    assert mu.shape == (B, fpc, cfg["gaussian_dim"]) and logvar.shape == mu.shape
    assert mu_s0.shape == (B, cfg["state_dim"]) and logvar_s0.shape == mu_s0.shape
    assert prob1.shape == (B, fpc - 1, cfg["n_clusters"])
    assert prob2.shape == (B, fpc - 1, cfg["n_clusters"])
    assert bool(jnp.all(jnp.isfinite(p1))) and bool(jnp.all(jnp.isfinite(p2)))
    print("KERNEL_OK")
</pallas_src>

<mosaic_0001>
module attributes {stable_mosaic.version = 11 : i64} {
  func.func @_bmm_kernel(%arg0: i32, %arg1: i32, %arg2: i32, %arg3: memref<1x512x48xbf16, #tpu.memory_space<vmem>>, %arg4: memref<1x48x256xbf16, #tpu.memory_space<vmem>>, %arg5: memref<1x1x256xf32, #tpu.memory_space<vmem>>, %arg6: memref<1x512x256xf32, #tpu.memory_space<vmem>>, %arg7: memref<512x256xf32, #tpu.memory_space<vmem>>) attributes {dimension_semantics = [#tpu.dimension_semantics<parallel>, #tpu.dimension_semantics<parallel>, #tpu.dimension_semantics<arbitrary>], iteration_bounds = array<i64: 4, 1, 1>, scalar_prefetch = 0 : i64, scratch_operands = 1 : i64, tpu.core_type = #tpu.core_type<tc>, window_params = [{transform_indices = @transform_0, window_bounds = array<i64: 1, 512, 48>}, {transform_indices = @transform_1, window_bounds = array<i64: 1, 48, 256>}, {transform_indices = @transform_2, window_bounds = array<i64: 1, 1, 256>}, {transform_indices = @transform_3, window_bounds = array<i64: 1, 512, 256>}]} {
    %c0_i32 = arith.constant 0 : i32
    %0 = arith.cmpi eq, %arg2, %c0_i32 : i32
    %1 = arith.extui %0 : i1 to i32
    %c0_i32_0 = arith.constant 0 : i32
    %2 = arith.cmpi ne, %1, %c0_i32_0 : i32
    scf.if %2 {
      %cst_12 = arith.constant 0.000000e+00 : f32
      %14 = vector.broadcast %cst_12 : f32 to vector<512x256xf32>
      %c0_13 = arith.constant 0 : index
      %c0_14 = arith.constant 0 : index
      %15 = vector.load %arg7[%c0_13, %c0_14] : memref<512x256xf32, #tpu.memory_space<vmem>>, vector<512x256xf32>
      tpu.vector_store %arg7[%c0_13, %c0_14], %14 {strides = array<i32>} : memref<512x256xf32, #tpu.memory_space<vmem>>, vector<512x256xf32>,
    } else {
    }
    %c0 = arith.constant 0 : index
    %c0_1 = arith.constant 0 : index
    %3 = vector.load %arg7[%c0, %c0_1] : memref<512x256xf32, #tpu.memory_space<vmem>>, vector<512x256xf32>
    %c0_2 = arith.constant 0 : index
    %c0_3 = arith.constant 0 : index
    %c0_4 = arith.constant 0 : index
    %4 = vector.load %arg3[%c0_2, %c0_3, %c0_4] : memref<1x512x48xbf16, #tpu.memory_space<vmem>>, vector<1x512x48xbf16>
    %5 = vector.shape_cast %4 : vector<1x512x48xbf16> to vector<512x48xbf16>
    %c0_5 = arith.constant 0 : index
    %c0_6 = arith.constant 0 : index
    %c0_7 = arith.constant 0 : index
    %6 = vector.load %arg4[%c0_5, %c0_6, %c0_7] : memref<1x48x256xbf16, #tpu.memory_space<vmem>>, vector<1x48x256xbf16>
    %7 = vector.shape_cast %6 : vector<1x48x256xbf16> to vector<48x256xbf16>
    %cst = arith.constant dense<0.000000e+00> : vector<512x256xf32>
    %8 = tpu.matmul %5, %7, %cst {dimension_numbers = #tpu.dot_dimension_numbers<[1], [0], [0], [1], [0, 0, 1, 1], [], []>} : vector<512x48xbf16>, vector<48x256xbf16>, vector<512x256xf32> -> vector<512x256xf32>
    %9 = arith.addf %3, %8 : vector<512x256xf32>
    %c0_8 = arith.constant 0 : index
    %c0_9 = arith.constant 0 : index
    %10 = vector.load %arg7[%c0_8, %c0_9] : memref<512x256xf32, #tpu.memory_space<vmem>>, vector<512x256xf32>
    tpu.vector_store %arg7[%c0_8, %c0_9], %9 {strides = array<i32>} : memref<512x256xf32, #tpu.memory_space<vmem>>, vector<512x256xf32>,
    %c0_i32_10 = arith.constant 0 : i32
    %11 = arith.cmpi eq, %arg2, %c0_i32_10 : i32
    %12 = arith.extui %11 : i1 to i32
    %c0_i32_11 = arith.constant 0 : i32
    %13 = arith.cmpi ne, %12, %c0_i32_11 : i32
    scf.if %13 {
      %c0_12 = arith.constant 0 : index
      %c0_13 = arith.constant 0 : index
      %14 = vector.load %arg7[%c0_12, %c0_13] : memref<512x256xf32, #tpu.memory_space<vmem>>, vector<512x256xf32>
      %c0_14 = arith.constant 0 : index
      %c0_15 = arith.constant 0 : index
      %c0_16 = arith.constant 0 : index
      %15 = vector.load %arg5[%c0_14, %c0_15, %c0_16] : memref<1x1x256xf32, #tpu.memory_space<vmem>>, vector<1x1x256xf32>
      %16 = vector.shape_cast %15 : vector<1x1x256xf32> to vector<1x256xf32>
      %17 = vector.broadcast %16 : vector<1x256xf32> to vector<512x256xf32>
      %18 = arith.addf %14, %17 : vector<512x256xf32>
      %cst_17 = arith.constant 0.000000e+00 : f32
      %19 = vector.broadcast %cst_17 : f32 to vector<512x256xf32>
      %20 = arith.cmpf oge, %18, %19 : vector<512x256xf32>
      %cst_18 = arith.constant 2.000000e-01 : f32
      %21 = vector.broadcast %cst_18 : f32 to vector<512x256xf32>
      %22 = arith.mulf %21, %18 : vector<512x256xf32>
      %23 = arith.select %20, %18, %22 : vector<512x256xi1>, vector<512x256xf32>
      %c0_19 = arith.constant 0 : index
      %c0_20 = arith.constant 0 : index
      %c0_21 = arith.constant 0 : index
      %24 = vector.load %arg6[%c0_19, %c0_20, %c0_21] : memref<1x512x256xf32, #tpu.memory_space<vmem>>, vector<1x512x256xf32>
      %25 = vector.shape_cast %24 : vector<1x512x256xf32> to vector<512x256xf32>
      %26 = vector.shape_cast %23 : vector<512x256xf32> to vector<1x512x256xf32>
      tpu.vector_store %arg6[%c0_19, %c0_20, %c0_21], %26 {strides = array<i32>} : memref<1x512x256xf32, #tpu.memory_space<vmem>>, vector<1x512x256xf32>,
    } else {
    }
    return
  }
  func.func @transform_0(%arg0: i32, %arg1: i32, %arg2: i32) -> (i32, i32, i32) {
    %c0_i32 = arith.constant 0 : i32
    return %arg0, %arg1, %arg2 : i32, i32, i32
  }
  func.func @transform_1(%arg0: i32, %arg1: i32, %arg2: i32) -> (i32, i32, i32) {
    %c0_i32 = arith.constant 0 : i32
    %c0_i32_0 = arith.constant 0 : i32
    return %arg0, %arg2, %c0_i32 : i32, i32, i32
  }
  func.func @transform_2(%arg0: i32, %arg1: i32, %arg2: i32) -> (i32, i32, i32) {
    %c0_i32 = arith.constant 0 : i32
    %c0_i32_0 = arith.constant 0 : i32
    %c0_i32_1 = arith.constant 0 : i32
    return %arg0, %c0_i32, %c0_i32_0 : i32, i32, i32
  }
  func.func @transform_3(%arg0: i32, %arg1: i32, %arg2: i32) -> (i32, i32, i32) {
    %c0_i32 = arith.constant 0 : i32
    %c0_i32_0 = arith.constant 0 : i32
    return %arg0, %arg1, %c0_i32 : i32, i32, i32
  }
}

module attributes {stable_mosaic.version = 11 : i64} {
  func.func @_bmm_kernel(%arg0: i32, %arg1: i32, %arg2: i32, %arg3: memref<1x8x4096xbf16, #tpu.memory_space<vmem>>, %arg4: memref<1x4096x16xbf16, #tpu.memory_space<vmem>>, %arg5: memref<1x1x16xf32, #tpu.memory_space<vmem>>, %arg6: memref<1x8x16xf32, #tpu.memory_space<vmem>>, %arg7: memref<8x16xf32, #tpu.memory_space<vmem>>) attributes {dimension_semantics = [#tpu.dimension_semantics<parallel>, #tpu.dimension_semantics<parallel>, #tpu.dimension_semantics<arbitrary>], iteration_bounds = array<i64: 1, 1, 8>, scalar_prefetch = 0 : i64, scratch_operands = 1 : i64, tpu.core_type = #tpu.core_type<tc>, window_params = [{transform_indices = @transform_0, window_bounds = array<i64: 1, 8, 4096>}, {transform_indices = @transform_1, window_bounds = array<i64: 1, 4096, 16>}, {transform_indices = @transform_2, window_bounds = array<i64: 1, 1, 16>}, {transform_indices = @transform_3, window_bounds = array<i64: 1, 8, 16>}]} {
    %c0_i32 = arith.constant 0 : i32
    %0 = arith.cmpi eq, %arg2, %c0_i32 : i32
    %1 = arith.extui %0 : i1 to i32
    %c0_i32_0 = arith.constant 0 : i32
    %2 = arith.cmpi ne, %1, %c0_i32_0 : i32
    scf.if %2 {
      %cst_11 = arith.constant 0.000000e+00 : f32
      %14 = vector.broadcast %cst_11 : f32 to vector<8x16xf32>
      %c0_12 = arith.constant 0 : index
      %c0_13 = arith.constant 0 : index
      %15 = vector.load %arg7[%c0_12, %c0_13] : memref<8x16xf32, #tpu.memory_space<vmem>>, vector<8x16xf32>
      tpu.vector_store %arg7[%c0_12, %c0_13], %14 {strides = array<i32>} : memref<8x16xf32, #tpu.memory_space<vmem>>, vector<8x16xf32>,
    } else {
    }
    %c0 = arith.constant 0 : index
    %c0_1 = arith.constant 0 : index
    %3 = vector.load %arg7[%c0, %c0_1] : memref<8x16xf32, #tpu.memory_space<vmem>>, vector<8x16xf32>
    %c0_2 = arith.constant 0 : index
    %c0_3 = arith.constant 0 : index
    %c0_4 = arith.constant 0 : index
    %4 = vector.load %arg3[%c0_2, %c0_3, %c0_4] : memref<1x8x4096xbf16, #tpu.memory_space<vmem>>, vector<1x8x4096xbf16>
    %5 = vector.shape_cast %4 : vector<1x8x4096xbf16> to vector<8x4096xbf16>
    %c0_5 = arith.constant 0 : index
    %c0_6 = arith.constant 0 : index
    %c0_7 = arith.constant 0 : index
    %6 = vector.load %arg4[%c0_5, %c0_6, %c0_7] : memref<1x4096x16xbf16, #tpu.memory_space<vmem>>, vector<1x4096x16xbf16>
    %7 = vector.shape_cast %6 : vector<1x4096x16xbf16> to vector<4096x16xbf16>
    %cst = arith.constant dense<0.000000e+00> : vector<8x16xf32>
    %8 = tpu.matmul %5, %7, %cst {dimension_numbers = #tpu.dot_dimension_numbers<[1], [0], [0], [1], [0, 0, 1, 1], [], []>} : vector<8x4096xbf16>, vector<4096x16xbf16>, vector<8x16xf32> -> vector<8x16xf32>
    %9 = arith.addf %3, %8 : vector<8x16xf32>
    %c0_8 = arith.constant 0 : index
    %c0_9 = arith.constant 0 : index
    %10 = vector.load %arg7[%c0_8, %c0_9] : memref<8x16xf32, #tpu.memory_space<vmem>>, vector<8x16xf32>
    tpu.vector_store %arg7[%c0_8, %c0_9], %9 {strides = array<i32>} : memref<8x16xf32, #tpu.memory_space<vmem>>, vector<8x16xf32>,
    %c7_i32 = arith.constant 7 : i32
    %11 = arith.cmpi eq, %arg2, %c7_i32 : i32
    %12 = arith.extui %11 : i1 to i32
    %c0_i32_10 = arith.constant 0 : i32
    %13 = arith.cmpi ne, %12, %c0_i32_10 : i32
    scf.if %13 {
      %c0_11 = arith.constant 0 : index
      %c0_12 = arith.constant 0 : index
      %14 = vector.load %arg7[%c0_11, %c0_12] : memref<8x16xf32, #tpu.memory_space<vmem>>, vector<8x16xf32>
      %c0_13 = arith.constant 0 : index
      %c0_14 = arith.constant 0 : index
      %c0_15 = arith.constant 0 : index
      %15 = vector.load %arg5[%c0_13, %c0_14, %c0_15] : memref<1x1x16xf32, #tpu.memory_space<vmem>>, vector<1x1x16xf32>
      %16 = vector.shape_cast %15 : vector<1x1x16xf32> to vector<1x16xf32>
      %17 = vector.broadcast %16 : vector<1x16xf32> to vector<8x16xf32>
      %18 = arith.addf %14, %17 : vector<8x16xf32>
      %cst_16 = arith.constant 0.000000e+00 : f32
      %19 = vector.broadcast %cst_16 : f32 to vector<8x16xf32>
      %20 = arith.cmpf oge, %18, %19 : vector<8x16xf32>
      %cst_17 = arith.constant 2.000000e-01 : f32
      %21 = vector.broadcast %cst_17 : f32 to vector<8x16xf32>
      %22 = arith.mulf %21, %18 : vector<8x16xf32>
      %23 = arith.select %20, %18, %22 : vector<8x16xi1>, vector<8x16xf32>
      %c0_18 = arith.constant 0 : index
      %c0_19 = arith.constant 0 : index
      %c0_20 = arith.constant 0 : index
      %24 = vector.load %arg6[%c0_18, %c0_19, %c0_20] : memref<1x8x16xf32, #tpu.memory_space<vmem>>, vector<1x8x16xf32>
      %25 = vector.shape_cast %24 : vector<1x8x16xf32> to vector<8x16xf32>
      %26 = vector.shape_cast %23 : vector<8x16xf32> to vector<1x8x16xf32>
      tpu.vector_store %arg6[%c0_18, %c0_19, %c0_20], %26 {strides = array<i32>} : memref<1x8x16xf32, #tpu.memory_space<vmem>>, vector<1x8x16xf32>,
    } else {
    }
    return
  }
  func.func @transform_0(%arg0: i32, %arg1: i32, %arg2: i32) -> (i32, i32, i32) {
    %c0_i32 = arith.constant 0 : i32
    return %arg0, %arg1, %arg2 : i32, i32, i32
  }
  func.func @transform_1(%arg0: i32, %arg1: i32, %arg2: i32) -> (i32, i32, i32) {
    %c0_i32 = arith.constant 0 : i32
    %c0_i32_0 = arith.constant 0 : i32
    return %arg0, %arg2, %c0_i32 : i32, i32, i32
  }
  func.func @transform_2(%arg0: i32, %arg1: i32, %arg2: i32) -> (i32, i32, i32) {
    %c0_i32 = arith.constant 0 : i32
    %c0_i32_0 = arith.constant 0 : i32
    %c0_i32_1 = arith.constant 0 : i32
    return %arg0, %c0_i32, %c0_i32_0 : i32, i32, i32
  }
  func.func @transform_3(%arg0: i32, %arg1: i32, %arg2: i32) -> (i32, i32, i32) {
    %c0_i32 = arith.constant 0 : i32
    %c0_i32_0 = arith.constant 0 : i32
    return %arg0, %arg1, %c0_i32 : i32, i32, i32
  }
}

module attributes {stable_mosaic.version = 11 : i64} {
  func.func @_bmm_kernel(%arg0: i32, %arg1: i32, %arg2: i32, %arg3: memref<1x8x16xbf16, #tpu.memory_space<vmem>>, %arg4: memref<1x16x32xbf16, #tpu.memory_space<vmem>>, %arg5: memref<1x1x32xf32, #tpu.memory_space<vmem>>, %arg6: memref<1x8x32xf32, #tpu.memory_space<vmem>>, %arg7: memref<8x32xf32, #tpu.memory_space<vmem>>) attributes {dimension_semantics = [#tpu.dimension_semantics<parallel>, #tpu.dimension_semantics<parallel>, #tpu.dimension_semantics<arbitrary>], iteration_bounds = array<i64: 1, 1, 1>, scalar_prefetch = 0 : i64, scratch_operands = 1 : i64, tpu.core_type = #tpu.core_type<tc>, window_params = [{transform_indices = @transform_0, window_bounds = array<i64: 1, 8, 16>}, {transform_indices = @transform_1, window_bounds = array<i64: 1, 16, 32>}, {transform_indices = @transform_2, window_bounds = array<i64: 1, 1, 32>}, {transform_indices = @transform_3, window_bounds = array<i64: 1, 8, 32>}]} {
    %c0_i32 = arith.constant 0 : i32
    %0 = arith.cmpi eq, %arg2, %c0_i32 : i32
    %1 = arith.extui %0 : i1 to i32
    %c0_i32_0 = arith.constant 0 : i32
    %2 = arith.cmpi ne, %1, %c0_i32_0 : i32
    scf.if %2 {
      %cst_12 = arith.constant 0.000000e+00 : f32
      %14 = vector.broadcast %cst_12 : f32 to vector<8x32xf32>
      %c0_13 = arith.constant 0 : index
      %c0_14 = arith.constant 0 : index
      %15 = vector.load %arg7[%c0_13, %c0_14] : memref<8x32xf32, #tpu.memory_space<vmem>>, vector<8x32xf32>
      tpu.vector_store %arg7[%c0_13, %c0_14], %14 {strides = array<i32>} : memref<8x32xf32, #tpu.memory_space<vmem>>, vector<8x32xf32>,
    } else {
    }
    %c0 = arith.constant 0 : index
    %c0_1 = arith.constant 0 : index
    %3 = vector.load %arg7[%c0, %c0_1] : memref<8x32xf32, #tpu.memory_space<vmem>>, vector<8x32xf32>
    %c0_2 = arith.constant 0 : index
    %c0_3 = arith.constant 0 : index
    %c0_4 = arith.constant 0 : index
    %4 = vector.load %arg3[%c0_2, %c0_3, %c0_4] : memref<1x8x16xbf16, #tpu.memory_space<vmem>>, vector<1x8x16xbf16>
    %5 = vector.shape_cast %4 : vector<1x8x16xbf16> to vector<8x16xbf16>
    %c0_5 = arith.constant 0 : index
    %c0_6 = arith.constant 0 : index
    %c0_7 = arith.constant 0 : index
    %6 = vector.load %arg4[%c0_5, %c0_6, %c0_7] : memref<1x16x32xbf16, #tpu.memory_space<vmem>>, vector<1x16x32xbf16>
    %7 = vector.shape_cast %6 : vector<1x16x32xbf16> to vector<16x32xbf16>
    %cst = arith.constant dense<0.000000e+00> : vector<8x32xf32>
    %8 = tpu.matmul %5, %7, %cst {dimension_numbers = #tpu.dot_dimension_numbers<[1], [0], [0], [1], [0, 0, 1, 1], [], []>} : vector<8x16xbf16>, vector<16x32xbf16>, vector<8x32xf32> -> vector<8x32xf32>
    %9 = arith.addf %3, %8 : vector<8x32xf32>
    %c0_8 = arith.constant 0 : index
    %c0_9 = arith.constant 0 : index
    %10 = vector.load %arg7[%c0_8, %c0_9] : memref<8x32xf32, #tpu.memory_space<vmem>>, vector<8x32xf32>
    tpu.vector_store %arg7[%c0_8, %c0_9], %9 {strides = array<i32>} : memref<8x32xf32, #tpu.memory_space<vmem>>, vector<8x32xf32>,
    %c0_i32_10 = arith.constant 0 : i32
    %11 = arith.cmpi eq, %arg2, %c0_i32_10 : i32
    %12 = arith.extui %11 : i1 to i32
    %c0_i32_11 = arith.constant 0 : i32
    %13 = arith.cmpi ne, %12, %c0_i32_11 : i32
    scf.if %13 {
      %c0_12 = arith.constant 0 : index
      %c0_13 = arith.constant 0 : index
      %14 = vector.load %arg7[%c0_12, %c0_13] : memref<8x32xf32, #tpu.memory_space<vmem>>, vector<8x32xf32>
      %c0_14 = arith.constant 0 : index
      %c0_15 = arith.constant 0 : index
      %c0_16 = arith.constant 0 : index
      %15 = vector.load %arg5[%c0_14, %c0_15, %c0_16] : memref<1x1x32xf32, #tpu.memory_space<vmem>>, vector<1x1x32xf32>
      %16 = vector.shape_cast %15 : vector<1x1x32xf32> to vector<1x32xf32>
      %17 = vector.broadcast %16 : vector<1x32xf32> to vector<8x32xf32>
      %18 = arith.addf %14, %17 : vector<8x32xf32>
      %c0_17 = arith.constant 0 : index
      %c0_18 = arith.constant 0 : index
      %c0_19 = arith.constant 0 : index
      %19 = vector.load %arg6[%c0_17, %c0_18, %c0_19] : memref<1x8x32xf32, #tpu.memory_space<vmem>>, vector<1x8x32xf32>
      %20 = vector.shape_cast %19 : vector<1x8x32xf32> to vector<8x32xf32>
      %21 = vector.shape_cast %18 : vector<8x32xf32> to vector<1x8x32xf32>
      tpu.vector_store %arg6[%c0_17, %c0_18, %c0_19], %21 {strides = array<i32>} : memref<1x8x32xf32, #tpu.memory_space<vmem>>, vector<1x8x32xf32>,
    } else {
    }
    return
  }
  func.func @transform_0(%arg0: i32, %arg1: i32, %arg2: i32) -> (i32, i32, i32) {
    %c0_i32 = arith.constant 0 : i32
    return %arg0, %arg1, %arg2 : i32, i32, i32
  }
  func.func @transform_1(%arg0: i32, %arg1: i32, %arg2: i32) -> (i32, i32, i32) {
    %c0_i32 = arith.constant 0 : i32
    %c0_i32_0 = arith.constant 0 : i32
    return %arg0, %arg2, %c0_i32 : i32, i32, i32
  }
  func.func @transform_2(%arg0: i32, %arg1: i32, %arg2: i32) -> (i32, i32, i32) {
    %c0_i32 = arith.constant 0 : i32
    %c0_i32_0 = arith.constant 0 : i32
    %c0_i32_1 = arith.constant 0 : i32
    return %arg0, %c0_i32, %c0_i32_0 : i32, i32, i32
  }
  func.func @transform_3(%arg0: i32, %arg1: i32, %arg2: i32) -> (i32, i32, i32) {
    %c0_i32 = arith.constant 0 : i32
    %c0_i32_0 = arith.constant 0 : i32
    return %arg0, %arg1, %c0_i32 : i32, i32, i32
  }
}

module attributes {stable_mosaic.version = 11 : i64} {
  func.func @_rnn_kernel(%arg0: memref<4x8x32xf32, #tpu.memory_space<vmem>>, %arg1: memref<32x32xf32, #tpu.memory_space<vmem>>, %arg2: memref<4x8x32xf32, #tpu.memory_space<vmem>>) attributes {dimension_semantics = [], scalar_prefetch = 0 : i64, scratch_operands = 0 : i64, tpu.core_type = #tpu.core_type<tc>} {
    %c0 = arith.constant 0 : index
    %c0_0 = arith.constant 0 : index
    %0 = vector.load %arg1[%c0, %c0_0] : memref<32x32xf32, #tpu.memory_space<vmem>>, vector<32x32xf32>
    %cst = arith.constant 0.000000e+00 : f32
    %1 = vector.broadcast %cst : f32 to vector<8x32xf32>
    %c0_1 = arith.constant 0 : index
    %c0_2 = arith.constant 0 : index
    %c0_3 = arith.constant 0 : index
    %2 = vector.load %arg0[%c0_1, %c0_2, %c0_3] : memref<4x8x32xf32, #tpu.memory_space<vmem>>, vector<1x8x32xf32>
    %3 = vector.shape_cast %2 : vector<1x8x32xf32> to vector<8x32xf32>
    %cst_4 = arith.constant dense<0.000000e+00> : vector<8x32xf32>
    %4 = tpu.matmul %1, %0, %cst_4 {dimension_numbers = #tpu.dot_dimension_numbers<[1], [0], [0], [1], [0, 0, 1, 1], [], []>} : vector<8x32xf32>, vector<32x32xf32>, vector<8x32xf32> -> vector<8x32xf32>
    %5 = arith.addf %3, %4 : vector<8x32xf32>
    %6 = math.tanh %5 : vector<8x32xf32>
    %c0_5 = arith.constant 0 : index
    %c0_6 = arith.constant 0 : index
    %c0_7 = arith.constant 0 : index
    %7 = vector.load %arg2[%c0_5, %c0_6, %c0_7] : memref<4x8x32xf32, #tpu.memory_space<vmem>>, vector<1x8x32xf32>
    %8 = vector.shape_cast %7 : vector<1x8x32xf32> to vector<8x32xf32>
    %9 = vector.shape_cast %6 : vector<8x32xf32> to vector<1x8x32xf32>
    tpu.vector_store %arg2[%c0_5, %c0_6, %c0_7], %9 {strides = array<i32>} : memref<4x8x32xf32, #tpu.memory_space<vmem>>, vector<1x8x32xf32>,
    %c1 = arith.constant 1 : index
    %c0_8 = arith.constant 0 : index
    %c0_9 = arith.constant 0 : index
    %10 = vector.load %arg0[%c1, %c0_8, %c0_9] : memref<4x8x32xf32, #tpu.memory_space<vmem>>, vector<1x8x32xf32>
    %11 = vector.shape_cast %10 : vector<1x8x32xf32> to vector<8x32xf32>
    %cst_10 = arith.constant dense<0.000000e+00> : vector<8x32xf32>
    %12 = tpu.matmul %6, %0, %cst_10 {dimension_numbers = #tpu.dot_dimension_numbers<[1], [0], [0], [1], [0, 0, 1, 1], [], []>} : vector<8x32xf32>, vector<32x32xf32>, vector<8x32xf32> -> vector<8x32xf32>
    %13 = arith.addf %11, %12 : vector<8x32xf32>
    %14 = math.tanh %13 : vector<8x32xf32>
    %c1_11 = arith.constant 1 : index
    %c0_12 = arith.constant 0 : index
    %c0_13 = arith.constant 0 : index
    %15 = vector.load %arg2[%c1_11, %c0_12, %c0_13] : memref<4x8x32xf32, #tpu.memory_space<vmem>>, vector<1x8x32xf32>
    %16 = vector.shape_cast %15 : vector<1x8x32xf32> to vector<8x32xf32>
    %17 = vector.shape_cast %14 : vector<8x32xf32> to vector<1x8x32xf32>
    tpu.vector_store %arg2[%c1_11, %c0_12, %c0_13], %17 {strides = array<i32>} : memref<4x8x32xf32, #tpu.memory_space<vmem>>, vector<1x8x32xf32>,
    %c2 = arith.constant 2 : index
    %c0_14 = arith.constant 0 : index
    %c0_15 = arith.constant 0 : index
    %18 = vector.load %arg0[%c2, %c0_14, %c0_15] : memref<4x8x32xf32, #tpu.memory_space<vmem>>, vector<1x8x32xf32>
    %19 = vector.shape_cast %18 : vector<1x8x32xf32> to vector<8x32xf32>
    %cst_16 = arith.constant dense<0.000000e+00> : vector<8x32xf32>
    %20 = tpu.matmul %14, %0, %cst_16 {dimension_numbers = #tpu.dot_dimension_numbers<[1], [0], [0], [1], [0, 0, 1, 1], [], []>} : vector<8x32xf32>, vector<32x32xf32>, vector<8x32xf32> -> vector<8x32xf32>
    %21 = arith.addf %19, %20 : vector<8x32xf32>
    %22 = math.tanh %21 : vector<8x32xf32>
    %c2_17 = arith.constant 2 : index
    %c0_18 = arith.constant 0 : index
    %c0_19 = arith.constant 0 : index
    %23 = vector.load %arg2[%c2_17, %c0_18, %c0_19] : memref<4x8x32xf32, #tpu.memory_space<vmem>>, vector<1x8x32xf32>
    %24 = vector.shape_cast %23 : vector<1x8x32xf32> to vector<8x32xf32>
    %25 = vector.shape_cast %22 : vector<8x32xf32> to vector<1x8x32xf32>
    tpu.vector_store %arg2[%c2_17, %c0_18, %c0_19], %25 {strides = array<i32>} : memref<4x8x32xf32, #tpu.memory_space<vmem>>, vector<1x8x32xf32>,
    %c3 = arith.constant 3 : index
    %c0_20 = arith.constant 0 : index
    %c0_21 = arith.constant 0 : index
    %26 = vector.load %arg0[%c3, %c0_20, %c0_21] : memref<4x8x32xf32, #tpu.memory_space<vmem>>, vector<1x8x32xf32>
    %27 = vector.shape_cast %26 : vector<1x8x32xf32> to vector<8x32xf32>
    %cst_22 = arith.constant dense<0.000000e+00> : vector<8x32xf32>
    %28 = tpu.matmul %22, %0, %cst_22 {dimension_numbers = #tpu.dot_dimension_numbers<[1], [0], [0], [1], [0, 0, 1, 1], [], []>} : vector<8x32xf32>, vector<32x32xf32>, vector<8x32xf32> -> vector<8x32xf32>
    %29 = arith.addf %27, %28 : vector<8x32xf32>
    %30 = math.tanh %29 : vector<8x32xf32>
    %c3_23 = arith.constant 3 : index
    %c0_24 = arith.constant 0 : index
    %c0_25 = arith.constant 0 : index
    %31 = vector.load %arg2[%c3_23, %c0_24, %c0_25] : memref<4x8x32xf32, #tpu.memory_space<vmem>>, vector<1x8x32xf32>
    %32 = vector.shape_cast %31 : vector<1x8x32xf32> to vector<8x32xf32>
    %33 = vector.shape_cast %30 : vector<8x32xf32> to vector<1x8x32xf32>
    tpu.vector_store %arg2[%c3_23, %c0_24, %c0_25], %33 {strides = array<i32>} : memref<4x8x32xf32, #tpu.memory_space<vmem>>, vector<1x8x32xf32>,
    return
  }
}

module attributes {stable_mosaic.version = 11 : i64} {
  func.func @_bmm_kernel(%arg0: i32, %arg1: i32, %arg2: i32, %arg3: memref<1x8x32xbf16, #tpu.memory_space<vmem>>, %arg4: memref<1x32x36xbf16, #tpu.memory_space<vmem>>, %arg5: memref<1x1x36xf32, #tpu.memory_space<vmem>>, %arg6: memref<1x8x36xf32, #tpu.memory_space<vmem>>, %arg7: memref<8x36xf32, #tpu.memory_space<vmem>>) attributes {dimension_semantics = [#tpu.dimension_semantics<parallel>, #tpu.dimension_semantics<parallel>, #tpu.dimension_semantics<arbitrary>], iteration_bounds = array<i64: 1, 1, 1>, scalar_prefetch = 0 : i64, scratch_operands = 1 : i64, tpu.core_type = #tpu.core_type<tc>, window_params = [{transform_indices = @transform_0, window_bounds = array<i64: 1, 8, 32>}, {transform_indices = @transform_1, window_bounds = array<i64: 1, 32, 36>}, {transform_indices = @transform_2, window_bounds = array<i64: 1, 1, 36>}, {transform_indices = @transform_3, window_bounds = array<i64: 1, 8, 36>}]} {
    %c0_i32 = arith.constant 0 : i32
    %0 = arith.cmpi eq, %arg2, %c0_i32 : i32
    %1 = arith.extui %0 : i1 to i32
    %c0_i32_0 = arith.constant 0 : i32
    %2 = arith.cmpi ne, %1, %c0_i32_0 : i32
    scf.if %2 {
      %cst_12 = arith.constant 0.000000e+00 : f32
      %14 = vector.broadcast %cst_12 : f32 to vector<8x36xf32>
      %c0_13 = arith.constant 0 : index
      %c0_14 = arith.constant 0 : index
      %15 = vector.load %arg7[%c0_13, %c0_14] : memref<8x36xf32, #tpu.memory_space<vmem>>, vector<8x36xf32>
      tpu.vector_store %arg7[%c0_13, %c0_14], %14 {strides = array<i32>} : memref<8x36xf32, #tpu.memory_space<vmem>>, vector<8x36xf32>,
    } else {
    }
    %c0 = arith.constant 0 : index
    %c0_1 = arith.constant 0 : index
    %3 = vector.load %arg7[%c0, %c0_1] : memref<8x36xf32, #tpu.memory_space<vmem>>, vector<8x36xf32>
    %c0_2 = arith.constant 0 : index
    %c0_3 = arith.constant 0 : index
    %c0_4 = arith.constant 0 : index
    %4 = vector.load %arg3[%c0_2, %c0_3, %c0_4] : memref<1x8x32xbf16, #tpu.memory_space<vmem>>, vector<1x8x32xbf16>
    %5 = vector.shape_cast %4 : vector<1x8x32xbf16> to vector<8x32xbf16>
    %c0_5 = arith.constant 0 : index
    %c0_6 = arith.constant 0 : index
    %c0_7 = arith.constant 0 : index
    %6 = vector.load %arg4[%c0_5, %c0_6, %c0_7] : memref<1x32x36xbf16, #tpu.memory_space<vmem>>, vector<1x32x36xbf16>
    %7 = vector.shape_cast %6 : vector<1x32x36xbf16> to vector<32x36xbf16>
    %cst = arith.constant dense<0.000000e+00> : vector<8x36xf32>
    %8 = tpu.matmul %5, %7, %cst {dimension_numbers = #tpu.dot_dimension_numbers<[1], [0], [0], [1], [0, 0, 1, 1], [], []>} : vector<8x32xbf16>, vector<32x36xbf16>, vector<8x36xf32> -> vector<8x36xf32>
    %9 = arith.addf %3, %8 : vector<8x36xf32>
    %c0_8 = arith.constant 0 : index
    %c0_9 = arith.constant 0 : index
    %10 = vector.load %arg7[%c0_8, %c0_9] : memref<8x36xf32, #tpu.memory_space<vmem>>, vector<8x36xf32>
    tpu.vector_store %arg7[%c0_8, %c0_9], %9 {strides = array<i32>} : memref<8x36xf32, #tpu.memory_space<vmem>>, vector<8x36xf32>,
    %c0_i32_10 = arith.constant 0 : i32
    %11 = arith.cmpi eq, %arg2, %c0_i32_10 : i32
    %12 = arith.extui %11 : i1 to i32
    %c0_i32_11 = arith.constant 0 : i32
    %13 = arith.cmpi ne, %12, %c0_i32_11 : i32
    scf.if %13 {
      %c0_12 = arith.constant 0 : index
      %c0_13 = arith.constant 0 : index
      %14 = vector.load %arg7[%c0_12, %c0_13] : memref<8x36xf32, #tpu.memory_space<vmem>>, vector<8x36xf32>
      %c0_14 = arith.constant 0 : index
      %c0_15 = arith.constant 0 : index
      %c0_16 = arith.constant 0 : index
      %15 = vector.load %arg5[%c0_14, %c0_15, %c0_16] : memref<1x1x36xf32, #tpu.memory_space<vmem>>, vector<1x1x36xf32>
      %16 = vector.shape_cast %15 : vector<1x1x36xf32> to vector<1x36xf32>
      %17 = vector.broadcast %16 : vector<1x36xf32> to vector<8x36xf32>
      %18 = arith.addf %14, %17 : vector<8x36xf32>
      %c0_17 = arith.constant 0 : index
      %c0_18 = arith.constant 0 : index
      %c0_19 = arith.constant 0 : index
      %19 = vector.load %arg6[%c0_17, %c0_18, %c0_19] : memref<1x8x36xf32, #tpu.memory_space<vmem>>, vector<1x8x36xf32>
      %20 = vector.shape_cast %19 : vector<1x8x36xf32> to vector<8x36xf32>
      %21 = vector.shape_cast %18 : vector<8x36xf32> to vector<1x8x36xf32>
      tpu.vector_store %arg6[%c0_17, %c0_18, %c0_19], %21 {strides = array<i32>} : memref<1x8x36xf32, #tpu.memory_space<vmem>>, vector<1x8x36xf32>,
    } else {
    }
    return
  }
  func.func @transform_0(%arg0: i32, %arg1: i32, %arg2: i32) -> (i32, i32, i32) {
    %c0_i32 = arith.constant 0 : i32
    return %arg0, %arg1, %arg2 : i32, i32, i32
  }
  func.func @transform_1(%arg0: i32, %arg1: i32, %arg2: i32) -> (i32, i32, i32) {
    %c0_i32 = arith.constant 0 : i32
    %c0_i32_0 = arith.constant 0 : i32
    return %arg0, %arg2, %c0_i32 : i32, i32, i32
  }
  func.func @transform_2(%arg0: i32, %arg1: i32, %arg2: i32) -> (i32, i32, i32) {
    %c0_i32 = arith.constant 0 : i32
    %c0_i32_0 = arith.constant 0 : i32
    %c0_i32_1 = arith.constant 0 : i32
    return %arg0, %c0_i32, %c0_i32_0 : i32, i32, i32
  }
  func.func @transform_3(%arg0: i32, %arg1: i32, %arg2: i32) -> (i32, i32, i32) {
    %c0_i32 = arith.constant 0 : i32
    %c0_i32_0 = arith.constant 0 : i32
    return %arg0, %arg1, %c0_i32 : i32, i32, i32
  }
}

module attributes {stable_mosaic.version = 11 : i64} {
  func.func @_gauss_mlp_kernel(%arg0: memref<8x32xf32, #tpu.memory_space<vmem>>, %arg1: memref<32x32xf32, #tpu.memory_space<vmem>>, %arg2: memref<1x32xf32, #tpu.memory_space<vmem>>, %arg3: memref<32x32xf32, #tpu.memory_space<vmem>>, %arg4: memref<1x32xf32, #tpu.memory_space<vmem>>, %arg5: memref<8x32xf32, #tpu.memory_space<vmem>>) attributes {dimension_semantics = [], scalar_prefetch = 0 : i64, scratch_operands = 0 : i64, tpu.core_type = #tpu.core_type<tc>} {
    %c0 = arith.constant 0 : index
    %c0_0 = arith.constant 0 : index
    %0 = vector.load %arg0[%c0, %c0_0] : memref<8x32xf32, #tpu.memory_space<vmem>>, vector<8x32xf32>
    %c0_1 = arith.constant 0 : index
    %c0_2 = arith.constant 0 : index
    %1 = vector.load %arg1[%c0_1, %c0_2] : memref<32x32xf32, #tpu.memory_space<vmem>>, vector<32x32xf32>
    %cst = arith.constant dense<0.000000e+00> : vector<8x32xf32>
    %2 = tpu.matmul %0, %1, %cst {dimension_numbers = #tpu.dot_dimension_numbers<[1], [0], [0], [1], [0, 0, 1, 1], [], []>} : vector<8x32xf32>, vector<32x32xf32>, vector<8x32xf32> -> vector<8x32xf32>
    %c0_3 = arith.constant 0 : index
    %c0_4 = arith.constant 0 : index
    %3 = vector.load %arg2[%c0_3, %c0_4] : memref<1x32xf32, #tpu.memory_space<vmem>>, vector<1x32xf32>
    %4 = vector.broadcast %3 : vector<1x32xf32> to vector<8x32xf32>
    %5 = arith.addf %2, %4 : vector<8x32xf32>
    %cst_5 = arith.constant 0.000000e+00 : f32
    %6 = vector.broadcast %cst_5 : f32 to vector<8x32xf32>
    %7 = arith.cmpf oge, %5, %6 : vector<8x32xf32>
    %cst_6 = arith.constant 2.000000e-01 : f32
    %8 = vector.broadcast %cst_6 : f32 to vector<8x32xf32>
    %9 = arith.mulf %8, %5 : vector<8x32xf32>
    %10 = arith.select %7, %5, %9 : vector<8x32xi1>, vector<8x32xf32>
    %c0_7 = arith.constant 0 : index
    %c0_8 = arith.constant 0 : index
    %11 = vector.load %arg3[%c0_7, %c0_8] : memref<32x32xf32, #tpu.memory_space<vmem>>, vector<32x32xf32>
    %cst_9 = arith.constant dense<0.000000e+00> : vector<8x32xf32>
    %12 = tpu.matmul %10, %11, %cst_9 {dimension_numbers = #tpu.dot_dimension_numbers<[1], [0], [0], [1], [0, 0, 1, 1], [], []>} : vector<8x32xf32>, vector<32x32xf32>, vector<8x32xf32> -> vector<8x32xf32>
    %c0_10 = arith.constant 0 : index
    %c0_11 = arith.constant 0 : index
    %13 = vector.load %arg4[%c0_10, %c0_11] : memref<1x32xf32, #tpu.memory_space<vmem>>, vector<1x32xf32>
    %14 = vector.broadcast %13 : vector<1x32xf32> to vector<8x32xf32>
    %15 = arith.addf %12, %14 : vector<8x32xf32>
    %c0_12 = arith.constant 0 : index
    %c0_13 = arith.constant 0 : index
    %16 = vector.load %arg5[%c0_12, %c0_13] : memref<8x32xf32, #tpu.memory_space<vmem>>, vector<8x32xf32>
    tpu.vector_store %arg5[%c0_12, %c0_13], %15 {strides = array<i32>} : memref<8x32xf32, #tpu.memory_space<vmem>>, vector<8x32xf32>,
    return
  }
}

module attributes {stable_mosaic.version = 11 : i64} {
  func.func @_state_kernel(%arg0: memref<8x16xf32, #tpu.memory_space<vmem>>, %arg1: memref<4x8x16xf32, #tpu.memory_space<vmem>>, %arg2: memref<16x16xf32, #tpu.memory_space<vmem>>, %arg3: memref<16x16xf32, #tpu.memory_space<vmem>>, %arg4: memref<1x16xf32, #tpu.memory_space<vmem>>, %arg5: memref<4x8x16xf32, #tpu.memory_space<vmem>>) attributes {dimension_semantics = [], scalar_prefetch = 0 : i64, scratch_operands = 0 : i64, tpu.core_type = #tpu.core_type<tc>} {
    %c0 = arith.constant 0 : index
    %c0_0 = arith.constant 0 : index
    %0 = vector.load %arg2[%c0, %c0_0] : memref<16x16xf32, #tpu.memory_space<vmem>>, vector<16x16xf32>
    %c0_1 = arith.constant 0 : index
    %c0_2 = arith.constant 0 : index
    %1 = vector.load %arg3[%c0_1, %c0_2] : memref<16x16xf32, #tpu.memory_space<vmem>>, vector<16x16xf32>
    %c0_3 = arith.constant 0 : index
    %c0_4 = arith.constant 0 : index
    %2 = vector.load %arg4[%c0_3, %c0_4] : memref<1x16xf32, #tpu.memory_space<vmem>>, vector<1x16xf32>
    %c0_5 = arith.constant 0 : index
    %c0_6 = arith.constant 0 : index
    %3 = vector.load %arg0[%c0_5, %c0_6] : memref<8x16xf32, #tpu.memory_space<vmem>>, vector<8x16xf32>
    %c0_7 = arith.constant 0 : index
    %c0_8 = arith.constant 0 : index
    %c0_9 = arith.constant 0 : index
    %4 = vector.load %arg5[%c0_7, %c0_8, %c0_9] : memref<4x8x16xf32, #tpu.memory_space<vmem>>, vector<1x8x16xf32>
    %5 = vector.shape_cast %4 : vector<1x8x16xf32> to vector<8x16xf32>
    %6 = vector.shape_cast %3 : vector<8x16xf32> to vector<1x8x16xf32>
    tpu.vector_store %arg5[%c0_7, %c0_8, %c0_9], %6 {strides = array<i32>} : memref<4x8x16xf32, #tpu.memory_space<vmem>>, vector<1x8x16xf32>,
    %cst = arith.constant dense<0.000000e+00> : vector<8x16xf32>
    %7 = tpu.matmul %3, %0, %cst {dimension_numbers = #tpu.dot_dimension_numbers<[1], [0], [0], [1], [0, 0, 1, 1], [], []>} : vector<8x16xf32>, vector<16x16xf32>, vector<8x16xf32> -> vector<8x16xf32>
    %c1 = arith.constant 1 : index
    %c0_10 = arith.constant 0 : index
    %c0_11 = arith.constant 0 : index
    %8 = vector.load %arg1[%c1, %c0_10, %c0_11] : memref<4x8x16xf32, #tpu.memory_space<vmem>>, vector<1x8x16xf32>
    %9 = vector.shape_cast %8 : vector<1x8x16xf32> to vector<8x16xf32>
    %cst_12 = arith.constant dense<0.000000e+00> : vector<8x16xf32>
    %10 = tpu.matmul %9, %1, %cst_12 {dimension_numbers = #tpu.dot_dimension_numbers<[1], [0], [0], [1], [0, 0, 1, 1], [], []>} : vector<8x16xf32>, vector<16x16xf32>, vector<8x16xf32> -> vector<8x16xf32>
    %11 = arith.addf %7, %10 : vector<8x16xf32>
    %12 = vector.broadcast %2 : vector<1x16xf32> to vector<8x16xf32>
    %13 = arith.addf %11, %12 : vector<8x16xf32>
    %c1_13 = arith.constant 1 : index
    %c0_14 = arith.constant 0 : index
    %c0_15 = arith.constant 0 : index
    %14 = vector.load %arg5[%c1_13, %c0_14, %c0_15] : memref<4x8x16xf32, #tpu.memory_space<vmem>>, vector<1x8x16xf32>
    %15 = vector.shape_cast %14 : vector<1x8x16xf32> to vector<8x16xf32>
    %16 = vector.shape_cast %13 : vector<8x16xf32> to vector<1x8x16xf32>
    tpu.vector_store %arg5[%c1_13, %c0_14, %c0_15], %16 {strides = array<i32>} : memref<4x8x16xf32, #tpu.memory_space<vmem>>, vector<1x8x16xf32>,
    %cst_16 = arith.constant dense<0.000000e+00> : vector<8x16xf32>
    %17 = tpu.matmul %13, %0, %cst_16 {dimension_numbers = #tpu.dot_dimension_numbers<[1], [0], [0], [1], [0, 0, 1, 1], [], []>} : vector<8x16xf32>, vector<16x16xf32>, vector<8x16xf32> -> vector<8x16xf32>
    %c2 = arith.constant 2 : index
    %c0_17 = arith.constant 0 : index
    %c0_18 = arith.constant 0 : index
    %18 = vector.load %arg1[%c2, %c0_17, %c0_18] : memref<4x8x16xf32, #tpu.memory_space<vmem>>, vector<1x8x16xf32>
    %19 = vector.shape_cast %18 : vector<1x8x16xf32> to vector<8x16xf32>
    %cst_19 = arith.constant dense<0.000000e+00> : vector<8x16xf32>
    %20 = tpu.matmul %19, %1, %cst_19 {dimension_numbers = #tpu.dot_dimension_numbers<[1], [0], [0], [1], [0, 0, 1, 1], [], []>} : vector<8x16xf32>, vector<16x16xf32>, vector<8x16xf32> -> vector<8x16xf32>
    %21 = arith.addf %17, %20 : vector<8x16xf32>
    %22 = vector.broadcast %2 : vector<1x16xf32> to vector<8x16xf32>
    %23 = arith.addf %21, %22 : vector<8x16xf32>
    %c2_20 = arith.constant 2 : index
    %c0_21 = arith.constant 0 : index
    %c0_22 = arith.constant 0 : index
    %24 = vector.load %arg5[%c2_20, %c0_21, %c0_22] : memref<4x8x16xf32, #tpu.memory_space<vmem>>, vector<1x8x16xf32>
    %25 = vector.shape_cast %24 : vector<1x8x16xf32> to vector<8x16xf32>
    %26 = vector.shape_cast %23 : vector<8x16xf32> to vector<1x8x16xf32>
    tpu.vector_store %arg5[%c2_20, %c0_21, %c0_22], %26 {strides = array<i32>} : memref<4x8x16xf32, #tpu.memory_space<vmem>>, vector<1x8x16xf32>,
    %cst_23 = arith.constant dense<0.000000e+00> : vector<8x16xf32>
    %27 = tpu.matmul %23, %0, %cst_23 {dimension_numbers = #tpu.dot_dimension_numbers<[1], [0], [0], [1], [0, 0, 1, 1], [], []>} : vector<8x16xf32>, vector<16x16xf32>, vector<8x16xf32> -> vector<8x16xf32>
    %c3 = arith.constant 3 : index
    %c0_24 = arith.constant 0 : index
    %c0_25 = arith.constant 0 : index
    %28 = vector.load %arg1[%c3, %c0_24, %c0_25] : memref<4x8x16xf32, #tpu.memory_space<vmem>>, vector<1x8x16xf32>
    %29 = vector.shape_cast %28 : vector<1x8x16xf32> to vector<8x16xf32>
    %cst_26 = arith.constant dense<0.000000e+00> : vector<8x16xf32>
    %30 = tpu.matmul %29, %1, %cst_26 {dimension_numbers = #tpu.dot_dimension_numbers<[1], [0], [0], [1], [0, 0, 1, 1], [], []>} : vector<8x16xf32>, vector<16x16xf32>, vector<8x16xf32> -> vector<8x16xf32>
    %31 = arith.addf %27, %30 : vector<8x16xf32>
    %32 = vector.broadcast %2 : vector<1x16xf32> to vector<8x16xf32>
    %33 = arith.addf %31, %32 : vector<8x16xf32>
    %c3_27 = arith.constant 3 : index
    %c0_28 = arith.constant 0 : index
    %c0_29 = arith.constant 0 : index
    %34 = vector.load %arg5[%c3_27, %c0_28, %c0_29] : memref<4x8x16xf32, #tpu.memory_space<vmem>>, vector<1x8x16xf32>
    %35 = vector.shape_cast %34 : vector<1x8x16xf32> to vector<8x16xf32>
    %36 = vector.shape_cast %33 : vector<8x16xf32> to vector<1x8x16xf32>
    tpu.vector_store %arg5[%c3_27, %c0_28, %c0_29], %36 {strides = array<i32>} : memref<4x8x16xf32, #tpu.memory_space<vmem>>, vector<1x8x16xf32>,
    return
  }
}

module attributes {stable_mosaic.version = 11 : i64} {
  func.func @_bmm_kernel(%arg0: i32, %arg1: i32, %arg2: i32, %arg3: memref<1x6x16xbf16, #tpu.memory_space<vmem>>, %arg4: memref<1x16x4xbf16, #tpu.memory_space<vmem>>, %arg5: memref<1x1x4xf32, #tpu.memory_space<vmem>>, %arg6: memref<1x6x4xf32, #tpu.memory_space<vmem>>, %arg7: memref<6x4xf32, #tpu.memory_space<vmem>>) attributes {dimension_semantics = [#tpu.dimension_semantics<parallel>, #tpu.dimension_semantics<parallel>, #tpu.dimension_semantics<arbitrary>], iteration_bounds = array<i64: 1, 1, 1>, scalar_prefetch = 0 : i64, scratch_operands = 1 : i64, tpu.core_type = #tpu.core_type<tc>, window_params = [{transform_indices = @transform_0, window_bounds = array<i64: 1, 6, 16>}, {transform_indices = @transform_1, window_bounds = array<i64: 1, 16, 4>}, {transform_indices = @transform_2, window_bounds = array<i64: 1, 1, 4>}, {transform_indices = @transform_3, window_bounds = array<i64: 1, 6, 4>}]} {
    %c0_i32 = arith.constant 0 : i32
    %0 = arith.cmpi eq, %arg2, %c0_i32 : i32
    %1 = arith.extui %0 : i1 to i32
    %c0_i32_0 = arith.constant 0 : i32
    %2 = arith.cmpi ne, %1, %c0_i32_0 : i32
    scf.if %2 {
      %cst_12 = arith.constant 0.000000e+00 : f32
      %14 = vector.broadcast %cst_12 : f32 to vector<6x4xf32>
      %c0_13 = arith.constant 0 : index
      %c0_14 = arith.constant 0 : index
      %15 = vector.load %arg7[%c0_13, %c0_14] : memref<6x4xf32, #tpu.memory_space<vmem>>, vector<6x4xf32>
      tpu.vector_store %arg7[%c0_13, %c0_14], %14 {strides = array<i32>} : memref<6x4xf32, #tpu.memory_space<vmem>>, vector<6x4xf32>,
    } else {
    }
    %c0 = arith.constant 0 : index
    %c0_1 = arith.constant 0 : index
    %3 = vector.load %arg7[%c0, %c0_1] : memref<6x4xf32, #tpu.memory_space<vmem>>, vector<6x4xf32>
    %c0_2 = arith.constant 0 : index
    %c0_3 = arith.constant 0 : index
    %c0_4 = arith.constant 0 : index
    %4 = vector.load %arg3[%c0_2, %c0_3, %c0_4] : memref<1x6x16xbf16, #tpu.memory_space<vmem>>, vector<1x6x16xbf16>
    %5 = vector.shape_cast %4 : vector<1x6x16xbf16> to vector<6x16xbf16>
    %c0_5 = arith.constant 0 : index
    %c0_6 = arith.constant 0 : index
    %c0_7 = arith.constant 0 : index
    %6 = vector.load %arg4[%c0_5, %c0_6, %c0_7] : memref<1x16x4xbf16, #tpu.memory_space<vmem>>, vector<1x16x4xbf16>
    %7 = vector.shape_cast %6 : vector<1x16x4xbf16> to vector<16x4xbf16>
    %cst = arith.constant dense<0.000000e+00> : vector<6x4xf32>
    %8 = tpu.matmul %5, %7, %cst {dimension_numbers = #tpu.dot_dimension_numbers<[1], [0], [0], [1], [0, 0, 1, 1], [], []>} : vector<6x16xbf16>, vector<16x4xbf16>, vector<6x4xf32> -> vector<6x4xf32>
    %9 = arith.addf %3, %8 : vector<6x4xf32>
    %c0_8 = arith.constant 0 : index
    %c0_9 = arith.constant 0 : index
    %10 = vector.load %arg7[%c0_8, %c0_9] : memref<6x4xf32, #tpu.memory_space<vmem>>, vector<6x4xf32>
    tpu.vector_store %arg7[%c0_8, %c0_9], %9 {strides = array<i32>} : memref<6x4xf32, #tpu.memory_space<vmem>>, vector<6x4xf32>,
    %c0_i32_10 = arith.constant 0 : i32
    %11 = arith.cmpi eq, %arg2, %c0_i32_10 : i32
    %12 = arith.extui %11 : i1 to i32
    %c0_i32_11 = arith.constant 0 : i32
    %13 = arith.cmpi ne, %12, %c0_i32_11 : i32
    scf.if %13 {
      %c0_12 = arith.constant 0 : index
      %c0_13 = arith.constant 0 : index
      %14 = vector.load %arg7[%c0_12, %c0_13] : memref<6x4xf32, #tpu.memory_space<vmem>>, vector<6x4xf32>
      %c0_14 = arith.constant 0 : index
      %c0_15 = arith.constant 0 : index
      %c0_16 = arith.constant 0 : index
      %15 = vector.load %arg5[%c0_14, %c0_15, %c0_16] : memref<1x1x4xf32, #tpu.memory_space<vmem>>, vector<1x1x4xf32>
      %16 = vector.shape_cast %15 : vector<1x1x4xf32> to vector<1x4xf32>
      %17 = vector.broadcast %16 : vector<1x4xf32> to vector<6x4xf32>
      %18 = arith.addf %14, %17 : vector<6x4xf32>
      %c0_17 = arith.constant 0 : index
      %c0_18 = arith.constant 0 : index
      %c0_19 = arith.constant 0 : index
      %19 = vector.load %arg6[%c0_17, %c0_18, %c0_19] : memref<1x6x4xf32, #tpu.memory_space<vmem>>, vector<1x6x4xf32>
      %20 = vector.shape_cast %19 : vector<1x6x4xf32> to vector<6x4xf32>
      %21 = vector.shape_cast %18 : vector<6x4xf32> to vector<1x6x4xf32>
      tpu.vector_store %arg6[%c0_17, %c0_18, %c0_19], %21 {strides = array<i32>} : memref<1x6x4xf32, #tpu.memory_space<vmem>>, vector<1x6x4xf32>,
    } else {
    }
    return
  }
  func.func @transform_0(%arg0: i32, %arg1: i32, %arg2: i32) -> (i32, i32, i32) {
    %c0_i32 = arith.constant 0 : i32
    return %arg0, %arg1, %arg2 : i32, i32, i32
  }
  func.func @transform_1(%arg0: i32, %arg1: i32, %arg2: i32) -> (i32, i32, i32) {
    %c0_i32 = arith.constant 0 : i32
    %c0_i32_0 = arith.constant 0 : i32
    return %arg0, %arg2, %c0_i32 : i32, i32, i32
  }
  func.func @transform_2(%arg0: i32, %arg1: i32, %arg2: i32) -> (i32, i32, i32) {
    %c0_i32 = arith.constant 0 : i32
    %c0_i32_0 = arith.constant 0 : i32
    %c0_i32_1 = arith.constant 0 : i32
    return %arg0, %c0_i32, %c0_i32_0 : i32, i32, i32
  }
  func.func @transform_3(%arg0: i32, %arg1: i32, %arg2: i32) -> (i32, i32, i32) {
    %c0_i32 = arith.constant 0 : i32
    %c0_i32_0 = arith.constant 0 : i32
    return %arg0, %arg1, %c0_i32 : i32, i32, i32
  }
}

module attributes {stable_mosaic.version = 11 : i64} {
  func.func @_bmm_kernel(%arg0: i32, %arg1: i32, %arg2: i32, %arg3: memref<1x256x512xbf16, #tpu.memory_space<vmem>>, %arg4: memref<1x512x16xbf16, #tpu.memory_space<vmem>>, %arg5: memref<1x1x16xf32, #tpu.memory_space<vmem>>, %arg6: memref<1x256x16xf32, #tpu.memory_space<vmem>>, %arg7: memref<256x16xf32, #tpu.memory_space<vmem>>) attributes {dimension_semantics = [#tpu.dimension_semantics<parallel>, #tpu.dimension_semantics<parallel>, #tpu.dimension_semantics<arbitrary>], iteration_bounds = array<i64: 1, 1, 1>, scalar_prefetch = 0 : i64, scratch_operands = 1 : i64, tpu.core_type = #tpu.core_type<tc>, window_params = [{transform_indices = @transform_0, window_bounds = array<i64: 1, 256, 512>}, {transform_indices = @transform_1, window_bounds = array<i64: 1, 512, 16>}, {transform_indices = @transform_2, window_bounds = array<i64: 1, 1, 16>}, {transform_indices = @transform_3, window_bounds = array<i64: 1, 256, 16>}]} {
    %c0_i32 = arith.constant 0 : i32
    %0 = arith.cmpi eq, %arg2, %c0_i32 : i32
    %1 = arith.extui %0 : i1 to i32
    %c0_i32_0 = arith.constant 0 : i32
    %2 = arith.cmpi ne, %1, %c0_i32_0 : i32
    scf.if %2 {
      %cst_12 = arith.constant 0.000000e+00 : f32
      %14 = vector.broadcast %cst_12 : f32 to vector<256x16xf32>
      %c0_13 = arith.constant 0 : index
      %c0_14 = arith.constant 0 : index
      %15 = vector.load %arg7[%c0_13, %c0_14] : memref<256x16xf32, #tpu.memory_space<vmem>>, vector<256x16xf32>
      tpu.vector_store %arg7[%c0_13, %c0_14], %14 {strides = array<i32>} : memref<256x16xf32, #tpu.memory_space<vmem>>, vector<256x16xf32>,
    } else {
    }
    %c0 = arith.constant 0 : index
    %c0_1 = arith.constant 0 : index
    %3 = vector.load %arg7[%c0, %c0_1] : memref<256x16xf32, #tpu.memory_space<vmem>>, vector<256x16xf32>
    %c0_2 = arith.constant 0 : index
    %c0_3 = arith.constant 0 : index
    %c0_4 = arith.constant 0 : index
    %4 = vector.load %arg3[%c0_2, %c0_3, %c0_4] : memref<1x256x512xbf16, #tpu.memory_space<vmem>>, vector<1x256x512xbf16>
    %5 = vector.shape_cast %4 : vector<1x256x512xbf16> to vector<256x512xbf16>
    %c0_5 = arith.constant 0 : index
    %c0_6 = arith.constant 0 : index
    %c0_7 = arith.constant 0 : index
    %6 = vector.load %arg4[%c0_5, %c0_6, %c0_7] : memref<1x512x16xbf16, #tpu.memory_space<vmem>>, vector<1x512x16xbf16>
    %7 = vector.shape_cast %6 : vector<1x512x16xbf16> to vector<512x16xbf16>
    %cst = arith.constant dense<0.000000e+00> : vector<256x16xf32>
    %8 = tpu.matmul %5, %7, %cst {dimension_numbers = #tpu.dot_dimension_numbers<[1], [0], [0], [1], [0, 0, 1, 1], [], []>} : vector<256x512xbf16>, vector<512x16xbf16>, vector<256x16xf32> -> vector<256x16xf32>
    %9 = arith.addf %3, %8 : vector<256x16xf32>
    %c0_8 = arith.constant 0 : index
    %c0_9 = arith.constant 0 : index
    %10 = vector.load %arg7[%c0_8, %c0_9] : memref<256x16xf32, #tpu.memory_space<vmem>>, vector<256x16xf32>
    tpu.vector_store %arg7[%c0_8, %c0_9], %9 {strides = array<i32>} : memref<256x16xf32, #tpu.memory_space<vmem>>, vector<256x16xf32>,
    %c0_i32_10 = arith.constant 0 : i32
    %11 = arith.cmpi eq, %arg2, %c0_i32_10 : i32
    %12 = arith.extui %11 : i1 to i32
    %c0_i32_11 = arith.constant 0 : i32
    %13 = arith.cmpi ne, %12, %c0_i32_11 : i32
    scf.if %13 {
      %c0_12 = arith.constant 0 : index
      %c0_13 = arith.constant 0 : index
      %14 = vector.load %arg7[%c0_12, %c0_13] : memref<256x16xf32, #tpu.memory_space<vmem>>, vector<256x16xf32>
      %c0_14 = arith.constant 0 : index
      %c0_15 = arith.constant 0 : index
      %c0_16 = arith.constant 0 : index
      %15 = vector.load %arg5[%c0_14, %c0_15, %c0_16] : memref<1x1x16xf32, #tpu.memory_space<vmem>>, vector<1x1x16xf32>
      %16 = vector.shape_cast %15 : vector<1x1x16xf32> to vector<1x16xf32>
      %17 = vector.broadcast %16 : vector<1x16xf32> to vector<256x16xf32>
      %18 = arith.addf %14, %17 : vector<256x16xf32>
      %cst_17 = arith.constant 0.000000e+00 : f32
      %19 = vector.broadcast %cst_17 : f32 to vector<256x16xf32>
      %20 = arith.cmpf oge, %18, %19 : vector<256x16xf32>
      %cst_18 = arith.constant 2.000000e-01 : f32
      %21 = vector.broadcast %cst_18 : f32 to vector<256x16xf32>
      %22 = arith.mulf %21, %18 : vector<256x16xf32>
      %23 = arith.select %20, %18, %22 : vector<256x16xi1>, vector<256x16xf32>
      %c0_19 = arith.constant 0 : index
      %c0_20 = arith.constant 0 : index
      %c0_21 = arith.constant 0 : index
      %24 = vector.load %arg6[%c0_19, %c0_20, %c0_21] : memref<1x256x16xf32, #tpu.memory_space<vmem>>, vector<1x256x16xf32>
      %25 = vector.shape_cast %24 : vector<1x256x16xf32> to vector<256x16xf32>
      %26 = vector.shape_cast %23 : vector<256x16xf32> to vector<1x256x16xf32>
      tpu.vector_store %arg6[%c0_19, %c0_20, %c0_21], %26 {strides = array<i32>} : memref<1x256x16xf32, #tpu.memory_space<vmem>>, vector<1x256x16xf32>,
    } else {
    }
    return
  }
  func.func @transform_0(%arg0: i32, %arg1: i32, %arg2: i32) -> (i32, i32, i32) {
    %c0_i32 = arith.constant 0 : i32
    return %arg0, %arg1, %arg2 : i32, i32, i32
  }
  func.func @transform_1(%arg0: i32, %arg1: i32, %arg2: i32) -> (i32, i32, i32) {
    %c0_i32 = arith.constant 0 : i32
    %c0_i32_0 = arith.constant 0 : i32
    return %arg0, %arg2, %c0_i32 : i32, i32, i32
  }
  func.func @transform_2(%arg0: i32, %arg1: i32, %arg2: i32) -> (i32, i32, i32) {
    %c0_i32 = arith.constant 0 : i32
    %c0_i32_0 = arith.constant 0 : i32
    %c0_i32_1 = arith.constant 0 : i32
    return %arg0, %c0_i32, %c0_i32_0 : i32, i32, i32
  }
  func.func @transform_3(%arg0: i32, %arg1: i32, %arg2: i32) -> (i32, i32, i32) {
    %c0_i32 = arith.constant 0 : i32
    %c0_i32_0 = arith.constant 0 : i32
    return %arg0, %arg1, %c0_i32 : i32, i32, i32
  }
}

module attributes {stable_mosaic.version = 11 : i64} {
  func.func @_bmm_kernel(%arg0: i32, %arg1: i32, %arg2: i32, %arg3: memref<1x512x32xbf16, #tpu.memory_space<vmem>>, %arg4: memref<1x32x512xbf16, #tpu.memory_space<vmem>>, %arg5: memref<1x1x512xf32, #tpu.memory_space<vmem>>, %arg6: memref<1x512x512xf32, #tpu.memory_space<vmem>>, %arg7: memref<512x512xf32, #tpu.memory_space<vmem>>) attributes {dimension_semantics = [#tpu.dimension_semantics<parallel>, #tpu.dimension_semantics<parallel>, #tpu.dimension_semantics<arbitrary>], iteration_bounds = array<i64: 1, 1, 1>, scalar_prefetch = 0 : i64, scratch_operands = 1 : i64, tpu.core_type = #tpu.core_type<tc>, window_params = [{transform_indices = @transform_0, window_bounds = array<i64: 1, 512, 32>}, {transform_indices = @transform_1, window_bounds = array<i64: 1, 32, 512>}, {transform_indices = @transform_2, window_bounds = array<i64: 1, 1, 512>}, {transform_indices = @transform_3, window_bounds = array<i64: 1, 512, 512>}]} {
    %c0_i32 = arith.constant 0 : i32
    %0 = arith.cmpi eq, %arg2, %c0_i32 : i32
    %1 = arith.extui %0 : i1 to i32
    %c0_i32_0 = arith.constant 0 : i32
    %2 = arith.cmpi ne, %1, %c0_i32_0 : i32
    scf.if %2 {
      %cst_12 = arith.constant 0.000000e+00 : f32
      %14 = vector.broadcast %cst_12 : f32 to vector<512x512xf32>
      %c0_13 = arith.constant 0 : index
      %c0_14 = arith.constant 0 : index
      %15 = vector.load %arg7[%c0_13, %c0_14] : memref<512x512xf32, #tpu.memory_space<vmem>>, vector<512x512xf32>
      tpu.vector_store %arg7[%c0_13, %c0_14], %14 {strides = array<i32>} : memref<512x512xf32, #tpu.memory_space<vmem>>, vector<512x512xf32>,
    } else {
    }
    %c0 = arith.constant 0 : index
    %c0_1 = arith.constant 0 : index
    %3 = vector.load %arg7[%c0, %c0_1] : memref<512x512xf32, #tpu.memory_space<vmem>>, vector<512x512xf32>
    %c0_2 = arith.constant 0 : index
    %c0_3 = arith.constant 0 : index
    %c0_4 = arith.constant 0 : index
    %4 = vector.load %arg3[%c0_2, %c0_3, %c0_4] : memref<1x512x32xbf16, #tpu.memory_space<vmem>>, vector<1x512x32xbf16>
    %5 = vector.shape_cast %4 : vector<1x512x32xbf16> to vector<512x32xbf16>
    %c0_5 = arith.constant 0 : index
    %c0_6 = arith.constant 0 : index
    %c0_7 = arith.constant 0 : index
    %6 = vector.load %arg4[%c0_5, %c0_6, %c0_7] : memref<1x32x512xbf16, #tpu.memory_space<vmem>>, vector<1x32x512xbf16>
    %7 = vector.shape_cast %6 : vector<1x32x512xbf16> to vector<32x512xbf16>
    %cst = arith.constant dense<0.000000e+00> : vector<512x512xf32>
    %8 = tpu.matmul %5, %7, %cst {dimension_numbers = #tpu.dot_dimension_numbers<[1], [0], [0], [1], [0, 0, 1, 1], [], []>} : vector<512x32xbf16>, vector<32x512xbf16>, vector<512x512xf32> -> vector<512x512xf32>
    %9 = arith.addf %3, %8 : vector<512x512xf32>
    %c0_8 = arith.constant 0 : index
    %c0_9 = arith.constant 0 : index
    %10 = vector.load %arg7[%c0_8, %c0_9] : memref<512x512xf32, #tpu.memory_space<vmem>>, vector<512x512xf32>
    tpu.vector_store %arg7[%c0_8, %c0_9], %9 {strides = array<i32>} : memref<512x512xf32, #tpu.memory_space<vmem>>, vector<512x512xf32>,
    %c0_i32_10 = arith.constant 0 : i32
    %11 = arith.cmpi eq, %arg2, %c0_i32_10 : i32
    %12 = arith.extui %11 : i1 to i32
    %c0_i32_11 = arith.constant 0 : i32
    %13 = arith.cmpi ne, %12, %c0_i32_11 : i32
    scf.if %13 {
      %c0_12 = arith.constant 0 : index
      %c0_13 = arith.constant 0 : index
      %14 = vector.load %arg7[%c0_12, %c0_13] : memref<512x512xf32, #tpu.memory_space<vmem>>, vector<512x512xf32>
      %c0_14 = arith.constant 0 : index
      %c0_15 = arith.constant 0 : index
      %c0_16 = arith.constant 0 : index
      %15 = vector.load %arg5[%c0_14, %c0_15, %c0_16] : memref<1x1x512xf32, #tpu.memory_space<vmem>>, vector<1x1x512xf32>
      %16 = vector.shape_cast %15 : vector<1x1x512xf32> to vector<1x512xf32>
      %17 = vector.broadcast %16 : vector<1x512xf32> to vector<512x512xf32>
      %18 = arith.addf %14, %17 : vector<512x512xf32>
      %cst_17 = arith.constant 0.000000e+00 : f32
      %19 = vector.broadcast %cst_17 : f32 to vector<512x512xf32>
      %20 = arith.cmpf oge, %18, %19 : vector<512x512xf32>
      %cst_18 = arith.constant 2.000000e-01 : f32
      %21 = vector.broadcast %cst_18 : f32 to vector<512x512xf32>
      %22 = arith.mulf %21, %18 : vector<512x512xf32>
      %23 = arith.select %20, %18, %22 : vector<512x512xi1>, vector<512x512xf32>
      %c0_19 = arith.constant 0 : index
      %c0_20 = arith.constant 0 : index
      %c0_21 = arith.constant 0 : index
      %24 = vector.load %arg6[%c0_19, %c0_20, %c0_21] : memref<1x512x512xf32, #tpu.memory_space<vmem>>, vector<1x512x512xf32>
      %25 = vector.shape_cast %24 : vector<1x512x512xf32> to vector<512x512xf32>
      %26 = vector.shape_cast %23 : vector<512x512xf32> to vector<1x512x512xf32>
      tpu.vector_store %arg6[%c0_19, %c0_20, %c0_21], %26 {strides = array<i32>} : memref<1x512x512xf32, #tpu.memory_space<vmem>>, vector<1x512x512xf32>,
    } else {
    }
    return
  }
  func.func @transform_0(%arg0: i32, %arg1: i32, %arg2: i32) -> (i32, i32, i32) {
    %c0_i32 = arith.constant 0 : i32
    return %arg0, %arg1, %arg2 : i32, i32, i32
  }
  func.func @transform_1(%arg0: i32, %arg1: i32, %arg2: i32) -> (i32, i32, i32) {
    %c0_i32 = arith.constant 0 : i32
    %c0_i32_0 = arith.constant 0 : i32
    return %arg0, %arg2, %c0_i32 : i32, i32, i32
  }
  func.func @transform_2(%arg0: i32, %arg1: i32, %arg2: i32) -> (i32, i32, i32) {
    %c0_i32 = arith.constant 0 : i32
    %c0_i32_0 = arith.constant 0 : i32
    %c0_i32_1 = arith.constant 0 : i32
    return %arg0, %c0_i32, %c0_i32_0 : i32, i32, i32
  }
  func.func @transform_3(%arg0: i32, %arg1: i32, %arg2: i32) -> (i32, i32, i32) {
    %c0_i32 = arith.constant 0 : i32
    %c0_i32_0 = arith.constant 0 : i32
    return %arg0, %arg1, %c0_i32 : i32, i32, i32
  }
}

module attributes {stable_mosaic.version = 11 : i64} {
  func.func @_bmm_kernel(%arg0: i32, %arg1: i32, %arg2: i32, %arg3: memref<1x512x256xbf16, #tpu.memory_space<vmem>>, %arg4: memref<1x256x48xbf16, #tpu.memory_space<vmem>>, %arg5: memref<1x1x48xf32, #tpu.memory_space<vmem>>, %arg6: memref<1x512x48xf32, #tpu.memory_space<vmem>>, %arg7: memref<512x48xf32, #tpu.memory_space<vmem>>) attributes {dimension_semantics = [#tpu.dimension_semantics<parallel>, #tpu.dimension_semantics<parallel>, #tpu.dimension_semantics<arbitrary>], iteration_bounds = array<i64: 2, 1, 1>, scalar_prefetch = 0 : i64, scratch_operands = 1 : i64, tpu.core_type = #tpu.core_type<tc>, window_params = [{transform_indices = @transform_0, window_bounds = array<i64: 1, 512, 256>}, {transform_indices = @transform_1, window_bounds = array<i64: 1, 256, 48>}, {transform_indices = @transform_2, window_bounds = array<i64: 1, 1, 48>}, {transform_indices = @transform_3, window_bounds = array<i64: 1, 512, 48>}]} {
    %c0_i32 = arith.constant 0 : i32
    %0 = arith.cmpi eq, %arg2, %c0_i32 : i32
    %1 = arith.extui %0 : i1 to i32
    %c0_i32_0 = arith.constant 0 : i32
    %2 = arith.cmpi ne, %1, %c0_i32_0 : i32
    scf.if %2 {
      %cst_12 = arith.constant 0.000000e+00 : f32
      %14 = vector.broadcast %cst_12 : f32 to vector<512x48xf32>
      %c0_13 = arith.constant 0 : index
      %c0_14 = arith.constant 0 : index
      %15 = vector.load %arg7[%c0_13, %c0_14] : memref<512x48xf32, #tpu.memory_space<vmem>>, vector<512x48xf32>
      tpu.vector_store %arg7[%c0_13, %c0_14], %14 {strides = array<i32>} : memref<512x48xf32, #tpu.memory_space<vmem>>, vector<512x48xf32>,
    } else {
    }
    %c0 = arith.constant 0 : index
    %c0_1 = arith.constant 0 : index
    %3 = vector.load %arg7[%c0, %c0_1] : memref<512x48xf32, #tpu.memory_space<vmem>>, vector<512x48xf32>
    %c0_2 = arith.constant 0 : index
    %c0_3 = arith.constant 0 : index
    %c0_4 = arith.constant 0 : index
    %4 = vector.load %arg3[%c0_2, %c0_3, %c0_4] : memref<1x512x256xbf16, #tpu.memory_space<vmem>>, vector<1x512x256xbf16>
    %5 = vector.shape_cast %4 : vector<1x512x256xbf16> to vector<512x256xbf16>
    %c0_5 = arith.constant 0 : index
    %c0_6 = arith.constant 0 : index
    %c0_7 = arith.constant 0 : index
    %6 = vector.load %arg4[%c0_5, %c0_6, %c0_7] : memref<1x256x48xbf16, #tpu.memory_space<vmem>>, vector<1x256x48xbf16>
    %7 = vector.shape_cast %6 : vector<1x256x48xbf16> to vector<256x48xbf16>
    %cst = arith.constant dense<0.000000e+00> : vector<512x48xf32>
    %8 = tpu.matmul %5, %7, %cst {dimension_numbers = #tpu.dot_dimension_numbers<[1], [0], [0], [1], [0, 0, 1, 1], [], []>} : vector<512x256xbf16>, vector<256x48xbf16>, vector<512x48xf32> -> vector<512x48xf32>
    %9 = arith.addf %3, %8 : vector<512x48xf32>
    %c0_8 = arith.constant 0 : index
    %c0_9 = arith.constant 0 : index
    %10 = vector.load %arg7[%c0_8, %c0_9] : memref<512x48xf32, #tpu.memory_space<vmem>>, vector<512x48xf32>
    tpu.vector_store %arg7[%c0_8, %c0_9], %9 {strides = array<i32>} : memref<512x48xf32, #tpu.memory_space<vmem>>, vector<512x48xf32>,
    %c0_i32_10 = arith.constant 0 : i32
    %11 = arith.cmpi eq, %arg2, %c0_i32_10 : i32
    %12 = arith.extui %11 : i1 to i32
    %c0_i32_11 = arith.constant 0 : i32
    %13 = arith.cmpi ne, %12, %c0_i32_11 : i32
    scf.if %13 {
      %c0_12 = arith.constant 0 : index
      %c0_13 = arith.constant 0 : index
      %14 = vector.load %arg7[%c0_12, %c0_13] : memref<512x48xf32, #tpu.memory_space<vmem>>, vector<512x48xf32>
      %c0_14 = arith.constant 0 : index
      %c0_15 = arith.constant 0 : index
      %c0_16 = arith.constant 0 : index
      %15 = vector.load %arg5[%c0_14, %c0_15, %c0_16] : memref<1x1x48xf32, #tpu.memory_space<vmem>>, vector<1x1x48xf32>
      %16 = vector.shape_cast %15 : vector<1x1x48xf32> to vector<1x48xf32>
      %17 = vector.broadcast %16 : vector<1x48xf32> to vector<512x48xf32>
      %18 = arith.addf %14, %17 : vector<512x48xf32>
      %c0_17 = arith.constant 0 : index
      %c0_18 = arith.constant 0 : index
      %c0_19 = arith.constant 0 : index
      %19 = vector.load %arg6[%c0_17, %c0_18, %c0_19] : memref<1x512x48xf32, #tpu.memory_space<vmem>>, vector<1x512x48xf32>
      %20 = vector.shape_cast %19 : vector<1x512x48xf32> to vector<512x48xf32>
      %21 = vector.shape_cast %18 : vector<512x48xf32> to vector<1x512x48xf32>
      tpu.vector_store %arg6[%c0_17, %c0_18, %c0_19], %21 {strides = array<i32>} : memref<1x512x48xf32, #tpu.memory_space<vmem>>, vector<1x512x48xf32>,
    } else {
    }
    return
  }
  func.func @transform_0(%arg0: i32, %arg1: i32, %arg2: i32) -> (i32, i32, i32) {
    %c0_i32 = arith.constant 0 : i32
    return %arg0, %arg1, %arg2 : i32, i32, i32
  }
  func.func @transform_1(%arg0: i32, %arg1: i32, %arg2: i32) -> (i32, i32, i32) {
    %c0_i32 = arith.constant 0 : i32
    %c0_i32_0 = arith.constant 0 : i32
    return %arg0, %arg2, %c0_i32 : i32, i32, i32
  }
  func.func @transform_2(%arg0: i32, %arg1: i32, %arg2: i32) -> (i32, i32, i32) {
    %c0_i32 = arith.constant 0 : i32
    %c0_i32_0 = arith.constant 0 : i32
    %c0_i32_1 = arith.constant 0 : i32
    return %arg0, %c0_i32, %c0_i32_0 : i32, i32, i32
  }
  func.func @transform_3(%arg0: i32, %arg1: i32, %arg2: i32) -> (i32, i32, i32) {
    %c0_i32 = arith.constant 0 : i32
    %c0_i32_0 = arith.constant 0 : i32
    return %arg0, %arg1, %c0_i32 : i32, i32, i32
  }
}

</mosaic_0001>

<bundles_post_ra>
// kernel: _lambda_.11
= control target key start
LH: loop header
LB: loop body
LE: loop exit
PB: predicated region body
PF: predicated region fallthrough
CT: control target
= control target key end

     0   :  { %s2631_s12 = smov 0   ;;  %s2633_s13 = smov 0   ;;  %s3036_s0 = inlined_call_operand.vmem [shape: bf16[4,512,48], index: 0, kind: input, shape index: {}]   ;;  %s3037_s1 = inlined_call_operand.vmem [shape: bf16[4,48,256], index: 1, kind: input, shape index: {}]   ;;  %s3038_s2 = inlined_call_operand.vmem [shape: f32[4,1,256], index: 2, kind: input, shape index: {}]   ;;  %s3039_s3 = inlined_call_operand.vmem [shape: f32[4,512,256], index: 3, kind: output, shape index: {}]  }
   0x1   :  { %s2635_s14 = smov 0  }
   0x2 LB: > { %s32_s15 = sadd.s32 1, %s2604_s13  ;;  %p2432_p0 = scmp.ge.s32.totalorder %s2608_s14, 1  ;;  %s2608_s14 = sphi %s2635_s14, %s13_s14   ;;  %s2604_s13 = sphi %s2633_s13, %s3041_s13   ;;  %s2600_s12 = sphi %s2631_s12, %s3040_s12  }
   0x3   : > { %p34_p1 = scmp.ge.s32.totalorder %s32_s15, 4  ;;  %p197_p2 = scmp.lt.s32.totalorder %s2608_s14, 5 }
   0x5   : > { %s3043_s15 = smov (%p34_p1, %s32_s15), 0  ;;  %p198_p3 = pnand %p2432_p0, %p197_p2 }
   0x6   : > { %p248_p4 = scmp.lt.s32.totalorder (!%p198_p3), %s2600_s12, 3  ;;  %v2610_v0 = vmov (!%p198_p3), 0   ;;  %vm807_vm0 = vcmask (!%p198_p3), 392192   ;;  %v1646_v39 = vlaneseq (!%p198_p3) }
   0x7   : > { %201 = sbr.rel (%p198_p3) target bundleno = 376 (0x178), region = 32  ;;  %936 = vmatprep.mubr.bf16.mxu0 (!%p198_p3), %v2610_v0  ;;  %1096 = vmatprep.mubr.bf16.mxu1 (!%p198_p3), %v2610_v0 }
   0x8   : > { %v1647_v40 = vshrl.u32 (!%p198_p3), %v1646_v39, 7 }
   0xa   : > { %v1648_v41 = vsub.s32 (!%p198_p3), 0, %v1647_v40  ;;  %v1652_v43 = vsub.s32 (!%p198_p3), 1, %v1647_v40 }
   0xe   : > { %s3045_s12 = smov (!%p248_p4, %s2600_s12), 3 }
   0xf   : > { %s2519_s16 = smul.u32 48, %s3045_s12  ;;  %s2511_s17 = sshll.u32 %s3045_s12, 8 }
  0x10   : > { %s2658_s20 = scalar_lea.vmem %s3036_s0, %s2511_s17  ;;  %s2436_s24 = sshll.u32 %s3045_s12, 1 }
  0x11   : > { %s269_s23 = scalar_lea.vmem %s3037_s1, %s2519_s16  ;;  %v2554_v7 = vld [vmem:[%s2658_s20] sm:$0xff]   ;;  %v2556_v9 = vld [vmem:[%s2658_s20 + $0x8] sm:$0xff]   ;;  %v2558_v11 = vld [vmem:[%s2658_s20 + $0x10] sm:$0xff]   ;;  %s274_s27 = scalar_lea.vmem %s3038_s2, %s2436_s24 }
  0x12   : > { %v2545_v1 = vld [vmem:[%s269_s23 + $0x4] ss:$8 sps:$4 sm:$0xff]   ;;  %v2547_v2 = vld [vmem:[%s269_s23] ss:$8 sps:$4 sm:$0xff]   ;;  %v2548_v3 = vld [vmem:[%s269_s23 + $0x14] ss:$8 sps:$4 sm:$0xff]  }
  0x13   : > { %904 = vmatprep.subr.bf16.mxu0 %v2545_v1  ;;  %2513 = vmatprep.subr.bf16.mxu1 %v2545_v1  ;;  %v2550_v4 = vld [vmem:[%s269_s23 + $0x10] ss:$8 sps:$4 sm:$0xff]   ;;  %v2551_v5 = vld [vmem:[%s269_s23 + $0x24] ss:$8 sps:$4 sm:$0xff]   ;;  %v2553_v6 = vld [vmem:[%s269_s23 + $0x20] ss:$8 sps:$4 sm:$0xff]  }
  0x14   : > { %905 = vmatpush1.bf16.msra.mxu0 %v2547_v2  ;;  %2516 = vmatpush1.bf16.msra.mxu1 %v2547_v2  ;;  %v2555_v8 = vld [vmem:[%s2658_s20 + $0x80] sm:$0xff]   ;;  %v2557_v10 = vld [vmem:[%s2658_s20 + $0x88] sm:$0xff]   ;;  %v2559_v12 = vld [vmem:[%s2658_s20 + $0x90] sm:$0xff]   ;;  %s2512_s28 = sshll.u32 %s3045_s12, 10 }
  0x15   : > { %906 = vmatprep.subr.bf16.mxu0 %v2548_v3  ;;  %2514 = vmatprep.subr.bf16.mxu1 %v2548_v3  ;;  %v2560_v13 = vld [vmem:[%s2658_s20 + $0x18] sm:$0xff]   ;;  %v2562_v15 = vld [vmem:[%s2658_s20 + $0x20] sm:$0xff]   ;;  %v2564_v17 = vld [vmem:[%s2658_s20 + $0x28] sm:$0xff]   ;;  %s2773_s4 = scalar_lea.vmem %s3039_s3, %s2512_s28 }
  0x16   : > { %v2561_v14 = vld [vmem:[%s2658_s20 + $0x98] sm:$0xff]   ;;  %v2563_v16 = vld [vmem:[%s2658_s20 + $0xa0] sm:$0xff]   ;;  %v2565_v18 = vld [vmem:[%s2658_s20 + $0xa8] sm:$0xff]  }
  0x17   : > { %v2566_v19 = vld [vmem:[%s2658_s20 + $0x30] sm:$0xff]   ;;  %v2568_v21 = vld [vmem:[%s2658_s20 + $0x38] sm:$0xff]   ;;  %v2570_v23 = vld [vmem:[%s2658_s20 + $0x40] sm:$0xff]  }
  0x18   : > { %907 = vmatpush1.bf16.msra.mxu0 %v2550_v4  ;;  %2517 = vmatpush1.bf16.msra.mxu1 %v2550_v4  ;;  %v2567_v20 = vld [vmem:[%s2658_s20 + $0xb0] sm:$0xff]   ;;  %v2569_v22 = vld [vmem:[%s2658_s20 + $0xb8] sm:$0xff]   ;;  %v2571_v24 = vld [vmem:[%s2658_s20 + $0xc0] sm:$0xff]  }
  0x19   : > { %908 = vmatprep.subr.bf16.mxu0 %v2551_v5  ;;  %2515 = vmatprep.subr.bf16.mxu1 %v2551_v5  ;;  %v2572_v25 = vld [vmem:[%s2658_s20 + $0x48] sm:$0xff]   ;;  %v2574_v27 = vld [vmem:[%s2658_s20 + $0x50] sm:$0xff]   ;;  %v2576_v29 = vld [vmem:[%s2658_s20 + $0x58] sm:$0xff]  }
  0x1a   : > { %v2573_v26 = vld [vmem:[%s2658_s20 + $0xc8] sm:$0xff]   ;;  %v2575_v28 = vld [vmem:[%s2658_s20 + $0xd0] sm:$0xff]   ;;  %v2577_v30 = vld [vmem:[%s2658_s20 + $0xd8] sm:$0xff]  }
  0x1b   : > { %v2578_v31 = vld [vmem:[%s2658_s20 + $0x60] sm:$0xff]   ;;  %v2580_v33 = vld [vmem:[%s2658_s20 + $0x68] sm:$0xff]   ;;  %v2582_v35 = vld [vmem:[%s2658_s20 + $0x70] sm:$0xff]  }
  0x1c   : > { %909 = vmatpush1.bf16.msra.mxu0 %v2553_v6  ;;  %2518 = vmatpush1.bf16.msra.mxu1 %v2553_v6  ;;  %v2579_v32 = vld [vmem:[%s2658_s20 + $0xe0] sm:$0xff]   ;;  %v2581_v34 = vld [vmem:[%s2658_s20 + $0xe8] sm:$0xff]   ;;  %v2583_v36 = vld [vmem:[%s2658_s20 + $0xf0] sm:$0xff]  }
  0x1d   : > { %v2584_v37 = vld [vmem:[%s2658_s20 + $0x78] sm:$0xff]   ;;  %v1644_v42 = vld [vmem:[%s274_s27] sm:$0x3] }
  0x1e   : > { %v2585_v38 = vld [vmem:[%s2658_s20 + $0xf8] sm:$0xff]   ;;  %v2761_v44 = vrot.slane %v1644_v42, %v1648_v41  ;;  %v2763_v45 = vrot.slane %v1644_v42, %v1652_v43 }
  0x1f   : > { %2477 = vmatmul.mubr.msk.bf16.vlgmr.msra.gmra.mrb[0].mxu0 %vm807_vm0, %v2554_v7  ;;  %2493 = vmatmul.mubr.msk.bf16.vlgmr.msra.gmra.mrb[0].mxu1 %vm807_vm0, %v2555_v8 }
  0x20   : > { %946 = vmatprep.mubr.bf16.mxu0 %v2610_v0  ;;  %1106 = vmatprep.mubr.bf16.mxu1 %v2610_v0 }
  0x27   : > { %2478 = vmatmul.mubr.msk.bf16.gmra.mrb[4].mxu0 %vm807_vm0, %v2556_v9  ;;  %2494 = vmatmul.mubr.msk.bf16.gmra.mrb[4].mxu1 %vm807_vm0, %v2557_v10 }
  0x28   : > { %956 = vmatprep.mubr.bf16.mxu0 %v2610_v0  ;;  %1116 = vmatprep.mubr.bf16.mxu1 %v2610_v0 }
  0x2f   : > { %2479 = vmatmul.mubr.msk.bf16.gmra.mrb[8].mxu0 %vm807_vm0, %v2558_v11  ;;  %2495 = vmatmul.mubr.msk.bf16.gmra.mrb[8].mxu1 %vm807_vm0, %v2559_v12 }
  0x30   : > { %966 = vmatprep.mubr.bf16.mxu0 %v2610_v0  ;;  %1126 = vmatprep.mubr.bf16.mxu1 %v2610_v0 }
  0x37   : > { %2480 = vmatmul.mubr.msk.bf16.gmra.mrb[12].mxu0 %vm807_vm0, %v2560_v13  ;;  %2496 = vmatmul.mubr.msk.bf16.gmra.mrb[12].mxu1 %vm807_vm0, %v2561_v14 }
  0x38   : > { %976 = vmatprep.mubr.bf16.mxu0 %v2610_v0  ;;  %1136 = vmatprep.mubr.bf16.mxu1 %v2610_v0 }
  0x3f   : > { %2481 = vmatmul.mubr.msk.bf16.gmra.mrb[16].mxu0 %vm807_vm0, %v2562_v15  ;;  %2497 = vmatmul.mubr.msk.bf16.gmra.mrb[16].mxu1 %vm807_vm0, %v2563_v16 }
  0x40   : > { %986 = vmatprep.mubr.bf16.mxu0 %v2610_v0  ;;  %1146 = vmatprep.mubr.bf16.mxu1 %v2610_v0 }
  0x47   : > { %2482 = vmatmul.mubr.msk.bf16.gmra.mrb[20].mxu0 %vm807_vm0, %v2564_v17  ;;  %2498 = vmatmul.mubr.msk.bf16.gmra.mrb[20].mxu1 %vm807_vm0, %v2565_v18 }
  0x48   : > { %996 = vmatprep.mubr.bf16.mxu0 %v2610_v0  ;;  %1156 = vmatprep.mubr.bf16.mxu1 %v2610_v0 }
  0x4f   : > { %2483 = vmatmul.mubr.msk.bf16.gmra.mrb[24].mxu0 %vm807_vm0, %v2566_v19  ;;  %2499 = vmatmul.mubr.msk.bf16.gmra.mrb[24].mxu1 %vm807_vm0, %v2567_v20 }
  0x50   : > { %1006 = vmatprep.mubr.bf16.mxu0 %v2610_v0  ;;  %1166 = vmatprep.mubr.bf16.mxu1 %v2610_v0 }
  0x57   : > { %2484 = vmatmul.mubr.msk.bf16.gmra.mrb[28].mxu0 %vm807_vm0, %v2568_v21  ;;  %2500 = vmatmul.mubr.msk.bf16.gmra.mrb[28].mxu1 %vm807_vm0, %v2569_v22 }
  0x58   : > { %1016 = vmatprep.mubr.bf16.mxu0 %v2610_v0  ;;  %1176 = vmatprep.mubr.bf16.mxu1 %v2610_v0 }
  0x5f   : > { %2485 = vmatmul.mubr.msk.bf16.gmra.mrb[32].mxu0 %vm807_vm0, %v2570_v23  ;;  %2501 = vmatmul.mubr.msk.bf16.gmra.mrb[32].mxu1 %vm807_vm0, %v2571_v24 }
  0x60   : > { %1026 = vmatprep.mubr.bf16.mxu0 %v2610_v0  ;;  %1186 = vmatprep.mubr.bf16.mxu1 %v2610_v0 }
  0x67   : > { %2486 = vmatmul.mubr.msk.bf16.gmra.mrb[36].mxu0 %vm807_vm0, %v2572_v25  ;;  %2502 = vmatmul.mubr.msk.bf16.gmra.mrb[36].mxu1 %vm807_vm0, %v2573_v26 }
  0x68   : > { %1036 = vmatprep.mubr.bf16.mxu0 %v2610_v0  ;;  %1196 = vmatprep.mubr.bf16.mxu1 %v2610_v0 }
  0x6f   : > { %2487 = vmatmul.mubr.msk.bf16.gmra.mrb[40].mxu0 %vm807_vm0, %v2574_v27  ;;  %2503 = vmatmul.mubr.msk.bf16.gmra.mrb[40].mxu1 %vm807_vm0, %v2575_v28 }
  0x70   : > { %1046 = vmatprep.mubr.bf16.mxu0 %v2610_v0  ;;  %1206 = vmatprep.mubr.bf16.mxu1 %v2610_v0 }
  0x77   : > { %2488 = vmatmul.mubr.msk.bf16.gmra.mrb[44].mxu0 %vm807_vm0, %v2576_v29  ;;  %2504 = vmatmul.mubr.msk.bf16.gmra.mrb[44].mxu1 %vm807_vm0, %v2577_v30 }
  0x78   : > { %1056 = vmatprep.mubr.bf16.mxu0 %v2610_v0  ;;  %1216 = vmatprep.mubr.bf16.mxu1 %v2610_v0 }
  0x7f   : > { %2489 = vmatmul.mubr.msk.bf16.gmra.mrb[48].mxu0 %vm807_vm0, %v2578_v31  ;;  %2505 = vmatmul.mubr.msk.bf16.gmra.mrb[48].mxu1 %vm807_vm0, %v2579_v32 }
  0x80   : > { %1066 = vmatprep.mubr.bf16.mxu0 %v2610_v0  ;;  %1226 = vmatprep.mubr.bf16.mxu1 %v2610_v0 }
  0x87   : > { %2490 = vmatmul.mubr.msk.bf16.gmra.mrb[52].mxu0 %vm807_vm0, %v2580_v33  ;;  %2506 = vmatmul.mubr.msk.bf16.gmra.mrb[52].mxu1 %vm807_vm0, %v2581_v34 }
  0x88   : > { %1076 = vmatprep.mubr.bf16.mxu0 %v2610_v0  ;;  %1236 = vmatprep.mubr.bf16.mxu1 %v2610_v0 }
  0x8f   : > { %2491 = vmatmul.mubr.msk.bf16.gmra.mrb[56].mxu0 %vm807_vm0, %v2582_v35  ;;  %2507 = vmatmul.mubr.msk.bf16.gmra.mrb[56].mxu1 %vm807_vm0, %v2583_v36 }
  0x90   : > { %1086 = vmatprep.mubr.bf16.mxu0 %v2610_v0  ;;  %1246 = vmatprep.mubr.bf16.mxu1 %v2610_v0 }
  0x97   : > { %2492 = vmatmul.mubr.msk.bf16.gmra.mrb[60].mxu0 %vm807_vm0, %v2584_v37  ;;  %2508 = vmatmul.mubr.msk.bf16.gmra.mrb[60].mxu1 %vm807_vm0, %v2585_v38 }
  0xf2   : > { %v938_v46 = vpop.f32.mrb[0].mxu0  ;;  %v1098_v47 = vpop.f32.mrb[0].mxu1 }
  0xf3   : > { %v1656_v48 = vadd.f32 %v2761_v44, %v938_v46  ;;  %v1720_v49 = vadd.f32 %v2761_v44, %v1098_v47  ;;  %v940_v50 = vpop.f32.mrb[1].mxu0  ;;  %v1100_v51 = vpop.f32.mrb[1].mxu1 }
  0xf4   : > { %v1657_v52 = vadd.f32 %v2763_v45, %v940_v50  ;;  %v1721_v53 = vadd.f32 %v2763_v45, %v1100_v51  ;;  %v942_v54 = vpop.f32.mrb[2].mxu0  ;;  %v1102_v55 = vpop.f32.mrb[2].mxu1 }
  0xf5   : > { %vm1784_vm1 = vcmp.ge.f32.partialorder %v1656_v48, 0.0  ;;  %v1912_v56 = vmul.f32 0.2, %v1656_v48  ;;  %vm1848_vm2 = vcmp.ge.f32.partialorder %v1720_v49, 0.0  ;;  %v1976_v57 = vmul.f32 0.2, %v1720_v49 }
  0xf6   : > { %vm1785_vm3 = vcmp.ge.f32.partialorder %v1657_v52, 0.0  ;;  %v1913_v58 = vmul.f32 0.2, %v1657_v52  ;;  %vm1849_vm4 = vcmp.ge.f32.partialorder %v1721_v53, 0.0  ;;  %v1977_v59 = vmul.f32 0.2, %v1721_v53 }
  0xf7   : > { %v2040_v60 = vsel %vm1784_vm1, %v1656_v48, %v1912_v56  ;;  %v2104_v61 = vsel %vm1848_vm2, %v1720_v49, %v1976_v57  ;;  %v1658_v62 = vadd.f32 %v2761_v44, %v942_v54  ;;  %v1722_v63 = vadd.f32 %v2761_v44, %v1102_v55  ;;  %v944_v0 = vpop.f32.mrb[3].mxu0  ;;  %v1104_v1 = vpop.f32.mrb[3].mxu1 }
  0xf8   : > { %2168 = vst [vmem:[%s2773_s4] sm:$0xff] %v2040_v60  ;;  %2232 = vst [vmem:[%s2773_s4 + $0x200] sm:$0xff] %v2104_v61  ;;  %v2041_v2 = vsel %vm1785_vm3, %v1657_v52, %v1913_v58  ;;  %v2105_v3 = vsel %vm1849_vm4, %v1721_v53, %v1977_v59  ;;  %v1659_v4 = vadd.f32 %v2763_v45, %v944_v0 }
  0xf9   : > { %v1723_v5 = vadd.f32 %v2763_v45, %v1104_v1  ;;  %2169 = vst [vmem:[%s2773_s4 + $0x8] sm:$0xff] %v2041_v2  ;;  %2233 = vst [vmem:[%s2773_s4 + $0x208] sm:$0xff] %v2105_v3  ;;  %vm1786_vm5 = vcmp.ge.f32.partialorder %v1658_v62, 0.0  ;;  %v1914_v6 = vmul.f32 0.2, %v1658_v62  ;;  %vm1850_vm6 = vcmp.ge.f32.partialorder %v1722_v63, 0.0 }
  0xfa   : > { %v1978_v7 = vmul.f32 0.2, %v1722_v63  ;;  %vm1787_vm7 = vcmp.ge.f32.partialorder %v1659_v4, 0.0  ;;  %v1915_v8 = vmul.f32 0.2, %v1659_v4  ;;  %v948_v12 = vpop.f32.mrb[4].mxu0 }
  0xfb   : > { %vm1851_vm8 = vcmp.ge.f32.partialorder %v1723_v5, 0.0  ;;  %v1979_v9 = vmul.f32 0.2, %v1723_v5  ;;  %v2042_v10 = vsel %vm1786_vm5, %v1658_v62, %v1914_v6  ;;  %v1108_v13 = vpop.f32.mrb[4].mxu1  ;;  %v1660_v16 = vadd.f32 %v2761_v44, %v948_v12  ;;  %v950_v18 = vpop.f32.mrb[5].mxu0 }
  0xfc   : > { %v2106_v11 = vsel %vm1850_vm6, %v1722_v63, %v1978_v7  ;;  %2170 = vst [vmem:[%s2773_s4 + $0x10] sm:$0xff] %v2042_v10  ;;  %v2043_v14 = vsel %vm1787_vm7, %v1659_v4, %v1915_v8  ;;  %v1724_v17 = vadd.f32 %v2761_v44, %v1108_v13  ;;  %v1110_v19 = vpop.f32.mrb[5].mxu1  ;;  %v1661_v20 = vadd.f32 %v2763_v45, %v950_v18  ;;  %v952_v22 = vpop.f32.mrb[6].mxu0 }
  0xfd   : > { %2234 = vst [vmem:[%s2773_s4 + $0x210] sm:$0xff] %v2106_v11  ;;  %v2107_v15 = vsel %vm1851_vm8, %v1723_v5, %v1979_v9  ;;  %2171 = vst [vmem:[%s2773_s4 + $0x18] sm:$0xff] %v2043_v14  ;;  %v1725_v21 = vadd.f32 %v2763_v45, %v1110_v19  ;;  %v1112_v23 = vpop.f32.mrb[6].mxu1  ;;  %vm1788_vm9 = vcmp.ge.f32.partialorder %v1660_v16, 0.0  ;;  %v1916_v24 = vmul.f32 0.2, %v1660_v16 }
  0xfe   : > { %2235 = vst [vmem:[%s2773_s4 + $0x218] sm:$0xff] %v2107_v15  ;;  %vm1852_vm10 = vcmp.ge.f32.partialorder %v1724_v17, 0.0  ;;  %v1980_v25 = vmul.f32 0.2, %v1724_v17  ;;  %vm1789_vm11 = vcmp.ge.f32.partialorder %v1661_v20, 0.0  ;;  %v1662_v30 = vadd.f32 %v2761_v44, %v952_v22  ;;  %v954_v32 = vpop.f32.mrb[7].mxu0 }
  0xff   : > { %v1917_v26 = vmul.f32 0.2, %v1661_v20  ;;  %vm1853_vm12 = vcmp.ge.f32.partialorder %v1725_v21, 0.0  ;;  %v1981_v27 = vmul.f32 0.2, %v1725_v21  ;;  %v2044_v28 = vsel %vm1788_vm9, %v1660_v16, %v1916_v24  ;;  %v1114_v33 = vpop.f32.mrb[7].mxu1 }
 0x100   : > { %v2108_v29 = vsel %vm1852_vm10, %v1724_v17, %v1980_v25  ;;  %v1726_v31 = vadd.f32 %v2761_v44, %v1112_v23  ;;  %2172 = vst [vmem:[%s2773_s4 + $0x20] sm:$0xff] %v2044_v28  ;;  %v1663_v36 = vadd.f32 %v2763_v45, %v954_v32  ;;  %v1727_v37 = vadd.f32 %v2763_v45, %v1114_v33 }
 0x101   : > { %2236 = vst [vmem:[%s2773_s4 + $0x220] sm:$0xff] %v2108_v29  ;;  %v2045_v34 = vsel %vm1789_vm11, %v1661_v20, %v1917_v26  ;;  %v2109_v35 = vsel %vm1853_vm12, %v1725_v21, %v1981_v27  ;;  %vm1790_vm13 = vcmp.ge.f32.partialorder %v1662_v30, 0.0  ;;  %v1918_v38 = vmul.f32 0.2, %v1662_v30 }
 0x102   : > { %2173 = vst [vmem:[%s2773_s4 + $0x28] sm:$0xff] %v2045_v34  ;;  %2237 = vst [vmem:[%s2773_s4 + $0x228] sm:$0xff] %v2109_v35  ;;  %vm1854_vm14 = vcmp.ge.f32.partialorder %v1726_v31, 0.0  ;;  %v1982_v39 = vmul.f32 0.2, %v1726_v31  ;;  %vm1791_vm15 = vcmp.ge.f32.partialorder %v1663_v36, 0.0 }
 0x103   : > { %v1919_v40 = vmul.f32 0.2, %v1663_v36  ;;  %vm1855_vm0 = vcmp.ge.f32.partialorder %v1727_v37, 0.0  ;;  %v1983_v41 = vmul.f32 0.2, %v1727_v37  ;;  %v2046_v42 = vsel %vm1790_vm13, %v1662_v30, %v1918_v38  ;;  %v958_v46 = vpop.f32.mrb[8].mxu0 }
 0x104   : > { %v2110_v43 = vsel %vm1854_vm14, %v1726_v31, %v1982_v39  ;;  %v1118_v47 = vpop.f32.mrb[8].mxu1  ;;  %2174 = vst [vmem:[%s2773_s4 + $0x30] sm:$0xff] %v2046_v42  ;;  %v1664_v50 = vadd.f32 %v2761_v44, %v958_v46  ;;  %v960_v52 = vpop.f32.mrb[9].mxu0 }
 0x105   : > { %2238 = vst [vmem:[%s2773_s4 + $0x230] sm:$0xff] %v2110_v43  ;;  %v2047_v48 = vsel %vm1791_vm15, %v1663_v36, %v1919_v40  ;;  %v2111_v49 = vsel %vm1855_vm0, %v1727_v37, %v1983_v41  ;;  %v1728_v51 = vadd.f32 %v2761_v44, %v1118_v47  ;;  %v1120_v53 = vpop.f32.mrb[9].mxu1  ;;  %v1665_v54 = vadd.f32 %v2763_v45, %v960_v52  ;;  %v962_v56 = vpop.f32.mrb[10].mxu0 }
 0x106   : > { %2175 = vst [vmem:[%s2773_s4 + $0x38] sm:$0xff] %v2047_v48  ;;  %2239 = vst [vmem:[%s2773_s4 + $0x238] sm:$0xff] %v2111_v49  ;;  %v1729_v55 = vadd.f32 %v2763_v45, %v1120_v53  ;;  %v1122_v57 = vpop.f32.mrb[10].mxu1  ;;  %vm1792_vm1 = vcmp.ge.f32.partialorder %v1664_v50, 0.0  ;;  %v1920_v58 = vmul.f32 0.2, %v1664_v50  ;;  %v1666_v0 = vadd.f32 %v2761_v44, %v962_v56 }
 0x107   : > { %vm1856_vm2 = vcmp.ge.f32.partialorder %v1728_v51, 0.0  ;;  %v1984_v59 = vmul.f32 0.2, %v1728_v51  ;;  %vm1793_vm3 = vcmp.ge.f32.partialorder %v1665_v54, 0.0  ;;  %v1921_v60 = vmul.f32 0.2, %v1665_v54 }
 0x108   : > { %vm1857_vm4 = vcmp.ge.f32.partialorder %v1729_v55, 0.0  ;;  %v1985_v61 = vmul.f32 0.2, %v1729_v55  ;;  %v2048_v62 = vsel %vm1792_vm1, %v1664_v50, %v1920_v58  ;;  %v1730_v1 = vadd.f32 %v2761_v44, %v1122_v57  ;;  %v964_v2 = vpop.f32.mrb[11].mxu0  ;;  %v1124_v3 = vpop.f32.mrb[11].mxu1 }
 0x109   : > { %v2112_v63 = vsel %vm1856_vm2, %v1728_v51, %v1984_v59  ;;  %2176 = vst [vmem:[%s2773_s4 + $0x40] sm:$0xff] %v2048_v62  ;;  %v2049_v4 = vsel %vm1793_vm3, %v1665_v54, %v1921_v60  ;;  %v1667_v6 = vadd.f32 %v2763_v45, %v964_v2  ;;  %v1731_v7 = vadd.f32 %v2763_v45, %v1124_v3 }
 0x10a   : > { %2240 = vst [vmem:[%s2773_s4 + $0x240] sm:$0xff] %v2112_v63  ;;  %v2113_v5 = vsel %vm1857_vm4, %v1729_v55, %v1985_v61  ;;  %v968_v8 = vpop.f32.mrb[12].mxu0  ;;  %v1128_v9 = vpop.f32.mrb[12].mxu1  ;;  %2177 = vst [vmem:[%s2773_s4 + $0x48] sm:$0xff] %v2049_v4  ;;  %vm1794_vm5 = vcmp.ge.f32.partialorder %v1666_v0, 0.0  ;;  %vm1858_vm6 = vcmp.ge.f32.partialorder %v1730_v1, 0.0 }
 0x10b   : > { %2241 = vst [vmem:[%s2773_s4 + $0x248] sm:$0xff] %v2113_v5  ;;  %v1922_v10 = vmul.f32 0.2, %v1666_v0  ;;  %v1986_v11 = vmul.f32 0.2, %v1730_v1  ;;  %vm1795_vm7 = vcmp.ge.f32.partialorder %v1667_v6, 0.0  ;;  %v1668_v16 = vadd.f32 %v2761_v44, %v968_v8 }
 0x10c   : > { %v1923_v12 = vmul.f32 0.2, %v1667_v6  ;;  %vm1859_vm8 = vcmp.ge.f32.partialorder %v1731_v7, 0.0  ;;  %v1987_v13 = vmul.f32 0.2, %v1731_v7  ;;  %v1732_v17 = vadd.f32 %v2761_v44, %v1128_v9  ;;  %v970_v18 = vpop.f32.mrb[13].mxu0 }
 0x10d   : > { %v2050_v14 = vsel %vm1794_vm5, %v1666_v0, %v1922_v10  ;;  %v2114_v15 = vsel %vm1858_vm6, %v1730_v1, %v1986_v11  ;;  %v1130_v19 = vpop.f32.mrb[13].mxu1  ;;  %v1669_v22 = vadd.f32 %v2763_v45, %v970_v18  ;;  %v972_v24 = vpop.f32.mrb[14].mxu0  ;;  %vm1796_vm9 = vcmp.ge.f32.partialorder %v1668_v16, 0.0 }
 0x10e   : > { %2178 = vst [vmem:[%s2773_s4 + $0x50] sm:$0xff] %v2050_v14  ;;  %2242 = vst [vmem:[%s2773_s4 + $0x250] sm:$0xff] %v2114_v15  ;;  %v2051_v20 = vsel %vm1795_vm7, %v1667_v6, %v1923_v12  ;;  %v2115_v21 = vsel %vm1859_vm8, %v1731_v7, %v1987_v13  ;;  %v1733_v23 = vadd.f32 %v2763_v45, %v1130_v19  ;;  %v1132_v25 = vpop.f32.mrb[14].mxu1  ;;  %v1924_v26 = vmul.f32 0.2, %v1668_v16  ;;  %v974_v34 = vpop.f32.mrb[15].mxu0 }
 0x10f   : > { %2179 = vst [vmem:[%s2773_s4 + $0x58] sm:$0xff] %v2051_v20  ;;  %2243 = vst [vmem:[%s2773_s4 + $0x258] sm:$0xff] %v2115_v21  ;;  %vm1860_vm10 = vcmp.ge.f32.partialorder %v1732_v17, 0.0  ;;  %v1988_v27 = vmul.f32 0.2, %v1732_v17  ;;  %vm1797_vm11 = vcmp.ge.f32.partialorder %v1669_v22, 0.0  ;;  %v1670_v32 = vadd.f32 %v2761_v44, %v972_v24 }
 0x110   : > { %v1925_v28 = vmul.f32 0.2, %v1669_v22  ;;  %vm1861_vm12 = vcmp.ge.f32.partialorder %v1733_v23, 0.0  ;;  %v1989_v29 = vmul.f32 0.2, %v1733_v23  ;;  %v2052_v30 = vsel %vm1796_vm9, %v1668_v16, %v1924_v26  ;;  %v1134_v35 = vpop.f32.mrb[15].mxu1 }
 0x111   : > { %v2116_v31 = vsel %vm1860_vm10, %v1732_v17, %v1988_v27  ;;  %v1734_v33 = vadd.f32 %v2761_v44, %v1132_v25  ;;  %2180 = vst [vmem:[%s2773_s4 + $0x60] sm:$0xff] %v2052_v30  ;;  %v1671_v38 = vadd.f32 %v2763_v45, %v974_v34  ;;  %v1735_v39 = vadd.f32 %v2763_v45, %v1134_v35 }
 0x112   : > { %2244 = vst [vmem:[%s2773_s4 + $0x260] sm:$0xff] %v2116_v31  ;;  %v2053_v36 = vsel %vm1797_vm11, %v1669_v22, %v1925_v28  ;;  %v2117_v37 = vsel %vm1861_vm12, %v1733_v23, %v1989_v29  ;;  %v978_v40 = vpop.f32.mrb[16].mxu0  ;;  %v1138_v41 = vpop.f32.mrb[16].mxu1  ;;  %vm1798_vm13 = vcmp.ge.f32.partialorder %v1670_v32, 0.0  ;;  %v1926_v42 = vmul.f32 0.2, %v1670_v32 }
 0x113   : > { %2181 = vst [vmem:[%s2773_s4 + $0x68] sm:$0xff] %v2053_v36  ;;  %2245 = vst [vmem:[%s2773_s4 + $0x268] sm:$0xff] %v2117_v37  ;;  %vm1862_vm14 = vcmp.ge.f32.partialorder %v1734_v33, 0.0  ;;  %v1990_v43 = vmul.f32 0.2, %v1734_v33  ;;  %vm1799_vm15 = vcmp.ge.f32.partialorder %v1671_v38, 0.0  ;;  %v1672_v50 = vadd.f32 %v2761_v44, %v978_v40 }
 0x114   : > { %v1927_v46 = vmul.f32 0.2, %v1671_v38  ;;  %vm1863_vm0 = vcmp.ge.f32.partialorder %v1735_v39, 0.0  ;;  %v1991_v47 = vmul.f32 0.2, %v1735_v39  ;;  %v2054_v48 = vsel %vm1798_vm13, %v1670_v32, %v1926_v42  ;;  %v980_v52 = vpop.f32.mrb[17].mxu0 }
 0x115   : > { %v2118_v49 = vsel %vm1862_vm14, %v1734_v33, %v1990_v43  ;;  %v1736_v51 = vadd.f32 %v2761_v44, %v1138_v41  ;;  %v1140_v53 = vpop.f32.mrb[17].mxu1  ;;  %2182 = vst [vmem:[%s2773_s4 + $0x70] sm:$0xff] %v2054_v48  ;;  %v1673_v56 = vadd.f32 %v2763_v45, %v980_v52  ;;  %v982_v58 = vpop.f32.mrb[18].mxu0  ;;  %vm1800_vm1 = vcmp.ge.f32.partialorder %v1672_v50, 0.0 }
 0x116   : > { %2246 = vst [vmem:[%s2773_s4 + $0x270] sm:$0xff] %v2118_v49  ;;  %v2055_v54 = vsel %vm1799_vm15, %v1671_v38, %v1927_v46  ;;  %v2119_v55 = vsel %vm1863_vm0, %v1735_v39, %v1991_v47  ;;  %v1737_v57 = vadd.f32 %v2763_v45, %v1140_v53  ;;  %v1142_v59 = vpop.f32.mrb[18].mxu1  ;;  %v1928_v60 = vmul.f32 0.2, %v1672_v50  ;;  %v984_v4 = vpop.f32.mrb[19].mxu0 }
 0x117   : > { %2183 = vst [vmem:[%s2773_s4 + $0x78] sm:$0xff] %v2055_v54  ;;  %2247 = vst [vmem:[%s2773_s4 + $0x278] sm:$0xff] %v2119_v55  ;;  %vm1864_vm2 = vcmp.ge.f32.partialorder %v1736_v51, 0.0  ;;  %v1992_v61 = vmul.f32 0.2, %v1736_v51  ;;  %vm1801_vm3 = vcmp.ge.f32.partialorder %v1673_v56, 0.0  ;;  %v1674_v2 = vadd.f32 %v2761_v44, %v982_v58 }
 0x118   : > { %v1929_v62 = vmul.f32 0.2, %v1673_v56  ;;  %vm1865_vm4 = vcmp.ge.f32.partialorder %v1737_v57, 0.0  ;;  %v1993_v63 = vmul.f32 0.2, %v1737_v57  ;;  %v2056_v0 = vsel %vm1800_vm1, %v1672_v50, %v1928_v60  ;;  %v1144_v5 = vpop.f32.mrb[19].mxu1 }
 0x119   : > { %v2120_v1 = vsel %vm1864_vm2, %v1736_v51, %v1992_v61  ;;  %v1738_v3 = vadd.f32 %v2761_v44, %v1142_v59  ;;  %2184 = vst [vmem:[%s2773_s4 + $0x80] sm:$0xff] %v2056_v0  ;;  %v1675_v8 = vadd.f32 %v2763_v45, %v984_v4  ;;  %v1739_v9 = vadd.f32 %v2763_v45, %v1144_v5 }
 0x11a   : > { %2248 = vst [vmem:[%s2773_s4 + $0x280] sm:$0xff] %v2120_v1  ;;  %v2057_v6 = vsel %vm1801_vm3, %v1673_v56, %v1929_v62  ;;  %v2121_v7 = vsel %vm1865_vm4, %v1737_v57, %v1993_v63  ;;  %v988_v10 = vpop.f32.mrb[20].mxu0  ;;  %v1148_v11 = vpop.f32.mrb[20].mxu1  ;;  %vm1802_vm5 = vcmp.ge.f32.partialorder %v1674_v2, 0.0  ;;  %v1930_v12 = vmul.f32 0.2, %v1674_v2 }
 0x11b   : > { %2185 = vst [vmem:[%s2773_s4 + $0x88] sm:$0xff] %v2057_v6  ;;  %2249 = vst [vmem:[%s2773_s4 + $0x288] sm:$0xff] %v2121_v7  ;;  %vm1866_vm6 = vcmp.ge.f32.partialorder %v1738_v3, 0.0  ;;  %v1994_v13 = vmul.f32 0.2, %v1738_v3  ;;  %vm1803_vm7 = vcmp.ge.f32.partialorder %v1675_v8, 0.0  ;;  %v1676_v18 = vadd.f32 %v2761_v44, %v988_v10 }
 0x11c   : > { %v1931_v14 = vmul.f32 0.2, %v1675_v8  ;;  %vm1867_vm8 = vcmp.ge.f32.partialorder %v1739_v9, 0.0  ;;  %v1995_v15 = vmul.f32 0.2, %v1739_v9  ;;  %v2058_v16 = vsel %vm1802_vm5, %v1674_v2, %v1930_v12  ;;  %v990_v20 = vpop.f32.mrb[21].mxu0 }
 0x11d   : > { %v2122_v17 = vsel %vm1866_vm6, %v1738_v3, %v1994_v13  ;;  %v1740_v19 = vadd.f32 %v2761_v44, %v1148_v11  ;;  %v1150_v21 = vpop.f32.mrb[21].mxu1  ;;  %2186 = vst [vmem:[%s2773_s4 + $0x90] sm:$0xff] %v2058_v16  ;;  %v1677_v24 = vadd.f32 %v2763_v45, %v990_v20  ;;  %v992_v26 = vpop.f32.mrb[22].mxu0  ;;  %vm1804_vm9 = vcmp.ge.f32.partialorder %v1676_v18, 0.0 }
 0x11e   : > { %2250 = vst [vmem:[%s2773_s4 + $0x290] sm:$0xff] %v2122_v17  ;;  %v2059_v22 = vsel %vm1803_vm7, %v1675_v8, %v1931_v14  ;;  %v2123_v23 = vsel %vm1867_vm8, %v1739_v9, %v1995_v15  ;;  %v1741_v25 = vadd.f32 %v2763_v45, %v1150_v21  ;;  %v1152_v27 = vpop.f32.mrb[22].mxu1  ;;  %v1932_v28 = vmul.f32 0.2, %v1676_v18  ;;  %v994_v36 = vpop.f32.mrb[23].mxu0 }
 0x11f   : > { %2187 = vst [vmem:[%s2773_s4 + $0x98] sm:$0xff] %v2059_v22  ;;  %2251 = vst [vmem:[%s2773_s4 + $0x298] sm:$0xff] %v2123_v23  ;;  %vm1868_vm10 = vcmp.ge.f32.partialorder %v1740_v19, 0.0  ;;  %v1996_v29 = vmul.f32 0.2, %v1740_v19  ;;  %vm1805_vm11 = vcmp.ge.f32.partialorder %v1677_v24, 0.0  ;;  %v1678_v34 = vadd.f32 %v2761_v44, %v992_v26 }
 0x120   : > { %v1933_v30 = vmul.f32 0.2, %v1677_v24  ;;  %vm1869_vm12 = vcmp.ge.f32.partialorder %v1741_v25, 0.0  ;;  %v1997_v31 = vmul.f32 0.2, %v1741_v25  ;;  %v2060_v32 = vsel %vm1804_vm9, %v1676_v18, %v1932_v28  ;;  %v1154_v37 = vpop.f32.mrb[23].mxu1 }
 0x121   : > { %v2124_v33 = vsel %vm1868_vm10, %v1740_v19, %v1996_v29  ;;  %v1742_v35 = vadd.f32 %v2761_v44, %v1152_v27  ;;  %2188 = vst [vmem:[%s2773_s4 + $0xa0] sm:$0xff] %v2060_v32  ;;  %v1679_v40 = vadd.f32 %v2763_v45, %v994_v36  ;;  %v1743_v41 = vadd.f32 %v2763_v45, %v1154_v37 }
 0x122   : > { %2252 = vst [vmem:[%s2773_s4 + $0x2a0] sm:$0xff] %v2124_v33  ;;  %v2061_v38 = vsel %vm1805_vm11, %v1677_v24, %v1933_v30  ;;  %v2125_v39 = vsel %vm1869_vm12, %v1741_v25, %v1997_v31  ;;  %v998_v42 = vpop.f32.mrb[24].mxu0  ;;  %v1158_v43 = vpop.f32.mrb[24].mxu1  ;;  %vm1806_vm13 = vcmp.ge.f32.partialorder %v1678_v34, 0.0  ;;  %v1934_v46 = vmul.f32 0.2, %v1678_v34 }
 0x123   : > { %2189 = vst [vmem:[%s2773_s4 + $0xa8] sm:$0xff] %v2061_v38  ;;  %2253 = vst [vmem:[%s2773_s4 + $0x2a8] sm:$0xff] %v2125_v39  ;;  %vm1870_vm14 = vcmp.ge.f32.partialorder %v1742_v35, 0.0  ;;  %v1998_v47 = vmul.f32 0.2, %v1742_v35  ;;  %vm1807_vm15 = vcmp.ge.f32.partialorder %v1679_v40, 0.0  ;;  %v1680_v52 = vadd.f32 %v2761_v44, %v998_v42 }
 0x124   : > { %v1935_v48 = vmul.f32 0.2, %v1679_v40  ;;  %vm1871_vm0 = vcmp.ge.f32.partialorder %v1743_v41, 0.0  ;;  %v1999_v49 = vmul.f32 0.2, %v1743_v41  ;;  %v2062_v50 = vsel %vm1806_vm13, %v1678_v34, %v1934_v46  ;;  %v1000_v54 = vpop.f32.mrb[25].mxu0 }
 0x125   : > { %v2126_v51 = vsel %vm1870_vm14, %v1742_v35, %v1998_v47  ;;  %v1744_v53 = vadd.f32 %v2761_v44, %v1158_v43  ;;  %v1160_v55 = vpop.f32.mrb[25].mxu1  ;;  %2190 = vst [vmem:[%s2773_s4 + $0xb0] sm:$0xff] %v2062_v50  ;;  %v1681_v58 = vadd.f32 %v2763_v45, %v1000_v54  ;;  %v1002_v60 = vpop.f32.mrb[26].mxu0  ;;  %vm1808_vm1 = vcmp.ge.f32.partialorder %v1680_v52, 0.0 }
 0x126   : > { %2254 = vst [vmem:[%s2773_s4 + $0x2b0] sm:$0xff] %v2126_v51  ;;  %v2063_v56 = vsel %vm1807_vm15, %v1679_v40, %v1935_v48  ;;  %v2127_v57 = vsel %vm1871_vm0, %v1743_v41, %v1999_v49  ;;  %v1745_v59 = vadd.f32 %v2763_v45, %v1160_v55  ;;  %v1162_v61 = vpop.f32.mrb[26].mxu1  ;;  %v1936_v62 = vmul.f32 0.2, %v1680_v52  ;;  %v1004_v6 = vpop.f32.mrb[27].mxu0 }
 0x127   : > { %2191 = vst [vmem:[%s2773_s4 + $0xb8] sm:$0xff] %v2063_v56  ;;  %2255 = vst [vmem:[%s2773_s4 + $0x2b8] sm:$0xff] %v2127_v57  ;;  %vm1872_vm2 = vcmp.ge.f32.partialorder %v1744_v53, 0.0  ;;  %v2000_v63 = vmul.f32 0.2, %v1744_v53  ;;  %vm1809_vm3 = vcmp.ge.f32.partialorder %v1681_v58, 0.0  ;;  %v1682_v4 = vadd.f32 %v2761_v44, %v1002_v60 }
 0x128   : > { %v1937_v0 = vmul.f32 0.2, %v1681_v58  ;;  %vm1873_vm4 = vcmp.ge.f32.partialorder %v1745_v59, 0.0  ;;  %v2001_v1 = vmul.f32 0.2, %v1745_v59  ;;  %v2064_v2 = vsel %vm1808_vm1, %v1680_v52, %v1936_v62  ;;  %v1164_v7 = vpop.f32.mrb[27].mxu1 }
 0x129   : > { %v2128_v3 = vsel %vm1872_vm2, %v1744_v53, %v2000_v63  ;;  %v1746_v5 = vadd.f32 %v2761_v44, %v1162_v61  ;;  %2192 = vst [vmem:[%s2773_s4 + $0xc0] sm:$0xff] %v2064_v2  ;;  %v1683_v10 = vadd.f32 %v2763_v45, %v1004_v6  ;;  %v1747_v11 = vadd.f32 %v2763_v45, %v1164_v7 }
 0x12a   : > { %2256 = vst [vmem:[%s2773_s4 + $0x2c0] sm:$0xff] %v2128_v3  ;;  %v2065_v8 = vsel %vm1809_vm3, %v1681_v58, %v1937_v0  ;;  %v2129_v9 = vsel %vm1873_vm4, %v1745_v59, %v2001_v1  ;;  %v1008_v12 = vpop.f32.mrb[28].mxu0  ;;  %v1168_v13 = vpop.f32.mrb[28].mxu1  ;;  %vm1810_vm5 = vcmp.ge.f32.partialorder %v1682_v4, 0.0  ;;  %v1938_v14 = vmul.f32 0.2, %v1682_v4 }
 0x12b   : > { %2193 = vst [vmem:[%s2773_s4 + $0xc8] sm:$0xff] %v2065_v8  ;;  %2257 = vst [vmem:[%s2773_s4 + $0x2c8] sm:$0xff] %v2129_v9  ;;  %vm1874_vm6 = vcmp.ge.f32.partialorder %v1746_v5, 0.0  ;;  %v2002_v15 = vmul.f32 0.2, %v1746_v5  ;;  %vm1811_vm7 = vcmp.ge.f32.partialorder %v1683_v10, 0.0  ;;  %v1684_v20 = vadd.f32 %v2761_v44, %v1008_v12 }
 0x12c   : > { %v1939_v16 = vmul.f32 0.2, %v1683_v10  ;;  %vm1875_vm8 = vcmp.ge.f32.partialorder %v1747_v11, 0.0  ;;  %v2003_v17 = vmul.f32 0.2, %v1747_v11  ;;  %v2066_v18 = vsel %vm1810_vm5, %v1682_v4, %v1938_v14  ;;  %v1010_v22 = vpop.f32.mrb[29].mxu0 }
 0x12d   : > { %v2130_v19 = vsel %vm1874_vm6, %v1746_v5, %v2002_v15  ;;  %v1748_v21 = vadd.f32 %v2761_v44, %v1168_v13  ;;  %v1170_v23 = vpop.f32.mrb[29].mxu1  ;;  %2194 = vst [vmem:[%s2773_s4 + $0xd0] sm:$0xff] %v2066_v18  ;;  %v1685_v26 = vadd.f32 %v2763_v45, %v1010_v22  ;;  %v1012_v28 = vpop.f32.mrb[30].mxu0  ;;  %vm1812_vm9 = vcmp.ge.f32.partialorder %v1684_v20, 0.0 }
 0x12e   : > { %2258 = vst [vmem:[%s2773_s4 + $0x2d0] sm:$0xff] %v2130_v19  ;;  %v2067_v24 = vsel %vm1811_vm7, %v1683_v10, %v1939_v16  ;;  %v2131_v25 = vsel %vm1875_vm8, %v1747_v11, %v2003_v17  ;;  %v1749_v27 = vadd.f32 %v2763_v45, %v1170_v23  ;;  %v1172_v29 = vpop.f32.mrb[30].mxu1  ;;  %v1940_v30 = vmul.f32 0.2, %v1684_v20  ;;  %v1014_v38 = vpop.f32.mrb[31].mxu0 }
 0x12f   : > { %2195 = vst [vmem:[%s2773_s4 + $0xd8] sm:$0xff] %v2067_v24  ;;  %2259 = vst [vmem:[%s2773_s4 + $0x2d8] sm:$0xff] %v2131_v25  ;;  %vm1876_vm10 = vcmp.ge.f32.partialorder %v1748_v21, 0.0  ;;  %v2004_v31 = vmul.f32 0.2, %v1748_v21  ;;  %vm1813_vm11 = vcmp.ge.f32.partialorder %v1685_v26, 0.0  ;;  %v1686_v36 = vadd.f32 %v2761_v44, %v1012_v28 }
 0x130   : > { %v1941_v32 = vmul.f32 0.2, %v1685_v26  ;;  %vm1877_vm12 = vcmp.ge.f32.partialorder %v1749_v27, 0.0  ;;  %v2005_v33 = vmul.f32 0.2, %v1749_v27  ;;  %v2068_v34 = vsel %vm1812_vm9, %v1684_v20, %v1940_v30  ;;  %v1174_v39 = vpop.f32.mrb[31].mxu1 }
 0x131   : > { %v2132_v35 = vsel %vm1876_vm10, %v1748_v21, %v2004_v31  ;;  %v1750_v37 = vadd.f32 %v2761_v44, %v1172_v29  ;;  %2196 = vst [vmem:[%s2773_s4 + $0xe0] sm:$0xff] %v2068_v34  ;;  %v1687_v42 = vadd.f32 %v2763_v45, %v1014_v38  ;;  %v1751_v43 = vadd.f32 %v2763_v45, %v1174_v39 }
 0x132   : > { %2260 = vst [vmem:[%s2773_s4 + $0x2e0] sm:$0xff] %v2132_v35  ;;  %v2069_v40 = vsel %vm1813_vm11, %v1685_v26, %v1941_v32  ;;  %v2133_v41 = vsel %vm1877_vm12, %v1749_v27, %v2005_v33  ;;  %v1018_v46 = vpop.f32.mrb[32].mxu0  ;;  %v1178_v47 = vpop.f32.mrb[32].mxu1  ;;  %vm1814_vm13 = vcmp.ge.f32.partialorder %v1686_v36, 0.0  ;;  %v1942_v48 = vmul.f32 0.2, %v1686_v36 }
 0x133   : > { %2197 = vst [vmem:[%s2773_s4 + $0xe8] sm:$0xff] %v2069_v40  ;;  %2261 = vst [vmem:[%s2773_s4 + $0x2e8] sm:$0xff] %v2133_v41  ;;  %vm1878_vm14 = vcmp.ge.f32.partialorder %v1750_v37, 0.0  ;;  %v2006_v49 = vmul.f32 0.2, %v1750_v37  ;;  %vm1815_vm15 = vcmp.ge.f32.partialorder %v1687_v42, 0.0  ;;  %v1688_v54 = vadd.f32 %v2761_v44, %v1018_v46 }
 0x134   : > { %v1943_v50 = vmul.f32 0.2, %v1687_v42  ;;  %vm1879_vm0 = vcmp.ge.f32.partialorder %v1751_v43, 0.0  ;;  %v2007_v51 = vmul.f32 0.2, %v1751_v43  ;;  %v2070_v52 = vsel %vm1814_vm13, %v1686_v36, %v1942_v48  ;;  %v1020_v56 = vpop.f32.mrb[33].mxu0 }
 0x135   : > { %v2134_v53 = vsel %vm1878_vm14, %v1750_v37, %v2006_v49  ;;  %v1752_v55 = vadd.f32 %v2761_v44, %v1178_v47  ;;  %v1180_v57 = vpop.f32.mrb[33].mxu1  ;;  %2198 = vst [vmem:[%s2773_s4 + $0xf0] sm:$0xff] %v2070_v52  ;;  %v1689_v60 = vadd.f32 %v2763_v45, %v1020_v56  ;;  %v1022_v62 = vpop.f32.mrb[34].mxu0  ;;  %vm1816_vm1 = vcmp.ge.f32.partialorder %v1688_v54, 0.0 }
 0x136   : > { %2262 = vst [vmem:[%s2773_s4 + $0x2f0] sm:$0xff] %v2134_v53  ;;  %v2071_v58 = vsel %vm1815_vm15, %v1687_v42, %v1943_v50  ;;  %v2135_v59 = vsel %vm1879_vm0, %v1751_v43, %v2007_v51  ;;  %v1753_v61 = vadd.f32 %v2763_v45, %v1180_v57  ;;  %v1182_v63 = vpop.f32.mrb[34].mxu1  ;;  %v1944_v0 = vmul.f32 0.2, %v1688_v54  ;;  %v1024_v8 = vpop.f32.mrb[35].mxu0 }
 0x137   : > { %2199 = vst [vmem:[%s2773_s4 + $0xf8] sm:$0xff] %v2071_v58  ;;  %2263 = vst [vmem:[%s2773_s4 + $0x2f8] sm:$0xff] %v2135_v59  ;;  %vm1880_vm2 = vcmp.ge.f32.partialorder %v1752_v55, 0.0  ;;  %v2008_v1 = vmul.f32 0.2, %v1752_v55  ;;  %vm1817_vm3 = vcmp.ge.f32.partialorder %v1689_v60, 0.0  ;;  %v1690_v6 = vadd.f32 %v2761_v44, %v1022_v62 }
 0x138   : > { %v1945_v2 = vmul.f32 0.2, %v1689_v60  ;;  %vm1881_vm4 = vcmp.ge.f32.partialorder %v1753_v61, 0.0  ;;  %v2009_v3 = vmul.f32 0.2, %v1753_v61  ;;  %v2072_v4 = vsel %vm1816_vm1, %v1688_v54, %v1944_v0  ;;  %v1184_v9 = vpop.f32.mrb[35].mxu1 }
 0x139   : > { %v2136_v5 = vsel %vm1880_vm2, %v1752_v55, %v2008_v1  ;;  %v1754_v7 = vadd.f32 %v2761_v44, %v1182_v63  ;;  %2200 = vst [vmem:[%s2773_s4 + $0x100] sm:$0xff] %v2072_v4  ;;  %v1691_v12 = vadd.f32 %v2763_v45, %v1024_v8  ;;  %v1755_v13 = vadd.f32 %v2763_v45, %v1184_v9 }
 0x13a   : > { %2264 = vst [vmem:[%s2773_s4 + $0x300] sm:$0xff] %v2136_v5  ;;  %v2073_v10 = vsel %vm1817_vm3, %v1689_v60, %v1945_v2  ;;  %v2137_v11 = vsel %vm1881_vm4, %v1753_v61, %v2009_v3  ;;  %v1028_v14 = vpop.f32.mrb[36].mxu0  ;;  %v1188_v15 = vpop.f32.mrb[36].mxu1  ;;  %vm1818_vm5 = vcmp.ge.f32.partialorder %v1690_v6, 0.0  ;;  %v1946_v16 = vmul.f32 0.2, %v1690_v6 }
 0x13b   : > { %2201 = vst [vmem:[%s2773_s4 + $0x108] sm:$0xff] %v2073_v10  ;;  %2265 = vst [vmem:[%s2773_s4 + $0x308] sm:$0xff] %v2137_v11  ;;  %vm1882_vm6 = vcmp.ge.f32.partialorder %v1754_v7, 0.0  ;;  %v2010_v17 = vmul.f32 0.2, %v1754_v7  ;;  %vm1819_vm7 = vcmp.ge.f32.partialorder %v1691_v12, 0.0  ;;  %v1692_v22 = vadd.f32 %v2761_v44, %v1028_v14 }
 0x13c   : > { %v1947_v18 = vmul.f32 0.2, %v1691_v12  ;;  %vm1883_vm8 = vcmp.ge.f32.partialorder %v1755_v13, 0.0  ;;  %v2011_v19 = vmul.f32 0.2, %v1755_v13  ;;  %v2074_v20 = vsel %vm1818_vm5, %v1690_v6, %v1946_v16  ;;  %v1030_v24 = vpop.f32.mrb[37].mxu0 }
 0x13d   : > { %v2138_v21 = vsel %vm1882_vm6, %v1754_v7, %v2010_v17  ;;  %v1756_v23 = vadd.f32 %v2761_v44, %v1188_v15  ;;  %v1190_v25 = vpop.f32.mrb[37].mxu1  ;;  %2202 = vst [vmem:[%s2773_s4 + $0x110] sm:$0xff] %v2074_v20  ;;  %v1693_v28 = vadd.f32 %v2763_v45, %v1030_v24  ;;  %v1032_v30 = vpop.f32.mrb[38].mxu0  ;;  %vm1820_vm9 = vcmp.ge.f32.partialorder %v1692_v22, 0.0 }
 0x13e   : > { %2266 = vst [vmem:[%s2773_s4 + $0x310] sm:$0xff] %v2138_v21  ;;  %v2075_v26 = vsel %vm1819_vm7, %v1691_v12, %v1947_v18  ;;  %v2139_v27 = vsel %vm1883_vm8, %v1755_v13, %v2011_v19  ;;  %v1757_v29 = vadd.f32 %v2763_v45, %v1190_v25  ;;  %v1192_v31 = vpop.f32.mrb[38].mxu1  ;;  %v1948_v32 = vmul.f32 0.2, %v1692_v22  ;;  %v1034_v40 = vpop.f32.mrb[39].mxu0 }
 0x13f   : > { %2203 = vst [vmem:[%s2773_s4 + $0x118] sm:$0xff] %v2075_v26  ;;  %2267 = vst [vmem:[%s2773_s4 + $0x318] sm:$0xff] %v2139_v27  ;;  %vm1884_vm10 = vcmp.ge.f32.partialorder %v1756_v23, 0.0  ;;  %v2012_v33 = vmul.f32 0.2, %v1756_v23  ;;  %vm1821_vm11 = vcmp.ge.f32.partialorder %v1693_v28, 0.0  ;;  %v1694_v38 = vadd.f32 %v2761_v44, %v1032_v30 }
 0x140   : > { %v1949_v34 = vmul.f32 0.2, %v1693_v28  ;;  %vm1885_vm12 = vcmp.ge.f32.partialorder %v1757_v29, 0.0  ;;  %v2013_v35 = vmul.f32 0.2, %v1757_v29  ;;  %v2076_v36 = vsel %vm1820_vm9, %v1692_v22, %v1948_v32  ;;  %v1194_v41 = vpop.f32.mrb[39].mxu1 }
 0x141   : > { %v2140_v37 = vsel %vm1884_vm10, %v1756_v23, %v2012_v33  ;;  %v1758_v39 = vadd.f32 %v2761_v44, %v1192_v31  ;;  %2204 = vst [vmem:[%s2773_s4 + $0x120] sm:$0xff] %v2076_v36  ;;  %v1695_v46 = vadd.f32 %v2763_v45, %v1034_v40  ;;  %v1759_v47 = vadd.f32 %v2763_v45, %v1194_v41 }
 0x142   : > { %2268 = vst [vmem:[%s2773_s4 + $0x320] sm:$0xff] %v2140_v37  ;;  %v2077_v42 = vsel %vm1821_vm11, %v1693_v28, %v1949_v34  ;;  %v2141_v43 = vsel %vm1885_vm12, %v1757_v29, %v2013_v35  ;;  %v1038_v48 = vpop.f32.mrb[40].mxu0  ;;  %v1198_v49 = vpop.f32.mrb[40].mxu1  ;;  %vm1822_vm13 = vcmp.ge.f32.partialorder %v1694_v38, 0.0  ;;  %v1950_v50 = vmul.f32 0.2, %v1694_v38 }
 0x143   : > { %2205 = vst [vmem:[%s2773_s4 + $0x128] sm:$0xff] %v2077_v42  ;;  %2269 = vst [vmem:[%s2773_s4 + $0x328] sm:$0xff] %v2141_v43  ;;  %vm1886_vm14 = vcmp.ge.f32.partialorder %v1758_v39, 0.0  ;;  %v2014_v51 = vmul.f32 0.2, %v1758_v39  ;;  %vm1823_vm15 = vcmp.ge.f32.partialorder %v1695_v46, 0.0  ;;  %v1696_v56 = vadd.f32 %v2761_v44, %v1038_v48 }
 0x144   : > { %v1951_v52 = vmul.f32 0.2, %v1695_v46  ;;  %vm1887_vm0 = vcmp.ge.f32.partialorder %v1759_v47, 0.0  ;;  %v2015_v53 = vmul.f32 0.2, %v1759_v47  ;;  %v2078_v54 = vsel %vm1822_vm13, %v1694_v38, %v1950_v50  ;;  %v1040_v58 = vpop.f32.mrb[41].mxu0 }
 0x145   : > { %v2142_v55 = vsel %vm1886_vm14, %v1758_v39, %v2014_v51  ;;  %v1760_v57 = vadd.f32 %v2761_v44, %v1198_v49  ;;  %v1200_v59 = vpop.f32.mrb[41].mxu1  ;;  %2206 = vst [vmem:[%s2773_s4 + $0x130] sm:$0xff] %v2078_v54  ;;  %v1697_v62 = vadd.f32 %v2763_v45, %v1040_v58  ;;  %v1042_v0 = vpop.f32.mrb[42].mxu0  ;;  %vm1824_vm1 = vcmp.ge.f32.partialorder %v1696_v56, 0.0 }
 0x146   : > { %2270 = vst [vmem:[%s2773_s4 + $0x330] sm:$0xff] %v2142_v55  ;;  %v2079_v60 = vsel %vm1823_vm15, %v1695_v46, %v1951_v52  ;;  %v2143_v61 = vsel %vm1887_vm0, %v1759_v47, %v2015_v53  ;;  %v1761_v63 = vadd.f32 %v2763_v45, %v1200_v59  ;;  %v1202_v1 = vpop.f32.mrb[42].mxu1  ;;  %v1952_v2 = vmul.f32 0.2, %v1696_v56  ;;  %v1044_v10 = vpop.f32.mrb[43].mxu0 }
 0x147   : > { %2207 = vst [vmem:[%s2773_s4 + $0x138] sm:$0xff] %v2079_v60  ;;  %2271 = vst [vmem:[%s2773_s4 + $0x338] sm:$0xff] %v2143_v61  ;;  %vm1888_vm2 = vcmp.ge.f32.partialorder %v1760_v57, 0.0  ;;  %v2016_v3 = vmul.f32 0.2, %v1760_v57  ;;  %vm1825_vm3 = vcmp.ge.f32.partialorder %v1697_v62, 0.0  ;;  %v1698_v8 = vadd.f32 %v2761_v44, %v1042_v0 }
 0x148   : > { %v1953_v4 = vmul.f32 0.2, %v1697_v62  ;;  %vm1889_vm4 = vcmp.ge.f32.partialorder %v1761_v63, 0.0  ;;  %v2017_v5 = vmul.f32 0.2, %v1761_v63  ;;  %v2080_v6 = vsel %vm1824_vm1, %v1696_v56, %v1952_v2  ;;  %v1204_v11 = vpop.f32.mrb[43].mxu1 }
 0x149   : > { %v2144_v7 = vsel %vm1888_vm2, %v1760_v57, %v2016_v3  ;;  %v1762_v9 = vadd.f32 %v2761_v44, %v1202_v1  ;;  %2208 = vst [vmem:[%s2773_s4 + $0x140] sm:$0xff] %v2080_v6  ;;  %v1699_v14 = vadd.f32 %v2763_v45, %v1044_v10  ;;  %v1763_v15 = vadd.f32 %v2763_v45, %v1204_v11 }
 0x14a   : > { %2272 = vst [vmem:[%s2773_s4 + $0x340] sm:$0xff] %v2144_v7  ;;  %v2081_v12 = vsel %vm1825_vm3, %v1697_v62, %v1953_v4  ;;  %v2145_v13 = vsel %vm1889_vm4, %v1761_v63, %v2017_v5  ;;  %v1048_v16 = vpop.f32.mrb[44].mxu0  ;;  %v1208_v17 = vpop.f32.mrb[44].mxu1  ;;  %vm1826_vm5 = vcmp.ge.f32.partialorder %v1698_v8, 0.0  ;;  %v1954_v18 = vmul.f32 0.2, %v1698_v8 }
 0x14b   : > { %2209 = vst [vmem:[%s2773_s4 + $0x148] sm:$0xff] %v2081_v12  ;;  %2273 = vst [vmem:[%s2773_s4 + $0x348] sm:$0xff] %v2145_v13  ;;  %vm1890_vm6 = vcmp.ge.f32.partialorder %v1762_v9, 0.0  ;;  %v2018_v19 = vmul.f32 0.2, %v1762_v9  ;;  %vm1827_vm7 = vcmp.ge.f32.partialorder %v1699_v14, 0.0  ;;  %v1700_v24 = vadd.f32 %v2761_v44, %v1048_v16 }
 0x14c   : > { %v1955_v20 = vmul.f32 0.2, %v1699_v14  ;;  %vm1891_vm8 = vcmp.ge.f32.partialorder %v1763_v15, 0.0  ;;  %v2019_v21 = vmul.f32 0.2, %v1763_v15  ;;  %v2082_v22 = vsel %vm1826_vm5, %v1698_v8, %v1954_v18  ;;  %v1050_v26 = vpop.f32.mrb[45].mxu0 }
 0x14d   : > { %v2146_v23 = vsel %vm1890_vm6, %v1762_v9, %v2018_v19  ;;  %v1764_v25 = vadd.f32 %v2761_v44, %v1208_v17  ;;  %v1210_v27 = vpop.f32.mrb[45].mxu1  ;;  %2210 = vst [vmem:[%s2773_s4 + $0x150] sm:$0xff] %v2082_v22  ;;  %v1701_v30 = vadd.f32 %v2763_v45, %v1050_v26  ;;  %v1052_v32 = vpop.f32.mrb[46].mxu0  ;;  %vm1828_vm9 = vcmp.ge.f32.partialorder %v1700_v24, 0.0 }
 0x14e   : > { %2274 = vst [vmem:[%s2773_s4 + $0x350] sm:$0xff] %v2146_v23  ;;  %v2083_v28 = vsel %vm1827_vm7, %v1699_v14, %v1955_v20  ;;  %v2147_v29 = vsel %vm1891_vm8, %v1763_v15, %v2019_v21  ;;  %v1765_v31 = vadd.f32 %v2763_v45, %v1210_v27  ;;  %v1212_v33 = vpop.f32.mrb[46].mxu1  ;;  %v1956_v34 = vmul.f32 0.2, %v1700_v24  ;;  %v1054_v42 = vpop.f32.mrb[47].mxu0 }
 0x14f   : > { %2211 = vst [vmem:[%s2773_s4 + $0x158] sm:$0xff] %v2083_v28  ;;  %2275 = vst [vmem:[%s2773_s4 + $0x358] sm:$0xff] %v2147_v29  ;;  %vm1892_vm10 = vcmp.ge.f32.partialorder %v1764_v25, 0.0  ;;  %v2020_v35 = vmul.f32 0.2, %v1764_v25  ;;  %vm1829_vm11 = vcmp.ge.f32.partialorder %v1701_v30, 0.0  ;;  %v1702_v40 = vadd.f32 %v2761_v44, %v1052_v32 }
 0x150   : > { %v1957_v36 = vmul.f32 0.2, %v1701_v30  ;;  %vm1893_vm12 = vcmp.ge.f32.partialorder %v1765_v31, 0.0  ;;  %v2021_v37 = vmul.f32 0.2, %v1765_v31  ;;  %v2084_v38 = vsel %vm1828_vm9, %v1700_v24, %v1956_v34  ;;  %v1214_v43 = vpop.f32.mrb[47].mxu1 }
 0x151   : > { %v2148_v39 = vsel %vm1892_vm10, %v1764_v25, %v2020_v35  ;;  %v1766_v41 = vadd.f32 %v2761_v44, %v1212_v33  ;;  %2212 = vst [vmem:[%s2773_s4 + $0x160] sm:$0xff] %v2084_v38  ;;  %v1703_v48 = vadd.f32 %v2763_v45, %v1054_v42  ;;  %v1767_v49 = vadd.f32 %v2763_v45, %v1214_v43 }
 0x152   : > { %2276 = vst [vmem:[%s2773_s4 + $0x360] sm:$0xff] %v2148_v39  ;;  %v2085_v46 = vsel %vm1829_vm11, %v1701_v30, %v1957_v36  ;;  %v2149_v47 = vsel %vm1893_vm12, %v1765_v31, %v2021_v37  ;;  %v1058_v50 = vpop.f32.mrb[48].mxu0  ;;  %v1218_v51 = vpop.f32.mrb[48].mxu1  ;;  %vm1830_vm13 = vcmp.ge.f32.partialorder %v1702_v40, 0.0  ;;  %v1958_v52 = vmul.f32 0.2, %v1702_v40 }
 0x153   : > { %2213 = vst [vmem:[%s2773_s4 + $0x168] sm:$0xff] %v2085_v46  ;;  %2277 = vst [vmem:[%s2773_s4 + $0x368] sm:$0xff] %v2149_v47  ;;  %vm1894_vm14 = vcmp.ge.f32.partialorder %v1766_v41, 0.0  ;;  %v2022_v53 = vmul.f32 0.2, %v1766_v41  ;;  %vm1831_vm15 = vcmp.ge.f32.partialorder %v1703_v48, 0.0  ;;  %v1704_v58 = vadd.f32 %v2761_v44, %v1058_v50 }
 0x154   : > { %v1959_v54 = vmul.f32 0.2, %v1703_v48  ;;  %vm1895_vm0 = vcmp.ge.f32.partialorder %v1767_v49, 0.0  ;;  %v2023_v55 = vmul.f32 0.2, %v1767_v49  ;;  %v2086_v56 = vsel %vm1830_vm13, %v1702_v40, %v1958_v52  ;;  %v1060_v60 = vpop.f32.mrb[49].mxu0 }
 0x155   : > { %v2150_v57 = vsel %vm1894_vm14, %v1766_v41, %v2022_v53  ;;  %v1768_v59 = vadd.f32 %v2761_v44, %v1218_v51  ;;  %v1220_v61 = vpop.f32.mrb[49].mxu1  ;;  %2214 = vst [vmem:[%s2773_s4 + $0x170] sm:$0xff] %v2086_v56  ;;  %v1705_v0 = vadd.f32 %v2763_v45, %v1060_v60  ;;  %v1062_v2 = vpop.f32.mrb[50].mxu0  ;;  %vm1832_vm1 = vcmp.ge.f32.partialorder %v1704_v58, 0.0 }
 0x156   : > { %2278 = vst [vmem:[%s2773_s4 + $0x370] sm:$0xff] %v2150_v57  ;;  %v2087_v62 = vsel %vm1831_vm15, %v1703_v48, %v1959_v54  ;;  %v2151_v63 = vsel %vm1895_vm0, %v1767_v49, %v2023_v55  ;;  %v1769_v1 = vadd.f32 %v2763_v45, %v1220_v61  ;;  %v1222_v3 = vpop.f32.mrb[50].mxu1  ;;  %v1960_v4 = vmul.f32 0.2, %v1704_v58  ;;  %v1064_v12 = vpop.f32.mrb[51].mxu0 }
 0x157   : > { %2215 = vst [vmem:[%s2773_s4 + $0x178] sm:$0xff] %v2087_v62  ;;  %2279 = vst [vmem:[%s2773_s4 + $0x378] sm:$0xff] %v2151_v63  ;;  %vm1896_vm2 = vcmp.ge.f32.partialorder %v1768_v59, 0.0  ;;  %v2024_v5 = vmul.f32 0.2, %v1768_v59  ;;  %vm1833_vm3 = vcmp.ge.f32.partialorder %v1705_v0, 0.0  ;;  %v1706_v10 = vadd.f32 %v2761_v44, %v1062_v2 }
 0x158   : > { %v1961_v6 = vmul.f32 0.2, %v1705_v0  ;;  %vm1897_vm4 = vcmp.ge.f32.partialorder %v1769_v1, 0.0  ;;  %v2025_v7 = vmul.f32 0.2, %v1769_v1  ;;  %v2088_v8 = vsel %vm1832_vm1, %v1704_v58, %v1960_v4  ;;  %v1224_v13 = vpop.f32.mrb[51].mxu1 }
 0x159   : > { %v2152_v9 = vsel %vm1896_vm2, %v1768_v59, %v2024_v5  ;;  %v1770_v11 = vadd.f32 %v2761_v44, %v1222_v3  ;;  %2216 = vst [vmem:[%s2773_s4 + $0x180] sm:$0xff] %v2088_v8  ;;  %v1707_v16 = vadd.f32 %v2763_v45, %v1064_v12  ;;  %v1771_v17 = vadd.f32 %v2763_v45, %v1224_v13 }
 0x15a   : > { %2280 = vst [vmem:[%s2773_s4 + $0x380] sm:$0xff] %v2152_v9  ;;  %v2089_v14 = vsel %vm1833_vm3, %v1705_v0, %v1961_v6  ;;  %v2153_v15 = vsel %vm1897_vm4, %v1769_v1, %v2025_v7  ;;  %v1068_v18 = vpop.f32.mrb[52].mxu0  ;;  %v1228_v19 = vpop.f32.mrb[52].mxu1  ;;  %vm1834_vm5 = vcmp.ge.f32.partialorder %v1706_v10, 0.0  ;;  %v1962_v20 = vmul.f32 0.2, %v1706_v10 }
 0x15b   : > { %2217 = vst [vmem:[%s2773_s4 + $0x188] sm:$0xff] %v2089_v14  ;;  %2281 = vst [vmem:[%s2773_s4 + $0x388] sm:$0xff] %v2153_v15  ;;  %vm1898_vm6 = vcmp.ge.f32.partialorder %v1770_v11, 0.0  ;;  %v2026_v21 = vmul.f32 0.2, %v1770_v11  ;;  %vm1835_vm7 = vcmp.ge.f32.partialorder %v1707_v16, 0.0  ;;  %v1708_v26 = vadd.f32 %v2761_v44, %v1068_v18 }
 0x15c   : > { %v1963_v22 = vmul.f32 0.2, %v1707_v16  ;;  %vm1899_vm8 = vcmp.ge.f32.partialorder %v1771_v17, 0.0  ;;  %v2027_v23 = vmul.f32 0.2, %v1771_v17  ;;  %v2090_v24 = vsel %vm1834_vm5, %v1706_v10, %v1962_v20  ;;  %v1070_v28 = vpop.f32.mrb[53].mxu0 }
 0x15d   : > { %v2154_v25 = vsel %vm1898_vm6, %v1770_v11, %v2026_v21  ;;  %v1772_v27 = vadd.f32 %v2761_v44, %v1228_v19  ;;  %v1230_v29 = vpop.f32.mrb[53].mxu1  ;;  %2218 = vst [vmem:[%s2773_s4 + $0x190] sm:$0xff] %v2090_v24  ;;  %v1709_v32 = vadd.f32 %v2763_v45, %v1070_v28  ;;  %v1072_v34 = vpop.f32.mrb[54].mxu0  ;;  %vm1836_vm9 = vcmp.ge.f32.partialorder %v1708_v26, 0.0 }
 0x15e   : > { %2282 = vst [vmem:[%s2773_s4 + $0x390] sm:$0xff] %v2154_v25  ;;  %v2091_v30 = vsel %vm1835_vm7, %v1707_v16, %v1963_v22  ;;  %v2155_v31 = vsel %vm1899_vm8, %v1771_v17, %v2027_v23  ;;  %v1773_v33 = vadd.f32 %v2763_v45, %v1230_v29  ;;  %v1232_v35 = vpop.f32.mrb[54].mxu1  ;;  %v1964_v36 = vmul.f32 0.2, %v1708_v26  ;;  %v1074_v46 = vpop.f32.mrb[55].mxu0 }
 0x15f   : > { %2219 = vst [vmem:[%s2773_s4 + $0x198] sm:$0xff] %v2091_v30  ;;  %2283 = vst [vmem:[%s2773_s4 + $0x398] sm:$0xff] %v2155_v31  ;;  %vm1900_vm10 = vcmp.ge.f32.partialorder %v1772_v27, 0.0  ;;  %v2028_v37 = vmul.f32 0.2, %v1772_v27  ;;  %vm1837_vm11 = vcmp.ge.f32.partialorder %v1709_v32, 0.0  ;;  %v1710_v42 = vadd.f32 %v2761_v44, %v1072_v34 }
 0x160   : > { %v1965_v38 = vmul.f32 0.2, %v1709_v32  ;;  %vm1901_vm12 = vcmp.ge.f32.partialorder %v1773_v33, 0.0  ;;  %v2029_v39 = vmul.f32 0.2, %v1773_v33  ;;  %v2092_v40 = vsel %vm1836_vm9, %v1708_v26, %v1964_v36  ;;  %v1234_v47 = vpop.f32.mrb[55].mxu1 }
 0x161   : > { %v2156_v41 = vsel %vm1900_vm10, %v1772_v27, %v2028_v37  ;;  %v1774_v43 = vadd.f32 %v2761_v44, %v1232_v35  ;;  %2220 = vst [vmem:[%s2773_s4 + $0x1a0] sm:$0xff] %v2092_v40  ;;  %v1711_v50 = vadd.f32 %v2763_v45, %v1074_v46  ;;  %v1775_v51 = vadd.f32 %v2763_v45, %v1234_v47 }
 0x162   : > { %2284 = vst [vmem:[%s2773_s4 + $0x3a0] sm:$0xff] %v2156_v41  ;;  %v2093_v48 = vsel %vm1837_vm11, %v1709_v32, %v1965_v38  ;;  %v2157_v49 = vsel %vm1901_vm12, %v1773_v33, %v2029_v39  ;;  %v1078_v52 = vpop.f32.mrb[56].mxu0  ;;  %v1238_v53 = vpop.f32.mrb[56].mxu1  ;;  %vm1838_vm13 = vcmp.ge.f32.partialorder %v1710_v42, 0.0  ;;  %v1966_v54 = vmul.f32 0.2, %v1710_v42 }
 0x163   : > { %2221 = vst [vmem:[%s2773_s4 + $0x1a8] sm:$0xff] %v2093_v48  ;;  %2285 = vst [vmem:[%s2773_s4 + $0x3a8] sm:$0xff] %v2157_v49  ;;  %vm1902_vm14 = vcmp.ge.f32.partialorder %v1774_v43, 0.0  ;;  %v2030_v55 = vmul.f32 0.2, %v1774_v43  ;;  %vm1839_vm15 = vcmp.ge.f32.partialorder %v1711_v50, 0.0  ;;  %v1712_v60 = vadd.f32 %v2761_v44, %v1078_v52 }
 0x164   : > { %v1967_v56 = vmul.f32 0.2, %v1711_v50  ;;  %vm1903_vm0 = vcmp.ge.f32.partialorder %v1775_v51, 0.0  ;;  %v2031_v57 = vmul.f32 0.2, %v1775_v51  ;;  %v2094_v58 = vsel %vm1838_vm13, %v1710_v42, %v1966_v54  ;;  %v1080_v62 = vpop.f32.mrb[57].mxu0 }
 0x165   : > { %v2158_v59 = vsel %vm1902_vm14, %v1774_v43, %v2030_v55  ;;  %v1776_v61 = vadd.f32 %v2761_v44, %v1238_v53  ;;  %v1240_v63 = vpop.f32.mrb[57].mxu1  ;;  %2222 = vst [vmem:[%s2773_s4 + $0x1b0] sm:$0xff] %v2094_v58  ;;  %v1713_v2 = vadd.f32 %v2763_v45, %v1080_v62  ;;  %v1082_v4 = vpop.f32.mrb[58].mxu0  ;;  %vm1840_vm1 = vcmp.ge.f32.partialorder %v1712_v60, 0.0 }
 0x166   : > { %2286 = vst [vmem:[%s2773_s4 + $0x3b0] sm:$0xff] %v2158_v59  ;;  %v2095_v0 = vsel %vm1839_vm15, %v1711_v50, %v1967_v56  ;;  %v2159_v1 = vsel %vm1903_vm0, %v1775_v51, %v2031_v57  ;;  %v1777_v3 = vadd.f32 %v2763_v45, %v1240_v63  ;;  %v1242_v5 = vpop.f32.mrb[58].mxu1  ;;  %v1968_v6 = vmul.f32 0.2, %v1712_v60  ;;  %v1084_v14 = vpop.f32.mrb[59].mxu0 }
 0x167   : > { %2223 = vst [vmem:[%s2773_s4 + $0x1b8] sm:$0xff] %v2095_v0  ;;  %2287 = vst [vmem:[%s2773_s4 + $0x3b8] sm:$0xff] %v2159_v1  ;;  %vm1904_vm2 = vcmp.ge.f32.partialorder %v1776_v61, 0.0  ;;  %v2032_v7 = vmul.f32 0.2, %v1776_v61  ;;  %vm1841_vm3 = vcmp.ge.f32.partialorder %v1713_v2, 0.0  ;;  %v1714_v12 = vadd.f32 %v2761_v44, %v1082_v4 }
 0x168   : > { %v1969_v8 = vmul.f32 0.2, %v1713_v2  ;;  %vm1905_vm4 = vcmp.ge.f32.partialorder %v1777_v3, 0.0  ;;  %v2033_v9 = vmul.f32 0.2, %v1777_v3  ;;  %v2096_v10 = vsel %vm1840_vm1, %v1712_v60, %v1968_v6  ;;  %v1244_v15 = vpop.f32.mrb[59].mxu1 }
 0x169   : > { %v2160_v11 = vsel %vm1904_vm2, %v1776_v61, %v2032_v7  ;;  %v1778_v13 = vadd.f32 %v2761_v44, %v1242_v5  ;;  %2224 = vst [vmem:[%s2773_s4 + $0x1c0] sm:$0xff] %v2096_v10  ;;  %v1715_v18 = vadd.f32 %v2763_v45, %v1084_v14  ;;  %v1779_v19 = vadd.f32 %v2763_v45, %v1244_v15 }
 0x16a   : > { %2288 = vst [vmem:[%s2773_s4 + $0x3c0] sm:$0xff] %v2160_v11  ;;  %v2097_v16 = vsel %vm1841_vm3, %v1713_v2, %v1969_v8  ;;  %v2161_v17 = vsel %vm1905_vm4, %v1777_v3, %v2033_v9  ;;  %v1088_v20 = vpop.f32.mrb[60].mxu0  ;;  %v1248_v21 = vpop.f32.mrb[60].mxu1  ;;  %vm1842_vm5 = vcmp.ge.f32.partialorder %v1714_v12, 0.0  ;;  %v1970_v22 = vmul.f32 0.2, %v1714_v12 }
 0x16b   : > { %2225 = vst [vmem:[%s2773_s4 + $0x1c8] sm:$0xff] %v2097_v16  ;;  %2289 = vst [vmem:[%s2773_s4 + $0x3c8] sm:$0xff] %v2161_v17  ;;  %vm1906_vm6 = vcmp.ge.f32.partialorder %v1778_v13, 0.0  ;;  %v2034_v23 = vmul.f32 0.2, %v1778_v13  ;;  %vm1843_vm7 = vcmp.ge.f32.partialorder %v1715_v18, 0.0  ;;  %v1716_v28 = vadd.f32 %v2761_v44, %v1088_v20 }
 0x16c   : > { %v1971_v24 = vmul.f32 0.2, %v1715_v18  ;;  %vm1907_vm8 = vcmp.ge.f32.partialorder %v1779_v19, 0.0  ;;  %v2035_v25 = vmul.f32 0.2, %v1779_v19  ;;  %v2098_v26 = vsel %vm1842_vm5, %v1714_v12, %v1970_v22  ;;  %v1090_v30 = vpop.f32.mrb[61].mxu0 }
 0x16d   : > { %v2162_v27 = vsel %vm1906_vm6, %v1778_v13, %v2034_v23  ;;  %v1780_v29 = vadd.f32 %v2761_v44, %v1248_v21  ;;  %v1250_v31 = vpop.f32.mrb[61].mxu1  ;;  %2226 = vst [vmem:[%s2773_s4 + $0x1d0] sm:$0xff] %v2098_v26  ;;  %v1717_v34 = vadd.f32 %v2763_v45, %v1090_v30  ;;  %v1092_v36 = vpop.f32.mrb[62].mxu0  ;;  %vm1844_vm9 = vcmp.ge.f32.partialorder %v1716_v28, 0.0 }
 0x16e   : > { %2290 = vst [vmem:[%s2773_s4 + $0x3d0] sm:$0xff] %v2162_v27  ;;  %v2099_v32 = vsel %vm1843_vm7, %v1715_v18, %v1971_v24  ;;  %v2163_v33 = vsel %vm1907_vm8, %v1779_v19, %v2035_v25  ;;  %v1781_v35 = vadd.f32 %v2763_v45, %v1250_v31  ;;  %v1252_v37 = vpop.f32.mrb[62].mxu1  ;;  %v1972_v38 = vmul.f32 0.2, %v1716_v28  ;;  %v1094_v48 = vpop.f32.mrb[63].mxu0 }
 0x16f   : > { %2227 = vst [vmem:[%s2773_s4 + $0x1d8] sm:$0xff] %v2099_v32  ;;  %2291 = vst [vmem:[%s2773_s4 + $0x3d8] sm:$0xff] %v2163_v33  ;;  %vm1908_vm10 = vcmp.ge.f32.partialorder %v1780_v29, 0.0  ;;  %v2036_v39 = vmul.f32 0.2, %v1780_v29  ;;  %vm1845_vm11 = vcmp.ge.f32.partialorder %v1717_v34, 0.0  ;;  %v1718_v46 = vadd.f32 %v2761_v44, %v1092_v36 }
 0x170   : > { %v1973_v40 = vmul.f32 0.2, %v1717_v34  ;;  %vm1909_vm12 = vcmp.ge.f32.partialorder %v1781_v35, 0.0  ;;  %v2037_v41 = vmul.f32 0.2, %v1781_v35  ;;  %v2100_v42 = vsel %vm1844_vm9, %v1716_v28, %v1972_v38  ;;  %v1254_v49 = vpop.f32.mrb[63].mxu1 }
 0x171   : > { %v2164_v43 = vsel %vm1908_vm10, %v1780_v29, %v2036_v39  ;;  %v1782_v47 = vadd.f32 %v2761_v44, %v1252_v37  ;;  %2228 = vst [vmem:[%s2773_s4 + $0x1e0] sm:$0xff] %v2100_v42  ;;  %v1719_v52 = vadd.f32 %v2763_v45, %v1094_v48  ;;  %v1783_v53 = vadd.f32 %v2763_v45, %v1254_v49 }
 0x172   : > { %2292 = vst [vmem:[%s2773_s4 + $0x3e0] sm:$0xff] %v2164_v43  ;;  %v2101_v50 = vsel %vm1845_vm11, %v1717_v34, %v1973_v40  ;;  %v2165_v51 = vsel %vm1909_vm12, %v1781_v35, %v2037_v41  ;;  %vm1846_vm13 = vcmp.ge.f32.partialorder %v1718_v46, 0.0  ;;  %v1974_v54 = vmul.f32 0.2, %v1718_v46 }
 0x173   : > { %2229 = vst [vmem:[%s2773_s4 + $0x1e8] sm:$0xff] %v2101_v50  ;;  %2293 = vst [vmem:[%s2773_s4 + $0x3e8] sm:$0xff] %v2165_v51  ;;  %vm1910_vm14 = vcmp.ge.f32.partialorder %v1782_v47, 0.0  ;;  %v2038_v44 = vmul.f32 0.2, %v1782_v47  ;;  %vm1847_vm15 = vcmp.ge.f32.partialorder %v1719_v52, 0.0 }
 0x174   : > { %v1975_v55 = vmul.f32 0.2, %v1719_v52  ;;  %vm1911_vm0 = vcmp.ge.f32.partialorder %v1783_v53, 0.0  ;;  %v2039_v56 = vmul.f32 0.2, %v1783_v53  ;;  %v2102_v57 = vsel %vm1846_vm13, %v1718_v46, %v1974_v54 }
 0x175   : > { %v2166_v58 = vsel %vm1910_vm14, %v1782_v47, %v2038_v44  ;;  %2230 = vst [vmem:[%s2773_s4 + $0x1f0] sm:$0xff] %v2102_v57 }
 0x176   : > { %2294 = vst [vmem:[%s2773_s4 + $0x3f0] sm:$0xff] %v2166_v58  ;;  %v2103_v59 = vsel %vm1847_vm15, %v1719_v52, %v1975_v55  ;;  %v2167_v60 = vsel %vm1911_vm0, %v1783_v53, %v2039_v56 }
 0x177   : > { %2231 = vst [vmem:[%s2773_s4 + $0x1f8] sm:$0xff] %v2103_v59  ;;  %2295 = vst [vmem:[%s2773_s4 + $0x3f8] sm:$0xff] %v2167_v60 }
 0x178 PF: > { %s13_s14 = sadd.s32 1, %s2608_s14   ;;  %s3040_s12 = smov %s2604_s13 }
 0x179   : > { %p10_p5 = scmp.ge.s32.totalorder %s13_s14, 6   ;;  %s3041_s13 = smov %s3043_s15 }
 0x17b   :  { %12 = sbr.rel (!%p10_p5) target bundleno = 2 (0x2), region = 76 }

// kernel: _lambda_.14
= control target key start
LH: loop header
LB: loop body
LE: loop exit
PB: predicated region body
PF: predicated region fallthrough
CT: control target
= control target key end

     0   :  { %vm19_vm0 = vcmask 261120   ;;  %v109_v0 = vmov 0.0   ;;  %vm110_vm1 = vmmov 0   ;;  %vm31_vm2 = vcmask 130048   ;;  %s146_s1 = inlined_call_operand.vmem [shape: bf16[1,16,32], index: 1, kind: input, shape index: {}]   ;;  %s147_s0 = inlined_call_operand.vmem [shape: bf16[1,8,16], index: 0, kind: input, shape index: {}]   ;;  %s148_s2 = inlined_call_operand.vmem [shape: f32[1,1,32], index: 2, kind: input, shape index: {}]   ;;  %s149_s3 = inlined_call_operand.vmem [shape: f32[1,8,32], index: 3, kind: output, shape index: {}]  }
   0x1   :  { %20 = vst.msk [vmem:[#allocation2] sm:$0xff] %vm19_vm0, %v109_v0  ;;  %100 = vmatprep.subr.bf16.mxu0 %v109_v0  ;;  %v108_v1 = vld [vmem:[%s146_s1] sm:$0xff]   ;;  %102 = vmatprep.mubr.msk.bf16.mxu0 %vm110_vm1, %v109_v0 }
   0x2   :  { %101 = vmatpush3.bf16.msra.mxu0 %v108_v1  ;;  %v22_v2 = vld [vmem:[%s147_s0] sm:$0xf] }
   0x3   :  { %v97_v9 = vld [vmem:[%s148_s2] ss:$0 sm:$0xff] }
   0x5   :  { %103 = vmatmul.mubr.msk.bf16.vlgmr.msra.gmra.mrb[0].mxu0 %vm31_vm2, %v22_v2 }
   0x8   :  { %v21_v3 = vld [vmem:[#allocation2] sm:$0xff] }
  0xd8   :  { %v69_v4 = vpop.f32.mrb[0].mxu0 }
  0xd9   :  { %v75_v5 = vadd.f32 %v69_v4, %v21_v3  ;;  %v104_v6 = vpop.f32.mrb[1].mxu0 }
  0xda   :  { %v72_v7 = vpop.f32.mrb[2].mxu0 }
  0xdb   :  { %77 = vst.msk [vmem:[#allocation2] sm:$0xff] %vm19_vm0, %v75_v5  ;;  %v105_v8 = vpop.f32.mrb[3].mxu0 }
  0xe2   :  { %v81_v10 = vld [vmem:[#allocation2] sm:$0xff] }
  0xe3   :  { %v89_v11 = vadd.f32 %v97_v9, %v81_v10 }
  0xe5   :  { %90 = vst.msk [vmem:[%s149_s3] sm:$0xff] %vm19_vm0, %v89_v11 }

// kernel: _lambda_.15
= control target key start
LH: loop header
LB: loop body
LE: loop exit
PB: predicated region body
PF: predicated region fallthrough
CT: control target
= control target key end

     0   :  { %v442_v0 = vmov 0.0|0.0   ;;  %vm443_vm0 = vmmov 0   ;;  %v444_v4 = vmov 0.0   ;;  %vm16_vm1 = vcmask 261120   ;;  %s507_s1 = inlined_call_operand.vmem [shape: f32[32,32], index: 1, kind: input, shape index: {}]   ;;  %s508_s0 = inlined_call_operand.vmem [shape: f32[4,8,32], index: 0, kind: input, shape index: {}]   ;;  %s509_s2 = inlined_call_operand.vmem [shape: f32[4,8,32], index: 2, kind: output, shape index: {}]  }
   0x1   :  { %407 = vmatprep.subr.bf16.mxu0 %v442_v0  ;;  %v11_v1 = vld [vmem:[%s507_s1] sm:$0xff]  ;;  %v12_v2 = vld [vmem:[%s507_s1 + $0x8] sm:$0xff]  ;;  %v13_v3 = vld [vmem:[%s507_s1 + $0x10] sm:$0xff]  ;;  %371 = vmatprep.mubr.msk.f32.mxu0 %vm443_vm0, %v444_v4 }
   0x2   :  { %v408_v5 = vpack.c.bf16 %v12_v2, %v11_v1  ;;  %v14_v6 = vld [vmem:[%s507_s1 + $0x18] sm:$0xff]  ;;  %413 = vmatprep.subr.bf16.mxu1 %v442_v0  ;;  %382 = vmatprep.mubr.msk.f32.mxu1 %vm443_vm0, %v444_v4  ;;  %v15_v8 = vld [vmem:[%s508_s0] sm:$0xff]  ;;  %v334_v13 = vld [vmem:[%s508_s0 + $0x8] sm:$0xff] }
   0x3   :  { %v411_v7 = vpack.c.bf16 %v14_v6, %v13_v3  ;;  %v337_v18 = vld [vmem:[%s508_s0 + $0x10] sm:$0xff]  ;;  %v340_v23 = vld [vmem:[%s508_s0 + $0x18] sm:$0xff] }
   0x4   :  { %409 = vmatpush3.bf16.msra.mxu0 %v408_v5  ;;  %415 = vmatpush3.bf16.msra.mxu1 %v408_v5 }
   0x5   :  { %410 = vmatprep.subr.bf16.mxu0 %v442_v0  ;;  %416 = vmatprep.subr.bf16.mxu1 %v442_v0 }
   0x8   :  { %412 = vmatpush3.bf16.msra.mxu0 %v411_v7  ;;  %418 = vmatpush3.bf16.msra.mxu1 %v411_v7 }
   0x9   :  { %419 = vmatprep.subr.bf16.mxu0 %v442_v0  ;;  %425 = vmatprep.subr.bf16.mxu1 %v442_v0 }
   0xb   :  { %372 = vmatmul.mubr.f32.vlgmr.msra.gmra.mrb[0].mxu0 %v444_v4 }
   0xc   :  { %421 = vmatpush3.bf16.msra.mxu0 %v408_v5  ;;  %393 = vmatprep.mubr.msk.f32.mxu0 %vm443_vm0, %v444_v4 }
   0xd   :  { %422 = vmatprep.subr.bf16.mxu0 %v442_v0 }
  0x10   :  { %424 = vmatpush3.bf16.msra.mxu0 %v411_v7 }
  0xde   :  { %v86_v9 = vpop.f32.mrb[0].mxu0 }
  0xdf   :  { %v90_v10 = vadd.f32 %v86_v9, %v15_v8  ;;  %v373_v11 = vpop.f32.mrb[1].mxu0 }
  0xe1   :  { %434 = vtanh.f32 %v90_v10 }
  0xeb   :  { %v435_v12 = vpop.eup %434 }
  0xec   :  { %92 = vst.msk [vmem:[%s509_s2] sm:$0xff] %vm16_vm1, %v435_v12  ;;  %383 = vmatmul.mubr.msk.f32.vlgmr.msra.gmra.mrb[0].mxu1 %vm16_vm1, %v435_v12 }
  0xed   :  { %427 = vmatpush3.bf16.msra.mxu1 %v408_v5  ;;  %404 = vmatprep.mubr.msk.f32.mxu1 %vm443_vm0, %v444_v4 }
  0xee   :  { %428 = vmatprep.subr.bf16.mxu1 %v442_v0 }
  0xf1   :  { %430 = vmatpush3.bf16.msra.mxu1 %v411_v7 }
 0x1bf   :  { %v164_v14 = vpop.f32.mrb[0].mxu1 }
 0x1c0   :  { %v168_v15 = vadd.f32 %v334_v13, %v164_v14  ;;  %v384_v16 = vpop.f32.mrb[1].mxu1 }
 0x1c2   :  { %436 = vtanh.f32 %v168_v15 }
 0x1cc   :  { %v437_v17 = vpop.eup %436 }
 0x1cd   :  { %336 = vst.msk [vmem:[%s509_s2 + $0x8] sm:$0xff] %vm16_vm1, %v437_v17  ;;  %394 = vmatmul.mubr.msk.f32.vlgmr.msra.gmra.mrb[2].mxu0 %vm16_vm1, %v437_v17 }
 0x2a0   :  { %v243_v19 = vpop.f32.mrb[2].mxu0 }
 0x2a1   :  { %v247_v20 = vadd.f32 %v337_v18, %v243_v19  ;;  %v395_v21 = vpop.f32.mrb[3].mxu0 }
 0x2a3   :  { %438 = vtanh.f32 %v247_v20 }
 0x2ad   :  { %v439_v22 = vpop.eup %438 }
 0x2ae   :  { %339 = vst.msk [vmem:[%s509_s2 + $0x10] sm:$0xff] %vm16_vm1, %v439_v22  ;;  %405 = vmatmul.mubr.msk.f32.vlgmr.msra.gmra.mrb[2].mxu1 %vm16_vm1, %v439_v22 }
 0x381   :  { %v322_v24 = vpop.f32.mrb[2].mxu1 }
 0x382   :  { %v326_v25 = vadd.f32 %v340_v23, %v322_v24  ;;  %v406_v26 = vpop.f32.mrb[3].mxu1 }
 0x384   :  { %440 = vtanh.f32 %v326_v25 }
 0x38e   :  { %v441_v27 = vpop.eup %440 }
 0x38f   :  { %342 = vst.msk [vmem:[%s509_s2 + $0x18] sm:$0xff] %vm16_vm1, %v441_v27 }

// kernel: _lambda_.16
= control target key start
LH: loop header
LB: loop body
LE: loop exit
PB: predicated region body
PF: predicated region fallthrough
CT: control target
= control target key end

     0   :  { %vm19_vm0 = vcmask 293888   ;;  %v122_v0 = vmov 0.0   ;;  %vm123_vm1 = vmmov 0   ;;  %vm39_vm2 = vcmask 261120   ;;  %s162_s1 = inlined_call_operand.vmem [shape: bf16[1,32,36], index: 1, kind: input, shape index: {}]   ;;  %s163_s0 = inlined_call_operand.vmem [shape: bf16[1,8,32], index: 0, kind: input, shape index: {}]   ;;  %s164_s2 = inlined_call_operand.vmem [shape: f32[1,1,36], index: 2, kind: input, shape index: {}]   ;;  %s165_s3 = inlined_call_operand.vmem [shape: f32[1,8,36], index: 3, kind: output, shape index: {}]  }
   0x1   :  { %20 = vst.msk [vmem:[#allocation2] sm:$0xff] %vm19_vm0, %v122_v0  ;;  %110 = vmatprep.subr.bf16.mxu0 %v122_v0  ;;  %v120_v1 = vld [vmem:[%s162_s1] sm:$0xff]   ;;  %114 = vmatprep.mubr.msk.bf16.mxu0 %vm123_vm1, %v122_v0  ;;  %v121_v2 = vld [vmem:[%s162_s1 + $0x8] sm:$0xff]  }
   0x2   :  { %111 = vmatpush3.bf16.msra.mxu0 %v120_v1  ;;  %v22_v3 = vld [vmem:[%s163_s0] sm:$0xf] }
   0x3   :  { %112 = vmatprep.subr.bf16.mxu0 %v122_v0  ;;  %v106_v10 = vld [vmem:[%s164_s2] ss:$0 sm:$0xff] }
   0x6   :  { %113 = vmatpush3.bf16.msra.mxu0 %v121_v2 }
   0x8   :  { %v21_v4 = vld [vmem:[#allocation2] sm:$0xff] }
   0x9   :  { %115 = vmatmul.mubr.msk.bf16.vlgmr.msra.gmra.mrb[0].mxu0 %vm39_vm2, %v22_v3 }
  0xdc   :  { %v77_v5 = vpop.f32.mrb[0].mxu0 }
  0xdd   :  { %v83_v6 = vadd.f32 %v77_v5, %v21_v4  ;;  %v116_v7 = vpop.f32.mrb[1].mxu0 }
  0xde   :  { %v80_v8 = vpop.f32.mrb[2].mxu0 }
  0xdf   :  { %85 = vst.msk [vmem:[#allocation2] sm:$0xff] %vm19_vm0, %v83_v6  ;;  %v117_v9 = vpop.f32.mrb[3].mxu0 }
  0xe6   :  { %v89_v11 = vld [vmem:[#allocation2] sm:$0xff] }
  0xe7   :  { %v97_v12 = vadd.f32 %v106_v10, %v89_v11 }
  0xe9   :  { %98 = vst.msk [vmem:[%s165_s3] sm:$0xff] %vm19_vm0, %v97_v12 }

// kernel: _lambda_.12
= control target key start
LH: loop header
LB: loop body
LE: loop exit
PB: predicated region body
PF: predicated region fallthrough
CT: control target
= control target key end

     0   :  { %s4247_s12 = smov 0   ;;  %s4249_s13 = smov 0   ;;  %s4568_s0 = inlined_call_operand.vmem [shape: bf16[1,8,32768], index: 0, kind: input, shape index: {}]   ;;  %s4569_s1 = inlined_call_operand.vmem [shape: bf16[1,32768,16], index: 1, kind: input, shape index: {}]   ;;  %s4570_s2 = inlined_call_operand.vmem [shape: f32[1,1,16], index: 2, kind: input, shape index: {}]   ;;  %s4571_s3 = inlined_call_operand.vmem [shape: f32[1,8,16], index: 3, kind: output, shape index: {}]  }
   0x1   :  { %s4251_s14 = smov 0  }
   0x2 LB: > { %s25_s15 = sadd.s32 1, %s4220_s13  ;;  %p3238_p0 = scmp.ge.s32.totalorder %s4224_s14, 1  ;;  %s4224_s14 = sphi %s4251_s14, %s13_s14   ;;  %s4220_s13 = sphi %s4249_s13, %s4573_s13   ;;  %s4216_s12 = sphi %s4247_s12, %s4572_s12  }
   0x3   : > { %p26_p1 = scmp.ge.s32.totalorder %s25_s15, 8  ;;  %p196_p2 = scmp.lt.s32.totalorder %s4224_s14, 9 }
   0x5   : > { %s4575_s15 = smov (%p26_p1, %s25_s15), 0  ;;  %p197_p3 = pnand %p3238_p0, %p196_p2 }
   0x6   : > { %s3239_s16 = sshll.u32 (!%p197_p3), %s4216_s12, 5  ;;  %s3241_s17 = sshll.u32 (!%p197_p3), %s4216_s12, 9 }
   0x7   : > { %200 = sbr.rel (%p197_p3) target bundleno = 517 (0x205), region = 32  ;;  %p247_p4 = scmp.lt.s32.totalorder (!%p197_p3), %s3239_s16, 255 }
   0x8   : > { %p259_p5 = scmp.lt.s32.totalorder (!%p197_p3), %s3241_s17, 4095  ;;  %p3243_p6 = scmp.ne.s32.totalorder (!%p197_p3), %s4216_s12, 0 }
   0xe   : > { %s4577_s16 = smov (!%p247_p4, %s3239_s16), 255  ;;  %s4579_s17 = smov (!%p259_p5, %s3241_s17), 4095 }
   0xf   : > { %s3240_s18 = sshll.u32 %s4577_s16, 2  ;;  %s3242_s22 = sshll.u32 %s4579_s17, 2  ;;  %vm281_vm0 = vcmask (!%p3243_p6), 130048   ;;  %v4226_v0 = vmov (!%p3243_p6), 0.0  }
  0x10   : > { %s4272_s21 = scalar_lea.vmem %s4568_s0, %s3240_s18  ;;  %s4277_s25 = scalar_lea.vmem %s4569_s1, %s3242_s22  ;;  %282 = vst.msk [vmem:[#allocation2] sm:$0xff] (!%p3243_p6), %vm281_vm0, %v4226_v0 }
  0x11   : > { %280 = sbr.rel (%p3243_p6) target bundleno = 24 (0x18), region = 36 }
  0x18 PF: > { %v3914_v1 = vld [vmem:[%s4277_s25 + $0x40] sm:$0xff]   ;;  %v3918_v5 = vld [vmem:[%s4277_s25 + $0x48] sm:$0xff]   ;;  %v3922_v9 = vld [vmem:[%s4277_s25 + $0x50] sm:$0xff]   ;;  %vm3101_vm1 = vcmask 130048   ;;  %p3532_p7 = scmp.ne.s32.totalorder %s4216_s12, 7 }
  0x19   : > { %v3915_v2 = vld [vmem:[%s4277_s25 + $0xc0] sm:$0xff]   ;;  %3537 = vmatprep.subr.bf16.mxu0 %v3914_v1  ;;  %v3919_v6 = vld [vmem:[%s4277_s25 + $0xc8] sm:$0xff]   ;;  %v3923_v10 = vld [vmem:[%s4277_s25 + $0xd0] sm:$0xff]  }
  0x1a   : > { %v3916_v3 = vld [vmem:[%s4277_s25] sm:$0xff]   ;;  %3559 = vmatprep.subr.bf16.mxu1 %v3915_v2  ;;  %v3920_v7 = vld [vmem:[%s4277_s25 + $0x8] sm:$0xff]   ;;  %v3924_v11 = vld [vmem:[%s4277_s25 + $0x10] sm:$0xff]  }
  0x1b   : > { %v3917_v4 = vld [vmem:[%s4277_s25 + $0x80] sm:$0xff]   ;;  %3538 = vmatpush3.bf16.msra.mxu0 %v3916_v3  ;;  %v3921_v8 = vld [vmem:[%s4277_s25 + $0x88] sm:$0xff]   ;;  %v3925_v12 = vld [vmem:[%s4277_s25 + $0x90] sm:$0xff]  }
  0x1c   : > { %3560 = vmatpush3.bf16.msra.mxu1 %v3917_v4  ;;  %3539 = vmatprep.subr.bf16.mxu0 %v3918_v5  ;;  %v3926_v13 = vld [vmem:[%s4277_s25 + $0x58] sm:$0xff]   ;;  %v3930_v17 = vld [vmem:[%s4277_s25 + $0x60] sm:$0xff]   ;;  %v3934_v21 = vld [vmem:[%s4277_s25 + $0x68] sm:$0xff]  }
  0x1d   : > { %3561 = vmatprep.subr.bf16.mxu1 %v3919_v6  ;;  %v3927_v14 = vld [vmem:[%s4277_s25 + $0xd8] sm:$0xff]   ;;  %v3931_v18 = vld [vmem:[%s4277_s25 + $0xe0] sm:$0xff]   ;;  %v3935_v22 = vld [vmem:[%s4277_s25 + $0xe8] sm:$0xff]  }
  0x1e   : > { %v3928_v15 = vld [vmem:[%s4277_s25 + $0x18] sm:$0xff]   ;;  %v3932_v19 = vld [vmem:[%s4277_s25 + $0x20] sm:$0xff]   ;;  %v3936_v23 = vld [vmem:[%s4277_s25 + $0x28] sm:$0xff]  }
  0x1f   : > { %3540 = vmatpush3.bf16.msra.mxu0 %v3920_v7  ;;  %v3929_v16 = vld [vmem:[%s4277_s25 + $0x98] sm:$0xff]   ;;  %v3933_v20 = vld [vmem:[%s4277_s25 + $0xa0] sm:$0xff]   ;;  %v3937_v24 = vld [vmem:[%s4277_s25 + $0xa8] sm:$0xff]  }
  0x20   : > { %3562 = vmatpush3.bf16.msra.mxu1 %v3921_v8  ;;  %3541 = vmatprep.subr.bf16.mxu0 %v3922_v9  ;;  %v3938_v25 = vld [vmem:[%s4277_s25 + $0x70] sm:$0xff]   ;;  %v3942_v29 = vld [vmem:[%s4277_s25 + $0x78] sm:$0xff]   ;;  %v284_v33 = vld [vmem:[%s4272_s21] sm:$0xff] }
  0x21   : > { %3563 = vmatprep.subr.bf16.mxu1 %v3923_v10  ;;  %v3939_v26 = vld [vmem:[%s4277_s25 + $0xf0] sm:$0xff]   ;;  %v3943_v30 = vld [vmem:[%s4277_s25 + $0xf8] sm:$0xff]   ;;  %v285_v34 = vld [vmem:[%s4272_s21 + $0x8] sm:$0xff]  ;;  %v3244_v35 = vcombine.low %v284_v33, %v284_v33  ;;  %v3245_v36 = vcombine.high %v284_v33, %v284_v33 }
  0x22   : > { %v3940_v27 = vld [vmem:[%s4277_s25 + $0x30] sm:$0xff]   ;;  %v3944_v31 = vld [vmem:[%s4277_s25 + $0x38] sm:$0xff]   ;;  %v3246_v37 = vcombine.low %v285_v34, %v285_v34  ;;  %v3247_v38 = vcombine.high %v285_v34, %v285_v34  ;;  %v3950_v39 = vld [vmem:[%s4277_s25 + $0x140] sm:$0xff]  }
  0x23   : > { %3542 = vmatpush3.bf16.msra.mxu0 %v3924_v11  ;;  %v3941_v28 = vld [vmem:[%s4277_s25 + $0xb0] sm:$0xff]   ;;  %v3945_v32 = vld [vmem:[%s4277_s25 + $0xb8] sm:$0xff]   ;;  %v3951_v40 = vld [vmem:[%s4277_s25 + $0x1c0] sm:$0xff]   ;;  %2492 = vmatprep.mubr.bf16.mxu0 %v3245_v36 }
  0x24   : > { %3564 = vmatpush3.bf16.msra.mxu1 %v3925_v12  ;;  %3543 = vmatprep.subr.bf16.mxu0 %v3926_v13  ;;  %v3952_v41 = vld [vmem:[%s4277_s25 + $0x100] sm:$0xff]   ;;  %v3954_v43 = vld [vmem:[%s4277_s25 + $0x148] sm:$0xff]   ;;  %v3958_v47 = vld [vmem:[%s4277_s25 + $0x150] sm:$0xff]  }
  0x25   : > { %3565 = vmatprep.subr.bf16.mxu1 %v3927_v14  ;;  %2532 = vmatprep.mubr.bf16.mxu1 %v3247_v38  ;;  %v3953_v42 = vld [vmem:[%s4277_s25 + $0x180] sm:$0xff]   ;;  %v3955_v44 = vld [vmem:[%s4277_s25 + $0x1c8] sm:$0xff]   ;;  %v3959_v48 = vld [vmem:[%s4277_s25 + $0x1d0] sm:$0xff]  }
  0x26   : > { %v3956_v45 = vld [vmem:[%s4277_s25 + $0x108] sm:$0xff]   ;;  %v3960_v49 = vld [vmem:[%s4277_s25 + $0x110] sm:$0xff]   ;;  %v3962_v51 = vld [vmem:[%s4277_s25 + $0x158] sm:$0xff]  }
  0x27   : > { %3544 = vmatpush3.bf16.msra.mxu0 %v3928_v15  ;;  %v3957_v46 = vld [vmem:[%s4277_s25 + $0x188] sm:$0xff]   ;;  %v3961_v50 = vld [vmem:[%s4277_s25 + $0x190] sm:$0xff]   ;;  %v3963_v52 = vld [vmem:[%s4277_s25 + $0x1d8] sm:$0xff]  }
  0x28   : > { %3566 = vmatpush3.bf16.msra.mxu1 %v3929_v16  ;;  %3545 = vmatprep.subr.bf16.mxu0 %v3930_v17  ;;  %v3964_v53 = vld [vmem:[%s4277_s25 + $0x118] sm:$0xff]   ;;  %v3966_v55 = vld [vmem:[%s4277_s25 + $0x160] sm:$0xff]   ;;  %v3970_v59 = vld [vmem:[%s4277_s25 + $0x168] sm:$0xff]  }
  0x29   : > { %3567 = vmatprep.subr.bf16.mxu1 %v3931_v18  ;;  %v3965_v54 = vld [vmem:[%s4277_s25 + $0x198] sm:$0xff]   ;;  %v3967_v56 = vld [vmem:[%s4277_s25 + $0x1e0] sm:$0xff]   ;;  %v3971_v60 = vld [vmem:[%s4277_s25 + $0x1e8] sm:$0xff]  }
  0x2a   : > { %v3968_v57 = vld [vmem:[%s4277_s25 + $0x120] sm:$0xff]   ;;  %v3972_v61 = vld [vmem:[%s4277_s25 + $0x128] sm:$0xff]   ;;  %v3974_v63 = vld [vmem:[%s4277_s25 + $0x170] sm:$0xff]  }
  0x2b   : > { %3546 = vmatpush3.bf16.msra.mxu0 %v3932_v19  ;;  %v3969_v58 = vld [vmem:[%s4277_s25 + $0x1a0] sm:$0xff]   ;;  %v3973_v62 = vld [vmem:[%s4277_s25 + $0x1a8] sm:$0xff]   ;;  %v3975_v0 = vld [vmem:[%s4277_s25 + $0x1f0] sm:$0xff]  }
  0x2c   : > { %3568 = vmatpush3.bf16.msra.mxu1 %v3933_v20  ;;  %3547 = vmatprep.subr.bf16.mxu0 %v3934_v21  ;;  %v3976_v1 = vld [vmem:[%s4277_s25 + $0x130] sm:$0xff]   ;;  %v3978_v3 = vld [vmem:[%s4277_s25 + $0x178] sm:$0xff]   ;;  %v3986_v13 = vld [vmem:[%s4277_s25 + $0x240] sm:$0xff]  }
  0x2d   : > { %3569 = vmatprep.subr.bf16.mxu1 %v3935_v22  ;;  %v3977_v2 = vld [vmem:[%s4277_s25 + $0x1b0] sm:$0xff]   ;;  %v3979_v4 = vld [vmem:[%s4277_s25 + $0x1f8] sm:$0xff]   ;;  %v3987_v14 = vld [vmem:[%s4277_s25 + $0x2c0] sm:$0xff]  }
  0x2e   : > { %v3980_v5 = vld [vmem:[%s4277_s25 + $0x138] sm:$0xff]   ;;  %v286_v7 = vld [vmem:[%s4272_s21 + $0x10] sm:$0xff]  ;;  %v3988_v15 = vld [vmem:[%s4277_s25 + $0x200] sm:$0xff]  }
  0x2f   : > { %3548 = vmatpush3.bf16.msra.mxu0 %v3936_v23  ;;  %v3981_v6 = vld [vmem:[%s4277_s25 + $0x1b8] sm:$0xff]   ;;  %v3248_v8 = vcombine.low %v286_v7, %v286_v7  ;;  %v3249_v9 = vcombine.high %v286_v7, %v286_v7  ;;  %v3989_v16 = vld [vmem:[%s4277_s25 + $0x280] sm:$0xff]   ;;  %v3990_v17 = vld [vmem:[%s4277_s25 + $0x248] sm:$0xff]  }
  0x30   : > { %3570 = vmatpush3.bf16.msra.mxu1 %v3937_v24  ;;  %3549 = vmatprep.subr.bf16.mxu0 %v3938_v25  ;;  %v287_v10 = vld [vmem:[%s4272_s21 + $0x18] sm:$0xff]  ;;  %v3991_v18 = vld [vmem:[%s4277_s25 + $0x2c8] sm:$0xff]   ;;  %v3994_v21 = vld [vmem:[%s4277_s25 + $0x250] sm:$0xff]  }
  0x31   : > { %3571 = vmatprep.subr.bf16.mxu1 %v3939_v26  ;;  %v3250_v11 = vcombine.low %v287_v10, %v287_v10  ;;  %v3251_v12 = vcombine.high %v287_v10, %v287_v10  ;;  %v3992_v19 = vld [vmem:[%s4277_s25 + $0x208] sm:$0xff]   ;;  %v3995_v22 = vld [vmem:[%s4277_s25 + $0x2d0] sm:$0xff]   ;;  %v3998_v25 = vld [vmem:[%s4277_s25 + $0x258] sm:$0xff]  }
  0x32   : > { %v3993_v20 = vld [vmem:[%s4277_s25 + $0x288] sm:$0xff]   ;;  %v3996_v23 = vld [vmem:[%s4277_s25 + $0x210] sm:$0xff]   ;;  %v3999_v26 = vld [vmem:[%s4277_s25 + $0x2d8] sm:$0xff]  }
  0x33   : > { %3550 = vmatpush3.bf16.msra.mxu0 %v3940_v27  ;;  %v3997_v24 = vld [vmem:[%s4277_s25 + $0x290] sm:$0xff]   ;;  %v4000_v27 = vld [vmem:[%s4277_s25 + $0x218] sm:$0xff]   ;;  %v4006_v33 = vld [vmem:[%s4277_s25 + $0x268] sm:$0xff]  }
  0x34   : > { %3572 = vmatpush3.bf16.msra.mxu1 %v3941_v28  ;;  %3551 = vmatprep.subr.bf16.mxu0 %v3942_v29  ;;  %v4001_v28 = vld [vmem:[%s4277_s25 + $0x298] sm:$0xff]   ;;  %v4002_v29 = vld [vmem:[%s4277_s25 + $0x260] sm:$0xff]   ;;  %v4007_v34 = vld [vmem:[%s4277_s25 + $0x2e8] sm:$0xff]  }
  0x35   : > { %3573 = vmatprep.subr.bf16.mxu1 %v3943_v30  ;;  %v4003_v30 = vld [vmem:[%s4277_s25 + $0x2e0] sm:$0xff]   ;;  %v4009_v36 = vld [vmem:[%s4277_s25 + $0x2a8] sm:$0xff]   ;;  %v4011_v38 = vld [vmem:[%s4277_s25 + $0x2f0] sm:$0xff]  }
  0x36   : > { %v4042_v7 = vld [vmem:[%s4277_s25 + $0x368] sm:$0xff]  }
  0x37   : > { %3552 = vmatpush3.bf16.msra.mxu0 %v3944_v31  ;;  %v4004_v31 = vld [vmem:[%s4277_s25 + $0x220] sm:$0xff]   ;;  %v4045_v10 = vld [vmem:[%s4277_s25 + $0x3a8] sm:$0xff]  }
  0x38   : > { %3574 = vmatpush3.bf16.msra.mxu1 %v3945_v32  ;;  %3581 = vmatprep.subr.bf16.mxu0 %v3950_v39  ;;  %v4005_v32 = vld [vmem:[%s4277_s25 + $0x2a0] sm:$0xff]   ;;  %v4012_v39 = vld [vmem:[%s4277_s25 + $0x230] sm:$0xff]  }
  0x39   : > { %3603 = vmatprep.subr.bf16.mxu1 %v3951_v40  ;;  %v4013_v40 = vld [vmem:[%s4277_s25 + $0x2b0] sm:$0xff]  }
  0x3a   : > { %2493 = vmatmul.mubr.bf16.vlgmr.msra.gmra.mrb[0].mxu0 %v3244_v35  ;;  %v4008_v35 = vld [vmem:[%s4277_s25 + $0x228] sm:$0xff]  }
  0x3b   : > { %2533 = vmatmul.mubr.bf16.vlgmr.msra.gmra.mrb[0].mxu1 %v3246_v37  ;;  %3582 = vmatpush3.bf16.msra.mxu0 %v3952_v41  ;;  %v4010_v37 = vld [vmem:[%s4277_s25 + $0x270] sm:$0xff]   ;;  %v4014_v41 = vld [vmem:[%s4277_s25 + $0x278] sm:$0xff]  }
  0x3c   : > { %3604 = vmatpush3.bf16.msra.mxu1 %v3953_v42  ;;  %3583 = vmatprep.subr.bf16.mxu0 %v3954_v43  ;;  %v4015_v42 = vld [vmem:[%s4277_s25 + $0x2f8] sm:$0xff]  }
  0x3d   : > { %3605 = vmatprep.subr.bf16.mxu1 %v3955_v44  ;;  %2572 = vmatprep.mubr.bf16.mxu0 %v3249_v9  ;;  %v4016_v43 = vld [vmem:[%s4277_s25 + $0x238] sm:$0xff]   ;;  %v4044_v9 = vld [vmem:[%s4277_s25 + $0x328] sm:$0xff]  }
  0x3e   : > { %2612 = vmatprep.mubr.bf16.mxu1 %v3251_v12  ;;  %v4017_v44 = vld [vmem:[%s4277_s25 + $0x2b8] sm:$0xff]   ;;  %v4047_v12 = vld [vmem:[%s4277_s25 + $0x3f0] sm:$0xff]  }
  0x3f   : > { %3584 = vmatpush3.bf16.msra.mxu0 %v3956_v45  ;;  %v288_v45 = vld [vmem:[%s4272_s21 + $0x20] sm:$0xff] }
  0x40   : > { %3606 = vmatpush3.bf16.msra.mxu1 %v3957_v46  ;;  %3585 = vmatprep.subr.bf16.mxu0 %v3958_v47  ;;  %v289_v46 = vld [vmem:[%s4272_s21 + $0x28] sm:$0xff]  ;;  %v3252_v47 = vcombine.low %v288_v45, %v288_v45 }
  0x41   : > { %3607 = vmatprep.subr.bf16.mxu1 %v3959_v48  ;;  %v3253_v48 = vcombine.high %v288_v45, %v288_v45  ;;  %v4078_v45 = vld [vmem:[%s4277_s25 + $0x468] sm:$0xff]  }
  0x43   : > { %3586 = vmatpush3.bf16.msra.mxu0 %v3960_v49  ;;  %v3254_v49 = vcombine.low %v289_v46, %v289_v46 }
  0x44   : > { %3608 = vmatpush3.bf16.msra.mxu1 %v3961_v50  ;;  %3587 = vmatprep.subr.bf16.mxu0 %v3962_v51  ;;  %v3255_v50 = vcombine.high %v289_v46, %v289_v46  ;;  %v4022_v51 = vld [vmem:[%s4277_s25 + $0x340] sm:$0xff]   ;;  %v4079_v46 = vld [vmem:[%s4277_s25 + $0x4e8] sm:$0xff]  }
  0x45   : > { %3609 = vmatprep.subr.bf16.mxu1 %v3963_v52  ;;  %v4023_v52 = vld [vmem:[%s4277_s25 + $0x3c0] sm:$0xff]  }
  0x47   : > { %3588 = vmatpush3.bf16.msra.mxu0 %v3964_v53  ;;  %v4024_v53 = vld [vmem:[%s4277_s25 + $0x300] sm:$0xff]  }
  0x48   : > { %3610 = vmatpush3.bf16.msra.mxu1 %v3965_v54  ;;  %3589 = vmatprep.subr.bf16.mxu0 %v3966_v55  ;;  %v4025_v54 = vld [vmem:[%s4277_s25 + $0x380] sm:$0xff]   ;;  %v4026_v55 = vld [vmem:[%s4277_s25 + $0x348] sm:$0xff]  }
  0x49   : > { %3611 = vmatprep.subr.bf16.mxu1 %v3967_v56  ;;  %v4027_v56 = vld [vmem:[%s4277_s25 + $0x3c8] sm:$0xff]  }
  0x4b   : > { %3590 = vmatpush3.bf16.msra.mxu0 %v3968_v57  ;;  %v4028_v57 = vld [vmem:[%s4277_s25 + $0x308] sm:$0xff]  }
  0x4c   : > { %3612 = vmatpush3.bf16.msra.mxu1 %v3969_v58  ;;  %3591 = vmatprep.subr.bf16.mxu0 %v3970_v59  ;;  %v4029_v58 = vld [vmem:[%s4277_s25 + $0x388] sm:$0xff]   ;;  %v4030_v59 = vld [vmem:[%s4277_s25 + $0x350] sm:$0xff]  }
  0x4d   : > { %3613 = vmatprep.subr.bf16.mxu1 %v3971_v60  ;;  %v4031_v60 = vld [vmem:[%s4277_s25 + $0x3d0] sm:$0xff]  }
  0x4f   : > { %3592 = vmatpush3.bf16.msra.mxu0 %v3972_v61  ;;  %v4032_v61 = vld [vmem:[%s4277_s25 + $0x310] sm:$0xff]  }
  0x50   : > { %3614 = vmatpush3.bf16.msra.mxu1 %v3973_v62  ;;  %3593 = vmatprep.subr.bf16.mxu0 %v3974_v63  ;;  %v4033_v62 = vld [vmem:[%s4277_s25 + $0x390] sm:$0xff]   ;;  %v4034_v63 = vld [vmem:[%s4277_s25 + $0x358] sm:$0xff]  }
  0x51   : > { %3615 = vmatprep.subr.bf16.mxu1 %v3975_v0  ;;  %v4035_v0 = vld [vmem:[%s4277_s25 + $0x3d8] sm:$0xff]  }
  0x53   : > { %3594 = vmatpush3.bf16.msra.mxu0 %v3976_v1  ;;  %v4036_v1 = vld [vmem:[%s4277_s25 + $0x318] sm:$0xff]  }
  0x54   : > { %3616 = vmatpush3.bf16.msra.mxu1 %v3977_v2  ;;  %3595 = vmatprep.subr.bf16.mxu0 %v3978_v3  ;;  %v4037_v2 = vld [vmem:[%s4277_s25 + $0x398] sm:$0xff]   ;;  %v4038_v3 = vld [vmem:[%s4277_s25 + $0x360] sm:$0xff]  }
  0x55   : > { %3617 = vmatprep.subr.bf16.mxu1 %v3979_v4  ;;  %v4039_v4 = vld [vmem:[%s4277_s25 + $0x3e0] sm:$0xff]  }
  0x57   : > { %3596 = vmatpush3.bf16.msra.mxu0 %v3980_v5  ;;  %v4040_v5 = vld [vmem:[%s4277_s25 + $0x320] sm:$0xff]  }
  0x58   : > { %3618 = vmatpush3.bf16.msra.mxu1 %v3981_v6  ;;  %3625 = vmatprep.subr.bf16.mxu0 %v3986_v13  ;;  %v4041_v6 = vld [vmem:[%s4277_s25 + $0x3a0] sm:$0xff]   ;;  %v4048_v13 = vld [vmem:[%s4277_s25 + $0x330] sm:$0xff]  }
  0x59   : > { %3647 = vmatprep.subr.bf16.mxu1 %v3987_v14  ;;  %v4049_v14 = vld [vmem:[%s4277_s25 + $0x3b0] sm:$0xff]  }
  0x5a   : > { %2573 = vmatmul.mubr.bf16.vlgmr.msra.gmra.mrb[4].mxu0 %v3248_v8  ;;  %v4043_v8 = vld [vmem:[%s4277_s25 + $0x3e8] sm:$0xff]  }
  0x5b   : > { %2613 = vmatmul.mubr.bf16.vlgmr.msra.gmra.mrb[4].mxu1 %v3250_v11  ;;  %3626 = vmatpush3.bf16.msra.mxu0 %v3988_v15  ;;  %v4046_v11 = vld [vmem:[%s4277_s25 + $0x370] sm:$0xff]   ;;  %v4050_v15 = vld [vmem:[%s4277_s25 + $0x378] sm:$0xff]  }
  0x5c   : > { %3648 = vmatpush3.bf16.msra.mxu1 %v3989_v16  ;;  %3627 = vmatprep.subr.bf16.mxu0 %v3990_v17  ;;  %v4051_v16 = vld [vmem:[%s4277_s25 + $0x3f8] sm:$0xff]  }
  0x5d   : > { %3649 = vmatprep.subr.bf16.mxu1 %v3991_v18  ;;  %2652 = vmatprep.mubr.bf16.mxu0 %v3253_v48  ;;  %v4052_v17 = vld [vmem:[%s4277_s25 + $0x338] sm:$0xff]   ;;  %v4081_v48 = vld [vmem:[%s4277_s25 + $0x4a8] sm:$0xff]  }
  0x5e   : > { %2692 = vmatprep.mubr.bf16.mxu1 %v3255_v50  ;;  %v4053_v18 = vld [vmem:[%s4277_s25 + $0x3b8] sm:$0xff]   ;;  %v4083_v50 = vld [vmem:[%s4277_s25 + $0x4f0] sm:$0xff]  }
  0x5f   : > { %3628 = vmatpush3.bf16.msra.mxu0 %v3992_v19  ;;  %v290_v19 = vld [vmem:[%s4272_s21 + $0x30] sm:$0xff] }
  0x60   : > { %3650 = vmatpush3.bf16.msra.mxu1 %v3993_v20  ;;  %3629 = vmatprep.subr.bf16.mxu0 %v3994_v21  ;;  %v291_v20 = vld [vmem:[%s4272_s21 + $0x38] sm:$0xff]  ;;  %v3256_v21 = vcombine.low %v290_v19, %v290_v19 }
  0x61   : > { %3651 = vmatprep.subr.bf16.mxu1 %v3995_v22  ;;  %v3257_v22 = vcombine.high %v290_v19, %v290_v19  ;;  %v4114_v19 = vld [vmem:[%s4277_s25 + $0x568] sm:$0xff]  }
  0x63   : > { %3630 = vmatpush3.bf16.msra.mxu0 %v3996_v23  ;;  %v3258_v23 = vcombine.low %v291_v20, %v291_v20 }
  0x64   : > { %3652 = vmatpush3.bf16.msra.mxu1 %v3997_v24  ;;  %3631 = vmatprep.subr.bf16.mxu0 %v3998_v25  ;;  %v4058_v24 = vld [vmem:[%s4277_s25 + $0x440] sm:$0xff]   ;;  %v3259_v25 = vcombine.high %v291_v20, %v291_v20  ;;  %v4115_v20 = vld [vmem:[%s4277_s25 + $0x5e8] sm:$0xff]  }
  0x65   : > { %3653 = vmatprep.subr.bf16.mxu1 %v3999_v26  ;;  %v4059_v26 = vld [vmem:[%s4277_s25 + $0x4c0] sm:$0xff]  }
  0x67   : > { %3632 = vmatpush3.bf16.msra.mxu0 %v4000_v27  ;;  %v4060_v27 = vld [vmem:[%s4277_s25 + $0x400] sm:$0xff]  }
  0x68   : > { %3654 = vmatpush3.bf16.msra.mxu1 %v4001_v28  ;;  %3633 = vmatprep.subr.bf16.mxu0 %v4002_v29  ;;  %v4061_v28 = vld [vmem:[%s4277_s25 + $0x480] sm:$0xff]   ;;  %v4062_v29 = vld [vmem:[%s4277_s25 + $0x448] sm:$0xff]  }
  0x69   : > { %3655 = vmatprep.subr.bf16.mxu1 %v4003_v30  ;;  %v4063_v30 = vld [vmem:[%s4277_s25 + $0x4c8] sm:$0xff]  }
  0x6b   : > { %3634 = vmatpush3.bf16.msra.mxu0 %v4004_v31  ;;  %v4064_v31 = vld [vmem:[%s4277_s25 + $0x408] sm:$0xff]  }
  0x6c   : > { %3656 = vmatpush3.bf16.msra.mxu1 %v4005_v32  ;;  %3635 = vmatprep.subr.bf16.mxu0 %v4006_v33  ;;  %v4065_v32 = vld [vmem:[%s4277_s25 + $0x488] sm:$0xff]   ;;  %v4066_v33 = vld [vmem:[%s4277_s25 + $0x450] sm:$0xff]  }
  0x6d   : > { %3657 = vmatprep.subr.bf16.mxu1 %v4007_v34  ;;  %v4067_v34 = vld [vmem:[%s4277_s25 + $0x4d0] sm:$0xff]  }
  0x6f   : > { %3636 = vmatpush3.bf16.msra.mxu0 %v4008_v35  ;;  %v4068_v35 = vld [vmem:[%s4277_s25 + $0x410] sm:$0xff]  }
  0x70   : > { %3658 = vmatpush3.bf16.msra.mxu1 %v4009_v36  ;;  %3637 = vmatprep.subr.bf16.mxu0 %v4010_v37  ;;  %v4069_v36 = vld [vmem:[%s4277_s25 + $0x490] sm:$0xff]   ;;  %v4070_v37 = vld [vmem:[%s4277_s25 + $0x458] sm:$0xff]  }
  0x71   : > { %3659 = vmatprep.subr.bf16.mxu1 %v4011_v38  ;;  %v4071_v38 = vld [vmem:[%s4277_s25 + $0x4d8] sm:$0xff]  }
  0x73   : > { %3638 = vmatpush3.bf16.msra.mxu0 %v4012_v39  ;;  %v4072_v39 = vld [vmem:[%s4277_s25 + $0x418] sm:$0xff]  }
  0x74   : > { %3660 = vmatpush3.bf16.msra.mxu1 %v4013_v40  ;;  %3639 = vmatprep.subr.bf16.mxu0 %v4014_v41  ;;  %v4073_v40 = vld [vmem:[%s4277_s25 + $0x498] sm:$0xff]   ;;  %v4074_v41 = vld [vmem:[%s4277_s25 + $0x460] sm:$0xff]  }
  0x75   : > { %3661 = vmatprep.subr.bf16.mxu1 %v4015_v42  ;;  %v4075_v42 = vld [vmem:[%s4277_s25 + $0x4e0] sm:$0xff]  }
  0x77   : > { %3640 = vmatpush3.bf16.msra.mxu0 %v4016_v43  ;;  %v4076_v43 = vld [vmem:[%s4277_s25 + $0x420] sm:$0xff]  }
  0x78   : > { %3662 = vmatpush3.bf16.msra.mxu1 %v4017_v44  ;;  %3669 = vmatprep.subr.bf16.mxu0 %v4022_v51  ;;  %v4077_v44 = vld [vmem:[%s4277_s25 + $0x4a0] sm:$0xff]   ;;  %v4084_v51 = vld [vmem:[%s4277_s25 + $0x430] sm:$0xff]  }
  0x79   : > { %3691 = vmatprep.subr.bf16.mxu1 %v4023_v52  ;;  %v4085_v52 = vld [vmem:[%s4277_s25 + $0x4b0] sm:$0xff]  }
  0x7a   : > { %2653 = vmatmul.mubr.bf16.vlgmr.msra.gmra.mrb[8].mxu0 %v3252_v47  ;;  %v4080_v47 = vld [vmem:[%s4277_s25 + $0x428] sm:$0xff]  }
  0x7b   : > { %2693 = vmatmul.mubr.bf16.vlgmr.msra.gmra.mrb[8].mxu1 %v3254_v49  ;;  %3670 = vmatpush3.bf16.msra.mxu0 %v4024_v53  ;;  %v4082_v49 = vld [vmem:[%s4277_s25 + $0x470] sm:$0xff]   ;;  %v4086_v53 = vld [vmem:[%s4277_s25 + $0x478] sm:$0xff]  }
  0x7c   : > { %3692 = vmatpush3.bf16.msra.mxu1 %v4025_v54  ;;  %3671 = vmatprep.subr.bf16.mxu0 %v4026_v55  ;;  %v4087_v54 = vld [vmem:[%s4277_s25 + $0x4f8] sm:$0xff]  }
  0x7d   : > { %3693 = vmatprep.subr.bf16.mxu1 %v4027_v56  ;;  %2732 = vmatprep.mubr.bf16.mxu0 %v3257_v22  ;;  %v4088_v55 = vld [vmem:[%s4277_s25 + $0x438] sm:$0xff]   ;;  %v4117_v22 = vld [vmem:[%s4277_s25 + $0x5a8] sm:$0xff]  }
  0x7e   : > { %2772 = vmatprep.mubr.bf16.mxu1 %v3259_v25  ;;  %v4089_v56 = vld [vmem:[%s4277_s25 + $0x4b8] sm:$0xff]   ;;  %v4120_v25 = vld [vmem:[%s4277_s25 + $0x530] sm:$0xff]  }
  0x7f   : > { %3672 = vmatpush3.bf16.msra.mxu0 %v4028_v57  ;;  %v292_v57 = vld [vmem:[%s4272_s21 + $0x40] sm:$0xff] }
  0x80   : > { %3694 = vmatpush3.bf16.msra.mxu1 %v4029_v58  ;;  %3673 = vmatprep.subr.bf16.mxu0 %v4030_v59  ;;  %v3260_v58 = vcombine.low %v292_v57, %v292_v57  ;;  %v3261_v59 = vcombine.high %v292_v57, %v292_v57  ;;  %v4150_v57 = vld [vmem:[%s4277_s25 + $0x668] sm:$0xff]  }
  0x81   : > { %3695 = vmatprep.subr.bf16.mxu1 %v4031_v60  ;;  %v293_v60 = vld [vmem:[%s4272_s21 + $0x48] sm:$0xff] }
  0x83   : > { %3674 = vmatpush3.bf16.msra.mxu0 %v4032_v61  ;;  %v3262_v61 = vcombine.low %v293_v60, %v293_v60 }
  0x84   : > { %3696 = vmatpush3.bf16.msra.mxu1 %v4033_v62  ;;  %3675 = vmatprep.subr.bf16.mxu0 %v4034_v63  ;;  %v3263_v62 = vcombine.high %v293_v60, %v293_v60  ;;  %v4094_v63 = vld [vmem:[%s4277_s25 + $0x540] sm:$0xff]   ;;  %v4153_v60 = vld [vmem:[%s4277_s25 + $0x6a8] sm:$0xff]  }
  0x85   : > { %3697 = vmatprep.subr.bf16.mxu1 %v4035_v0  ;;  %v4095_v0 = vld [vmem:[%s4277_s25 + $0x5c0] sm:$0xff]  }
  0x87   : > { %3676 = vmatpush3.bf16.msra.mxu0 %v4036_v1  ;;  %v4096_v1 = vld [vmem:[%s4277_s25 + $0x500] sm:$0xff]  }
  0x88   : > { %3698 = vmatpush3.bf16.msra.mxu1 %v4037_v2  ;;  %3677 = vmatprep.subr.bf16.mxu0 %v4038_v3  ;;  %v4097_v2 = vld [vmem:[%s4277_s25 + $0x580] sm:$0xff]   ;;  %v4098_v3 = vld [vmem:[%s4277_s25 + $0x548] sm:$0xff]  }
  0x89   : > { %3699 = vmatprep.subr.bf16.mxu1 %v4039_v4  ;;  %v4099_v4 = vld [vmem:[%s4277_s25 + $0x5c8] sm:$0xff]  }
  0x8b   : > { %3678 = vmatpush3.bf16.msra.mxu0 %v4040_v5  ;;  %v4100_v5 = vld [vmem:[%s4277_s25 + $0x508] sm:$0xff]  }
  0x8c   : > { %3700 = vmatpush3.bf16.msra.mxu1 %v4041_v6  ;;  %3679 = vmatprep.subr.bf16.mxu0 %v4042_v7  ;;  %v4101_v6 = vld [vmem:[%s4277_s25 + $0x588] sm:$0xff]   ;;  %v4102_v7 = vld [vmem:[%s4277_s25 + $0x550] sm:$0xff]  }
  0x8d   : > { %3701 = vmatprep.subr.bf16.mxu1 %v4043_v8  ;;  %v4103_v8 = vld [vmem:[%s4277_s25 + $0x5d0] sm:$0xff]  }
  0x8f   : > { %3680 = vmatpush3.bf16.msra.mxu0 %v4044_v9  ;;  %v4104_v9 = vld [vmem:[%s4277_s25 + $0x510] sm:$0xff]  }
  0x90   : > { %3702 = vmatpush3.bf16.msra.mxu1 %v4045_v10  ;;  %3681 = vmatprep.subr.bf16.mxu0 %v4046_v11  ;;  %v4105_v10 = vld [vmem:[%s4277_s25 + $0x590] sm:$0xff]   ;;  %v4106_v11 = vld [vmem:[%s4277_s25 + $0x558] sm:$0xff]  }
  0x91   : > { %3703 = vmatprep.subr.bf16.mxu1 %v4047_v12  ;;  %v4107_v12 = vld [vmem:[%s4277_s25 + $0x5d8] sm:$0xff]  }
  0x93   : > { %3682 = vmatpush3.bf16.msra.mxu0 %v4048_v13  ;;  %v4108_v13 = vld [vmem:[%s4277_s25 + $0x518] sm:$0xff]  }
  0x94   : > { %3704 = vmatpush3.bf16.msra.mxu1 %v4049_v14  ;;  %3683 = vmatprep.subr.bf16.mxu0 %v4050_v15  ;;  %v4109_v14 = vld [vmem:[%s4277_s25 + $0x598] sm:$0xff]   ;;  %v4110_v15 = vld [vmem:[%s4277_s25 + $0x560] sm:$0xff]  }
  0x95   : > { %3705 = vmatprep.subr.bf16.mxu1 %v4051_v16  ;;  %v4111_v16 = vld [vmem:[%s4277_s25 + $0x5e0] sm:$0xff]  }
  0x97   : > { %3684 = vmatpush3.bf16.msra.mxu0 %v4052_v17  ;;  %v4112_v17 = vld [vmem:[%s4277_s25 + $0x520] sm:$0xff]  }
  0x98   : > { %3706 = vmatpush3.bf16.msra.mxu1 %v4053_v18  ;;  %3713 = vmatprep.subr.bf16.mxu0 %v4058_v24  ;;  %v4113_v18 = vld [vmem:[%s4277_s25 + $0x5a0] sm:$0xff]   ;;  %v4119_v24 = vld [vmem:[%s4277_s25 + $0x5f0] sm:$0xff]  }
  0x99   : > { %3735 = vmatprep.subr.bf16.mxu1 %v4059_v26  ;;  %v4121_v26 = vld [vmem:[%s4277_s25 + $0x5b0] sm:$0xff]  }
  0x9a   : > { %2733 = vmatmul.mubr.bf16.vlgmr.msra.gmra.mrb[12].mxu0 %v3256_v21  ;;  %v4116_v21 = vld [vmem:[%s4277_s25 + $0x528] sm:$0xff]  }
  0x9b   : > { %2773 = vmatmul.mubr.bf16.vlgmr.msra.gmra.mrb[12].mxu1 %v3258_v23  ;;  %3714 = vmatpush3.bf16.msra.mxu0 %v4060_v27  ;;  %v4118_v23 = vld [vmem:[%s4277_s25 + $0x570] sm:$0xff]   ;;  %v4122_v27 = vld [vmem:[%s4277_s25 + $0x578] sm:$0xff]  }
  0x9c   : > { %3736 = vmatpush3.bf16.msra.mxu1 %v4061_v28  ;;  %3715 = vmatprep.subr.bf16.mxu0 %v4062_v29  ;;  %v4123_v28 = vld [vmem:[%s4277_s25 + $0x5f8] sm:$0xff]  }
  0x9d   : > { %3737 = vmatprep.subr.bf16.mxu1 %v4063_v30  ;;  %2812 = vmatprep.mubr.bf16.mxu0 %v3261_v59  ;;  %v4124_v29 = vld [vmem:[%s4277_s25 + $0x538] sm:$0xff]   ;;  %v4152_v59 = vld [vmem:[%s4277_s25 + $0x628] sm:$0xff]  }
  0x9e   : > { %2852 = vmatprep.mubr.bf16.mxu1 %v3263_v62  ;;  %v4125_v30 = vld [vmem:[%s4277_s25 + $0x5b8] sm:$0xff]   ;;  %v4155_v62 = vld [vmem:[%s4277_s25 + $0x6f0] sm:$0xff]  }
  0x9f   : > { %3716 = vmatpush3.bf16.msra.mxu0 %v4064_v31  ;;  %v294_v31 = vld [vmem:[%s4272_s21 + $0x50] sm:$0xff] }
  0xa0   : > { %3738 = vmatpush3.bf16.msra.mxu1 %v4065_v32  ;;  %3717 = vmatprep.subr.bf16.mxu0 %v4066_v33  ;;  %v295_v32 = vld [vmem:[%s4272_s21 + $0x58] sm:$0xff]  ;;  %v3264_v33 = vcombine.low %v294_v31, %v294_v31 }
  0xa1   : > { %3739 = vmatprep.subr.bf16.mxu1 %v4067_v34  ;;  %v3265_v34 = vcombine.high %v294_v31, %v294_v31  ;;  %v4185_v31 = vld [vmem:[%s4277_s25 + $0x7a0] sm:$0xff]  }
  0xa3   : > { %3718 = vmatpush3.bf16.msra.mxu0 %v4068_v35  ;;  %v3266_v35 = vcombine.low %v295_v32, %v295_v32 }
  0xa4   : > { %3740 = vmatpush3.bf16.msra.mxu1 %v4069_v36  ;;  %3719 = vmatprep.subr.bf16.mxu0 %v4070_v37  ;;  %v3267_v36 = vcombine.high %v295_v32, %v295_v32  ;;  %v4130_v37 = vld [vmem:[%s4277_s25 + $0x640] sm:$0xff]  }
  0xa5   : > { %3741 = vmatprep.subr.bf16.mxu1 %v4071_v38  ;;  %v4131_v38 = vld [vmem:[%s4277_s25 + $0x6c0] sm:$0xff]  }
  0xa7   : > { %3720 = vmatpush3.bf16.msra.mxu0 %v4072_v39  ;;  %v4132_v39 = vld [vmem:[%s4277_s25 + $0x600] sm:$0xff]  }
  0xa8   : > { %3742 = vmatpush3.bf16.msra.mxu1 %v4073_v40  ;;  %3721 = vmatprep.subr.bf16.mxu0 %v4074_v41  ;;  %v4133_v40 = vld [vmem:[%s4277_s25 + $0x680] sm:$0xff]   ;;  %v4134_v41 = vld [vmem:[%s4277_s25 + $0x648] sm:$0xff]  }
  0xa9   : > { %3743 = vmatprep.subr.bf16.mxu1 %v4075_v42  ;;  %v4135_v42 = vld [vmem:[%s4277_s25 + $0x6c8] sm:$0xff]  }
  0xab   : > { %3722 = vmatpush3.bf16.msra.mxu0 %v4076_v43  ;;  %v4136_v43 = vld [vmem:[%s4277_s25 + $0x608] sm:$0xff]  }
  0xac   : > { %3744 = vmatpush3.bf16.msra.mxu1 %v4077_v44  ;;  %3723 = vmatprep.subr.bf16.mxu0 %v4078_v45  ;;  %v4137_v44 = vld [vmem:[%s4277_s25 + $0x688] sm:$0xff]   ;;  %v4138_v45 = vld [vmem:[%s4277_s25 + $0x650] sm:$0xff]  }
  0xad   : > { %3745 = vmatprep.subr.bf16.mxu1 %v4079_v46  ;;  %v4139_v46 = vld [vmem:[%s4277_s25 + $0x6d0] sm:$0xff]  }
  0xaf   : > { %3724 = vmatpush3.bf16.msra.mxu0 %v4080_v47  ;;  %v4140_v47 = vld [vmem:[%s4277_s25 + $0x610] sm:$0xff]  }
  0xb0   : > { %3746 = vmatpush3.bf16.msra.mxu1 %v4081_v48  ;;  %3725 = vmatprep.subr.bf16.mxu0 %v4082_v49  ;;  %v4141_v48 = vld [vmem:[%s4277_s25 + $0x690] sm:$0xff]   ;;  %v4142_v49 = vld [vmem:[%s4277_s25 + $0x658] sm:$0xff]  }
  0xb1   : > { %3747 = vmatprep.subr.bf16.mxu1 %v4083_v50  ;;  %v4143_v50 = vld [vmem:[%s4277_s25 + $0x6d8] sm:$0xff]  }
  0xb3   : > { %3726 = vmatpush3.bf16.msra.mxu0 %v4084_v51  ;;  %v4144_v51 = vld [vmem:[%s4277_s25 + $0x618] sm:$0xff]  }
  0xb4   : > { %3748 = vmatpush3.bf16.msra.mxu1 %v4085_v52  ;;  %3727 = vmatprep.subr.bf16.mxu0 %v4086_v53  ;;  %v4145_v52 = vld [vmem:[%s4277_s25 + $0x698] sm:$0xff]   ;;  %v4146_v53 = vld [vmem:[%s4277_s25 + $0x660] sm:$0xff]  }
  0xb5   : > { %3749 = vmatprep.subr.bf16.mxu1 %v4087_v54  ;;  %v4147_v54 = vld [vmem:[%s4277_s25 + $0x6e0] sm:$0xff]  }
  0xb7   : > { %3728 = vmatpush3.bf16.msra.mxu0 %v4088_v55  ;;  %v4148_v55 = vld [vmem:[%s4277_s25 + $0x620] sm:$0xff]  }
  0xb8   : > { %3750 = vmatpush3.bf16.msra.mxu1 %v4089_v56  ;;  %3757 = vmatprep.subr.bf16.mxu0 %v4094_v63  ;;  %v4149_v56 = vld [vmem:[%s4277_s25 + $0x6a0] sm:$0xff]   ;;  %v4156_v63 = vld [vmem:[%s4277_s25 + $0x630] sm:$0xff]  }
  0xb9   : > { %3779 = vmatprep.subr.bf16.mxu1 %v4095_v0  ;;  %v4157_v0 = vld [vmem:[%s4277_s25 + $0x6b0] sm:$0xff]  }
  0xba   : > { %2813 = vmatmul.mubr.bf16.vlgmr.msra.gmra.mrb[16].mxu0 %v3260_v58  ;;  %v4151_v58 = vld [vmem:[%s4277_s25 + $0x6e8] sm:$0xff]  }
  0xbb   : > { %2853 = vmatmul.mubr.bf16.vlgmr.msra.gmra.mrb[16].mxu1 %v3262_v61  ;;  %3758 = vmatpush3.bf16.msra.mxu0 %v4096_v1  ;;  %v4154_v61 = vld [vmem:[%s4277_s25 + $0x670] sm:$0xff]   ;;  %v4158_v1 = vld [vmem:[%s4277_s25 + $0x678] sm:$0xff]  }
  0xbc   : > { %3780 = vmatpush3.bf16.msra.mxu1 %v4097_v2  ;;  %3759 = vmatprep.subr.bf16.mxu0 %v4098_v3  ;;  %v4159_v2 = vld [vmem:[%s4277_s25 + $0x6f8] sm:$0xff]  }
  0xbd   : > { %3781 = vmatprep.subr.bf16.mxu1 %v4099_v4  ;;  %2892 = vmatprep.mubr.bf16.mxu0 %v3265_v34  ;;  %v4160_v3 = vld [vmem:[%s4277_s25 + $0x638] sm:$0xff]   ;;  %v4186_v34 = vld [vmem:[%s4277_s25 + $0x768] sm:$0xff]  }
  0xbe   : > { %2932 = vmatprep.mubr.bf16.mxu1 %v3267_v36  ;;  %v4161_v4 = vld [vmem:[%s4277_s25 + $0x6b8] sm:$0xff]  }
  0xbf   : > { %3760 = vmatpush3.bf16.msra.mxu0 %v4100_v5  ;;  %v296_v5 = vld [vmem:[%s4272_s21 + $0x60] sm:$0xff] }
  0xc0   : > { %3782 = vmatpush3.bf16.msra.mxu1 %v4101_v6  ;;  %3761 = vmatprep.subr.bf16.mxu0 %v4102_v7  ;;  %v297_v6 = vld [vmem:[%s4272_s21 + $0x68] sm:$0xff]  ;;  %v3268_v7 = vcombine.low %v296_v5, %v296_v5 }
  0xc1   : > { %3783 = vmatprep.subr.bf16.mxu1 %v4103_v8  ;;  %v3269_v8 = vcombine.high %v296_v5, %v296_v5 }
  0xc3   : > { %3762 = vmatpush3.bf16.msra.mxu0 %v4104_v9  ;;  %v3270_v9 = vcombine.low %v297_v6, %v297_v6 }
  0xc4   : > { %3784 = vmatpush3.bf16.msra.mxu1 %v4105_v10  ;;  %3763 = vmatprep.subr.bf16.mxu0 %v4106_v11  ;;  %v4166_v10 = vld [vmem:[%s4277_s25 + $0x740] sm:$0xff]   ;;  %v3271_v11 = vcombine.high %v297_v6, %v297_v6 }
  0xc5   : > { %3785 = vmatprep.subr.bf16.mxu1 %v4107_v12  ;;  %v4167_v12 = vld [vmem:[%s4277_s25 + $0x7c0] sm:$0xff]  }
  0xc7   : > { %3764 = vmatpush3.bf16.msra.mxu0 %v4108_v13  ;;  %v4168_v13 = vld [vmem:[%s4277_s25 + $0x700] sm:$0xff]  }
  0xc8   : > { %3786 = vmatpush3.bf16.msra.mxu1 %v4109_v14  ;;  %3765 = vmatprep.subr.bf16.mxu0 %v4110_v15  ;;  %v4169_v14 = vld [vmem:[%s4277_s25 + $0x780] sm:$0xff]   ;;  %v4170_v15 = vld [vmem:[%s4277_s25 + $0x748] sm:$0xff]  }
  0xc9   : > { %3787 = vmatprep.subr.bf16.mxu1 %v4111_v16  ;;  %v4171_v16 = vld [vmem:[%s4277_s25 + $0x7c8] sm:$0xff]  }
  0xcb   : > { %3766 = vmatpush3.bf16.msra.mxu0 %v4112_v17  ;;  %v4172_v17 = vld [vmem:[%s4277_s25 + $0x708] sm:$0xff]  }
  0xcc   : > { %3788 = vmatpush3.bf16.msra.mxu1 %v4113_v18  ;;  %3767 = vmatprep.subr.bf16.mxu0 %v4114_v19  ;;  %v4173_v18 = vld [vmem:[%s4277_s25 + $0x788] sm:$0xff]   ;;  %v4174_v19 = vld [vmem:[%s4277_s25 + $0x750] sm:$0xff]  }
  0xcd   : > { %3789 = vmatprep.subr.bf16.mxu1 %v4115_v20  ;;  %v4175_v20 = vld [vmem:[%s4277_s25 + $0x7d0] sm:$0xff]  }
  0xcf   : > { %3768 = vmatpush3.bf16.msra.mxu0 %v4116_v21  ;;  %v4176_v21 = vld [vmem:[%s4277_s25 + $0x710] sm:$0xff]  }
  0xd0   : > { %3790 = vmatpush3.bf16.msra.mxu1 %v4117_v22  ;;  %3769 = vmatprep.subr.bf16.mxu0 %v4118_v23  ;;  %v4177_v22 = vld [vmem:[%s4277_s25 + $0x790] sm:$0xff]   ;;  %v4178_v23 = vld [vmem:[%s4277_s25 + $0x758] sm:$0xff]  }
  0xd1   : > { %3791 = vmatprep.subr.bf16.mxu1 %v4119_v24  ;;  %v4179_v24 = vld [vmem:[%s4277_s25 + $0x7d8] sm:$0xff]  }
  0xd3   : > { %3770 = vmatpush3.bf16.msra.mxu0 %v4120_v25  ;;  %v4180_v25 = vld [vmem:[%s4277_s25 + $0x718] sm:$0xff]  }
  0xd4   : > { %3792 = vmatpush3.bf16.msra.mxu1 %v4121_v26  ;;  %3771 = vmatprep.subr.bf16.mxu0 %v4122_v27  ;;  %v4181_v26 = vld [vmem:[%s4277_s25 + $0x798] sm:$0xff]   ;;  %v4182_v27 = vld [vmem:[%s4277_s25 + $0x760] sm:$0xff]  }
  0xd5   : > { %3793 = vmatprep.subr.bf16.mxu1 %v4123_v28  ;;  %v4183_v28 = vld [vmem:[%s4277_s25 + $0x7e0] sm:$0xff]  }
  0xd7   : > { %3772 = vmatpush3.bf16.msra.mxu0 %v4124_v29  ;;  %v4184_v29 = vld [vmem:[%s4277_s25 + $0x720] sm:$0xff]  }
  0xd8   : > { %3794 = vmatpush3.bf16.msra.mxu1 %v4125_v30  ;;  %3801 = vmatprep.subr.bf16.mxu0 %v4130_v37  ;;  %v4187_v37 = vld [vmem:[%s4277_s25 + $0x7e8] sm:$0xff]  }
  0xd9   : > { %3823 = vmatprep.subr.bf16.mxu1 %v4131_v38 }
  0xda   : > { %2893 = vmatmul.mubr.bf16.vlgmr.msra.gmra.mrb[20].mxu0 %v3264_v33 }
  0xdb   : > { %2933 = vmatmul.mubr.bf16.vlgmr.msra.gmra.mrb[20].mxu1 %v3266_v35  ;;  %3802 = vmatpush3.bf16.msra.mxu0 %v4132_v39 }
  0xdc   : > { %3824 = vmatpush3.bf16.msra.mxu1 %v4133_v40  ;;  %3803 = vmatprep.subr.bf16.mxu0 %v4134_v41  ;;  %v4188_v41 = vld [vmem:[%s4277_s25 + $0x728] sm:$0xff]  }
  0xdd   : > { %3825 = vmatprep.subr.bf16.mxu1 %v4135_v42  ;;  %2972 = vmatprep.mubr.bf16.mxu0 %v3269_v8 }
  0xde   : > { %3012 = vmatprep.mubr.bf16.mxu1 %v3271_v11 }
  0xdf   : > { %3804 = vmatpush3.bf16.msra.mxu0 %v4136_v43 }
  0xe0   : > { %3826 = vmatpush3.bf16.msra.mxu1 %v4137_v44  ;;  %3805 = vmatprep.subr.bf16.mxu0 %v4138_v45  ;;  %v4189_v44 = vld [vmem:[%s4277_s25 + $0x7a8] sm:$0xff]  }
  0xe1   : > { %3827 = vmatprep.subr.bf16.mxu1 %v4139_v46  ;;  %v4190_v46 = vld [vmem:[%s4277_s25 + $0x770] sm:$0xff]  }
  0xe3   : > { %3806 = vmatpush3.bf16.msra.mxu0 %v4140_v47  ;;  %v4191_v47 = vld [vmem:[%s4277_s25 + $0x7f0] sm:$0xff]  }
  0xe4   : > { %3828 = vmatpush3.bf16.msra.mxu1 %v4141_v48  ;;  %3807 = vmatprep.subr.bf16.mxu0 %v4142_v49  ;;  %v4192_v48 = vld [vmem:[%s4277_s25 + $0x730] sm:$0xff]  }
  0xe5   : > { %3829 = vmatprep.subr.bf16.mxu1 %v4143_v50  ;;  %v4193_v49 = vld [vmem:[%s4277_s25 + $0x7b0] sm:$0xff]   ;;  %v4194_v50 = vld [vmem:[%s4277_s25 + $0x778] sm:$0xff]  }
  0xe7   : > { %3808 = vmatpush3.bf16.msra.mxu0 %v4144_v51  ;;  %v4195_v51 = vld [vmem:[%s4277_s25 + $0x7f8] sm:$0xff]  }
  0xe8   : > { %3830 = vmatpush3.bf16.msra.mxu1 %v4145_v52  ;;  %3809 = vmatprep.subr.bf16.mxu0 %v4146_v53  ;;  %v4196_v52 = vld [vmem:[%s4277_s25 + $0x738] sm:$0xff]  }
  0xe9   : > { %3831 = vmatprep.subr.bf16.mxu1 %v4147_v54  ;;  %v4197_v53 = vld [vmem:[%s4277_s25 + $0x7b8] sm:$0xff]   ;;  %v298_v54 = vld [vmem:[%s4272_s21 + $0x70] sm:$0xff] }
  0xeb   : > { %3810 = vmatpush3.bf16.msra.mxu0 %v4148_v55  ;;  %v299_v55 = vld [vmem:[%s4272_s21 + $0x78] sm:$0xff] }
  0xec   : > { %3832 = vmatpush3.bf16.msra.mxu1 %v4149_v56  ;;  %3811 = vmatprep.subr.bf16.mxu0 %v4150_v57  ;;  %v3272_v56 = vcombine.low %v298_v54, %v298_v54  ;;  %v3273_v57 = vcombine.high %v298_v54, %v298_v54 }
  0xed   : > { %3833 = vmatprep.subr.bf16.mxu1 %v4151_v58  ;;  %v3274_v58 = vcombine.low %v299_v55, %v299_v55 }
  0xef   : > { %3812 = vmatpush3.bf16.msra.mxu0 %v4152_v59  ;;  %v3275_v59 = vcombine.high %v299_v55, %v299_v55 }
  0xf0   : > { %3834 = vmatpush3.bf16.msra.mxu1 %v4153_v60  ;;  %3813 = vmatprep.subr.bf16.mxu0 %v4154_v61 }
  0xf1   : > { %3835 = vmatprep.subr.bf16.mxu1 %v4155_v62 }
  0xf3   : > { %3814 = vmatpush3.bf16.msra.mxu0 %v4156_v63 }
  0xf4   : > { %3836 = vmatpush3.bf16.msra.mxu1 %v4157_v0  ;;  %3815 = vmatprep.subr.bf16.mxu0 %v4158_v1 }
  0xf5   : > { %3837 = vmatprep.subr.bf16.mxu1 %v4159_v2 }
  0xf7   : > { %3816 = vmatpush3.bf16.msra.mxu0 %v4160_v3 }
  0xf8   : > { %3838 = vmatpush3.bf16.msra.mxu1 %v4161_v4  ;;  %3845 = vmatprep.subr.bf16.mxu0 %v4166_v10 }
  0xf9   : > { %3867 = vmatprep.subr.bf16.mxu1 %v4167_v12 }
  0xfa   : > { %2973 = vmatmul.mubr.bf16.vlgmr.msra.gmra.mrb[24].mxu0 %v3268_v7 }
  0xfb   : > { %3013 = vmatmul.mubr.bf16.vlgmr.msra.gmra.mrb[24].mxu1 %v3270_v9  ;;  %3846 = vmatpush3.bf16.msra.mxu0 %v4168_v13 }
  0xfc   : > { %3868 = vmatpush3.bf16.msra.mxu1 %v4169_v14  ;;  %3847 = vmatprep.subr.bf16.mxu0 %v4170_v15 }
  0xfd   : > { %3869 = vmatprep.subr.bf16.mxu1 %v4171_v16  ;;  %3052 = vmatprep.mubr.bf16.mxu0 %v3273_v57 }
  0xfe   : > { %3092 = vmatprep.mubr.bf16.mxu1 %v3275_v59 }
  0xff   : > { %3848 = vmatpush3.bf16.msra.mxu0 %v4172_v17 }
 0x100   : > { %3870 = vmatpush3.bf16.msra.mxu1 %v4173_v18  ;;  %3849 = vmatprep.subr.bf16.mxu0 %v4174_v19 }
 0x101   : > { %3871 = vmatprep.subr.bf16.mxu1 %v4175_v20 }
 0x103   : > { %3850 = vmatpush3.bf16.msra.mxu0 %v4176_v21 }
 0x104   : > { %3872 = vmatpush3.bf16.msra.mxu1 %v4177_v22  ;;  %3851 = vmatprep.subr.bf16.mxu0 %v4178_v23 }
 0x105   : > { %3873 = vmatprep.subr.bf16.mxu1 %v4179_v24 }
 0x107   : > { %3852 = vmatpush3.bf16.msra.mxu0 %v4180_v25 }
 0x108   : > { %3874 = vmatpush3.bf16.msra.mxu1 %v4181_v26  ;;  %3853 = vmatprep.subr.bf16.mxu0 %v4182_v27 }
 0x109   : > { %3875 = vmatprep.subr.bf16.mxu1 %v4183_v28 }
 0x10b   : > { %3854 = vmatpush3.bf16.msra.mxu0 %v4184_v29 }
 0x10c   : > { %3876 = vmatpush3.bf16.msra.mxu1 %v4185_v31  ;;  %3855 = vmatprep.subr.bf16.mxu0 %v4186_v34 }
 0x10d   : > { %v3553_v30 = vpop.f32.mrb[0].mxu0  ;;  %3877 = vmatprep.subr.bf16.mxu1 %v4187_v37 }
 0x10e   : > { %v3575_v32 = vpop.f32.mrb[0].mxu1  ;;  %v3554_v33 = vpop.f32.mrb[1].mxu0 }
 0x10f   : > { %v3555_v35 = vadd.f32 %v3554_v33, %v3553_v30  ;;  %v3576_v36 = vpop.f32.mrb[1].mxu1  ;;  %v3556_v39 = vpop.f32.mrb[2].mxu0  ;;  %3856 = vmatpush3.bf16.msra.mxu0 %v4188_v41 }
 0x110   : > { %v3577_v38 = vadd.f32 %v3576_v36, %v3575_v32  ;;  %v3578_v40 = vpop.f32.mrb[2].mxu1  ;;  %v3557_v42 = vpop.f32.mrb[3].mxu0  ;;  %3878 = vmatpush3.bf16.msra.mxu1 %v4189_v44  ;;  %3857 = vmatprep.subr.bf16.mxu0 %v4190_v46 }
 0x111   : > { %v3579_v45 = vpop.f32.mrb[3].mxu1  ;;  %3879 = vmatprep.subr.bf16.mxu1 %v4191_v47 }
 0x112   : > { %v2535_v43 = vadd.f32 %v3577_v38, %v3555_v35 }
 0x113   : > { %3858 = vmatpush3.bf16.msra.mxu0 %v4192_v48 }
 0x114   : > { %3880 = vmatpush3.bf16.msra.mxu1 %v4193_v49  ;;  %3859 = vmatprep.subr.bf16.mxu0 %v4194_v50 }
 0x115   : > { %3881 = vmatprep.subr.bf16.mxu1 %v4195_v51 }
 0x117   : > { %3860 = vmatpush3.bf16.msra.mxu0 %v4196_v52 }
 0x118   : > { %3882 = vmatpush3.bf16.msra.mxu1 %v4197_v53 }
 0x11a   : > { %3053 = vmatmul.mubr.bf16.vlgmr.msra.gmra.mrb[28].mxu0 %v3272_v56 }
 0x11b   : > { %3093 = vmatmul.mubr.bf16.vlgmr.msra.gmra.mrb[28].mxu1 %v3274_v58 }
 0x12d   : > { %v3597_v60 = vpop.f32.mrb[4].mxu0 }
 0x12e   : > { %v3619_v61 = vpop.f32.mrb[4].mxu1  ;;  %v3598_v62 = vpop.f32.mrb[5].mxu0 }
 0x12f   : > { %v3620_v63 = vpop.f32.mrb[5].mxu1  ;;  %v3599_v0 = vadd.f32 %v3598_v62, %v3597_v60  ;;  %v3600_v2 = vpop.f32.mrb[6].mxu0 }
 0x130   : > { %v3621_v1 = vadd.f32 %v3620_v63, %v3619_v61  ;;  %v3622_v3 = vpop.f32.mrb[6].mxu1  ;;  %v3601_v4 = vpop.f32.mrb[7].mxu0 }
 0x131   : > { %v3623_v5 = vpop.f32.mrb[7].mxu1  ;;  %v2575_v6 = vadd.f32 %v3599_v0, %v2535_v43 }
 0x133   : > { %v2615_v7 = vadd.f32 %v3621_v1, %v2575_v6 }
 0x14d   : > { %v3641_v8 = vpop.f32.mrb[8].mxu0 }
 0x14e   : > { %v3663_v9 = vpop.f32.mrb[8].mxu1  ;;  %v3642_v10 = vpop.f32.mrb[9].mxu0 }
 0x14f   : > { %v3643_v11 = vadd.f32 %v3642_v10, %v3641_v8  ;;  %v3664_v12 = vpop.f32.mrb[9].mxu1  ;;  %v3644_v13 = vpop.f32.mrb[10].mxu0 }
 0x150   : > { %v3665_v14 = vadd.f32 %v3664_v12, %v3663_v9  ;;  %v3666_v15 = vpop.f32.mrb[10].mxu1  ;;  %v3645_v16 = vpop.f32.mrb[11].mxu0 }
 0x151   : > { %v2655_v17 = vadd.f32 %v3643_v11, %v2615_v7  ;;  %v3667_v18 = vpop.f32.mrb[11].mxu1  ;;  %v283_v15 = vld [vmem:[#allocation2] sm:$0xff] }
 0x153   : > { %v2695_v19 = vadd.f32 %v3665_v14, %v2655_v17 }
 0x16d   : > { %v3685_v20 = vpop.f32.mrb[12].mxu0 }
 0x16e   : > { %v3707_v21 = vpop.f32.mrb[12].mxu1  ;;  %v3686_v22 = vpop.f32.mrb[13].mxu0 }
 0x16f   : > { %v3687_v23 = vadd.f32 %v3686_v22, %v3685_v20  ;;  %v3708_v24 = vpop.f32.mrb[13].mxu1  ;;  %v3688_v25 = vpop.f32.mrb[14].mxu0 }
 0x170   : > { %v3709_v26 = vadd.f32 %v3708_v24, %v3707_v21  ;;  %v3710_v27 = vpop.f32.mrb[14].mxu1  ;;  %v3689_v28 = vpop.f32.mrb[15].mxu0 }
 0x171   : > { %v2735_v29 = vadd.f32 %v3687_v23, %v2695_v19  ;;  %v3711_v30 = vpop.f32.mrb[15].mxu1  ;;  %v3533_v19 = vld [vmem:[%s4570_s2] ss:$0 sm:$0xff] (!%p3532_p7) }
 0x173   : > { %v2775_v31 = vadd.f32 %v3709_v26, %v2735_v29 }
 0x18d   : > { %v3729_v32 = vpop.f32.mrb[16].mxu0 }
 0x18e   : > { %v3751_v33 = vpop.f32.mrb[16].mxu1  ;;  %v3730_v34 = vpop.f32.mrb[17].mxu0 }
 0x18f   : > { %v3752_v35 = vpop.f32.mrb[17].mxu1  ;;  %v3731_v36 = vadd.f32 %v3730_v34, %v3729_v32  ;;  %v3732_v38 = vpop.f32.mrb[18].mxu0 }
 0x190   : > { %v3753_v37 = vadd.f32 %v3752_v35, %v3751_v33  ;;  %v3754_v39 = vpop.f32.mrb[18].mxu1  ;;  %v3733_v40 = vpop.f32.mrb[19].mxu0 }
 0x191   : > { %v3755_v41 = vpop.f32.mrb[19].mxu1  ;;  %v2815_v42 = vadd.f32 %v3731_v36, %v2775_v31 }
 0x193   : > { %v2855_v43 = vadd.f32 %v3753_v37, %v2815_v42 }
 0x1ad   : > { %v3773_v44 = vpop.f32.mrb[20].mxu0 }
 0x1ae   : > { %v3795_v45 = vpop.f32.mrb[20].mxu1  ;;  %v3774_v46 = vpop.f32.mrb[21].mxu0 }
 0x1af   : > { %v3775_v47 = vadd.f32 %v3774_v46, %v3773_v44  ;;  %v3796_v48 = vpop.f32.mrb[21].mxu1  ;;  %v3776_v49 = vpop.f32.mrb[22].mxu0 }
 0x1b0   : > { %v3797_v50 = vadd.f32 %v3796_v48, %v3795_v45  ;;  %v3798_v51 = vpop.f32.mrb[22].mxu1  ;;  %v3777_v52 = vpop.f32.mrb[23].mxu0 }
 0x1b1   : > { %v2895_v53 = vadd.f32 %v3775_v47, %v2855_v43  ;;  %v3799_v54 = vpop.f32.mrb[23].mxu1 }
 0x1b3   : > { %v2935_v55 = vadd.f32 %v3797_v50, %v2895_v53 }
 0x1cd   : > { %v3817_v56 = vpop.f32.mrb[24].mxu0 }
 0x1ce   : > { %v3839_v57 = vpop.f32.mrb[24].mxu1  ;;  %v3818_v58 = vpop.f32.mrb[25].mxu0 }
 0x1cf   : > { %v3819_v59 = vadd.f32 %v3818_v58, %v3817_v56  ;;  %v3840_v60 = vpop.f32.mrb[25].mxu1  ;;  %v3820_v61 = vpop.f32.mrb[26].mxu0 }
 0x1d0   : > { %v3841_v62 = vadd.f32 %v3840_v60, %v3839_v57  ;;  %v3842_v63 = vpop.f32.mrb[26].mxu1  ;;  %v3821_v0 = vpop.f32.mrb[27].mxu0 }
 0x1d1   : > { %v2975_v1 = vadd.f32 %v3819_v59, %v2935_v55  ;;  %v3843_v2 = vpop.f32.mrb[27].mxu1 }
 0x1d3   : > { %v3015_v3 = vadd.f32 %v3841_v62, %v2975_v1 }
 0x1ed   : > { %v3861_v4 = vpop.f32.mrb[28].mxu0 }
 0x1ee   : > { %v3883_v5 = vpop.f32.mrb[28].mxu1  ;;  %v3862_v6 = vpop.f32.mrb[29].mxu0 }
 0x1ef   : > { %v3863_v7 = vadd.f32 %v3862_v6, %v3861_v4  ;;  %v3884_v8 = vpop.f32.mrb[29].mxu1  ;;  %v3864_v9 = vpop.f32.mrb[30].mxu0 }
 0x1f0   : > { %v3885_v10 = vadd.f32 %v3884_v8, %v3883_v5  ;;  %v3886_v11 = vpop.f32.mrb[30].mxu1  ;;  %v3865_v12 = vpop.f32.mrb[31].mxu0 }
 0x1f1   : > { %v3055_v13 = vadd.f32 %v3863_v7, %v3015_v3  ;;  %v3887_v14 = vpop.f32.mrb[31].mxu1  ;;  %3106 = sbr.rel (%p3532_p7) target bundleno = 517 (0x205), region = 40 }
 0x1f3   : > { %v3095_v16 = vadd.f32 %v3885_v10, %v3055_v13 }
 0x1f5   : > { %v3100_v17 = vadd.f32 %v3095_v16, %v283_v15 }
 0x1f7   : > { %3102 = vst.msk [vmem:[#allocation2] sm:$0xff] %vm3101_vm1, %v3100_v17 }
 0x1fe   : > { %v3107_v18 = vld [vmem:[#allocation2] sm:$0xff] }
 0x1ff   : > { %v3115_v20 = vadd.f32 %v3533_v19, %v3107_v18 }
 0x201   : > { %vm3116_vm2 = vcmp.ge.f32.partialorder %v3115_v20, 0.0  ;;  %v3117_v21 = vmul.f32 0.2, %v3115_v20 }
 0x203   : > { %v3118_v22 = vsel %vm3116_vm2, %v3115_v20, %v3117_v21 }
 0x204   : > { %3119 = vst.msk [vmem:[%s4571_s3] sm:$0xff] %vm3101_vm1, %v3118_v22 }
 0x205 PF: > { %s13_s14 = sadd.s32 1, %s4224_s14   ;;  %s4572_s12 = smov %s4220_s13 }
 0x206   : > { %p10_p8 = scmp.ge.s32.totalorder %s13_s14, 10   ;;  %s4573_s13 = smov %s4575_s15 }
 0x208   :  { %12 = sbr.rel (!%p10_p8) target bundleno = 2 (0x2), region = 76 }

// kernel: _lambda_.13
= control target key start
LH: loop header
LB: loop body
LE: loop exit
PB: predicated region body
PF: predicated region fallthrough
CT: control target
= control target key end

     0   :  { %v249_v0 = vmov 0.0|0.0   ;;  %vm250_vm0 = vmmov 0   ;;  %v251_v4 = vmov 0.0   ;;  %vm32_vm1 = vcmask 261120   ;;  %s321_s1 = inlined_call_operand.vmem [shape: f32[32,32], index: 1, kind: input, shape index: {}]   ;;  %s322_s3 = inlined_call_operand.vmem [shape: f32[32,32], index: 3, kind: input, shape index: {}]   ;;  %s323_s0 = inlined_call_operand.vmem [shape: f32[8,32], index: 0, kind: input, shape index: {}]   ;;  %s324_s2 = inlined_call_operand.vmem [shape: f32[1,32], index: 2, kind: input, shape index: {}]   ;;  %s325_s4 = inlined_call_operand.vmem [shape: f32[1,32], index: 4, kind: input, shape index: {}]   ;;  %s326_s5 = inlined_call_operand.vmem [shape: f32[8,32], index: 5, kind: output, shape index: {}]  }
   0x1   :  { %234 = vmatprep.subr.bf16.mxu0 %v249_v0  ;;  %v21_v1 = vld [vmem:[%s321_s1] sm:$0xff]  ;;  %v22_v2 = vld [vmem:[%s321_s1 + $0x8] sm:$0xff]  ;;  %v23_v3 = vld [vmem:[%s321_s1 + $0x10] sm:$0xff]  ;;  %220 = vmatprep.mubr.msk.f32.mxu0 %vm250_vm0, %v251_v4 }
   0x2   :  { %v235_v5 = vpack.c.bf16 %v22_v2, %v21_v1  ;;  %v24_v6 = vld [vmem:[%s321_s1 + $0x18] sm:$0xff]  ;;  %240 = vmatprep.subr.bf16.mxu1 %v249_v0  ;;  %v109_v7 = vld [vmem:[%s322_s3] sm:$0xff]  ;;  %231 = vmatprep.mubr.msk.f32.mxu1 %vm250_vm0, %v251_v4  ;;  %v110_v8 = vld [vmem:[%s322_s3 + $0x8] sm:$0xff] }
   0x3   :  { %v238_v9 = vpack.c.bf16 %v24_v6, %v23_v3  ;;  %v241_v10 = vpack.c.bf16 %v110_v8, %v109_v7  ;;  %v20_v11 = vld [vmem:[%s323_s0] sm:$0xff]  ;;  %v111_v12 = vld [vmem:[%s322_s3 + $0x10] sm:$0xff]  ;;  %v112_v13 = vld [vmem:[%s322_s3 + $0x18] sm:$0xff] }
   0x4   :  { %236 = vmatpush3.bf16.msra.mxu0 %v235_v5  ;;  %v244_v14 = vpack.c.bf16 %v112_v13, %v111_v12  ;;  %v198_v15 = vld [vmem:[%s324_s2] ss:$0 sm:$0xff] }
   0x5   :  { %237 = vmatprep.subr.bf16.mxu0 %v249_v0  ;;  %242 = vmatpush3.bf16.msra.mxu1 %v241_v10  ;;  %v200_v21 = vld [vmem:[%s325_s4] ss:$0 sm:$0xff] }
   0x6   :  { %243 = vmatprep.subr.bf16.mxu1 %v249_v0 }
   0x8   :  { %239 = vmatpush3.bf16.msra.mxu0 %v238_v9 }
   0x9   :  { %245 = vmatpush3.bf16.msra.mxu1 %v244_v14 }
   0xb   :  { %221 = vmatmul.mubr.msk.f32.vlgmr.msra.gmra.mrb[0].mxu0 %vm32_vm1, %v20_v11 }
  0xde   :  { %v102_v16 = vpop.f32.mrb[0].mxu0 }
  0xdf   :  { %v103_v17 = vadd.f32 %v198_v15, %v102_v16  ;;  %v222_v18 = vpop.f32.mrb[1].mxu0 }
  0xe1   :  { %vm106_vm2 = vcmp.ge.f32.partialorder %v103_v17, 0.0  ;;  %v107_v19 = vmul.f32 0.2, %v103_v17 }
  0xe3   :  { %v108_v20 = vsel %vm106_vm2, %v103_v17, %v107_v19 }
  0xe4   :  { %232 = vmatmul.mubr.msk.f32.vlgmr.msra.gmra.mrb[0].mxu1 %vm32_vm1, %v108_v20 }
 0x1b7   :  { %v189_v22 = vpop.f32.mrb[0].mxu1 }
 0x1b8   :  { %v190_v23 = vadd.f32 %v200_v21, %v189_v22  ;;  %v233_v24 = vpop.f32.mrb[1].mxu1 }
 0x1ba   :  { %193 = vst.msk [vmem:[%s326_s5] sm:$0xff] %vm32_vm1, %v190_v23 }

// kernel: _lambda_.17
= control target key start
LH: loop header
LB: loop body
LE: loop exit
PB: predicated region body
PF: predicated region fallthrough
CT: control target
= control target key end

     0   :  { %v585_v0 = vmov 0.0|0.0   ;;  %vm586_vm0 = vmmov 0   ;;  %v587_v6 = vmov 0.0   ;;  %vm26_vm1 = vcmask 130048   ;;  %s673_s3 = inlined_call_operand.vmem [shape: f32[16,16], index: 3, kind: input, shape index: {}]   ;;  %s674_s2 = inlined_call_operand.vmem [shape: f32[16,16], index: 2, kind: input, shape index: {}]   ;;  %s675_s0 = inlined_call_operand.vmem [shape: f32[8,16], index: 0, kind: input, shape index: {}]   ;;  %s676_s1 = inlined_call_operand.vmem [shape: f32[4,8,16], index: 1, kind: input, shape index: {}]   ;;  %s677_s5 = inlined_call_operand.vmem [shape: f32[4,8,16], index: 5, kind: output, shape index: {}]   ;;  %s678_s4 = inlined_call_operand.vmem [shape: f32[1,16], index: 4, kind: input, shape index: {}]  }
   0x1   :  { %564 = vmatprep.subr.bf16.mxu0 %v585_v0  ;;  %567 = vmatprep.subr.bf16.mxu1 %v585_v0  ;;  %v22_v1 = vld [vmem:[%s673_s3] sm:$0xff]  ;;  %v23_v2 = vld [vmem:[%s673_s3 + $0x8] sm:$0xff]  ;;  %v496_v10 = vld [vmem:[%s676_s1 + $0x10] sm:$0xff] }
   0x2   :  { %v20_v3 = vld [vmem:[%s674_s2] sm:$0xff]  ;;  %v565_v4 = vpack.c.bf16 %v23_v2, %v22_v1  ;;  %v21_v5 = vld [vmem:[%s674_s2 + $0x8] sm:$0xff]  ;;  %526 = vmatprep.mubr.msk.f32.mxu0 %vm586_vm0, %v587_v6  ;;  %533 = vmatprep.mubr.msk.f32.mxu1 %vm586_vm0, %v587_v6  ;;  %v500_v20 = vld [vmem:[%s676_s1 + $0x18] sm:$0xff] }
   0x3   :  { %v25_v7 = vld [vmem:[%s675_s0] sm:$0xff]  ;;  %v568_v8 = vpack.c.bf16 %v21_v5, %v20_v3  ;;  %v491_v9 = vld [vmem:[%s676_s1 + $0x8] sm:$0xff] }
   0x4   :  { %27 = vst.msk [vmem:[%s677_s5] sm:$0xff] %vm26_vm1, %v25_v7  ;;  %566 = vmatpush3.bf16.msra.mxu0 %v565_v4  ;;  %v494_v12 = vld [vmem:[%s678_s4] ss:$0 sm:$0xff] }
   0x5   :  { %569 = vmatpush3.bf16.msra.mxu1 %v568_v8  ;;  %570 = vmatprep.subr.bf16.mxu0 %v585_v0 }
   0x6   :  { %573 = vmatprep.subr.bf16.mxu1 %v585_v0 }
   0x7   :  { %527 = vmatmul.mubr.msk.f32.vlgmr.msra.gmra.mrb[0].mxu0 %vm26_vm1, %v491_v9 }
   0x8   :  { %534 = vmatmul.mubr.msk.f32.vlgmr.msra.gmra.mrb[0].mxu1 %vm26_vm1, %v25_v7  ;;  %572 = vmatpush3.bf16.msra.mxu0 %v565_v4 }
   0x9   :  { %575 = vmatpush3.bf16.msra.mxu1 %v568_v8  ;;  %540 = vmatprep.mubr.msk.f32.mxu0 %vm586_vm0, %v587_v6 }
   0xa   :  { %547 = vmatprep.mubr.msk.f32.mxu1 %vm586_vm0, %v587_v6  ;;  %576 = vmatprep.subr.bf16.mxu0 %v585_v0 }
   0xb   :  { %579 = vmatprep.subr.bf16.mxu1 %v585_v0  ;;  %541 = vmatmul.mubr.msk.f32.vlgmr.msra.gmra.mrb[2].mxu0 %vm26_vm1, %v496_v10 }
   0xc   :  { %578 = vmatpush3.bf16.msra.mxu0 %v565_v4  ;;  %554 = vmatprep.mubr.msk.f32.mxu0 %vm586_vm0, %v587_v6 }
   0xf   :  { %555 = vmatmul.mubr.msk.f32.vlgmr.msra.gmra.mrb[4].mxu0 %vm26_vm1, %v500_v20 }
  0xda   :  { %v99_v11 = vpop.f32.mrb[0].mxu0 }
  0xdb   :  { %v172_v13 = vpop.f32.mrb[0].mxu1  ;;  %v528_v14 = vpop.f32.mrb[1].mxu0 }
  0xdc   :  { %v173_v15 = vadd.f32 %v172_v13, %v99_v11  ;;  %v535_v16 = vpop.f32.mrb[1].mxu1 }
  0xde   :  { %v182_v17 = vadd.f32 %v494_v12, %v173_v15  ;;  %v256_v18 = vpop.f32.mrb[2].mxu0 }
  0xdf   :  { %v542_v19 = vpop.f32.mrb[3].mxu0 }
  0xe0   :  { %495 = vst.msk [vmem:[%s677_s5 + $0x8] sm:$0xff] %vm26_vm1, %v182_v17  ;;  %548 = vmatmul.mubr.msk.f32.vlgmr.msra.gmra.mrb[2].mxu1 %vm26_vm1, %v182_v17 }
  0xe1   :  { %581 = vmatpush3.bf16.msra.mxu1 %v568_v8  ;;  %561 = vmatprep.mubr.msk.f32.mxu1 %vm586_vm0, %v587_v6 }
  0xe2   :  { %v407_v25 = vpop.f32.mrb[4].mxu0 }
  0xe3   :  { %v556_v26 = vpop.f32.mrb[5].mxu0 }
 0x1b3   :  { %v329_v21 = vpop.f32.mrb[2].mxu1 }
 0x1b4   :  { %v330_v22 = vadd.f32 %v329_v21, %v256_v18  ;;  %v549_v23 = vpop.f32.mrb[3].mxu1 }
 0x1b6   :  { %v333_v24 = vadd.f32 %v494_v12, %v330_v22 }
 0x1b8   :  { %499 = vst.msk [vmem:[%s677_s5 + $0x10] sm:$0xff] %vm26_vm1, %v333_v24  ;;  %562 = vmatmul.mubr.msk.f32.vlgmr.msra.gmra.mrb[4].mxu1 %vm26_vm1, %v333_v24 }
 0x28b   :  { %v480_v27 = vpop.f32.mrb[4].mxu1 }
 0x28c   :  { %v481_v28 = vadd.f32 %v480_v27, %v407_v25  ;;  %v563_v29 = vpop.f32.mrb[5].mxu1 }
 0x28e   :  { %v484_v30 = vadd.f32 %v494_v12, %v481_v28 }
 0x290   :  { %503 = vst.msk [vmem:[%s677_s5 + $0x18] sm:$0xff] %vm26_vm1, %v484_v30 }

// kernel: _lambda_.21
= control target key start
LH: loop header
LB: loop body
LE: loop exit
PB: predicated region body
PF: predicated region fallthrough
CT: control target
= control target key end

     0   :  { %vm19_vm0 = vcmask 29696   ;;  %v109_v0 = vmov 0.0   ;;  %vm110_vm1 = vmmov 0   ;;  %vm31_vm2 = vcmask 130048   ;;  %s146_s1 = inlined_call_operand.vmem [shape: bf16[1,16,4], index: 1, kind: input, shape index: {}]   ;;  %s147_s0 = inlined_call_operand.vmem [shape: bf16[1,6,16], index: 0, kind: input, shape index: {}]   ;;  %s148_s2 = inlined_call_operand.vmem [shape: f32[1,1,4], index: 2, kind: input, shape index: {}]   ;;  %s149_s3 = inlined_call_operand.vmem [shape: f32[1,6,4], index: 3, kind: output, shape index: {}]  }
   0x1   :  { %20 = vst.msk [vmem:[#allocation2] sm:$0x3f] %vm19_vm0, %v109_v0  ;;  %100 = vmatprep.subr.bf16.mxu0 %v109_v0  ;;  %v108_v1 = vld [vmem:[%s146_s1] sm:$0xff]   ;;  %102 = vmatprep.mubr.msk.bf16.mxu0 %vm110_vm1, %v109_v0 }
   0x2   :  { %101 = vmatpush3.bf16.msra.mxu0 %v108_v1  ;;  %v22_v2 = vld [vmem:[%s147_s0] sm:$0x7] }
   0x3   :  { %v97_v9 = vld [vmem:[%s148_s2] ss:$0 sm:$0xff] }
   0x5   :  { %103 = vmatmul.mubr.msk.bf16.vlgmr.msra.gmra.mrb[0].mxu0 %vm31_vm2, %v22_v2 }
   0x8   :  { %v21_v3 = vld [vmem:[#allocation2] sm:$0x3f] }
  0xd8   :  { %v69_v4 = vpop.f32.mrb[0].mxu0 }
  0xd9   :  { %v75_v5 = vadd.f32 %v69_v4, %v21_v3  ;;  %v104_v6 = vpop.f32.mrb[1].mxu0 }
  0xda   :  { %v72_v7 = vpop.f32.mrb[2].mxu0 }
  0xdb   :  { %77 = vst.msk [vmem:[#allocation2] sm:$0x3f] %vm19_vm0, %v75_v5  ;;  %v105_v8 = vpop.f32.mrb[3].mxu0 }
  0xe2   :  { %v81_v10 = vld [vmem:[#allocation2] sm:$0x3f] }
  0xe3   :  { %v89_v11 = vadd.f32 %v97_v9, %v81_v10 }
  0xe5   :  { %90 = vst.msk [vmem:[%s149_s3] sm:$0x3f] %vm19_vm0, %v89_v11 }

// kernel: _lambda_.18
= control target key start
LH: loop header
LB: loop body
LE: loop exit
PB: predicated region body
PF: predicated region fallthrough
CT: control target
= control target key end

     0   :  { %vm19_vm0 = vcmask 130048   ;;  %s2305_s1 = inlined_call_operand.vmem [shape: bf16[1,512,16], index: 1, kind: input, shape index: {}]   ;;  %s2306_s0 = inlined_call_operand.vmem [shape: bf16[1,256,512], index: 0, kind: input, shape index: {}]   ;;  %s2307_s2 = inlined_call_operand.vmem [shape: f32[1,1,16], index: 2, kind: input, shape index: {}]   ;;  %s2308_s3 = inlined_call_operand.vmem [shape: f32[1,256,16], index: 3, kind: output, shape index: {}]  }
   0x1   :  { %v1639_v0 = vld [vmem:[%s2305_s1 + $0x40] sm:$0xff]   ;;  %v1643_v4 = vld [vmem:[%s2305_s1 + $0x48] sm:$0xff]   ;;  %v1647_v8 = vld [vmem:[%s2305_s1 + $0x50] sm:$0xff]  }
   0x2   :  { %v1640_v1 = vld [vmem:[%s2305_s1 + $0xc0] sm:$0xff]   ;;  %1414 = vmatprep.subr.bf16.mxu0 %v1639_v0  ;;  %v1644_v5 = vld [vmem:[%s2305_s1 + $0xc8] sm:$0xff]   ;;  %v1648_v9 = vld [vmem:[%s2305_s1 + $0xd0] sm:$0xff]  }
   0x3   :  { %v1641_v2 = vld [vmem:[%s2305_s1] sm:$0xff]   ;;  %1526 = vmatprep.subr.bf16.mxu1 %v1640_v1  ;;  %v1645_v6 = vld [vmem:[%s2305_s1 + $0x8] sm:$0xff]   ;;  %v1649_v10 = vld [vmem:[%s2305_s1 + $0x10] sm:$0xff]  }
   0x4   :  { %v1642_v3 = vld [vmem:[%s2305_s1 + $0x80] sm:$0xff]   ;;  %1415 = vmatpush3.bf16.msra.mxu0 %v1641_v2  ;;  %v1646_v7 = vld [vmem:[%s2305_s1 + $0x88] sm:$0xff]   ;;  %v1650_v11 = vld [vmem:[%s2305_s1 + $0x90] sm:$0xff]  }
   0x5   :  { %1527 = vmatpush3.bf16.msra.mxu1 %v1642_v3  ;;  %1416 = vmatprep.subr.bf16.mxu0 %v1643_v4  ;;  %v1651_v12 = vld [vmem:[%s2305_s1 + $0x58] sm:$0xff]   ;;  %v1655_v16 = vld [vmem:[%s2305_s1 + $0x60] sm:$0xff]   ;;  %v1659_v20 = vld [vmem:[%s2305_s1 + $0x68] sm:$0xff]  }
   0x6   :  { %1528 = vmatprep.subr.bf16.mxu1 %v1644_v5  ;;  %v1652_v13 = vld [vmem:[%s2305_s1 + $0xd8] sm:$0xff]   ;;  %v1656_v17 = vld [vmem:[%s2305_s1 + $0xe0] sm:$0xff]   ;;  %v1660_v21 = vld [vmem:[%s2305_s1 + $0xe8] sm:$0xff]  }
   0x7   :  { %v1653_v14 = vld [vmem:[%s2305_s1 + $0x18] sm:$0xff]   ;;  %v1657_v18 = vld [vmem:[%s2305_s1 + $0x20] sm:$0xff]   ;;  %v1661_v22 = vld [vmem:[%s2305_s1 + $0x28] sm:$0xff]  }
   0x8   :  { %1417 = vmatpush3.bf16.msra.mxu0 %v1645_v6  ;;  %v1654_v15 = vld [vmem:[%s2305_s1 + $0x98] sm:$0xff]   ;;  %v1658_v19 = vld [vmem:[%s2305_s1 + $0xa0] sm:$0xff]   ;;  %v1662_v23 = vld [vmem:[%s2305_s1 + $0xa8] sm:$0xff]  }
   0x9   :  { %1529 = vmatpush3.bf16.msra.mxu1 %v1646_v7  ;;  %1418 = vmatprep.subr.bf16.mxu0 %v1647_v8  ;;  %v1663_v24 = vld [vmem:[%s2305_s1 + $0x70] sm:$0xff]   ;;  %v1667_v28 = vld [vmem:[%s2305_s1 + $0x78] sm:$0xff]  }
   0xa   :  { %1530 = vmatprep.subr.bf16.mxu1 %v1648_v9  ;;  %v1664_v25 = vld [vmem:[%s2305_s1 + $0xf0] sm:$0xff]   ;;  %v1668_v29 = vld [vmem:[%s2305_s1 + $0xf8] sm:$0xff]  }
   0xb   :  { %v1665_v26 = vld [vmem:[%s2305_s1 + $0x30] sm:$0xff]   ;;  %v1669_v30 = vld [vmem:[%s2305_s1 + $0x38] sm:$0xff]  }
   0xc   :  { %1419 = vmatpush3.bf16.msra.mxu0 %v1649_v10  ;;  %v1666_v27 = vld [vmem:[%s2305_s1 + $0xb0] sm:$0xff]   ;;  %v1670_v31 = vld [vmem:[%s2305_s1 + $0xb8] sm:$0xff]  }
   0xd   :  { %1531 = vmatpush3.bf16.msra.mxu1 %v1650_v11  ;;  %1420 = vmatprep.subr.bf16.mxu0 %v1651_v12  ;;  %v1671_v32 = vld [vmem:[%s2306_s0] ss:$16 sps:$4 sm:$0xff]   ;;  %v1673_v33 = vld [vmem:[%s2306_s0 + $0x4] ss:$16 sps:$4 sm:$0xff]   ;;  %v1674_v34 = vld [vmem:[%s2306_s0 + $0x8] ss:$16 sps:$4 sm:$0xff]  }
   0xe   :  { %1532 = vmatprep.subr.bf16.mxu1 %v1652_v13  ;;  %v1676_v35 = vld [vmem:[%s2306_s0 + $0xc] ss:$16 sps:$4 sm:$0xff]   ;;  %756 = vmatprep.mubr.bf16.mxu0 %v1673_v33  ;;  %v1677_v36 = vld [vmem:[%s2306_s0 + $0x24] ss:$16 sps:$4 sm:$0xff]   ;;  %v1681_v38 = vld [vmem:[%s2306_s0 + $0x20] ss:$16 sps:$4 sm:$0xff]  }
   0xf   :  { %917 = vmatprep.mubr.bf16.mxu1 %v1676_v35  ;;  %v1679_v37 = vld [vmem:[%s2306_s0 + $0x2c] ss:$16 sps:$4 sm:$0xff]   ;;  %v1682_v39 = vld [vmem:[%s2306_s0 + $0x28] ss:$16 sps:$4 sm:$0xff]   ;;  %v1683_v40 = vld [vmem:[%s2306_s0 + $0x44] ss:$16 sps:$4 sm:$0xff]  }
  0x10   :  { %1421 = vmatpush3.bf16.msra.mxu0 %v1653_v14  ;;  %v1685_v41 = vld [vmem:[%s2306_s0 + $0x4c] ss:$16 sps:$4 sm:$0xff]   ;;  %v1687_v42 = vld [vmem:[%s2306_s0 + $0x40] ss:$16 sps:$4 sm:$0xff]   ;;  %v1688_v43 = vld [vmem:[%s2306_s0 + $0x48] ss:$16 sps:$4 sm:$0xff]  }
  0x11   :  { %1533 = vmatpush3.bf16.msra.mxu1 %v1654_v15  ;;  %1422 = vmatprep.subr.bf16.mxu0 %v1655_v16  ;;  %v1689_v44 = vld [vmem:[%s2306_s0 + $0x64] ss:$16 sps:$4 sm:$0xff]   ;;  %v1691_v45 = vld [vmem:[%s2306_s0 + $0x6c] ss:$16 sps:$4 sm:$0xff]   ;;  %v1693_v46 = vld [vmem:[%s2306_s0 + $0x60] ss:$16 sps:$4 sm:$0xff]  }
  0x12   :  { %1534 = vmatprep.subr.bf16.mxu1 %v1656_v17  ;;  %v1694_v47 = vld [vmem:[%s2306_s0 + $0x68] ss:$16 sps:$4 sm:$0xff]   ;;  %v1695_v48 = vld [vmem:[%s2306_s0 + $0x84] ss:$16 sps:$4 sm:$0xff]   ;;  %v1697_v49 = vld [vmem:[%s2306_s0 + $0x8c] ss:$16 sps:$4 sm:$0xff]  }
  0x13   :  { %v1699_v50 = vld [vmem:[%s2306_s0 + $0x80] ss:$16 sps:$4 sm:$0xff]   ;;  %v1700_v51 = vld [vmem:[%s2306_s0 + $0x88] ss:$16 sps:$4 sm:$0xff]   ;;  %v1701_v52 = vld [vmem:[%s2306_s0 + $0xa4] ss:$16 sps:$4 sm:$0xff]  }
  0x14   :  { %1423 = vmatpush3.bf16.msra.mxu0 %v1657_v18  ;;  %v1703_v53 = vld [vmem:[%s2306_s0 + $0xac] ss:$16 sps:$4 sm:$0xff]   ;;  %v1705_v54 = vld [vmem:[%s2306_s0 + $0xa0] ss:$16 sps:$4 sm:$0xff]   ;;  %v1706_v55 = vld [vmem:[%s2306_s0 + $0xa8] ss:$16 sps:$4 sm:$0xff]  }
  0x15   :  { %1535 = vmatpush3.bf16.msra.mxu1 %v1658_v19  ;;  %1424 = vmatprep.subr.bf16.mxu0 %v1659_v20  ;;  %v1707_v56 = vld [vmem:[%s2306_s0 + $0xc4] ss:$16 sps:$4 sm:$0xff]   ;;  %v1709_v57 = vld [vmem:[%s2306_s0 + $0xcc] ss:$16 sps:$4 sm:$0xff]   ;;  %v1711_v58 = vld [vmem:[%s2306_s0 + $0xc0] ss:$16 sps:$4 sm:$0xff]  }
  0x16   :  { %1536 = vmatprep.subr.bf16.mxu1 %v1660_v21  ;;  %v1712_v59 = vld [vmem:[%s2306_s0 + $0xc8] ss:$16 sps:$4 sm:$0xff]   ;;  %v1713_v60 = vld [vmem:[%s2306_s0 + $0xe4] ss:$16 sps:$4 sm:$0xff]   ;;  %v1715_v61 = vld [vmem:[%s2306_s0 + $0xec] ss:$16 sps:$4 sm:$0xff]  }
  0x17   :  { %v1717_v62 = vld [vmem:[%s2306_s0 + $0xe0] ss:$16 sps:$4 sm:$0xff]   ;;  %v1718_v63 = vld [vmem:[%s2306_s0 + $0xe8] ss:$16 sps:$4 sm:$0xff]   ;;  %v1719_v0 = vld [vmem:[%s2306_s0 + $0x104] ss:$16 sps:$4 sm:$0xff]  }
  0x18   :  { %1425 = vmatpush3.bf16.msra.mxu0 %v1661_v22  ;;  %v1721_v1 = vld [vmem:[%s2306_s0 + $0x10c] ss:$16 sps:$4 sm:$0xff]   ;;  %v1723_v2 = vld [vmem:[%s2306_s0 + $0x100] ss:$16 sps:$4 sm:$0xff]   ;;  %v1724_v3 = vld [vmem:[%s2306_s0 + $0x108] ss:$16 sps:$4 sm:$0xff]  }
  0x19   :  { %1537 = vmatpush3.bf16.msra.mxu1 %v1662_v23  ;;  %1426 = vmatprep.subr.bf16.mxu0 %v1663_v24  ;;  %v1725_v4 = vld [vmem:[%s2306_s0 + $0x124] ss:$16 sps:$4 sm:$0xff]   ;;  %v1727_v5 = vld [vmem:[%s2306_s0 + $0x12c] ss:$16 sps:$4 sm:$0xff]   ;;  %v1729_v6 = vld [vmem:[%s2306_s0 + $0x120] ss:$16 sps:$4 sm:$0xff]  }
  0x1a   :  { %1538 = vmatprep.subr.bf16.mxu1 %v1664_v25  ;;  %v1730_v7 = vld [vmem:[%s2306_s0 + $0x128] ss:$16 sps:$4 sm:$0xff]   ;;  %v1731_v8 = vld [vmem:[%s2306_s0 + $0x144] ss:$16 sps:$4 sm:$0xff]   ;;  %v1733_v9 = vld [vmem:[%s2306_s0 + $0x14c] ss:$16 sps:$4 sm:$0xff]  }
  0x1b   :  { %v1735_v10 = vld [vmem:[%s2306_s0 + $0x140] ss:$16 sps:$4 sm:$0xff]   ;;  %v1736_v11 = vld [vmem:[%s2306_s0 + $0x148] ss:$16 sps:$4 sm:$0xff]   ;;  %v1737_v12 = vld [vmem:[%s2306_s0 + $0x164] ss:$16 sps:$4 sm:$0xff]  }
  0x1c   :  { %1427 = vmatpush3.bf16.msra.mxu0 %v1665_v26  ;;  %v1739_v13 = vld [vmem:[%s2306_s0 + $0x16c] ss:$16 sps:$4 sm:$0xff]   ;;  %v1767_v14 = vmov 0.0   ;;  %v1741_v15 = vld [vmem:[%s2306_s0 + $0x160] ss:$16 sps:$4 sm:$0xff]  }
  0x1d   :  { %1539 = vmatpush3.bf16.msra.mxu1 %v1666_v27  ;;  %1428 = vmatprep.subr.bf16.mxu0 %v1667_v28  ;;  %20 = vst.msk [vmem:[#allocation2] sm:$0xff] %vm19_vm0, %v1767_v14  ;;  %21 = vst.msk [vmem:[#allocation2 + $0x8] sm:$0xff] %vm19_vm0, %v1767_v14  ;;  %v1742_v16 = vld [vmem:[%s2306_s0 + $0x168] ss:$16 sps:$4 sm:$0xff]   ;;  %v1743_v17 = vld [vmem:[%s2306_s0 + $0x184] ss:$16 sps:$4 sm:$0xff]  }
  0x1e   :  { %1540 = vmatprep.subr.bf16.mxu1 %v1668_v29  ;;  %22 = vst.msk [vmem:[#allocation2 + $0x10] sm:$0xff] %vm19_vm0, %v1767_v14  ;;  %23 = vst.msk [vmem:[#allocation2 + $0x18] sm:$0xff] %vm19_vm0, %v1767_v14  ;;  %v1745_v18 = vld [vmem:[%s2306_s0 + $0x18c] ss:$16 sps:$4 sm:$0xff]   ;;  %v1747_v19 = vld [vmem:[%s2306_s0 + $0x180] ss:$16 sps:$4 sm:$0xff]  }
  0x1f   :  { %24 = vst.msk [vmem:[#allocation2 + $0x20] sm:$0xff] %vm19_vm0, %v1767_v14  ;;  %25 = vst.msk [vmem:[#allocation2 + $0x28] sm:$0xff] %vm19_vm0, %v1767_v14  ;;  %v1748_v20 = vld [vmem:[%s2306_s0 + $0x188] ss:$16 sps:$4 sm:$0xff]   ;;  %v1749_v21 = vld [vmem:[%s2306_s0 + $0x1a4] ss:$16 sps:$4 sm:$0xff]  }
  0x20   :  { %1429 = vmatpush3.bf16.msra.mxu0 %v1669_v30  ;;  %26 = vst.msk [vmem:[#allocation2 + $0x30] sm:$0xff] %vm19_vm0, %v1767_v14  ;;  %27 = vst.msk [vmem:[#allocation2 + $0x38] sm:$0xff] %vm19_vm0, %v1767_v14  ;;  %v1751_v22 = vld [vmem:[%s2306_s0 + $0x1ac] ss:$16 sps:$4 sm:$0xff]   ;;  %v1753_v23 = vld [vmem:[%s2306_s0 + $0x1a0] ss:$16 sps:$4 sm:$0xff]  }
  0x21   :  { %1541 = vmatpush3.bf16.msra.mxu1 %v1670_v31  ;;  %28 = vst.msk [vmem:[#allocation2 + $0x40] sm:$0xff] %vm19_vm0, %v1767_v14  ;;  %29 = vst.msk [vmem:[#allocation2 + $0x48] sm:$0xff] %vm19_vm0, %v1767_v14  ;;  %v1754_v24 = vld [vmem:[%s2306_s0 + $0x1a8] ss:$16 sps:$4 sm:$0xff]   ;;  %v1755_v25 = vld [vmem:[%s2306_s0 + $0x1c4] ss:$16 sps:$4 sm:$0xff]  }
  0x22   :  { %30 = vst.msk [vmem:[#allocation2 + $0x50] sm:$0xff] %vm19_vm0, %v1767_v14  ;;  %31 = vst.msk [vmem:[#allocation2 + $0x58] sm:$0xff] %vm19_vm0, %v1767_v14  ;;  %v1757_v26 = vld [vmem:[%s2306_s0 + $0x1cc] ss:$16 sps:$4 sm:$0xff]   ;;  %v1759_v27 = vld [vmem:[%s2306_s0 + $0x1c0] ss:$16 sps:$4 sm:$0xff]  }
  0x23   :  { %757 = vmatmul.mubr.bf16.vlgmr.msra.gmra.mrb[0].mxu0 %v1671_v32  ;;  %32 = vst.msk [vmem:[#allocation2 + $0x60] sm:$0xff] %vm19_vm0, %v1767_v14  ;;  %33 = vst.msk [vmem:[#allocation2 + $0x68] sm:$0xff] %vm19_vm0, %v1767_v14  ;;  %v1760_v28 = vld [vmem:[%s2306_s0 + $0x1c8] ss:$16 sps:$4 sm:$0xff]   ;;  %v1761_v29 = vld [vmem:[%s2306_s0 + $0x1e4] ss:$16 sps:$4 sm:$0xff]  }
  0x24   :  { %918 = vmatmul.mubr.bf16.vlgmr.msra.gmra.mrb[0].mxu1 %v1674_v34  ;;  %764 = vmatprep.mubr.bf16.mxu0 %v1677_v36  ;;  %34 = vst.msk [vmem:[#allocation2 + $0x70] sm:$0xff] %vm19_vm0, %v1767_v14  ;;  %35 = vst.msk [vmem:[#allocation2 + $0x78] sm:$0xff] %vm19_vm0, %v1767_v14  ;;  %v1763_v30 = vld [vmem:[%s2306_s0 + $0x1ec] ss:$16 sps:$4 sm:$0xff]   ;;  %v1765_v31 = vld [vmem:[%s2306_s0 + $0x1e0] ss:$16 sps:$4 sm:$0xff]  }
  0x25   :  { %925 = vmatprep.mubr.bf16.mxu1 %v1679_v37  ;;  %36 = vst.msk [vmem:[#allocation2 + $0x80] sm:$0xff] %vm19_vm0, %v1767_v14  ;;  %37 = vst.msk [vmem:[#allocation2 + $0x88] sm:$0xff] %vm19_vm0, %v1767_v14  ;;  %v1766_v32 = vld [vmem:[%s2306_s0 + $0x1e8] ss:$16 sps:$4 sm:$0xff]  }
  0x26   :  { %38 = vst.msk [vmem:[#allocation2 + $0x90] sm:$0xff] %vm19_vm0, %v1767_v14  ;;  %39 = vst.msk [vmem:[#allocation2 + $0x98] sm:$0xff] %vm19_vm0, %v1767_v14 }
  0x27   :  { %40 = vst.msk [vmem:[#allocation2 + $0xa0] sm:$0xff] %vm19_vm0, %v1767_v14  ;;  %41 = vst.msk [vmem:[#allocation2 + $0xa8] sm:$0xff] %vm19_vm0, %v1767_v14 }
  0x28   :  { %42 = vst.msk [vmem:[#allocation2 + $0xb0] sm:$0xff] %vm19_vm0, %v1767_v14  ;;  %43 = vst.msk [vmem:[#allocation2 + $0xb8] sm:$0xff] %vm19_vm0, %v1767_v14 }
  0x29   :  { %44 = vst.msk [vmem:[#allocation2 + $0xc0] sm:$0xff] %vm19_vm0, %v1767_v14  ;;  %45 = vst.msk [vmem:[#allocation2 + $0xc8] sm:$0xff] %vm19_vm0, %v1767_v14 }
  0x2a   :  { %46 = vst.msk [vmem:[#allocation2 + $0xd0] sm:$0xff] %vm19_vm0, %v1767_v14  ;;  %47 = vst.msk [vmem:[#allocation2 + $0xd8] sm:$0xff] %vm19_vm0, %v1767_v14 }
  0x2b   :  { %765 = vmatmul.mubr.bf16.gmra.mrb[4].mxu0 %v1681_v38  ;;  %48 = vst.msk [vmem:[#allocation2 + $0xe0] sm:$0xff] %vm19_vm0, %v1767_v14  ;;  %49 = vst.msk [vmem:[#allocation2 + $0xe8] sm:$0xff] %vm19_vm0, %v1767_v14 }
  0x2c   :  { %926 = vmatmul.mubr.bf16.gmra.mrb[4].mxu1 %v1682_v39  ;;  %772 = vmatprep.mubr.bf16.mxu0 %v1683_v40  ;;  %50 = vst.msk [vmem:[#allocation2 + $0xf0] sm:$0xff] %vm19_vm0, %v1767_v14  ;;  %51 = vst.msk [vmem:[#allocation2 + $0xf8] sm:$0xff] %vm19_vm0, %v1767_v14 }
  0x2d   :  { %933 = vmatprep.mubr.bf16.mxu1 %v1685_v41 }
  0x33   :  { %773 = vmatmul.mubr.bf16.gmra.mrb[8].mxu0 %v1687_v42  ;;  %v52_v42 = vld [vmem:[#allocation2] sm:$0xff] }
  0x34   :  { %934 = vmatmul.mubr.bf16.gmra.mrb[8].mxu1 %v1688_v43  ;;  %780 = vmatprep.mubr.bf16.mxu0 %v1689_v44 }
  0x35   :  { %941 = vmatprep.mubr.bf16.mxu1 %v1691_v45 }
  0x3b   :  { %781 = vmatmul.mubr.bf16.gmra.mrb[12].mxu0 %v1693_v46 }
  0x3c   :  { %942 = vmatmul.mubr.bf16.gmra.mrb[12].mxu1 %v1694_v47  ;;  %788 = vmatprep.mubr.bf16.mxu0 %v1695_v48  ;;  %v53_v47 = vld [vmem:[#allocation2 + $0x8] sm:$0xff] }
  0x3d   :  { %949 = vmatprep.mubr.bf16.mxu1 %v1697_v49 }
  0x43   :  { %789 = vmatmul.mubr.bf16.gmra.mrb[16].mxu0 %v1699_v50 }
  0x44   :  { %950 = vmatmul.mubr.bf16.gmra.mrb[16].mxu1 %v1700_v51  ;;  %796 = vmatprep.mubr.bf16.mxu0 %v1701_v52 }
  0x45   :  { %957 = vmatprep.mubr.bf16.mxu1 %v1703_v53 }
  0x4b   :  { %797 = vmatmul.mubr.bf16.gmra.mrb[20].mxu0 %v1705_v54 }
  0x4c   :  { %958 = vmatmul.mubr.bf16.gmra.mrb[20].mxu1 %v1706_v55  ;;  %804 = vmatprep.mubr.bf16.mxu0 %v1707_v56 }
  0x4d   :  { %965 = vmatprep.mubr.bf16.mxu1 %v1709_v57 }
  0x53   :  { %805 = vmatmul.mubr.bf16.gmra.mrb[24].mxu0 %v1711_v58 }
  0x54   :  { %966 = vmatmul.mubr.bf16.gmra.mrb[24].mxu1 %v1712_v59  ;;  %812 = vmatprep.mubr.bf16.mxu0 %v1713_v60  ;;  %v54_v60 = vld [vmem:[#allocation2 + $0x10] sm:$0xff] }
  0x55   :  { %973 = vmatprep.mubr.bf16.mxu1 %v1715_v61 }
  0x5b   :  { %813 = vmatmul.mubr.bf16.gmra.mrb[28].mxu0 %v1717_v62 }
  0x5c   :  { %974 = vmatmul.mubr.bf16.gmra.mrb[28].mxu1 %v1718_v63  ;;  %820 = vmatprep.mubr.bf16.mxu0 %v1719_v0 }
  0x5d   :  { %981 = vmatprep.mubr.bf16.mxu1 %v1721_v1  ;;  %v2113_v1 = vld [vmem:[%s2307_s2] ss:$0 sm:$0xff] }
  0x63   :  { %821 = vmatmul.mubr.bf16.gmra.mrb[32].mxu0 %v1723_v2  ;;  %v55_v2 = vld [vmem:[#allocation2 + $0x18] sm:$0xff] }
  0x64   :  { %982 = vmatmul.mubr.bf16.gmra.mrb[32].mxu1 %v1724_v3  ;;  %828 = vmatprep.mubr.bf16.mxu0 %v1725_v4 }
  0x65   :  { %989 = vmatprep.mubr.bf16.mxu1 %v1727_v5 }
  0x6b   :  { %829 = vmatmul.mubr.bf16.gmra.mrb[36].mxu0 %v1729_v6 }
  0x6c   :  { %990 = vmatmul.mubr.bf16.gmra.mrb[36].mxu1 %v1730_v7  ;;  %836 = vmatprep.mubr.bf16.mxu0 %v1731_v8 }
  0x6d   :  { %997 = vmatprep.mubr.bf16.mxu1 %v1733_v9 }
  0x73   :  { %837 = vmatmul.mubr.bf16.gmra.mrb[40].mxu0 %v1735_v10 }
  0x74   :  { %998 = vmatmul.mubr.bf16.gmra.mrb[40].mxu1 %v1736_v11  ;;  %844 = vmatprep.mubr.bf16.mxu0 %v1737_v12 }
  0x75   :  { %1005 = vmatprep.mubr.bf16.mxu1 %v1739_v13 }
  0x7b   :  { %845 = vmatmul.mubr.bf16.gmra.mrb[44].mxu0 %v1741_v15 }
  0x7c   :  { %1006 = vmatmul.mubr.bf16.gmra.mrb[44].mxu1 %v1742_v16  ;;  %852 = vmatprep.mubr.bf16.mxu0 %v1743_v17 }
  0x7d   :  { %1013 = vmatprep.mubr.bf16.mxu1 %v1745_v18 }
  0x83   :  { %853 = vmatmul.mubr.bf16.gmra.mrb[48].mxu0 %v1747_v19 }
  0x84   :  { %1014 = vmatmul.mubr.bf16.gmra.mrb[48].mxu1 %v1748_v20  ;;  %860 = vmatprep.mubr.bf16.mxu0 %v1749_v21  ;;  %v56_v20 = vld [vmem:[#allocation2 + $0x20] sm:$0xff] }
  0x85   :  { %1021 = vmatprep.mubr.bf16.mxu1 %v1751_v22 }
  0x8b   :  { %861 = vmatmul.mubr.bf16.gmra.mrb[52].mxu0 %v1753_v23 }
  0x8c   :  { %1022 = vmatmul.mubr.bf16.gmra.mrb[52].mxu1 %v1754_v24  ;;  %868 = vmatprep.mubr.bf16.mxu0 %v1755_v25 }
  0x8d   :  { %1029 = vmatprep.mubr.bf16.mxu1 %v1757_v26 }
  0x93   :  { %869 = vmatmul.mubr.bf16.gmra.mrb[56].mxu0 %v1759_v27 }
  0x94   :  { %1030 = vmatmul.mubr.bf16.gmra.mrb[56].mxu1 %v1760_v28  ;;  %876 = vmatprep.mubr.bf16.mxu0 %v1761_v29  ;;  %v57_v29 = vld [vmem:[#allocation2 + $0x28] sm:$0xff] }
  0x95   :  { %1037 = vmatprep.mubr.bf16.mxu1 %v1763_v30 }
  0x9b   :  { %877 = vmatmul.mubr.bf16.gmra.mrb[60].mxu0 %v1765_v31 }
  0x9c   :  { %1038 = vmatmul.mubr.bf16.gmra.mrb[60].mxu1 %v1766_v32 }
  0xf6   :  { %v1430_v33 = vpop.f32.mrb[0].mxu0 }
  0xf7   :  { %v1542_v34 = vpop.f32.mrb[0].mxu1  ;;  %v1431_v35 = vpop.f32.mrb[1].mxu0 }
  0xf8   :  { %v1432_v36 = vadd.f32 %v1431_v35, %v1430_v33  ;;  %v1543_v37 = vpop.f32.mrb[1].mxu1  ;;  %v1433_v38 = vpop.f32.mrb[2].mxu0 }
  0xf9   :  { %v1544_v39 = vadd.f32 %v1543_v37, %v1542_v34  ;;  %v1545_v40 = vpop.f32.mrb[2].mxu1  ;;  %v1434_v41 = vpop.f32.mrb[3].mxu0 }
  0xfa   :  { %v1435_v43 = vadd.f32 %v1434_v41, %v1433_v38  ;;  %v1546_v44 = vpop.f32.mrb[3].mxu1 }
  0xfb   :  { %v920_v45 = vadd.f32 %v1544_v39, %v1432_v36  ;;  %v1547_v46 = vadd.f32 %v1546_v44, %v1545_v40 }
  0xfd   :  { %v1046_v48 = vadd.f32 %v920_v45, %v52_v42  ;;  %v923_v49 = vadd.f32 %v1547_v46, %v1435_v43  ;;  %v58_v46 = vld [vmem:[#allocation2 + $0x30] sm:$0xff] }
  0xfe   :  { %v1436_v50 = vpop.f32.mrb[4].mxu0 }
  0xff   :  { %1079 = vst.msk [vmem:[#allocation2] sm:$0xff] %vm19_vm0, %v1046_v48  ;;  %v1047_v51 = vadd.f32 %v923_v49, %v53_v47  ;;  %v1548_v52 = vpop.f32.mrb[4].mxu1  ;;  %v1437_v53 = vpop.f32.mrb[5].mxu0 }
 0x100   :  { %v1438_v54 = vadd.f32 %v1437_v53, %v1436_v50  ;;  %v1549_v55 = vpop.f32.mrb[5].mxu1  ;;  %v1439_v56 = vpop.f32.mrb[6].mxu0 }
 0x101   :  { %1080 = vst.msk [vmem:[#allocation2 + $0x8] sm:$0xff] %vm19_vm0, %v1047_v51  ;;  %v1550_v57 = vadd.f32 %v1549_v55, %v1548_v52  ;;  %v1551_v58 = vpop.f32.mrb[6].mxu1  ;;  %v1440_v59 = vpop.f32.mrb[7].mxu0  ;;  %v59_v55 = vld [vmem:[#allocation2 + $0x38] sm:$0xff] }
 0x102   :  { %v1441_v61 = vadd.f32 %v1440_v59, %v1439_v56  ;;  %v1552_v62 = vpop.f32.mrb[7].mxu1 }
 0x103   :  { %v928_v63 = vadd.f32 %v1550_v57, %v1438_v54  ;;  %v1553_v0 = vadd.f32 %v1552_v62, %v1551_v58 }
 0x105   :  { %v1048_v3 = vadd.f32 %v928_v63, %v54_v60  ;;  %v931_v4 = vadd.f32 %v1553_v0, %v1441_v61 }
 0x106   :  { %v1114_v5 = vld [vmem:[#allocation2] sm:$0xff]  ;;  %v1442_v6 = vpop.f32.mrb[8].mxu0 }
 0x107   :  { %v1153_v7 = vadd.f32 %v2113_v1, %v1114_v5  ;;  %1081 = vst.msk [vmem:[#allocation2 + $0x10] sm:$0xff] %vm19_vm0, %v1048_v3  ;;  %v1049_v8 = vadd.f32 %v931_v4, %v55_v2  ;;  %v1554_v9 = vpop.f32.mrb[8].mxu1  ;;  %v1443_v10 = vpop.f32.mrb[9].mxu0 }
 0x108   :  { %v1115_v11 = vld [vmem:[#allocation2 + $0x8] sm:$0xff]  ;;  %v1444_v12 = vadd.f32 %v1443_v10, %v1442_v6  ;;  %v1555_v13 = vpop.f32.mrb[9].mxu1  ;;  %v1445_v14 = vpop.f32.mrb[10].mxu0 }
 0x109   :  { %vm1185_vm1 = vcmp.ge.f32.partialorder %v1153_v7, 0.0  ;;  %v1217_v15 = vmul.f32 0.2, %v1153_v7  ;;  %v1154_v16 = vadd.f32 %v2113_v1, %v1115_v11  ;;  %1082 = vst.msk [vmem:[#allocation2 + $0x18] sm:$0xff] %vm19_vm0, %v1049_v8  ;;  %v1556_v17 = vadd.f32 %v1555_v13, %v1554_v9  ;;  %v1557_v18 = vpop.f32.mrb[10].mxu1  ;;  %v1446_v19 = vpop.f32.mrb[11].mxu0 }
 0x10a   :  { %v1447_v21 = vadd.f32 %v1446_v19, %v1445_v14  ;;  %v1558_v22 = vpop.f32.mrb[11].mxu1  ;;  %v60_v9 = vld [vmem:[#allocation2 + $0x40] sm:$0xff] }
 0x10b   :  { %v1249_v23 = vsel %vm1185_vm1, %v1153_v7, %v1217_v15  ;;  %vm1186_vm2 = vcmp.ge.f32.partialorder %v1154_v16, 0.0  ;;  %v1218_v24 = vmul.f32 0.2, %v1154_v16  ;;  %v936_v25 = vadd.f32 %v1556_v17, %v1444_v12 }
 0x10c   :  { %1281 = vst.msk [vmem:[%s2308_s3] sm:$0xff] %vm19_vm0, %v1249_v23  ;;  %v1559_v26 = vadd.f32 %v1558_v22, %v1557_v18 }
 0x10d   :  { %v1250_v27 = vsel %vm1186_vm2, %v1154_v16, %v1218_v24  ;;  %v1050_v28 = vadd.f32 %v936_v25, %v56_v20  ;;  %v61_v16 = vld [vmem:[#allocation2 + $0x48] sm:$0xff] }
 0x10e   :  { %1282 = vst.msk [vmem:[%s2308_s3 + $0x8] sm:$0xff] %vm19_vm0, %v1250_v27  ;;  %v1116_v30 = vld [vmem:[#allocation2 + $0x10] sm:$0xff]  ;;  %v939_v31 = vadd.f32 %v1559_v26, %v1447_v21  ;;  %v1448_v32 = vpop.f32.mrb[12].mxu0 }
 0x10f   :  { %v1155_v33 = vadd.f32 %v2113_v1, %v1116_v30  ;;  %1083 = vst.msk [vmem:[#allocation2 + $0x20] sm:$0xff] %vm19_vm0, %v1050_v28  ;;  %v1560_v34 = vpop.f32.mrb[12].mxu1  ;;  %v1449_v35 = vpop.f32.mrb[13].mxu0 }
 0x110   :  { %v1117_v36 = vld [vmem:[#allocation2 + $0x18] sm:$0xff]  ;;  %v1051_v37 = vadd.f32 %v939_v31, %v57_v29  ;;  %v1450_v38 = vadd.f32 %v1449_v35, %v1448_v32  ;;  %v1561_v39 = vpop.f32.mrb[13].mxu1  ;;  %v1451_v40 = vpop.f32.mrb[14].mxu0  ;;  %v62_v35 = vld [vmem:[#allocation2 + $0x50] sm:$0xff] }
 0x111   :  { %vm1187_vm3 = vcmp.ge.f32.partialorder %v1155_v33, 0.0  ;;  %v1219_v41 = vmul.f32 0.2, %v1155_v33  ;;  %v1156_v42 = vadd.f32 %v2113_v1, %v1117_v36  ;;  %v1562_v43 = vadd.f32 %v1561_v39, %v1560_v34  ;;  %v1563_v44 = vpop.f32.mrb[14].mxu1  ;;  %v1452_v45 = vpop.f32.mrb[15].mxu0 }
 0x112   :  { %1084 = vst.msk [vmem:[#allocation2 + $0x28] sm:$0xff] %vm19_vm0, %v1051_v37  ;;  %v1453_v47 = vadd.f32 %v1452_v45, %v1451_v40  ;;  %v1564_v48 = vpop.f32.mrb[15].mxu1 }
 0x113   :  { %v1251_v49 = vsel %vm1187_vm3, %v1155_v33, %v1219_v41  ;;  %vm1188_vm4 = vcmp.ge.f32.partialorder %v1156_v42, 0.0  ;;  %v1220_v50 = vmul.f32 0.2, %v1156_v42  ;;  %v944_v51 = vadd.f32 %v1562_v43, %v1450_v38 }
 0x114   :  { %1283 = vst.msk [vmem:[%s2308_s3 + $0x10] sm:$0xff] %vm19_vm0, %v1251_v49  ;;  %v1565_v52 = vadd.f32 %v1564_v48, %v1563_v44 }
 0x115   :  { %v1252_v53 = vsel %vm1188_vm4, %v1156_v42, %v1220_v50  ;;  %v1052_v54 = vadd.f32 %v944_v51, %v58_v46  ;;  %v63_v42 = vld [vmem:[#allocation2 + $0x58] sm:$0xff] }
 0x116   :  { %1284 = vst.msk [vmem:[%s2308_s3 + $0x18] sm:$0xff] %vm19_vm0, %v1252_v53  ;;  %v1118_v56 = vld [vmem:[#allocation2 + $0x20] sm:$0xff]  ;;  %v947_v57 = vadd.f32 %v1565_v52, %v1453_v47  ;;  %v1454_v58 = vpop.f32.mrb[16].mxu0 }
 0x117   :  { %v1157_v59 = vadd.f32 %v2113_v1, %v1118_v56  ;;  %1085 = vst.msk [vmem:[#allocation2 + $0x30] sm:$0xff] %vm19_vm0, %v1052_v54  ;;  %v1566_v60 = vpop.f32.mrb[16].mxu1  ;;  %v1455_v61 = vpop.f32.mrb[17].mxu0 }
 0x118   :  { %v1053_v62 = vadd.f32 %v947_v57, %v59_v55  ;;  %v1456_v63 = vadd.f32 %v1455_v61, %v1454_v58  ;;  %v1567_v0 = vpop.f32.mrb[17].mxu1  ;;  %v1457_v2 = vpop.f32.mrb[18].mxu0  ;;  %v64_v61 = vld [vmem:[#allocation2 + $0x60] sm:$0xff] }
 0x119   :  { %vm1189_vm5 = vcmp.ge.f32.partialorder %v1157_v59, 0.0  ;;  %v1221_v3 = vmul.f32 0.2, %v1157_v59  ;;  %v1119_v4 = vld [vmem:[#allocation2 + $0x28] sm:$0xff]  ;;  %v1568_v5 = vadd.f32 %v1567_v0, %v1566_v60  ;;  %v1569_v6 = vpop.f32.mrb[18].mxu1  ;;  %v1458_v7 = vpop.f32.mrb[19].mxu0 }
 0x11a   :  { %v1158_v8 = vadd.f32 %v2113_v1, %v1119_v4  ;;  %1086 = vst.msk [vmem:[#allocation2 + $0x38] sm:$0xff] %vm19_vm0, %v1053_v62  ;;  %v1459_v10 = vadd.f32 %v1458_v7, %v1457_v2  ;;  %v1570_v11 = vpop.f32.mrb[19].mxu1  ;;  %v65_v7 = vld [vmem:[#allocation2 + $0x68] sm:$0xff] }
 0x11b   :  { %v1253_v12 = vsel %vm1189_vm5, %v1157_v59, %v1221_v3  ;;  %v952_v13 = vadd.f32 %v1568_v5, %v1456_v63  ;;  %v1571_v14 = vadd.f32 %v1570_v11, %v1569_v6 }
 0x11c   :  { %1285 = vst.msk [vmem:[%s2308_s3 + $0x20] sm:$0xff] %vm19_vm0, %v1253_v12  ;;  %vm1190_vm6 = vcmp.ge.f32.partialorder %v1158_v8, 0.0  ;;  %v1222_v15 = vmul.f32 0.2, %v1158_v8 }
 0x11d   :  { %v1054_v17 = vadd.f32 %v952_v13, %v60_v9  ;;  %v955_v18 = vadd.f32 %v1571_v14, %v1459_v10 }
 0x11e   :  { %v1254_v19 = vsel %vm1190_vm6, %v1158_v8, %v1222_v15  ;;  %v1120_v20 = vld [vmem:[#allocation2 + $0x30] sm:$0xff]  ;;  %v1460_v21 = vpop.f32.mrb[20].mxu0 }
 0x11f   :  { %1286 = vst.msk [vmem:[%s2308_s3 + $0x28] sm:$0xff] %vm19_vm0, %v1254_v19  ;;  %v1159_v22 = vadd.f32 %v2113_v1, %v1120_v20  ;;  %1087 = vst.msk [vmem:[#allocation2 + $0x40] sm:$0xff] %vm19_vm0, %v1054_v17  ;;  %v1055_v23 = vadd.f32 %v955_v18, %v61_v16  ;;  %v1572_v24 = vpop.f32.mrb[20].mxu1  ;;  %v1461_v25 = vpop.f32.mrb[21].mxu0 }
 0x120   :  { %v1462_v26 = vadd.f32 %v1461_v25, %v1460_v21  ;;  %v1573_v27 = vpop.f32.mrb[21].mxu1  ;;  %v1463_v28 = vpop.f32.mrb[22].mxu0 }
 0x121   :  { %vm1191_vm7 = vcmp.ge.f32.partialorder %v1159_v22, 0.0  ;;  %v1223_v29 = vmul.f32 0.2, %v1159_v22  ;;  %v1121_v30 = vld [vmem:[#allocation2 + $0x38] sm:$0xff]  ;;  %1088 = vst.msk [vmem:[#allocation2 + $0x48] sm:$0xff] %vm19_vm0, %v1055_v23  ;;  %v1574_v31 = vadd.f32 %v1573_v27, %v1572_v24  ;;  %v1575_v32 = vpop.f32.mrb[22].mxu1 }
 0x122   :  { %v1464_v33 = vpop.f32.mrb[23].mxu0  ;;  %v1160_v34 = vadd.f32 %v2113_v1, %v1121_v30  ;;  %v1576_v37 = vpop.f32.mrb[23].mxu1  ;;  %v66_v24 = vld [vmem:[#allocation2 + $0x70] sm:$0xff] }
 0x123   :  { %v1465_v36 = vadd.f32 %v1464_v33, %v1463_v28  ;;  %v1255_v38 = vsel %vm1191_vm7, %v1159_v22, %v1223_v29  ;;  %v960_v39 = vadd.f32 %v1574_v31, %v1462_v26  ;;  %v1577_v40 = vadd.f32 %v1576_v37, %v1575_v32  ;;  %v67_v33 = vld [vmem:[#allocation2 + $0x78] sm:$0xff] }
 0x124   :  { %1287 = vst.msk [vmem:[%s2308_s3 + $0x30] sm:$0xff] %vm19_vm0, %v1255_v38  ;;  %vm1192_vm8 = vcmp.ge.f32.partialorder %v1160_v34, 0.0  ;;  %v1224_v41 = vmul.f32 0.2, %v1160_v34 }
 0x125   :  { %v1056_v43 = vadd.f32 %v960_v39, %v62_v35  ;;  %v963_v44 = vadd.f32 %v1577_v40, %v1465_v36 }
 0x126   :  { %v1256_v45 = vsel %vm1192_vm8, %v1160_v34, %v1224_v41  ;;  %v1122_v46 = vld [vmem:[#allocation2 + $0x40] sm:$0xff]  ;;  %v1466_v47 = vpop.f32.mrb[24].mxu0 }
 0x127   :  { %1288 = vst.msk [vmem:[%s2308_s3 + $0x38] sm:$0xff] %vm19_vm0, %v1256_v45  ;;  %v1161_v48 = vadd.f32 %v2113_v1, %v1122_v46  ;;  %1089 = vst.msk [vmem:[#allocation2 + $0x50] sm:$0xff] %vm19_vm0, %v1056_v43  ;;  %v1057_v49 = vadd.f32 %v963_v44, %v63_v42  ;;  %v1578_v50 = vpop.f32.mrb[24].mxu1  ;;  %v1467_v51 = vpop.f32.mrb[25].mxu0 }
 0x128   :  { %v1123_v52 = vld [vmem:[#allocation2 + $0x48] sm:$0xff]  ;;  %v1468_v53 = vadd.f32 %v1467_v51, %v1466_v47  ;;  %v1579_v54 = vpop.f32.mrb[25].mxu1  ;;  %v1469_v55 = vpop.f32.mrb[26].mxu0 }
 0x129   :  { %vm1193_vm9 = vcmp.ge.f32.partialorder %v1161_v48, 0.0  ;;  %v1225_v56 = vmul.f32 0.2, %v1161_v48  ;;  %v1162_v57 = vadd.f32 %v2113_v1, %v1123_v52  ;;  %1090 = vst.msk [vmem:[#allocation2 + $0x58] sm:$0xff] %vm19_vm0, %v1057_v49  ;;  %v1580_v58 = vadd.f32 %v1579_v54, %v1578_v50  ;;  %v1581_v59 = vpop.f32.mrb[26].mxu1  ;;  %v1470_v60 = vpop.f32.mrb[27].mxu0 }
 0x12a   :  { %v1471_v62 = vadd.f32 %v1470_v60, %v1469_v55  ;;  %v1582_v63 = vpop.f32.mrb[27].mxu1  ;;  %v68_v50 = vld [vmem:[#allocation2 + $0x80] sm:$0xff] }
 0x12b   :  { %v1257_v0 = vsel %vm1193_vm9, %v1161_v48, %v1225_v56  ;;  %vm1194_vm10 = vcmp.ge.f32.partialorder %v1162_v57, 0.0  ;;  %v1226_v2 = vmul.f32 0.2, %v1162_v57  ;;  %v968_v3 = vadd.f32 %v1580_v58, %v1468_v53 }
 0x12c   :  { %1289 = vst.msk [vmem:[%s2308_s3 + $0x40] sm:$0xff] %vm19_vm0, %v1257_v0  ;;  %v1583_v4 = vadd.f32 %v1582_v63, %v1581_v59 }
 0x12d   :  { %v1258_v5 = vsel %vm1194_vm10, %v1162_v57, %v1226_v2  ;;  %v1058_v6 = vadd.f32 %v968_v3, %v64_v61  ;;  %v69_v57 = vld [vmem:[#allocation2 + $0x88] sm:$0xff] }
 0x12e   :  { %1290 = vst.msk [vmem:[%s2308_s3 + $0x48] sm:$0xff] %vm19_vm0, %v1258_v5  ;;  %v1124_v8 = vld [vmem:[#allocation2 + $0x50] sm:$0xff]  ;;  %v971_v9 = vadd.f32 %v1583_v4, %v1471_v62  ;;  %v1472_v10 = vpop.f32.mrb[28].mxu0 }
 0x12f   :  { %v1163_v11 = vadd.f32 %v2113_v1, %v1124_v8  ;;  %1091 = vst.msk [vmem:[#allocation2 + $0x60] sm:$0xff] %vm19_vm0, %v1058_v6  ;;  %v1584_v12 = vpop.f32.mrb[28].mxu1  ;;  %v1473_v13 = vpop.f32.mrb[29].mxu0 }
 0x130   :  { %v1125_v14 = vld [vmem:[#allocation2 + $0x58] sm:$0xff]  ;;  %v1059_v15 = vadd.f32 %v971_v9, %v65_v7  ;;  %v1474_v16 = vadd.f32 %v1473_v13, %v1472_v10  ;;  %v1585_v17 = vpop.f32.mrb[29].mxu1  ;;  %v1475_v18 = vpop.f32.mrb[30].mxu0  ;;  %v70_v13 = vld [vmem:[#allocation2 + $0x90] sm:$0xff] }
 0x131   :  { %vm1195_vm11 = vcmp.ge.f32.partialorder %v1163_v11, 0.0  ;;  %v1227_v19 = vmul.f32 0.2, %v1163_v11  ;;  %v1164_v20 = vadd.f32 %v2113_v1, %v1125_v14  ;;  %v1586_v21 = vadd.f32 %v1585_v17, %v1584_v12  ;;  %v1587_v22 = vpop.f32.mrb[30].mxu1  ;;  %v1476_v23 = vpop.f32.mrb[31].mxu0 }
 0x132   :  { %1092 = vst.msk [vmem:[#allocation2 + $0x68] sm:$0xff] %vm19_vm0, %v1059_v15  ;;  %v1477_v25 = vadd.f32 %v1476_v23, %v1475_v18  ;;  %v1588_v26 = vpop.f32.mrb[31].mxu1 }
 0x133   :  { %v1259_v27 = vsel %vm1195_vm11, %v1163_v11, %v1227_v19  ;;  %vm1196_vm12 = vcmp.ge.f32.partialorder %v1164_v20, 0.0  ;;  %v1228_v28 = vmul.f32 0.2, %v1164_v20  ;;  %v976_v29 = vadd.f32 %v1586_v21, %v1474_v16 }
 0x134   :  { %1291 = vst.msk [vmem:[%s2308_s3 + $0x50] sm:$0xff] %vm19_vm0, %v1259_v27  ;;  %v1589_v30 = vadd.f32 %v1588_v26, %v1587_v22 }
 0x135   :  { %v1260_v31 = vsel %vm1196_vm12, %v1164_v20, %v1228_v28  ;;  %v1060_v32 = vadd.f32 %v976_v29, %v66_v24  ;;  %v71_v20 = vld [vmem:[#allocation2 + $0x98] sm:$0xff] }
 0x136   :  { %1292 = vst.msk [vmem:[%s2308_s3 + $0x58] sm:$0xff] %vm19_vm0, %v1260_v31  ;;  %v1126_v34 = vld [vmem:[#allocation2 + $0x60] sm:$0xff]  ;;  %v979_v35 = vadd.f32 %v1589_v30, %v1477_v25  ;;  %v1478_v36 = vpop.f32.mrb[32].mxu0 }
 0x137   :  { %v1165_v37 = vadd.f32 %v2113_v1, %v1126_v34  ;;  %1093 = vst.msk [vmem:[#allocation2 + $0x70] sm:$0xff] %vm19_vm0, %v1060_v32  ;;  %v1590_v38 = vpop.f32.mrb[32].mxu1  ;;  %v1479_v39 = vpop.f32.mrb[33].mxu0 }
 0x138   :  { %v1061_v40 = vadd.f32 %v979_v35, %v67_v33  ;;  %v1480_v41 = vadd.f32 %v1479_v39, %v1478_v36  ;;  %v1591_v42 = vpop.f32.mrb[33].mxu1  ;;  %v1481_v43 = vpop.f32.mrb[34].mxu0  ;;  %v72_v39 = vld [vmem:[#allocation2 + $0xa0] sm:$0xff] }
 0x139   :  { %vm1197_vm13 = vcmp.ge.f32.partialorder %v1165_v37, 0.0  ;;  %v1229_v44 = vmul.f32 0.2, %v1165_v37  ;;  %v1127_v45 = vld [vmem:[#allocation2 + $0x68] sm:$0xff]  ;;  %v1592_v46 = vadd.f32 %v1591_v42, %v1590_v38  ;;  %v1593_v47 = vpop.f32.mrb[34].mxu1  ;;  %v1482_v48 = vpop.f32.mrb[35].mxu0 }
 0x13a   :  { %v1166_v49 = vadd.f32 %v2113_v1, %v1127_v45  ;;  %1094 = vst.msk [vmem:[#allocation2 + $0x78] sm:$0xff] %vm19_vm0, %v1061_v40  ;;  %v1483_v51 = vadd.f32 %v1482_v48, %v1481_v43  ;;  %v1594_v52 = vpop.f32.mrb[35].mxu1  ;;  %v73_v48 = vld [vmem:[#allocation2 + $0xa8] sm:$0xff] }
 0x13b   :  { %v1261_v53 = vsel %vm1197_vm13, %v1165_v37, %v1229_v44  ;;  %v984_v54 = vadd.f32 %v1592_v46, %v1480_v41  ;;  %v1595_v55 = vadd.f32 %v1594_v52, %v1593_v47 }
 0x13c   :  { %1293 = vst.msk [vmem:[%s2308_s3 + $0x60] sm:$0xff] %vm19_vm0, %v1261_v53  ;;  %vm1198_vm14 = vcmp.ge.f32.partialorder %v1166_v49, 0.0  ;;  %v1230_v56 = vmul.f32 0.2, %v1166_v49 }
 0x13d   :  { %v1062_v58 = vadd.f32 %v984_v54, %v68_v50  ;;  %v987_v59 = vadd.f32 %v1595_v55, %v1483_v51 }
 0x13e   :  { %v1262_v60 = vsel %vm1198_vm14, %v1166_v49, %v1230_v56  ;;  %v1128_v61 = vld [vmem:[#allocation2 + $0x70] sm:$0xff]  ;;  %v1484_v62 = vpop.f32.mrb[36].mxu0 }
 0x13f   :  { %1294 = vst.msk [vmem:[%s2308_s3 + $0x68] sm:$0xff] %vm19_vm0, %v1262_v60  ;;  %v1167_v63 = vadd.f32 %v2113_v1, %v1128_v61  ;;  %1095 = vst.msk [vmem:[#allocation2 + $0x80] sm:$0xff] %vm19_vm0, %v1062_v58  ;;  %v1063_v0 = vadd.f32 %v987_v59, %v69_v57  ;;  %v1596_v2 = vpop.f32.mrb[36].mxu1  ;;  %v1485_v3 = vpop.f32.mrb[37].mxu0 }
 0x140   :  { %v1486_v4 = vadd.f32 %v1485_v3, %v1484_v62  ;;  %v1597_v5 = vpop.f32.mrb[37].mxu1  ;;  %v1487_v6 = vpop.f32.mrb[38].mxu0 }
 0x141   :  { %vm1199_vm15 = vcmp.ge.f32.partialorder %v1167_v63, 0.0  ;;  %v1231_v7 = vmul.f32 0.2, %v1167_v63  ;;  %v1129_v8 = vld [vmem:[#allocation2 + $0x78] sm:$0xff]  ;;  %1096 = vst.msk [vmem:[#allocation2 + $0x88] sm:$0xff] %vm19_vm0, %v1063_v0  ;;  %v1598_v9 = vadd.f32 %v1597_v5, %v1596_v2  ;;  %v1599_v10 = vpop.f32.mrb[38].mxu1 }
 0x142   :  { %v1488_v11 = vpop.f32.mrb[39].mxu0  ;;  %v1168_v12 = vadd.f32 %v2113_v1, %v1129_v8  ;;  %v1600_v15 = vpop.f32.mrb[39].mxu1  ;;  %v74_v2 = vld [vmem:[#allocation2 + $0xb0] sm:$0xff] }
 0x143   :  { %v1489_v14 = vadd.f32 %v1488_v11, %v1487_v6  ;;  %v1263_v16 = vsel %vm1199_vm15, %v1167_v63, %v1231_v7  ;;  %v992_v17 = vadd.f32 %v1598_v9, %v1486_v4  ;;  %v1601_v18 = vadd.f32 %v1600_v15, %v1599_v10  ;;  %v75_v11 = vld [vmem:[#allocation2 + $0xb8] sm:$0xff] }
 0x144   :  { %1295 = vst.msk [vmem:[%s2308_s3 + $0x70] sm:$0xff] %vm19_vm0, %v1263_v16  ;;  %vm1200_vm1 = vcmp.ge.f32.partialorder %v1168_v12, 0.0  ;;  %v1232_v19 = vmul.f32 0.2, %v1168_v12 }
 0x145   :  { %v1064_v21 = vadd.f32 %v992_v17, %v70_v13  ;;  %v995_v22 = vadd.f32 %v1601_v18, %v1489_v14 }
 0x146   :  { %v1264_v23 = vsel %vm1200_vm1, %v1168_v12, %v1232_v19  ;;  %v1130_v24 = vld [vmem:[#allocation2 + $0x80] sm:$0xff]  ;;  %v1490_v25 = vpop.f32.mrb[40].mxu0 }
 0x147   :  { %1296 = vst.msk [vmem:[%s2308_s3 + $0x78] sm:$0xff] %vm19_vm0, %v1264_v23  ;;  %v1169_v26 = vadd.f32 %v2113_v1, %v1130_v24  ;;  %1097 = vst.msk [vmem:[#allocation2 + $0x90] sm:$0xff] %vm19_vm0, %v1064_v21  ;;  %v1065_v27 = vadd.f32 %v995_v22, %v71_v20  ;;  %v1602_v28 = vpop.f32.mrb[40].mxu1  ;;  %v1491_v29 = vpop.f32.mrb[41].mxu0 }
 0x148   :  { %v1131_v30 = vld [vmem:[#allocation2 + $0x88] sm:$0xff]  ;;  %v1492_v31 = vadd.f32 %v1491_v29, %v1490_v25  ;;  %v1603_v32 = vpop.f32.mrb[41].mxu1  ;;  %v1493_v33 = vpop.f32.mrb[42].mxu0 }
 0x149   :  { %vm1201_vm2 = vcmp.ge.f32.partialorder %v1169_v26, 0.0  ;;  %v1233_v34 = vmul.f32 0.2, %v1169_v26  ;;  %v1170_v35 = vadd.f32 %v2113_v1, %v1131_v30  ;;  %1098 = vst.msk [vmem:[#allocation2 + $0x98] sm:$0xff] %vm19_vm0, %v1065_v27  ;;  %v1604_v36 = vadd.f32 %v1603_v32, %v1602_v28  ;;  %v1605_v37 = vpop.f32.mrb[42].mxu1  ;;  %v1494_v38 = vpop.f32.mrb[43].mxu0 }
 0x14a   :  { %v1495_v40 = vadd.f32 %v1494_v38, %v1493_v33  ;;  %v1606_v41 = vpop.f32.mrb[43].mxu1  ;;  %v76_v28 = vld [vmem:[#allocation2 + $0xc0] sm:$0xff] }
 0x14b   :  { %v1265_v42 = vsel %vm1201_vm2, %v1169_v26, %v1233_v34  ;;  %vm1202_vm3 = vcmp.ge.f32.partialorder %v1170_v35, 0.0  ;;  %v1234_v43 = vmul.f32 0.2, %v1170_v35  ;;  %v1000_v44 = vadd.f32 %v1604_v36, %v1492_v31 }
 0x14c   :  { %1297 = vst.msk [vmem:[%s2308_s3 + $0x80] sm:$0xff] %vm19_vm0, %v1265_v42  ;;  %v1607_v45 = vadd.f32 %v1606_v41, %v1605_v37 }
 0x14d   :  { %v1266_v46 = vsel %vm1202_vm3, %v1170_v35, %v1234_v43  ;;  %v1066_v47 = vadd.f32 %v1000_v44, %v72_v39  ;;  %v77_v35 = vld [vmem:[#allocation2 + $0xc8] sm:$0xff] }
 0x14e   :  { %1298 = vst.msk [vmem:[%s2308_s3 + $0x88] sm:$0xff] %vm19_vm0, %v1266_v46  ;;  %v1132_v49 = vld [vmem:[#allocation2 + $0x90] sm:$0xff]  ;;  %v1003_v50 = vadd.f32 %v1607_v45, %v1495_v40  ;;  %v1496_v51 = vpop.f32.mrb[44].mxu0 }
 0x14f   :  { %v1171_v52 = vadd.f32 %v2113_v1, %v1132_v49  ;;  %1099 = vst.msk [vmem:[#allocation2 + $0xa0] sm:$0xff] %vm19_vm0, %v1066_v47  ;;  %v1608_v53 = vpop.f32.mrb[44].mxu1  ;;  %v1497_v54 = vpop.f32.mrb[45].mxu0 }
 0x150   :  { %v1133_v55 = vld [vmem:[#allocation2 + $0x98] sm:$0xff]  ;;  %v1067_v56 = vadd.f32 %v1003_v50, %v73_v48  ;;  %v1498_v57 = vadd.f32 %v1497_v54, %v1496_v51  ;;  %v1609_v58 = vpop.f32.mrb[45].mxu1  ;;  %v1499_v59 = vpop.f32.mrb[46].mxu0  ;;  %v78_v54 = vld [vmem:[#allocation2 + $0xd0] sm:$0xff] }
 0x151   :  { %vm1203_vm4 = vcmp.ge.f32.partialorder %v1171_v52, 0.0  ;;  %v1235_v60 = vmul.f32 0.2, %v1171_v52  ;;  %v1172_v61 = vadd.f32 %v2113_v1, %v1133_v55  ;;  %v1610_v62 = vadd.f32 %v1609_v58, %v1608_v53  ;;  %v1611_v63 = vpop.f32.mrb[46].mxu1  ;;  %v1500_v0 = vpop.f32.mrb[47].mxu0 }
 0x152   :  { %1100 = vst.msk [vmem:[#allocation2 + $0xa8] sm:$0xff] %vm19_vm0, %v1067_v56  ;;  %v1501_v3 = vadd.f32 %v1500_v0, %v1499_v59  ;;  %v1612_v4 = vpop.f32.mrb[47].mxu1 }
 0x153   :  { %v1267_v5 = vsel %vm1203_vm4, %v1171_v52, %v1235_v60  ;;  %vm1204_vm5 = vcmp.ge.f32.partialorder %v1172_v61, 0.0  ;;  %v1236_v6 = vmul.f32 0.2, %v1172_v61  ;;  %v1008_v7 = vadd.f32 %v1610_v62, %v1498_v57 }
 0x154   :  { %1299 = vst.msk [vmem:[%s2308_s3 + $0x90] sm:$0xff] %vm19_vm0, %v1267_v5  ;;  %v1613_v8 = vadd.f32 %v1612_v4, %v1611_v63 }
 0x155   :  { %v1268_v9 = vsel %vm1204_vm5, %v1172_v61, %v1236_v6  ;;  %v1068_v10 = vadd.f32 %v1008_v7, %v74_v2  ;;  %v79_v61 = vld [vmem:[#allocation2 + $0xd8] sm:$0xff] }
 0x156   :  { %1300 = vst.msk [vmem:[%s2308_s3 + $0x98] sm:$0xff] %vm19_vm0, %v1268_v9  ;;  %v1134_v12 = vld [vmem:[#allocation2 + $0xa0] sm:$0xff]  ;;  %v1011_v13 = vadd.f32 %v1613_v8, %v1501_v3  ;;  %v1502_v14 = vpop.f32.mrb[48].mxu0 }
 0x157   :  { %v1173_v15 = vadd.f32 %v2113_v1, %v1134_v12  ;;  %1101 = vst.msk [vmem:[#allocation2 + $0xb0] sm:$0xff] %vm19_vm0, %v1068_v10  ;;  %v1614_v16 = vpop.f32.mrb[48].mxu1  ;;  %v1503_v17 = vpop.f32.mrb[49].mxu0 }
 0x158   :  { %v1069_v18 = vadd.f32 %v1011_v13, %v75_v11  ;;  %v1504_v19 = vadd.f32 %v1503_v17, %v1502_v14  ;;  %v1615_v20 = vpop.f32.mrb[49].mxu1  ;;  %v1505_v21 = vpop.f32.mrb[50].mxu0  ;;  %v80_v17 = vld [vmem:[#allocation2 + $0xe0] sm:$0xff] }
 0x159   :  { %vm1205_vm6 = vcmp.ge.f32.partialorder %v1173_v15, 0.0  ;;  %v1237_v22 = vmul.f32 0.2, %v1173_v15  ;;  %v1135_v23 = vld [vmem:[#allocation2 + $0xa8] sm:$0xff]  ;;  %v1616_v24 = vadd.f32 %v1615_v20, %v1614_v16  ;;  %v1617_v25 = vpop.f32.mrb[50].mxu1  ;;  %v1506_v26 = vpop.f32.mrb[51].mxu0 }
 0x15a   :  { %v1174_v27 = vadd.f32 %v2113_v1, %v1135_v23  ;;  %1102 = vst.msk [vmem:[#allocation2 + $0xb8] sm:$0xff] %vm19_vm0, %v1069_v18  ;;  %v1507_v29 = vadd.f32 %v1506_v26, %v1505_v21  ;;  %v1618_v30 = vpop.f32.mrb[51].mxu1  ;;  %v81_v26 = vld [vmem:[#allocation2 + $0xe8] sm:$0xff] }
 0x15b   :  { %v1269_v31 = vsel %vm1205_vm6, %v1173_v15, %v1237_v22  ;;  %v1016_v32 = vadd.f32 %v1616_v24, %v1504_v19  ;;  %v1619_v33 = vadd.f32 %v1618_v30, %v1617_v25 }
 0x15c   :  { %1301 = vst.msk [vmem:[%s2308_s3 + $0xa0] sm:$0xff] %vm19_vm0, %v1269_v31  ;;  %vm1206_vm7 = vcmp.ge.f32.partialorder %v1174_v27, 0.0  ;;  %v1238_v34 = vmul.f32 0.2, %v1174_v27 }
 0x15d   :  { %v1070_v36 = vadd.f32 %v1016_v32, %v76_v28  ;;  %v1019_v37 = vadd.f32 %v1619_v33, %v1507_v29 }
 0x15e   :  { %v1270_v38 = vsel %vm1206_vm7, %v1174_v27, %v1238_v34  ;;  %v1136_v39 = vld [vmem:[#allocation2 + $0xb0] sm:$0xff]  ;;  %v1508_v40 = vpop.f32.mrb[52].mxu0 }
 0x15f   :  { %1302 = vst.msk [vmem:[%s2308_s3 + $0xa8] sm:$0xff] %vm19_vm0, %v1270_v38  ;;  %v1175_v41 = vadd.f32 %v2113_v1, %v1136_v39  ;;  %1103 = vst.msk [vmem:[#allocation2 + $0xc0] sm:$0xff] %vm19_vm0, %v1070_v36  ;;  %v1071_v42 = vadd.f32 %v1019_v37, %v77_v35  ;;  %v1620_v43 = vpop.f32.mrb[52].mxu1  ;;  %v1509_v44 = vpop.f32.mrb[53].mxu0 }
 0x160   :  { %v1510_v45 = vadd.f32 %v1509_v44, %v1508_v40  ;;  %v1621_v46 = vpop.f32.mrb[53].mxu1  ;;  %v1511_v47 = vpop.f32.mrb[54].mxu0 }
 0x161   :  { %vm1207_vm8 = vcmp.ge.f32.partialorder %v1175_v41, 0.0  ;;  %v1239_v48 = vmul.f32 0.2, %v1175_v41  ;;  %v1137_v49 = vld [vmem:[#allocation2 + $0xb8] sm:$0xff]  ;;  %1104 = vst.msk [vmem:[#allocation2 + $0xc8] sm:$0xff] %vm19_vm0, %v1071_v42  ;;  %v1622_v50 = vadd.f32 %v1621_v46, %v1620_v43  ;;  %v1623_v51 = vpop.f32.mrb[54].mxu1 }
 0x162   :  { %v1512_v52 = vpop.f32.mrb[55].mxu0  ;;  %v1176_v53 = vadd.f32 %v2113_v1, %v1137_v49  ;;  %v1624_v56 = vpop.f32.mrb[55].mxu1  ;;  %v82_v43 = vld [vmem:[#allocation2 + $0xf0] sm:$0xff] }
 0x163   :  { %v1513_v55 = vadd.f32 %v1512_v52, %v1511_v47  ;;  %v1271_v57 = vsel %vm1207_vm8, %v1175_v41, %v1239_v48  ;;  %v1024_v58 = vadd.f32 %v1622_v50, %v1510_v45  ;;  %v1625_v59 = vadd.f32 %v1624_v56, %v1623_v51  ;;  %v83_v52 = vld [vmem:[#allocation2 + $0xf8] sm:$0xff] }
 0x164   :  { %1303 = vst.msk [vmem:[%s2308_s3 + $0xb0] sm:$0xff] %vm19_vm0, %v1271_v57  ;;  %vm1208_vm9 = vcmp.ge.f32.partialorder %v1176_v53, 0.0  ;;  %v1240_v60 = vmul.f32 0.2, %v1176_v53 }
 0x165   :  { %v1072_v62 = vadd.f32 %v1024_v58, %v78_v54  ;;  %v1027_v63 = vadd.f32 %v1625_v59, %v1513_v55 }
 0x166   :  { %v1272_v0 = vsel %vm1208_vm9, %v1176_v53, %v1240_v60  ;;  %v1138_v2 = vld [vmem:[#allocation2 + $0xc0] sm:$0xff]  ;;  %v1514_v3 = vpop.f32.mrb[56].mxu0 }
 0x167   :  { %1304 = vst.msk [vmem:[%s2308_s3 + $0xb8] sm:$0xff] %vm19_vm0, %v1272_v0  ;;  %v1177_v4 = vadd.f32 %v2113_v1, %v1138_v2  ;;  %1105 = vst.msk [vmem:[#allocation2 + $0xd0] sm:$0xff] %vm19_vm0, %v1072_v62  ;;  %v1073_v5 = vadd.f32 %v1027_v63, %v79_v61  ;;  %v1626_v6 = vpop.f32.mrb[56].mxu1  ;;  %v1515_v7 = vpop.f32.mrb[57].mxu0 }
 0x168   :  { %v1139_v8 = vld [vmem:[#allocation2 + $0xc8] sm:$0xff]  ;;  %v1516_v9 = vadd.f32 %v1515_v7, %v1514_v3  ;;  %v1627_v10 = vpop.f32.mrb[57].mxu1  ;;  %v1517_v11 = vpop.f32.mrb[58].mxu0 }
 0x169   :  { %vm1209_vm10 = vcmp.ge.f32.partialorder %v1177_v4, 0.0  ;;  %v1241_v12 = vmul.f32 0.2, %v1177_v4  ;;  %v1178_v13 = vadd.f32 %v2113_v1, %v1139_v8  ;;  %1106 = vst.msk [vmem:[#allocation2 + $0xd8] sm:$0xff] %vm19_vm0, %v1073_v5  ;;  %v1628_v14 = vadd.f32 %v1627_v10, %v1626_v6  ;;  %v1629_v15 = vpop.f32.mrb[58].mxu1  ;;  %v1518_v16 = vpop.f32.mrb[59].mxu0 }
 0x16a   :  { %v1519_v18 = vadd.f32 %v1518_v16, %v1517_v11  ;;  %v1630_v19 = vpop.f32.mrb[59].mxu1 }
 0x16b   :  { %v1273_v20 = vsel %vm1209_vm10, %v1177_v4, %v1241_v12  ;;  %vm1210_vm11 = vcmp.ge.f32.partialorder %v1178_v13, 0.0  ;;  %v1242_v21 = vmul.f32 0.2, %v1178_v13  ;;  %v1032_v22 = vadd.f32 %v1628_v14, %v1516_v9 }
 0x16c   :  { %1305 = vst.msk [vmem:[%s2308_s3 + $0xc0] sm:$0xff] %vm19_vm0, %v1273_v20  ;;  %v1631_v23 = vadd.f32 %v1630_v19, %v1629_v15 }
 0x16d   :  { %v1274_v24 = vsel %vm1210_vm11, %v1178_v13, %v1242_v21  ;;  %v1074_v25 = vadd.f32 %v1032_v22, %v80_v17 }
 0x16e   :  { %1306 = vst.msk [vmem:[%s2308_s3 + $0xc8] sm:$0xff] %vm19_vm0, %v1274_v24  ;;  %v1140_v27 = vld [vmem:[#allocation2 + $0xd0] sm:$0xff]  ;;  %v1035_v28 = vadd.f32 %v1631_v23, %v1519_v18  ;;  %v1520_v29 = vpop.f32.mrb[60].mxu0 }
 0x16f   :  { %v1179_v30 = vadd.f32 %v2113_v1, %v1140_v27  ;;  %1107 = vst.msk [vmem:[#allocation2 + $0xe0] sm:$0xff] %vm19_vm0, %v1074_v25  ;;  %v1632_v31 = vpop.f32.mrb[60].mxu1  ;;  %v1521_v32 = vpop.f32.mrb[61].mxu0 }
 0x170   :  { %v1141_v33 = vld [vmem:[#allocation2 + $0xd8] sm:$0xff]  ;;  %v1075_v34 = vadd.f32 %v1035_v28, %v81_v26  ;;  %v1522_v35 = vadd.f32 %v1521_v32, %v1520_v29  ;;  %v1633_v36 = vpop.f32.mrb[61].mxu1  ;;  %v1523_v37 = vpop.f32.mrb[62].mxu0 }
 0x171   :  { %vm1211_vm12 = vcmp.ge.f32.partialorder %v1179_v30, 0.0  ;;  %v1243_v38 = vmul.f32 0.2, %v1179_v30  ;;  %v1180_v39 = vadd.f32 %v2113_v1, %v1141_v33  ;;  %v1634_v40 = vadd.f32 %v1633_v36, %v1632_v31  ;;  %v1635_v41 = vpop.f32.mrb[62].mxu1  ;;  %v1524_v42 = vpop.f32.mrb[63].mxu0 }
 0x172   :  { %1108 = vst.msk [vmem:[#allocation2 + $0xe8] sm:$0xff] %vm19_vm0, %v1075_v34  ;;  %v1525_v44 = vadd.f32 %v1524_v42, %v1523_v37  ;;  %v1636_v45 = vpop.f32.mrb[63].mxu1 }
 0x173   :  { %v1275_v46 = vsel %vm1211_vm12, %v1179_v30, %v1243_v38  ;;  %vm1212_vm13 = vcmp.ge.f32.partialorder %v1180_v39, 0.0  ;;  %v1244_v47 = vmul.f32 0.2, %v1180_v39  ;;  %v1040_v48 = vadd.f32 %v1634_v40, %v1522_v35 }
 0x174   :  { %1307 = vst.msk [vmem:[%s2308_s3 + $0xd0] sm:$0xff] %vm19_vm0, %v1275_v46  ;;  %v1637_v49 = vadd.f32 %v1636_v45, %v1635_v41 }
 0x175   :  { %v1276_v50 = vsel %vm1212_vm13, %v1180_v39, %v1244_v47  ;;  %v1076_v51 = vadd.f32 %v1040_v48, %v82_v43 }
 0x176   :  { %1308 = vst.msk [vmem:[%s2308_s3 + $0xd8] sm:$0xff] %vm19_vm0, %v1276_v50  ;;  %v1142_v53 = vld [vmem:[#allocation2 + $0xe0] sm:$0xff]  ;;  %v1043_v54 = vadd.f32 %v1637_v49, %v1525_v44 }
 0x177   :  { %v1181_v55 = vadd.f32 %v2113_v1, %v1142_v53  ;;  %1109 = vst.msk [vmem:[#allocation2 + $0xf0] sm:$0xff] %vm19_vm0, %v1076_v51 }
 0x178   :  { %v1077_v56 = vadd.f32 %v1043_v54, %v83_v52 }
 0x179   :  { %vm1213_vm14 = vcmp.ge.f32.partialorder %v1181_v55, 0.0  ;;  %v1245_v57 = vmul.f32 0.2, %v1181_v55  ;;  %v1143_v58 = vld [vmem:[#allocation2 + $0xe8] sm:$0xff] }
 0x17a   :  { %v1182_v59 = vadd.f32 %v2113_v1, %v1143_v58  ;;  %1110 = vst.msk [vmem:[#allocation2 + $0xf8] sm:$0xff] %vm19_vm0, %v1077_v56 }
 0x17b   :  { %v1277_v60 = vsel %vm1213_vm14, %v1181_v55, %v1245_v57 }
 0x17c   :  { %1309 = vst.msk [vmem:[%s2308_s3 + $0xe0] sm:$0xff] %vm19_vm0, %v1277_v60  ;;  %vm1214_vm15 = vcmp.ge.f32.partialorder %v1182_v59, 0.0  ;;  %v1246_v61 = vmul.f32 0.2, %v1182_v59 }
 0x17e   :  { %v1278_v62 = vsel %vm1214_vm15, %v1182_v59, %v1246_v61  ;;  %v1144_v63 = vld [vmem:[#allocation2 + $0xf0] sm:$0xff] }
 0x17f   :  { %1310 = vst.msk [vmem:[%s2308_s3 + $0xe8] sm:$0xff] %vm19_vm0, %v1278_v62  ;;  %v1183_v0 = vadd.f32 %v2113_v1, %v1144_v63 }
 0x181   :  { %vm1215_vm1 = vcmp.ge.f32.partialorder %v1183_v0, 0.0  ;;  %v1247_v2 = vmul.f32 0.2, %v1183_v0  ;;  %v1145_v3 = vld [vmem:[#allocation2 + $0xf8] sm:$0xff] }
 0x182   :  { %v1184_v4 = vadd.f32 %v2113_v1, %v1145_v3 }
 0x183   :  { %v1279_v5 = vsel %vm1215_vm1, %v1183_v0, %v1247_v2 }
 0x184   :  { %1311 = vst.msk [vmem:[%s2308_s3 + $0xf0] sm:$0xff] %vm19_vm0, %v1279_v5  ;;  %vm1216_vm2 = vcmp.ge.f32.partialorder %v1184_v4, 0.0  ;;  %v1248_v6 = vmul.f32 0.2, %v1184_v4 }
 0x186   :  { %v1280_v7 = vsel %vm1216_vm2, %v1184_v4, %v1248_v6 }
 0x187   :  { %1312 = vst.msk [vmem:[%s2308_s3 + $0xf8] sm:$0xff] %vm19_vm0, %v1280_v7 }

// kernel: _lambda_.20
= control target key start
LH: loop header
LB: loop body
LE: loop exit
PB: predicated region body
PF: predicated region fallthrough
CT: control target
= control target key end

     0   :  { %s1988_s12 = smov 0   ;;  %s1990_s13 = smov 0   ;;  %s2544_s0 = inlined_call_operand.vmem [shape: bf16[2,512,256], index: 0, kind: input, shape index: {}]   ;;  %s2545_s1 = inlined_call_operand.vmem [shape: bf16[2,256,48], index: 1, kind: input, shape index: {}]   ;;  %s2546_s2 = inlined_call_operand.vmem [shape: f32[2,1,48], index: 2, kind: input, shape index: {}]   ;;  %s2547_s3 = inlined_call_operand.vmem [shape: f32[2,512,48], index: 3, kind: output, shape index: {}]  }
   0x1   :  { %s1992_s14 = smov 0  }
   0x2 LB: > { %s32_s15 = sadd.s32 1, %s1960_s13  ;;  %p1679_p0 = scmp.ge.s32.totalorder %s1964_s14, 1  ;;  %s1964_s14 = sphi %s1992_s14, %s13_s14   ;;  %s1960_s13 = sphi %s1990_s13, %s2549_s13   ;;  %s1956_s12 = sphi %s1988_s12, %s2548_s12  }
   0x3   : > { %p34_p1 = scmp.ge.s32.totalorder %s32_s15, 2  ;;  %p198_p2 = scmp.lt.s32.totalorder %s1964_s14, 3 }
   0x5   : > { %s2551_s15 = smov (%p34_p1, %s32_s15), 0  ;;  %p199_p3 = pnand %p1679_p0, %p198_p2 }
   0x6   : > { %p249_p4 = scmp.lt.s32.totalorder (!%p199_p3), %s1956_s12, 1  ;;  %v1966_v0 = vmov (!%p199_p3), 0   ;;  %vm291_vm0 = vcmask (!%p199_p3), 392192   ;;  %v1967_v19 = vmov (!%p199_p3), 0.0  }
   0x7   : > { %202 = sbr.rel (%p199_p3) target bundleno = 429 (0x1ad), region = 32  ;;  %932 = vmatprep.subr.bf16.mxu0 (!%p199_p3), %v1966_v0  ;;  %1772 = vmatprep.subr.bf16.mxu1 (!%p199_p3), %v1966_v0  ;;  %292 = vst.msk [vmem:[#allocation2] sm:$0xff] (!%p199_p3), %vm291_vm0, %v1967_v19  ;;  %293 = vst.msk [vmem:[#allocation2 + $0x8] sm:$0xff] (!%p199_p3), %vm291_vm0, %v1967_v19 }
   0x8   : > { %294 = vst.msk [vmem:[#allocation2 + $0x10] sm:$0xff] (!%p199_p3), %vm291_vm0, %v1967_v19  ;;  %295 = vst.msk [vmem:[#allocation2 + $0x18] sm:$0xff] (!%p199_p3), %vm291_vm0, %v1967_v19 }
   0x9   : > { %296 = vst.msk [vmem:[#allocation2 + $0x20] sm:$0xff] (!%p199_p3), %vm291_vm0, %v1967_v19  ;;  %297 = vst.msk [vmem:[#allocation2 + $0x28] sm:$0xff] (!%p199_p3), %vm291_vm0, %v1967_v19 }
   0xa   : > { %298 = vst.msk [vmem:[#allocation2 + $0x30] sm:$0xff] (!%p199_p3), %vm291_vm0, %v1967_v19  ;;  %299 = vst.msk [vmem:[#allocation2 + $0x38] sm:$0xff] (!%p199_p3), %vm291_vm0, %v1967_v19 }
   0xb   : > { %300 = vst.msk [vmem:[#allocation2 + $0x40] sm:$0xff] (!%p199_p3), %vm291_vm0, %v1967_v19  ;;  %301 = vst.msk [vmem:[#allocation2 + $0x48] sm:$0xff] (!%p199_p3), %vm291_vm0, %v1967_v19 }
   0xc   : > { %302 = vst.msk [vmem:[#allocation2 + $0x50] sm:$0xff] (!%p199_p3), %vm291_vm0, %v1967_v19  ;;  %303 = vst.msk [vmem:[#allocation2 + $0x58] sm:$0xff] (!%p199_p3), %vm291_vm0, %v1967_v19 }
   0xd   : > { %304 = vst.msk [vmem:[#allocation2 + $0x60] sm:$0xff] (!%p199_p3), %vm291_vm0, %v1967_v19  ;;  %305 = vst.msk [vmem:[#allocation2 + $0x68] sm:$0xff] (!%p199_p3), %vm291_vm0, %v1967_v19 }
   0xe   : > { %s2553_s12 = smov (!%p249_p4, %s1956_s12), 1  ;;  %306 = vst.msk [vmem:[#allocation2 + $0x70] sm:$0xff] %vm291_vm0, %v1967_v19  ;;  %307 = vst.msk [vmem:[#allocation2 + $0x78] sm:$0xff] %vm291_vm0, %v1967_v19 }
   0xf   : > { %s1770_s16 = sshll.u32 %s2553_s12, 7  ;;  %s1769_s20 = sshll.u32 %s2553_s12, 9  ;;  %308 = vst.msk [vmem:[#allocation2 + $0x80] sm:$0xff] %vm291_vm0, %v1967_v19  ;;  %309 = vst.msk [vmem:[#allocation2 + $0x88] sm:$0xff] %vm291_vm0, %v1967_v19 }
  0x10   : > { %s2014_s19 = scalar_lea.vmem %s2545_s1, %s1770_s16  ;;  %s2033_s23 = scalar_lea.vmem %s2544_s0, %s1769_s20  ;;  %310 = vst.msk [vmem:[#allocation2 + $0x90] sm:$0xff] %vm291_vm0, %v1967_v19  ;;  %311 = vst.msk [vmem:[#allocation2 + $0x98] sm:$0xff] %vm291_vm0, %v1967_v19 }
  0x11   : > { %v1830_v1 = vld [vmem:[%s2014_s19] sm:$0xff]   ;;  %v1831_v2 = vld [vmem:[%s2014_s19 + $0x8] sm:$0xff]   ;;  %v1832_v3 = vld [vmem:[%s2014_s19 + $0x10] sm:$0xff]   ;;  %312 = vst.msk [vmem:[#allocation2 + $0xa0] sm:$0xff] %vm291_vm0, %v1967_v19  ;;  %s275_s26 = scalar_lea.vmem %s2546_s2, %s2553_s12  ;;  %s2281_s29 = scalar_lea.vmem %s2547_s3, %s1769_s20 }
  0x12   : > { %933 = vmatpush1.bf16.msra.mxu0 %v1830_v1  ;;  %1788 = vmatpush1.bf16.msra.mxu1 %v1830_v1  ;;  %v1833_v4 = vld [vmem:[%s2014_s19 + $0x18] sm:$0xff]   ;;  %v1834_v5 = vld [vmem:[%s2014_s19 + $0x20] sm:$0xff]   ;;  %v1835_v7 = vld [vmem:[%s2014_s19 + $0x28] sm:$0xff]   ;;  %313 = vst.msk [vmem:[#allocation2 + $0xa8] sm:$0xff] %vm291_vm0, %v1967_v19 }
  0x13   : > { %934 = vmatprep.subr.bf16.mxu0 %v1966_v0  ;;  %1773 = vmatprep.subr.bf16.mxu1 %v1966_v0  ;;  %v1848_v6 = vld [vmem:[%s2033_s23 + $0x4] ss:$8 sps:$4 sm:$0xff]   ;;  %v1836_v9 = vld [vmem:[%s2014_s19 + $0x30] sm:$0xff]   ;;  %v1837_v10 = vld [vmem:[%s2014_s19 + $0x38] sm:$0xff]   ;;  %314 = vst.msk [vmem:[#allocation2 + $0xb0] sm:$0xff] %vm291_vm0, %v1967_v19 }
  0x14   : > { %v1851_v8 = vld [vmem:[%s2033_s23 + $0x104] ss:$8 sps:$4 sm:$0xff]   ;;  %964 = vmatprep.mubr.bf16.mxu0 %v1848_v6  ;;  %v1840_v13 = vld [vmem:[%s2014_s19 + $0x50] sm:$0xff]   ;;  %v1841_v14 = vld [vmem:[%s2014_s19 + $0x58] sm:$0xff]   ;;  %315 = vst.msk [vmem:[#allocation2 + $0xb8] sm:$0xff] %vm291_vm0, %v1967_v19 }
  0x15   : > { %1092 = vmatprep.mubr.bf16.mxu1 %v1851_v8  ;;  %v1838_v11 = vld [vmem:[%s2014_s19 + $0x40] sm:$0xff]   ;;  %v1839_v12 = vld [vmem:[%s2014_s19 + $0x48] sm:$0xff]   ;;  %v1844_v17 = vld [vmem:[%s2014_s19 + $0x70] sm:$0xff]   ;;  %316 = vst.msk [vmem:[#allocation2 + $0xc0] sm:$0xff] %vm291_vm0, %v1967_v19 }
  0x16   : > { %935 = vmatpush1.bf16.msra.mxu0 %v1831_v2  ;;  %1789 = vmatpush1.bf16.msra.mxu1 %v1831_v2  ;;  %v1842_v15 = vld [vmem:[%s2014_s19 + $0x60] sm:$0xff]   ;;  %v1843_v16 = vld [vmem:[%s2014_s19 + $0x68] sm:$0xff]   ;;  %v2070_v18 = vld [vmem:[%s2014_s19 + $0x78] sm:$0xff]   ;;  %317 = vst.msk [vmem:[#allocation2 + $0xc8] sm:$0xff] %vm291_vm0, %v1967_v19 }
  0x17   : > { %936 = vmatprep.subr.bf16.mxu0 %v1966_v0  ;;  %1774 = vmatprep.subr.bf16.mxu1 %v1966_v0  ;;  %318 = vst.msk [vmem:[#allocation2 + $0xd0] sm:$0xff] %vm291_vm0, %v1967_v19  ;;  %319 = vst.msk [vmem:[#allocation2 + $0xd8] sm:$0xff] %vm291_vm0, %v1967_v19  ;;  %v1846_v20 = vld [vmem:[%s2033_s23] ss:$8 sps:$4 sm:$0xff]   ;;  %v1852_v22 = vld [vmem:[%s2033_s23 + $0x14] ss:$8 sps:$4 sm:$0xff]  }
  0x18   : > { %320 = vst.msk [vmem:[#allocation2 + $0xe0] sm:$0xff] %vm291_vm0, %v1967_v19  ;;  %321 = vst.msk [vmem:[#allocation2 + $0xe8] sm:$0xff] %vm291_vm0, %v1967_v19  ;;  %v1849_v21 = vld [vmem:[%s2033_s23 + $0x100] ss:$8 sps:$4 sm:$0xff]   ;;  %v1854_v23 = vld [vmem:[%s2033_s23 + $0x114] ss:$8 sps:$4 sm:$0xff]  }
  0x19   : > { %322 = vst.msk [vmem:[#allocation2 + $0xf0] sm:$0xff] %vm291_vm0, %v1967_v19  ;;  %323 = vst.msk [vmem:[#allocation2 + $0xf8] sm:$0xff] %vm291_vm0, %v1967_v19  ;;  %v1856_v24 = vld [vmem:[%s2033_s23 + $0x10] ss:$8 sps:$4 sm:$0xff]   ;;  %v1858_v26 = vld [vmem:[%s2033_s23 + $0x24] ss:$8 sps:$4 sm:$0xff]  }
  0x1a   : > { %937 = vmatpush1.bf16.msra.mxu0 %v1832_v3  ;;  %1790 = vmatpush1.bf16.msra.mxu1 %v1832_v3  ;;  %324 = vst.msk [vmem:[#allocation2 + $0x100] sm:$0xff] %vm291_vm0, %v1967_v19  ;;  %325 = vst.msk [vmem:[#allocation2 + $0x108] sm:$0xff] %vm291_vm0, %v1967_v19  ;;  %v1857_v25 = vld [vmem:[%s2033_s23 + $0x110] ss:$8 sps:$4 sm:$0xff]   ;;  %v1860_v27 = vld [vmem:[%s2033_s23 + $0x124] ss:$8 sps:$4 sm:$0xff]  }
  0x1b   : > { %938 = vmatprep.subr.bf16.mxu0 %v1966_v0  ;;  %1775 = vmatprep.subr.bf16.mxu1 %v1966_v0  ;;  %326 = vst.msk [vmem:[#allocation2 + $0x110] sm:$0xff] %vm291_vm0, %v1967_v19  ;;  %327 = vst.msk [vmem:[#allocation2 + $0x118] sm:$0xff] %vm291_vm0, %v1967_v19  ;;  %v1862_v28 = vld [vmem:[%s2033_s23 + $0x20] ss:$8 sps:$4 sm:$0xff]   ;;  %v1864_v30 = vld [vmem:[%s2033_s23 + $0x34] ss:$8 sps:$4 sm:$0xff]  }
  0x1c   : > { %328 = vst.msk [vmem:[#allocation2 + $0x120] sm:$0xff] %vm291_vm0, %v1967_v19  ;;  %329 = vst.msk [vmem:[#allocation2 + $0x128] sm:$0xff] %vm291_vm0, %v1967_v19  ;;  %v1863_v29 = vld [vmem:[%s2033_s23 + $0x120] ss:$8 sps:$4 sm:$0xff]   ;;  %v1866_v31 = vld [vmem:[%s2033_s23 + $0x134] ss:$8 sps:$4 sm:$0xff]  }
  0x1d   : > { %330 = vst.msk [vmem:[#allocation2 + $0x130] sm:$0xff] %vm291_vm0, %v1967_v19  ;;  %331 = vst.msk [vmem:[#allocation2 + $0x138] sm:$0xff] %vm291_vm0, %v1967_v19  ;;  %v1868_v32 = vld [vmem:[%s2033_s23 + $0x30] ss:$8 sps:$4 sm:$0xff]   ;;  %v1870_v34 = vld [vmem:[%s2033_s23 + $0x44] ss:$8 sps:$4 sm:$0xff]  }
  0x1e   : > { %939 = vmatpush1.bf16.msra.mxu0 %v1833_v4  ;;  %1791 = vmatpush1.bf16.msra.mxu1 %v1833_v4  ;;  %332 = vst.msk [vmem:[#allocation2 + $0x140] sm:$0xff] %vm291_vm0, %v1967_v19  ;;  %333 = vst.msk [vmem:[#allocation2 + $0x148] sm:$0xff] %vm291_vm0, %v1967_v19  ;;  %v1869_v33 = vld [vmem:[%s2033_s23 + $0x130] ss:$8 sps:$4 sm:$0xff]   ;;  %v1872_v35 = vld [vmem:[%s2033_s23 + $0x144] ss:$8 sps:$4 sm:$0xff]  }
  0x1f   : > { %940 = vmatprep.subr.bf16.mxu0 %v1966_v0  ;;  %1776 = vmatprep.subr.bf16.mxu1 %v1966_v0  ;;  %334 = vst.msk [vmem:[#allocation2 + $0x150] sm:$0xff] %vm291_vm0, %v1967_v19  ;;  %335 = vst.msk [vmem:[#allocation2 + $0x158] sm:$0xff] %vm291_vm0, %v1967_v19  ;;  %v1874_v36 = vld [vmem:[%s2033_s23 + $0x40] ss:$8 sps:$4 sm:$0xff]   ;;  %v1876_v38 = vld [vmem:[%s2033_s23 + $0x54] ss:$8 sps:$4 sm:$0xff]  }
  0x20   : > { %336 = vst.msk [vmem:[#allocation2 + $0x160] sm:$0xff] %vm291_vm0, %v1967_v19  ;;  %337 = vst.msk [vmem:[#allocation2 + $0x168] sm:$0xff] %vm291_vm0, %v1967_v19  ;;  %v1875_v37 = vld [vmem:[%s2033_s23 + $0x140] ss:$8 sps:$4 sm:$0xff]   ;;  %v1878_v39 = vld [vmem:[%s2033_s23 + $0x154] ss:$8 sps:$4 sm:$0xff]  }
  0x21   : > { %338 = vst.msk [vmem:[#allocation2 + $0x170] sm:$0xff] %vm291_vm0, %v1967_v19  ;;  %339 = vst.msk [vmem:[#allocation2 + $0x178] sm:$0xff] %vm291_vm0, %v1967_v19  ;;  %v1880_v40 = vld [vmem:[%s2033_s23 + $0x50] ss:$8 sps:$4 sm:$0xff]   ;;  %v1882_v42 = vld [vmem:[%s2033_s23 + $0x64] ss:$8 sps:$4 sm:$0xff]  }
  0x22   : > { %941 = vmatpush1.bf16.msra.mxu0 %v1834_v5  ;;  %1792 = vmatpush1.bf16.msra.mxu1 %v1834_v5  ;;  %340 = vst.msk [vmem:[#allocation2 + $0x180] sm:$0xff] %vm291_vm0, %v1967_v19  ;;  %341 = vst.msk [vmem:[#allocation2 + $0x188] sm:$0xff] %vm291_vm0, %v1967_v19  ;;  %v1881_v41 = vld [vmem:[%s2033_s23 + $0x150] ss:$8 sps:$4 sm:$0xff]   ;;  %v1884_v43 = vld [vmem:[%s2033_s23 + $0x164] ss:$8 sps:$4 sm:$0xff]  }
  0x23   : > { %942 = vmatprep.subr.bf16.mxu0 %v1966_v0  ;;  %1777 = vmatprep.subr.bf16.mxu1 %v1966_v0  ;;  %342 = vst.msk [vmem:[#allocation2 + $0x190] sm:$0xff] %vm291_vm0, %v1967_v19  ;;  %343 = vst.msk [vmem:[#allocation2 + $0x198] sm:$0xff] %vm291_vm0, %v1967_v19  ;;  %v1886_v44 = vld [vmem:[%s2033_s23 + $0x60] ss:$8 sps:$4 sm:$0xff]   ;;  %v1888_v46 = vld [vmem:[%s2033_s23 + $0x74] ss:$8 sps:$4 sm:$0xff]  }
  0x24   : > { %344 = vst.msk [vmem:[#allocation2 + $0x1a0] sm:$0xff] %vm291_vm0, %v1967_v19  ;;  %345 = vst.msk [vmem:[#allocation2 + $0x1a8] sm:$0xff] %vm291_vm0, %v1967_v19  ;;  %v1887_v45 = vld [vmem:[%s2033_s23 + $0x160] ss:$8 sps:$4 sm:$0xff]   ;;  %v1890_v47 = vld [vmem:[%s2033_s23 + $0x174] ss:$8 sps:$4 sm:$0xff]  }
  0x25   : > { %346 = vst.msk [vmem:[#allocation2 + $0x1b0] sm:$0xff] %vm291_vm0, %v1967_v19  ;;  %347 = vst.msk [vmem:[#allocation2 + $0x1b8] sm:$0xff] %vm291_vm0, %v1967_v19  ;;  %v1892_v48 = vld [vmem:[%s2033_s23 + $0x70] ss:$8 sps:$4 sm:$0xff]   ;;  %v1894_v50 = vld [vmem:[%s2033_s23 + $0x84] ss:$8 sps:$4 sm:$0xff]  }
  0x26   : > { %943 = vmatpush1.bf16.msra.mxu0 %v1835_v7  ;;  %1793 = vmatpush1.bf16.msra.mxu1 %v1835_v7  ;;  %348 = vst.msk [vmem:[#allocation2 + $0x1c0] sm:$0xff] %vm291_vm0, %v1967_v19  ;;  %349 = vst.msk [vmem:[#allocation2 + $0x1c8] sm:$0xff] %vm291_vm0, %v1967_v19  ;;  %v1893_v49 = vld [vmem:[%s2033_s23 + $0x170] ss:$8 sps:$4 sm:$0xff]   ;;  %v1896_v51 = vld [vmem:[%s2033_s23 + $0x184] ss:$8 sps:$4 sm:$0xff]  }
  0x27   : > { %944 = vmatprep.subr.bf16.mxu0 %v1966_v0  ;;  %1778 = vmatprep.subr.bf16.mxu1 %v1966_v0  ;;  %350 = vst.msk [vmem:[#allocation2 + $0x1d0] sm:$0xff] %vm291_vm0, %v1967_v19  ;;  %351 = vst.msk [vmem:[#allocation2 + $0x1d8] sm:$0xff] %vm291_vm0, %v1967_v19  ;;  %v1898_v52 = vld [vmem:[%s2033_s23 + $0x80] ss:$8 sps:$4 sm:$0xff]   ;;  %v1900_v54 = vld [vmem:[%s2033_s23 + $0x94] ss:$8 sps:$4 sm:$0xff]  }
  0x28   : > { %352 = vst.msk [vmem:[#allocation2 + $0x1e0] sm:$0xff] %vm291_vm0, %v1967_v19  ;;  %353 = vst.msk [vmem:[#allocation2 + $0x1e8] sm:$0xff] %vm291_vm0, %v1967_v19  ;;  %v1899_v53 = vld [vmem:[%s2033_s23 + $0x180] ss:$8 sps:$4 sm:$0xff]   ;;  %v1902_v55 = vld [vmem:[%s2033_s23 + $0x194] ss:$8 sps:$4 sm:$0xff]  }
  0x29   : > { %354 = vst.msk [vmem:[#allocation2 + $0x1f0] sm:$0xff] %vm291_vm0, %v1967_v19  ;;  %355 = vst.msk [vmem:[#allocation2 + $0x1f8] sm:$0xff] %vm291_vm0, %v1967_v19  ;;  %v1904_v56 = vld [vmem:[%s2033_s23 + $0x90] ss:$8 sps:$4 sm:$0xff]   ;;  %v1906_v58 = vld [vmem:[%s2033_s23 + $0xa4] ss:$8 sps:$4 sm:$0xff]  }
  0x2a   : > { %945 = vmatpush1.bf16.msra.mxu0 %v1836_v9  ;;  %1794 = vmatpush1.bf16.msra.mxu1 %v1836_v9  ;;  %v1905_v57 = vld [vmem:[%s2033_s23 + $0x190] ss:$8 sps:$4 sm:$0xff]   ;;  %v1908_v59 = vld [vmem:[%s2033_s23 + $0x1a4] ss:$8 sps:$4 sm:$0xff]   ;;  %v1910_v60 = vld [vmem:[%s2033_s23 + $0xa0] ss:$8 sps:$4 sm:$0xff]  }
  0x2b   : > { %946 = vmatprep.subr.bf16.mxu0 %v1966_v0  ;;  %1779 = vmatprep.subr.bf16.mxu1 %v1966_v0  ;;  %v1911_v61 = vld [vmem:[%s2033_s23 + $0x1a0] ss:$8 sps:$4 sm:$0xff]   ;;  %v1912_v62 = vld [vmem:[%s2033_s23 + $0xb4] ss:$8 sps:$4 sm:$0xff]   ;;  %v1917_v1 = vld [vmem:[%s2033_s23 + $0x1b0] ss:$8 sps:$4 sm:$0xff]  }
  0x2c   : > { %v1914_v63 = vld [vmem:[%s2033_s23 + $0x1b4] ss:$8 sps:$4 sm:$0xff]   ;;  %v1918_v2 = vld [vmem:[%s2033_s23 + $0xc4] ss:$8 sps:$4 sm:$0xff]   ;;  %v1922_v4 = vld [vmem:[%s2033_s23 + $0xc0] ss:$8 sps:$4 sm:$0xff]  }
  0x2d   : > { %v1920_v3 = vld [vmem:[%s2033_s23 + $0x1c4] ss:$8 sps:$4 sm:$0xff]   ;;  %v1923_v5 = vld [vmem:[%s2033_s23 + $0x1c0] ss:$8 sps:$4 sm:$0xff]   ;;  %v1924_v6 = vld [vmem:[%s2033_s23 + $0xd4] ss:$8 sps:$4 sm:$0xff]  }
  0x2e   : > { %947 = vmatpush1.bf16.msra.mxu0 %v1837_v10  ;;  %1795 = vmatpush1.bf16.msra.mxu1 %v1837_v10  ;;  %v1926_v7 = vld [vmem:[%s2033_s23 + $0x1d4] ss:$8 sps:$4 sm:$0xff]   ;;  %v1928_v8 = vld [vmem:[%s2033_s23 + $0xd0] ss:$8 sps:$4 sm:$0xff]   ;;  %v1930_v10 = vld [vmem:[%s2033_s23 + $0xe4] ss:$8 sps:$4 sm:$0xff]  }
  0x2f   : > { %948 = vmatprep.subr.bf16.mxu0 %v1966_v0  ;;  %1780 = vmatprep.subr.bf16.mxu1 %v1966_v0  ;;  %v1929_v9 = vld [vmem:[%s2033_s23 + $0x1d0] ss:$8 sps:$4 sm:$0xff]   ;;  %v388_v19 = vld [vmem:[#allocation2 + $0x100] sm:$0xff] }
  0x32   : > { %949 = vmatpush1.bf16.msra.mxu0 %v1838_v11  ;;  %1796 = vmatpush1.bf16.msra.mxu1 %v1838_v11  ;;  %v1932_v11 = vld [vmem:[%s2033_s23 + $0x1e4] ss:$8 sps:$4 sm:$0xff]  }
  0x33   : > { %950 = vmatprep.subr.bf16.mxu0 %v1966_v0  ;;  %1781 = vmatprep.subr.bf16.mxu1 %v1966_v0 }
  0x36   : > { %951 = vmatpush1.bf16.msra.mxu0 %v1839_v12  ;;  %1797 = vmatpush1.bf16.msra.mxu1 %v1839_v12  ;;  %v1934_v12 = vld [vmem:[%s2033_s23 + $0xe0] ss:$8 sps:$4 sm:$0xff]  }
  0x37   : > { %952 = vmatprep.subr.bf16.mxu0 %v1966_v0  ;;  %1782 = vmatprep.subr.bf16.mxu1 %v1966_v0 }
  0x3a   : > { %953 = vmatpush1.bf16.msra.mxu0 %v1840_v13  ;;  %1798 = vmatpush1.bf16.msra.mxu1 %v1840_v13  ;;  %v1935_v13 = vld [vmem:[%s2033_s23 + $0x1e0] ss:$8 sps:$4 sm:$0xff]  }
  0x3b   : > { %954 = vmatprep.subr.bf16.mxu0 %v1966_v0  ;;  %1783 = vmatprep.subr.bf16.mxu1 %v1966_v0 }
  0x3e   : > { %955 = vmatpush1.bf16.msra.mxu0 %v1841_v14  ;;  %1799 = vmatpush1.bf16.msra.mxu1 %v1841_v14  ;;  %v1936_v14 = vld [vmem:[%s2033_s23 + $0xf4] ss:$8 sps:$4 sm:$0xff]  }
  0x3f   : > { %956 = vmatprep.subr.bf16.mxu0 %v1966_v0  ;;  %1784 = vmatprep.subr.bf16.mxu1 %v1966_v0 }
  0x42   : > { %957 = vmatpush1.bf16.msra.mxu0 %v1842_v15  ;;  %1800 = vmatpush1.bf16.msra.mxu1 %v1842_v15  ;;  %v1938_v15 = vld [vmem:[%s2033_s23 + $0x1f4] ss:$8 sps:$4 sm:$0xff]  }
  0x43   : > { %958 = vmatprep.subr.bf16.mxu0 %v1966_v0  ;;  %1785 = vmatprep.subr.bf16.mxu1 %v1966_v0 }
  0x46   : > { %959 = vmatpush1.bf16.msra.mxu0 %v1843_v16  ;;  %1801 = vmatpush1.bf16.msra.mxu1 %v1843_v16  ;;  %v1940_v16 = vld [vmem:[%s2033_s23 + $0xf0] ss:$8 sps:$4 sm:$0xff]  }
  0x47   : > { %960 = vmatprep.subr.bf16.mxu0 %v1966_v0  ;;  %1786 = vmatprep.subr.bf16.mxu1 %v1966_v0 }
  0x4a   : > { %961 = vmatpush1.bf16.msra.mxu0 %v1844_v17  ;;  %1802 = vmatpush1.bf16.msra.mxu1 %v1844_v17  ;;  %v1941_v17 = vld [vmem:[%s2033_s23 + $0x1f0] ss:$8 sps:$4 sm:$0xff]  }
  0x4b   : > { %962 = vmatprep.subr.bf16.mxu0 %v1966_v0  ;;  %1787 = vmatprep.subr.bf16.mxu1 %v1966_v0  ;;  %v1916_v0 = vld [vmem:[%s2033_s23 + $0xb0] ss:$8 sps:$4 sm:$0xff]  }
  0x4e   : > { %963 = vmatpush1.bf16.msra.mxu0 %v2070_v18  ;;  %1803 = vmatpush1.bf16.msra.mxu1 %v2070_v18  ;;  %v356_v18 = vld [vmem:[#allocation2] sm:$0xff] }
  0x51   : > { %965 = vmatmul.mubr.bf16.vlgmr.msra.gmra.mrb[0].mxu0 %v1846_v20  ;;  %1093 = vmatmul.mubr.bf16.vlgmr.msra.gmra.mrb[0].mxu1 %v1849_v21 }
  0x52   : > { %972 = vmatprep.mubr.bf16.mxu0 %v1852_v22  ;;  %1100 = vmatprep.mubr.bf16.mxu1 %v1854_v23  ;;  %v357_v22 = vld [vmem:[#allocation2 + $0x8] sm:$0xff] }
  0x53   : > { %v389_v23 = vld [vmem:[#allocation2 + $0x108] sm:$0xff] }
  0x59   : > { %973 = vmatmul.mubr.bf16.gmra.mrb[4].mxu0 %v1856_v24  ;;  %1101 = vmatmul.mubr.bf16.gmra.mrb[4].mxu1 %v1857_v25 }
  0x5a   : > { %980 = vmatprep.mubr.bf16.mxu0 %v1858_v26  ;;  %1108 = vmatprep.mubr.bf16.mxu1 %v1860_v27 }
  0x61   : > { %981 = vmatmul.mubr.bf16.gmra.mrb[8].mxu0 %v1862_v28  ;;  %1109 = vmatmul.mubr.bf16.gmra.mrb[8].mxu1 %v1863_v29 }
  0x62   : > { %988 = vmatprep.mubr.bf16.mxu0 %v1864_v30  ;;  %1116 = vmatprep.mubr.bf16.mxu1 %v1866_v31 }
  0x69   : > { %989 = vmatmul.mubr.bf16.gmra.mrb[12].mxu0 %v1868_v32  ;;  %1117 = vmatmul.mubr.bf16.gmra.mrb[12].mxu1 %v1869_v33 }
  0x6a   : > { %996 = vmatprep.mubr.bf16.mxu0 %v1870_v34  ;;  %1124 = vmatprep.mubr.bf16.mxu1 %v1872_v35  ;;  %v358_v34 = vld [vmem:[#allocation2 + $0x10] sm:$0xff] }
  0x6b   : > { %v390_v35 = vld [vmem:[#allocation2 + $0x110] sm:$0xff] }
  0x71   : > { %997 = vmatmul.mubr.bf16.gmra.mrb[16].mxu0 %v1874_v36  ;;  %1125 = vmatmul.mubr.bf16.gmra.mrb[16].mxu1 %v1875_v37  ;;  %v2274_v36 = vld [vmem:[%s275_s26] ss:$0 sm:$0xff] }
  0x72   : > { %1004 = vmatprep.mubr.bf16.mxu0 %v1876_v38  ;;  %1132 = vmatprep.mubr.bf16.mxu1 %v1878_v39  ;;  %v359_v39 = vld [vmem:[#allocation2 + $0x18] sm:$0xff] }
  0x79   : > { %1005 = vmatmul.mubr.bf16.gmra.mrb[20].mxu0 %v1880_v40  ;;  %1133 = vmatmul.mubr.bf16.gmra.mrb[20].mxu1 %v1881_v41  ;;  %v391_v40 = vld [vmem:[#allocation2 + $0x118] sm:$0xff] }
  0x7a   : > { %1012 = vmatprep.mubr.bf16.mxu0 %v1882_v42  ;;  %1140 = vmatprep.mubr.bf16.mxu1 %v1884_v43 }
  0x81   : > { %1013 = vmatmul.mubr.bf16.gmra.mrb[24].mxu0 %v1886_v44  ;;  %1141 = vmatmul.mubr.bf16.gmra.mrb[24].mxu1 %v1887_v45 }
  0x82   : > { %1020 = vmatprep.mubr.bf16.mxu0 %v1888_v46  ;;  %1148 = vmatprep.mubr.bf16.mxu1 %v1890_v47 }
  0x89   : > { %1021 = vmatmul.mubr.bf16.gmra.mrb[28].mxu0 %v1892_v48  ;;  %1149 = vmatmul.mubr.bf16.gmra.mrb[28].mxu1 %v1893_v49 }
  0x8a   : > { %1028 = vmatprep.mubr.bf16.mxu0 %v1894_v50  ;;  %1156 = vmatprep.mubr.bf16.mxu1 %v1896_v51 }
  0x91   : > { %1029 = vmatmul.mubr.bf16.gmra.mrb[32].mxu0 %v1898_v52  ;;  %1157 = vmatmul.mubr.bf16.gmra.mrb[32].mxu1 %v1899_v53 }
  0x92   : > { %1036 = vmatprep.mubr.bf16.mxu0 %v1900_v54  ;;  %1164 = vmatprep.mubr.bf16.mxu1 %v1902_v55 }
  0x99   : > { %1037 = vmatmul.mubr.bf16.gmra.mrb[36].mxu0 %v1904_v56  ;;  %1165 = vmatmul.mubr.bf16.gmra.mrb[36].mxu1 %v1905_v57 }
  0x9a   : > { %1044 = vmatprep.mubr.bf16.mxu0 %v1906_v58  ;;  %1172 = vmatprep.mubr.bf16.mxu1 %v1908_v59  ;;  %v360_v59 = vld [vmem:[#allocation2 + $0x20] sm:$0xff] }
  0xa1   : > { %1045 = vmatmul.mubr.bf16.gmra.mrb[40].mxu0 %v1910_v60  ;;  %1173 = vmatmul.mubr.bf16.gmra.mrb[40].mxu1 %v1911_v61  ;;  %v392_v60 = vld [vmem:[#allocation2 + $0x120] sm:$0xff] }
  0xa2   : > { %1052 = vmatprep.mubr.bf16.mxu0 %v1912_v62  ;;  %1180 = vmatprep.mubr.bf16.mxu1 %v1914_v63  ;;  %v361_v63 = vld [vmem:[#allocation2 + $0x28] sm:$0xff] }
  0xa9   : > { %1053 = vmatmul.mubr.bf16.gmra.mrb[44].mxu0 %v1916_v0  ;;  %1181 = vmatmul.mubr.bf16.gmra.mrb[44].mxu1 %v1917_v1  ;;  %v393_v0 = vld [vmem:[#allocation2 + $0x128] sm:$0xff] }
  0xaa   : > { %1060 = vmatprep.mubr.bf16.mxu0 %v1918_v2  ;;  %1188 = vmatprep.mubr.bf16.mxu1 %v1920_v3 }
  0xb1   : > { %1061 = vmatmul.mubr.bf16.gmra.mrb[48].mxu0 %v1922_v4  ;;  %1189 = vmatmul.mubr.bf16.gmra.mrb[48].mxu1 %v1923_v5 }
  0xb2   : > { %1068 = vmatprep.mubr.bf16.mxu0 %v1924_v6  ;;  %1196 = vmatprep.mubr.bf16.mxu1 %v1926_v7 }
  0xb9   : > { %1069 = vmatmul.mubr.bf16.gmra.mrb[52].mxu0 %v1928_v8  ;;  %1197 = vmatmul.mubr.bf16.gmra.mrb[52].mxu1 %v1929_v9 }
  0xba   : > { %1076 = vmatprep.mubr.bf16.mxu0 %v1930_v10  ;;  %1204 = vmatprep.mubr.bf16.mxu1 %v1932_v11 }
  0xc1   : > { %1077 = vmatmul.mubr.bf16.gmra.mrb[56].mxu0 %v1934_v12  ;;  %1205 = vmatmul.mubr.bf16.gmra.mrb[56].mxu1 %v1935_v13 }
  0xc2   : > { %1084 = vmatprep.mubr.bf16.mxu0 %v1936_v14  ;;  %1212 = vmatprep.mubr.bf16.mxu1 %v1938_v15 }
  0xc9   : > { %1085 = vmatmul.mubr.bf16.gmra.mrb[60].mxu0 %v1940_v16  ;;  %1213 = vmatmul.mubr.bf16.gmra.mrb[60].mxu1 %v1941_v17 }
 0x124   : > { %v966_v20 = vpop.f32.mrb[0].mxu0  ;;  %v1094_v21 = vpop.f32.mrb[0].mxu1 }
 0x125   : > { %v1221_v24 = vadd.f32 %v966_v20, %v356_v18  ;;  %v1253_v25 = vadd.f32 %v1094_v21, %v388_v19  ;;  %v968_v26 = vpop.f32.mrb[1].mxu0  ;;  %v1096_v27 = vpop.f32.mrb[1].mxu1  ;;  %v362_v19 = vld [vmem:[#allocation2 + $0x30] sm:$0xff] }
 0x126   : > { %v969_v28 = vpop.f32.mrb[2].mxu0  ;;  %v1097_v29 = vpop.f32.mrb[2].mxu1  ;;  %v394_v20 = vld [vmem:[#allocation2 + $0x130] sm:$0xff] }
 0x127   : > { %1286 = vst.msk [vmem:[#allocation2] sm:$0xff] %vm291_vm0, %v1221_v24  ;;  %1318 = vst.msk [vmem:[#allocation2 + $0x100] sm:$0xff] %vm291_vm0, %v1253_v25  ;;  %v1222_v30 = vadd.f32 %v969_v28, %v357_v22  ;;  %v1254_v31 = vadd.f32 %v1097_v29, %v389_v23  ;;  %v971_v32 = vpop.f32.mrb[3].mxu0  ;;  %v1099_v33 = vpop.f32.mrb[3].mxu1  ;;  %v363_v23 = vld [vmem:[#allocation2 + $0x38] sm:$0xff] }
 0x128   : > { %v395_v24 = vld [vmem:[#allocation2 + $0x138] sm:$0xff] }
 0x129   : > { %1287 = vst.msk [vmem:[#allocation2 + $0x8] sm:$0xff] %vm291_vm0, %v1222_v30  ;;  %1319 = vst.msk [vmem:[#allocation2 + $0x108] sm:$0xff] %vm291_vm0, %v1254_v31 }
 0x12c   : > { %v974_v37 = vpop.f32.mrb[4].mxu0  ;;  %v1102_v38 = vpop.f32.mrb[4].mxu1 }
 0x12d   : > { %v1223_v41 = vadd.f32 %v974_v37, %v358_v34  ;;  %v1255_v42 = vadd.f32 %v1102_v38, %v390_v35  ;;  %v976_v43 = vpop.f32.mrb[5].mxu0  ;;  %v1104_v44 = vpop.f32.mrb[5].mxu1 }
 0x12e   : > { %v1353_v45 = vld [vmem:[#allocation2] sm:$0xff]  ;;  %v977_v47 = vpop.f32.mrb[6].mxu0  ;;  %v1105_v48 = vpop.f32.mrb[6].mxu1 }
 0x12f   : > { %v1385_v46 = vld [vmem:[#allocation2 + $0x100] sm:$0xff]  ;;  %v1424_v49 = vadd.f32 %v2274_v36, %v1353_v45  ;;  %1288 = vst.msk [vmem:[#allocation2 + $0x10] sm:$0xff] %vm291_vm0, %v1223_v41  ;;  %1320 = vst.msk [vmem:[#allocation2 + $0x110] sm:$0xff] %vm291_vm0, %v1255_v42  ;;  %v1224_v51 = vadd.f32 %v977_v47, %v359_v39  ;;  %v1256_v52 = vadd.f32 %v1105_v48, %v391_v40  ;;  %v979_v53 = vpop.f32.mrb[7].mxu0  ;;  %v1107_v54 = vpop.f32.mrb[7].mxu1  ;;  %v365_v48 = vld [vmem:[#allocation2 + $0x48] sm:$0xff] }
 0x130   : > { %v1456_v50 = vadd.f32 %v2274_v36, %v1385_v46  ;;  %v1354_v55 = vld [vmem:[#allocation2 + $0x8] sm:$0xff]  ;;  %v364_v44 = vld [vmem:[#allocation2 + $0x40] sm:$0xff] }
 0x131   : > { %v1386_v56 = vld [vmem:[#allocation2 + $0x108] sm:$0xff]  ;;  %1488 = vst.msk [vmem:[%s2281_s29] sm:$0xff] %vm291_vm0, %v1424_v49  ;;  %v1425_v57 = vadd.f32 %v2274_v36, %v1354_v55  ;;  %1289 = vst.msk [vmem:[#allocation2 + $0x18] sm:$0xff] %vm291_vm0, %v1224_v51  ;;  %v396_v45 = vld [vmem:[#allocation2 + $0x140] sm:$0xff] }
 0x132   : > { %1520 = vst.msk [vmem:[%s2281_s29 + $0x100] sm:$0xff] %vm291_vm0, %v1456_v50  ;;  %v1457_v58 = vadd.f32 %v2274_v36, %v1386_v56  ;;  %1321 = vst.msk [vmem:[#allocation2 + $0x118] sm:$0xff] %vm291_vm0, %v1256_v52  ;;  %v397_v49 = vld [vmem:[#allocation2 + $0x148] sm:$0xff] }
 0x133   : > { %1489 = vst.msk [vmem:[%s2281_s29 + $0x8] sm:$0xff] %vm291_vm0, %v1425_v57 }
 0x134   : > { %1521 = vst.msk [vmem:[%s2281_s29 + $0x108] sm:$0xff] %vm291_vm0, %v1457_v58  ;;  %v982_v61 = vpop.f32.mrb[8].mxu0  ;;  %v1110_v62 = vpop.f32.mrb[8].mxu1 }
 0x135   : > { %v1225_v1 = vadd.f32 %v982_v61, %v360_v59  ;;  %v1257_v2 = vadd.f32 %v1110_v62, %v392_v60  ;;  %v984_v3 = vpop.f32.mrb[9].mxu0  ;;  %v1112_v4 = vpop.f32.mrb[9].mxu1 }
 0x136   : > { %v1355_v5 = vld [vmem:[#allocation2 + $0x10] sm:$0xff]  ;;  %v985_v7 = vpop.f32.mrb[10].mxu0  ;;  %v1113_v8 = vpop.f32.mrb[10].mxu1 }
 0x137   : > { %v1387_v6 = vld [vmem:[#allocation2 + $0x110] sm:$0xff]  ;;  %v1426_v9 = vadd.f32 %v2274_v36, %v1355_v5  ;;  %1290 = vst.msk [vmem:[#allocation2 + $0x20] sm:$0xff] %vm291_vm0, %v1225_v1  ;;  %1322 = vst.msk [vmem:[#allocation2 + $0x120] sm:$0xff] %vm291_vm0, %v1257_v2  ;;  %v1226_v11 = vadd.f32 %v985_v7, %v361_v63  ;;  %v1258_v12 = vadd.f32 %v1113_v8, %v393_v0  ;;  %v987_v13 = vpop.f32.mrb[11].mxu0  ;;  %v1115_v14 = vpop.f32.mrb[11].mxu1  ;;  %v367_v8 = vld [vmem:[#allocation2 + $0x58] sm:$0xff] }
 0x138   : > { %v1458_v10 = vadd.f32 %v2274_v36, %v1387_v6  ;;  %v1356_v15 = vld [vmem:[#allocation2 + $0x18] sm:$0xff]  ;;  %v366_v4 = vld [vmem:[#allocation2 + $0x50] sm:$0xff] }
 0x139   : > { %v1388_v16 = vld [vmem:[#allocation2 + $0x118] sm:$0xff]  ;;  %1490 = vst.msk [vmem:[%s2281_s29 + $0x10] sm:$0xff] %vm291_vm0, %v1426_v9  ;;  %v1427_v17 = vadd.f32 %v2274_v36, %v1356_v15  ;;  %1291 = vst.msk [vmem:[#allocation2 + $0x28] sm:$0xff] %vm291_vm0, %v1226_v11  ;;  %v398_v5 = vld [vmem:[#allocation2 + $0x150] sm:$0xff] }
 0x13a   : > { %1522 = vst.msk [vmem:[%s2281_s29 + $0x110] sm:$0xff] %vm291_vm0, %v1458_v10  ;;  %v1459_v18 = vadd.f32 %v2274_v36, %v1388_v16  ;;  %1323 = vst.msk [vmem:[#allocation2 + $0x128] sm:$0xff] %vm291_vm0, %v1258_v12  ;;  %v399_v9 = vld [vmem:[#allocation2 + $0x158] sm:$0xff] }
 0x13b   : > { %1491 = vst.msk [vmem:[%s2281_s29 + $0x18] sm:$0xff] %vm291_vm0, %v1427_v17 }
 0x13c   : > { %1523 = vst.msk [vmem:[%s2281_s29 + $0x118] sm:$0xff] %vm291_vm0, %v1459_v18  ;;  %v990_v21 = vpop.f32.mrb[12].mxu0  ;;  %v1118_v22 = vpop.f32.mrb[12].mxu1 }
 0x13d   : > { %v1227_v25 = vadd.f32 %v990_v21, %v362_v19  ;;  %v1259_v26 = vadd.f32 %v1118_v22, %v394_v20  ;;  %v992_v27 = vpop.f32.mrb[13].mxu0  ;;  %v1120_v28 = vpop.f32.mrb[13].mxu1 }
 0x13e   : > { %v1357_v29 = vld [vmem:[#allocation2 + $0x20] sm:$0xff]  ;;  %v993_v31 = vpop.f32.mrb[14].mxu0  ;;  %v1121_v32 = vpop.f32.mrb[14].mxu1 }
 0x13f   : > { %v1389_v30 = vld [vmem:[#allocation2 + $0x120] sm:$0xff]  ;;  %v1428_v33 = vadd.f32 %v2274_v36, %v1357_v29  ;;  %1292 = vst.msk [vmem:[#allocation2 + $0x30] sm:$0xff] %vm291_vm0, %v1227_v25  ;;  %1324 = vst.msk [vmem:[#allocation2 + $0x130] sm:$0xff] %vm291_vm0, %v1259_v26  ;;  %v1228_v35 = vadd.f32 %v993_v31, %v363_v23  ;;  %v1260_v37 = vadd.f32 %v1121_v32, %v395_v24  ;;  %v995_v38 = vpop.f32.mrb[15].mxu0  ;;  %v1123_v39 = vpop.f32.mrb[15].mxu1  ;;  %v369_v32 = vld [vmem:[#allocation2 + $0x68] sm:$0xff] }
 0x140   : > { %v1460_v34 = vadd.f32 %v2274_v36, %v1389_v30  ;;  %v1358_v40 = vld [vmem:[#allocation2 + $0x28] sm:$0xff]  ;;  %v368_v28 = vld [vmem:[#allocation2 + $0x60] sm:$0xff] }
 0x141   : > { %v1390_v41 = vld [vmem:[#allocation2 + $0x128] sm:$0xff]  ;;  %1492 = vst.msk [vmem:[%s2281_s29 + $0x20] sm:$0xff] %vm291_vm0, %v1428_v33  ;;  %v1429_v42 = vadd.f32 %v2274_v36, %v1358_v40  ;;  %1293 = vst.msk [vmem:[#allocation2 + $0x38] sm:$0xff] %vm291_vm0, %v1228_v35  ;;  %v400_v29 = vld [vmem:[#allocation2 + $0x160] sm:$0xff] }
 0x142   : > { %1524 = vst.msk [vmem:[%s2281_s29 + $0x120] sm:$0xff] %vm291_vm0, %v1460_v34  ;;  %v1461_v43 = vadd.f32 %v2274_v36, %v1390_v41  ;;  %1325 = vst.msk [vmem:[#allocation2 + $0x138] sm:$0xff] %vm291_vm0, %v1260_v37  ;;  %v401_v33 = vld [vmem:[#allocation2 + $0x168] sm:$0xff] }
 0x143   : > { %1493 = vst.msk [vmem:[%s2281_s29 + $0x28] sm:$0xff] %vm291_vm0, %v1429_v42 }
 0x144   : > { %1525 = vst.msk [vmem:[%s2281_s29 + $0x128] sm:$0xff] %vm291_vm0, %v1461_v43  ;;  %v998_v46 = vpop.f32.mrb[16].mxu0  ;;  %v1126_v47 = vpop.f32.mrb[16].mxu1 }
 0x145   : > { %v1229_v50 = vadd.f32 %v998_v46, %v364_v44  ;;  %v1261_v51 = vadd.f32 %v1126_v47, %v396_v45  ;;  %v1000_v52 = vpop.f32.mrb[17].mxu0  ;;  %v1128_v53 = vpop.f32.mrb[17].mxu1 }
 0x146   : > { %v1359_v54 = vld [vmem:[#allocation2 + $0x30] sm:$0xff]  ;;  %v1001_v56 = vpop.f32.mrb[18].mxu0  ;;  %v1129_v57 = vpop.f32.mrb[18].mxu1 }
 0x147   : > { %v1391_v55 = vld [vmem:[#allocation2 + $0x130] sm:$0xff]  ;;  %v1430_v58 = vadd.f32 %v2274_v36, %v1359_v54  ;;  %1294 = vst.msk [vmem:[#allocation2 + $0x40] sm:$0xff] %vm291_vm0, %v1229_v50  ;;  %1326 = vst.msk [vmem:[#allocation2 + $0x140] sm:$0xff] %vm291_vm0, %v1261_v51  ;;  %v1230_v60 = vadd.f32 %v1001_v56, %v365_v48  ;;  %v1262_v61 = vadd.f32 %v1129_v57, %v397_v49  ;;  %v1003_v62 = vpop.f32.mrb[19].mxu0  ;;  %v1131_v63 = vpop.f32.mrb[19].mxu1  ;;  %v371_v57 = vld [vmem:[#allocation2 + $0x78] sm:$0xff] }
 0x148   : > { %v1462_v59 = vadd.f32 %v2274_v36, %v1391_v55  ;;  %v1360_v0 = vld [vmem:[#allocation2 + $0x38] sm:$0xff]  ;;  %v370_v53 = vld [vmem:[#allocation2 + $0x70] sm:$0xff] }
 0x149   : > { %v1392_v1 = vld [vmem:[#allocation2 + $0x138] sm:$0xff]  ;;  %1494 = vst.msk [vmem:[%s2281_s29 + $0x30] sm:$0xff] %vm291_vm0, %v1430_v58  ;;  %v1431_v2 = vadd.f32 %v2274_v36, %v1360_v0  ;;  %1295 = vst.msk [vmem:[#allocation2 + $0x48] sm:$0xff] %vm291_vm0, %v1230_v60  ;;  %v402_v54 = vld [vmem:[#allocation2 + $0x170] sm:$0xff] }
 0x14a   : > { %1526 = vst.msk [vmem:[%s2281_s29 + $0x130] sm:$0xff] %vm291_vm0, %v1462_v59  ;;  %v1463_v3 = vadd.f32 %v2274_v36, %v1392_v1  ;;  %1327 = vst.msk [vmem:[#allocation2 + $0x148] sm:$0xff] %vm291_vm0, %v1262_v61  ;;  %v403_v58 = vld [vmem:[#allocation2 + $0x178] sm:$0xff] }
 0x14b   : > { %1495 = vst.msk [vmem:[%s2281_s29 + $0x38] sm:$0xff] %vm291_vm0, %v1431_v2 }
 0x14c   : > { %1527 = vst.msk [vmem:[%s2281_s29 + $0x138] sm:$0xff] %vm291_vm0, %v1463_v3  ;;  %v1006_v6 = vpop.f32.mrb[20].mxu0  ;;  %v1134_v7 = vpop.f32.mrb[20].mxu1 }
 0x14d   : > { %v1231_v10 = vadd.f32 %v1006_v6, %v366_v4  ;;  %v1263_v11 = vadd.f32 %v1134_v7, %v398_v5  ;;  %v1008_v12 = vpop.f32.mrb[21].mxu0  ;;  %v1136_v13 = vpop.f32.mrb[21].mxu1 }
 0x14e   : > { %v1361_v14 = vld [vmem:[#allocation2 + $0x40] sm:$0xff]  ;;  %v1009_v16 = vpop.f32.mrb[22].mxu0  ;;  %v1137_v17 = vpop.f32.mrb[22].mxu1 }
 0x14f   : > { %v1393_v15 = vld [vmem:[#allocation2 + $0x140] sm:$0xff]  ;;  %v1432_v18 = vadd.f32 %v2274_v36, %v1361_v14  ;;  %1296 = vst.msk [vmem:[#allocation2 + $0x50] sm:$0xff] %vm291_vm0, %v1231_v10  ;;  %1328 = vst.msk [vmem:[#allocation2 + $0x150] sm:$0xff] %vm291_vm0, %v1263_v11  ;;  %v1232_v20 = vadd.f32 %v1009_v16, %v367_v8  ;;  %v1264_v21 = vadd.f32 %v1137_v17, %v399_v9  ;;  %v1011_v22 = vpop.f32.mrb[23].mxu0  ;;  %v1139_v23 = vpop.f32.mrb[23].mxu1  ;;  %v373_v17 = vld [vmem:[#allocation2 + $0x88] sm:$0xff] }
 0x150   : > { %v1464_v19 = vadd.f32 %v2274_v36, %v1393_v15  ;;  %v1362_v24 = vld [vmem:[#allocation2 + $0x48] sm:$0xff]  ;;  %v372_v13 = vld [vmem:[#allocation2 + $0x80] sm:$0xff] }
 0x151   : > { %v1394_v25 = vld [vmem:[#allocation2 + $0x148] sm:$0xff]  ;;  %1496 = vst.msk [vmem:[%s2281_s29 + $0x40] sm:$0xff] %vm291_vm0, %v1432_v18  ;;  %v1433_v26 = vadd.f32 %v2274_v36, %v1362_v24  ;;  %1297 = vst.msk [vmem:[#allocation2 + $0x58] sm:$0xff] %vm291_vm0, %v1232_v20  ;;  %v404_v14 = vld [vmem:[#allocation2 + $0x180] sm:$0xff] }
 0x152   : > { %1528 = vst.msk [vmem:[%s2281_s29 + $0x140] sm:$0xff] %vm291_vm0, %v1464_v19  ;;  %v1465_v27 = vadd.f32 %v2274_v36, %v1394_v25  ;;  %1329 = vst.msk [vmem:[#allocation2 + $0x158] sm:$0xff] %vm291_vm0, %v1264_v21  ;;  %v405_v18 = vld [vmem:[#allocation2 + $0x188] sm:$0xff] }
 0x153   : > { %1497 = vst.msk [vmem:[%s2281_s29 + $0x48] sm:$0xff] %vm291_vm0, %v1433_v26 }
 0x154   : > { %1529 = vst.msk [vmem:[%s2281_s29 + $0x148] sm:$0xff] %vm291_vm0, %v1465_v27  ;;  %v1014_v30 = vpop.f32.mrb[24].mxu0  ;;  %v1142_v31 = vpop.f32.mrb[24].mxu1 }
 0x155   : > { %v1233_v34 = vadd.f32 %v1014_v30, %v368_v28  ;;  %v1265_v35 = vadd.f32 %v1142_v31, %v400_v29  ;;  %v1016_v37 = vpop.f32.mrb[25].mxu0  ;;  %v1144_v38 = vpop.f32.mrb[25].mxu1 }
 0x156   : > { %v1363_v39 = vld [vmem:[#allocation2 + $0x50] sm:$0xff]  ;;  %v1017_v41 = vpop.f32.mrb[26].mxu0  ;;  %v1145_v42 = vpop.f32.mrb[26].mxu1 }
 0x157   : > { %v1395_v40 = vld [vmem:[#allocation2 + $0x150] sm:$0xff]  ;;  %v1434_v43 = vadd.f32 %v2274_v36, %v1363_v39  ;;  %1298 = vst.msk [vmem:[#allocation2 + $0x60] sm:$0xff] %vm291_vm0, %v1233_v34  ;;  %1330 = vst.msk [vmem:[#allocation2 + $0x160] sm:$0xff] %vm291_vm0, %v1265_v35  ;;  %v1234_v45 = vadd.f32 %v1017_v41, %v369_v32  ;;  %v1266_v46 = vadd.f32 %v1145_v42, %v401_v33  ;;  %v1019_v47 = vpop.f32.mrb[27].mxu0  ;;  %v1147_v48 = vpop.f32.mrb[27].mxu1  ;;  %v375_v42 = vld [vmem:[#allocation2 + $0x98] sm:$0xff] }
 0x158   : > { %v1466_v44 = vadd.f32 %v2274_v36, %v1395_v40  ;;  %v1364_v49 = vld [vmem:[#allocation2 + $0x58] sm:$0xff]  ;;  %v374_v38 = vld [vmem:[#allocation2 + $0x90] sm:$0xff] }
 0x159   : > { %v1396_v50 = vld [vmem:[#allocation2 + $0x158] sm:$0xff]  ;;  %1498 = vst.msk [vmem:[%s2281_s29 + $0x50] sm:$0xff] %vm291_vm0, %v1434_v43  ;;  %v1435_v51 = vadd.f32 %v2274_v36, %v1364_v49  ;;  %1299 = vst.msk [vmem:[#allocation2 + $0x68] sm:$0xff] %vm291_vm0, %v1234_v45  ;;  %v406_v39 = vld [vmem:[#allocation2 + $0x190] sm:$0xff] }
 0x15a   : > { %1530 = vst.msk [vmem:[%s2281_s29 + $0x150] sm:$0xff] %vm291_vm0, %v1466_v44  ;;  %v1467_v52 = vadd.f32 %v2274_v36, %v1396_v50  ;;  %1331 = vst.msk [vmem:[#allocation2 + $0x168] sm:$0xff] %vm291_vm0, %v1266_v46  ;;  %v407_v43 = vld [vmem:[#allocation2 + $0x198] sm:$0xff] }
 0x15b   : > { %1499 = vst.msk [vmem:[%s2281_s29 + $0x58] sm:$0xff] %vm291_vm0, %v1435_v51 }
 0x15c   : > { %1531 = vst.msk [vmem:[%s2281_s29 + $0x158] sm:$0xff] %vm291_vm0, %v1467_v52  ;;  %v1022_v55 = vpop.f32.mrb[28].mxu0  ;;  %v1150_v56 = vpop.f32.mrb[28].mxu1 }
 0x15d   : > { %v1235_v59 = vadd.f32 %v1022_v55, %v370_v53  ;;  %v1267_v60 = vadd.f32 %v1150_v56, %v402_v54  ;;  %v1024_v61 = vpop.f32.mrb[29].mxu0  ;;  %v1152_v62 = vpop.f32.mrb[29].mxu1 }
 0x15e   : > { %v1365_v63 = vld [vmem:[#allocation2 + $0x60] sm:$0xff]  ;;  %v1025_v1 = vpop.f32.mrb[30].mxu0  ;;  %v1153_v2 = vpop.f32.mrb[30].mxu1 }
 0x15f   : > { %v1397_v0 = vld [vmem:[#allocation2 + $0x160] sm:$0xff]  ;;  %v1436_v3 = vadd.f32 %v2274_v36, %v1365_v63  ;;  %1300 = vst.msk [vmem:[#allocation2 + $0x70] sm:$0xff] %vm291_vm0, %v1235_v59  ;;  %1332 = vst.msk [vmem:[#allocation2 + $0x170] sm:$0xff] %vm291_vm0, %v1267_v60  ;;  %v1236_v5 = vadd.f32 %v1025_v1, %v371_v57  ;;  %v1268_v6 = vadd.f32 %v1153_v2, %v403_v58  ;;  %v1027_v7 = vpop.f32.mrb[31].mxu0  ;;  %v1155_v8 = vpop.f32.mrb[31].mxu1  ;;  %v377_v2 = vld [vmem:[#allocation2 + $0xa8] sm:$0xff] }
 0x160   : > { %v1468_v4 = vadd.f32 %v2274_v36, %v1397_v0  ;;  %v1366_v9 = vld [vmem:[#allocation2 + $0x68] sm:$0xff]  ;;  %v376_v62 = vld [vmem:[#allocation2 + $0xa0] sm:$0xff] }
 0x161   : > { %v1398_v10 = vld [vmem:[#allocation2 + $0x168] sm:$0xff]  ;;  %1500 = vst.msk [vmem:[%s2281_s29 + $0x60] sm:$0xff] %vm291_vm0, %v1436_v3  ;;  %v1437_v11 = vadd.f32 %v2274_v36, %v1366_v9  ;;  %1301 = vst.msk [vmem:[#allocation2 + $0x78] sm:$0xff] %vm291_vm0, %v1236_v5  ;;  %v408_v63 = vld [vmem:[#allocation2 + $0x1a0] sm:$0xff] }
 0x162   : > { %1532 = vst.msk [vmem:[%s2281_s29 + $0x160] sm:$0xff] %vm291_vm0, %v1468_v4  ;;  %v1469_v12 = vadd.f32 %v2274_v36, %v1398_v10  ;;  %1333 = vst.msk [vmem:[#allocation2 + $0x178] sm:$0xff] %vm291_vm0, %v1268_v6  ;;  %v409_v3 = vld [vmem:[#allocation2 + $0x1a8] sm:$0xff] }
 0x163   : > { %1501 = vst.msk [vmem:[%s2281_s29 + $0x68] sm:$0xff] %vm291_vm0, %v1437_v11 }
 0x164   : > { %1533 = vst.msk [vmem:[%s2281_s29 + $0x168] sm:$0xff] %vm291_vm0, %v1469_v12  ;;  %v1030_v15 = vpop.f32.mrb[32].mxu0  ;;  %v1158_v16 = vpop.f32.mrb[32].mxu1 }
 0x165   : > { %v1237_v19 = vadd.f32 %v1030_v15, %v372_v13  ;;  %v1269_v20 = vadd.f32 %v1158_v16, %v404_v14  ;;  %v1032_v21 = vpop.f32.mrb[33].mxu0  ;;  %v1160_v22 = vpop.f32.mrb[33].mxu1 }
 0x166   : > { %v1367_v23 = vld [vmem:[#allocation2 + $0x70] sm:$0xff]  ;;  %v1033_v25 = vpop.f32.mrb[34].mxu0  ;;  %v1161_v26 = vpop.f32.mrb[34].mxu1 }
 0x167   : > { %v1399_v24 = vld [vmem:[#allocation2 + $0x170] sm:$0xff]  ;;  %v1438_v27 = vadd.f32 %v2274_v36, %v1367_v23  ;;  %1302 = vst.msk [vmem:[#allocation2 + $0x80] sm:$0xff] %vm291_vm0, %v1237_v19  ;;  %1334 = vst.msk [vmem:[#allocation2 + $0x180] sm:$0xff] %vm291_vm0, %v1269_v20  ;;  %v1238_v29 = vadd.f32 %v1033_v25, %v373_v17  ;;  %v1270_v30 = vadd.f32 %v1161_v26, %v405_v18  ;;  %v1035_v31 = vpop.f32.mrb[35].mxu0  ;;  %v1163_v32 = vpop.f32.mrb[35].mxu1  ;;  %v379_v26 = vld [vmem:[#allocation2 + $0xb8] sm:$0xff] }
 0x168   : > { %v1470_v28 = vadd.f32 %v2274_v36, %v1399_v24  ;;  %v1368_v33 = vld [vmem:[#allocation2 + $0x78] sm:$0xff]  ;;  %v378_v22 = vld [vmem:[#allocation2 + $0xb0] sm:$0xff] }
 0x169   : > { %v1400_v34 = vld [vmem:[#allocation2 + $0x178] sm:$0xff]  ;;  %1502 = vst.msk [vmem:[%s2281_s29 + $0x70] sm:$0xff] %vm291_vm0, %v1438_v27  ;;  %v1439_v35 = vadd.f32 %v2274_v36, %v1368_v33  ;;  %1303 = vst.msk [vmem:[#allocation2 + $0x88] sm:$0xff] %vm291_vm0, %v1238_v29  ;;  %v410_v23 = vld [vmem:[#allocation2 + $0x1b0] sm:$0xff] }
 0x16a   : > { %1534 = vst.msk [vmem:[%s2281_s29 + $0x170] sm:$0xff] %vm291_vm0, %v1470_v28  ;;  %v1471_v37 = vadd.f32 %v2274_v36, %v1400_v34  ;;  %1335 = vst.msk [vmem:[#allocation2 + $0x188] sm:$0xff] %vm291_vm0, %v1270_v30  ;;  %v411_v27 = vld [vmem:[#allocation2 + $0x1b8] sm:$0xff] }
 0x16b   : > { %1503 = vst.msk [vmem:[%s2281_s29 + $0x78] sm:$0xff] %vm291_vm0, %v1439_v35 }
 0x16c   : > { %1535 = vst.msk [vmem:[%s2281_s29 + $0x178] sm:$0xff] %vm291_vm0, %v1471_v37  ;;  %v1038_v40 = vpop.f32.mrb[36].mxu0  ;;  %v1166_v41 = vpop.f32.mrb[36].mxu1 }
 0x16d   : > { %v1239_v44 = vadd.f32 %v1038_v40, %v374_v38  ;;  %v1271_v45 = vadd.f32 %v1166_v41, %v406_v39  ;;  %v1040_v46 = vpop.f32.mrb[37].mxu0  ;;  %v1168_v47 = vpop.f32.mrb[37].mxu1 }
 0x16e   : > { %v1369_v48 = vld [vmem:[#allocation2 + $0x80] sm:$0xff]  ;;  %v1041_v50 = vpop.f32.mrb[38].mxu0  ;;  %v1169_v51 = vpop.f32.mrb[38].mxu1 }
 0x16f   : > { %v1401_v49 = vld [vmem:[#allocation2 + $0x180] sm:$0xff]  ;;  %v1440_v52 = vadd.f32 %v2274_v36, %v1369_v48  ;;  %1304 = vst.msk [vmem:[#allocation2 + $0x90] sm:$0xff] %vm291_vm0, %v1239_v44  ;;  %1336 = vst.msk [vmem:[#allocation2 + $0x190] sm:$0xff] %vm291_vm0, %v1271_v45  ;;  %v1240_v54 = vadd.f32 %v1041_v50, %v375_v42  ;;  %v1272_v55 = vadd.f32 %v1169_v51, %v407_v43  ;;  %v1043_v56 = vpop.f32.mrb[39].mxu0  ;;  %v1171_v57 = vpop.f32.mrb[39].mxu1  ;;  %v381_v51 = vld [vmem:[#allocation2 + $0xc8] sm:$0xff] }
 0x170   : > { %v1472_v53 = vadd.f32 %v2274_v36, %v1401_v49  ;;  %v1370_v58 = vld [vmem:[#allocation2 + $0x88] sm:$0xff]  ;;  %v380_v47 = vld [vmem:[#allocation2 + $0xc0] sm:$0xff] }
 0x171   : > { %v1402_v59 = vld [vmem:[#allocation2 + $0x188] sm:$0xff]  ;;  %1504 = vst.msk [vmem:[%s2281_s29 + $0x80] sm:$0xff] %vm291_vm0, %v1440_v52  ;;  %v1441_v60 = vadd.f32 %v2274_v36, %v1370_v58  ;;  %1305 = vst.msk [vmem:[#allocation2 + $0x98] sm:$0xff] %vm291_vm0, %v1240_v54  ;;  %v412_v48 = vld [vmem:[#allocation2 + $0x1c0] sm:$0xff] }
 0x172   : > { %1536 = vst.msk [vmem:[%s2281_s29 + $0x180] sm:$0xff] %vm291_vm0, %v1472_v53  ;;  %v1473_v61 = vadd.f32 %v2274_v36, %v1402_v59  ;;  %1337 = vst.msk [vmem:[#allocation2 + $0x198] sm:$0xff] %vm291_vm0, %v1272_v55  ;;  %v413_v52 = vld [vmem:[#allocation2 + $0x1c8] sm:$0xff] }
 0x173   : > { %1505 = vst.msk [vmem:[%s2281_s29 + $0x88] sm:$0xff] %vm291_vm0, %v1441_v60 }
 0x174   : > { %1537 = vst.msk [vmem:[%s2281_s29 + $0x188] sm:$0xff] %vm291_vm0, %v1473_v61  ;;  %v1046_v0 = vpop.f32.mrb[40].mxu0  ;;  %v1174_v1 = vpop.f32.mrb[40].mxu1 }
 0x175   : > { %v1241_v4 = vadd.f32 %v1046_v0, %v376_v62  ;;  %v1273_v5 = vadd.f32 %v1174_v1, %v408_v63  ;;  %v1048_v6 = vpop.f32.mrb[41].mxu0  ;;  %v1176_v7 = vpop.f32.mrb[41].mxu1 }
 0x176   : > { %v1371_v8 = vld [vmem:[#allocation2 + $0x90] sm:$0xff]  ;;  %v1049_v10 = vpop.f32.mrb[42].mxu0  ;;  %v1177_v11 = vpop.f32.mrb[42].mxu1 }
 0x177   : > { %v1403_v9 = vld [vmem:[#allocation2 + $0x190] sm:$0xff]  ;;  %v1442_v12 = vadd.f32 %v2274_v36, %v1371_v8  ;;  %1306 = vst.msk [vmem:[#allocation2 + $0xa0] sm:$0xff] %vm291_vm0, %v1241_v4  ;;  %1338 = vst.msk [vmem:[#allocation2 + $0x1a0] sm:$0xff] %vm291_vm0, %v1273_v5  ;;  %v1242_v14 = vadd.f32 %v1049_v10, %v377_v2  ;;  %v1274_v15 = vadd.f32 %v1177_v11, %v409_v3  ;;  %v1051_v16 = vpop.f32.mrb[43].mxu0  ;;  %v1179_v17 = vpop.f32.mrb[43].mxu1  ;;  %v383_v11 = vld [vmem:[#allocation2 + $0xd8] sm:$0xff] }
 0x178   : > { %v1474_v13 = vadd.f32 %v2274_v36, %v1403_v9  ;;  %v1372_v18 = vld [vmem:[#allocation2 + $0x98] sm:$0xff]  ;;  %v382_v7 = vld [vmem:[#allocation2 + $0xd0] sm:$0xff] }
 0x179   : > { %v1404_v19 = vld [vmem:[#allocation2 + $0x198] sm:$0xff]  ;;  %1506 = vst.msk [vmem:[%s2281_s29 + $0x90] sm:$0xff] %vm291_vm0, %v1442_v12  ;;  %v1443_v20 = vadd.f32 %v2274_v36, %v1372_v18  ;;  %1307 = vst.msk [vmem:[#allocation2 + $0xa8] sm:$0xff] %vm291_vm0, %v1242_v14  ;;  %v414_v8 = vld [vmem:[#allocation2 + $0x1d0] sm:$0xff] }
 0x17a   : > { %1538 = vst.msk [vmem:[%s2281_s29 + $0x190] sm:$0xff] %vm291_vm0, %v1474_v13  ;;  %v1475_v21 = vadd.f32 %v2274_v36, %v1404_v19  ;;  %1339 = vst.msk [vmem:[#allocation2 + $0x1a8] sm:$0xff] %vm291_vm0, %v1274_v15  ;;  %v415_v12 = vld [vmem:[#allocation2 + $0x1d8] sm:$0xff] }
 0x17b   : > { %1507 = vst.msk [vmem:[%s2281_s29 + $0x98] sm:$0xff] %vm291_vm0, %v1443_v20 }
 0x17c   : > { %1539 = vst.msk [vmem:[%s2281_s29 + $0x198] sm:$0xff] %vm291_vm0, %v1475_v21  ;;  %v1054_v24 = vpop.f32.mrb[44].mxu0  ;;  %v1182_v25 = vpop.f32.mrb[44].mxu1 }
 0x17d   : > { %v1243_v28 = vadd.f32 %v1054_v24, %v378_v22  ;;  %v1275_v29 = vadd.f32 %v1182_v25, %v410_v23  ;;  %v1056_v30 = vpop.f32.mrb[45].mxu0  ;;  %v1184_v31 = vpop.f32.mrb[45].mxu1 }
 0x17e   : > { %v1373_v32 = vld [vmem:[#allocation2 + $0xa0] sm:$0xff]  ;;  %v1057_v34 = vpop.f32.mrb[46].mxu0  ;;  %v1185_v35 = vpop.f32.mrb[46].mxu1 }
 0x17f   : > { %v1405_v33 = vld [vmem:[#allocation2 + $0x1a0] sm:$0xff]  ;;  %v1444_v37 = vadd.f32 %v2274_v36, %v1373_v32  ;;  %1308 = vst.msk [vmem:[#allocation2 + $0xb0] sm:$0xff] %vm291_vm0, %v1243_v28  ;;  %1340 = vst.msk [vmem:[#allocation2 + $0x1b0] sm:$0xff] %vm291_vm0, %v1275_v29  ;;  %v1244_v39 = vadd.f32 %v1057_v34, %v379_v26  ;;  %v1276_v40 = vadd.f32 %v1185_v35, %v411_v27  ;;  %v1059_v41 = vpop.f32.mrb[47].mxu0  ;;  %v1187_v42 = vpop.f32.mrb[47].mxu1  ;;  %v385_v35 = vld [vmem:[#allocation2 + $0xe8] sm:$0xff] }
 0x180   : > { %v1476_v38 = vadd.f32 %v2274_v36, %v1405_v33  ;;  %v1374_v43 = vld [vmem:[#allocation2 + $0xa8] sm:$0xff]  ;;  %v384_v31 = vld [vmem:[#allocation2 + $0xe0] sm:$0xff] }
 0x181   : > { %v1406_v44 = vld [vmem:[#allocation2 + $0x1a8] sm:$0xff]  ;;  %1508 = vst.msk [vmem:[%s2281_s29 + $0xa0] sm:$0xff] %vm291_vm0, %v1444_v37  ;;  %v1445_v45 = vadd.f32 %v2274_v36, %v1374_v43  ;;  %1309 = vst.msk [vmem:[#allocation2 + $0xb8] sm:$0xff] %vm291_vm0, %v1244_v39  ;;  %v416_v32 = vld [vmem:[#allocation2 + $0x1e0] sm:$0xff] }
 0x182   : > { %1540 = vst.msk [vmem:[%s2281_s29 + $0x1a0] sm:$0xff] %vm291_vm0, %v1476_v38  ;;  %v1477_v46 = vadd.f32 %v2274_v36, %v1406_v44  ;;  %1341 = vst.msk [vmem:[#allocation2 + $0x1b8] sm:$0xff] %vm291_vm0, %v1276_v40  ;;  %v417_v37 = vld [vmem:[#allocation2 + $0x1e8] sm:$0xff] }
 0x183   : > { %1509 = vst.msk [vmem:[%s2281_s29 + $0xa8] sm:$0xff] %vm291_vm0, %v1445_v45 }
 0x184   : > { %1541 = vst.msk [vmem:[%s2281_s29 + $0x1a8] sm:$0xff] %vm291_vm0, %v1477_v46  ;;  %v1062_v49 = vpop.f32.mrb[48].mxu0  ;;  %v1190_v50 = vpop.f32.mrb[48].mxu1 }
 0x185   : > { %v1245_v53 = vadd.f32 %v1062_v49, %v380_v47  ;;  %v1277_v54 = vadd.f32 %v1190_v50, %v412_v48  ;;  %v1064_v55 = vpop.f32.mrb[49].mxu0  ;;  %v1192_v56 = vpop.f32.mrb[49].mxu1 }
 0x186   : > { %v1375_v57 = vld [vmem:[#allocation2 + $0xb0] sm:$0xff]  ;;  %v1065_v59 = vpop.f32.mrb[50].mxu0  ;;  %v1193_v60 = vpop.f32.mrb[50].mxu1 }
 0x187   : > { %v1407_v58 = vld [vmem:[#allocation2 + $0x1b0] sm:$0xff]  ;;  %v1446_v61 = vadd.f32 %v2274_v36, %v1375_v57  ;;  %1310 = vst.msk [vmem:[#allocation2 + $0xc0] sm:$0xff] %vm291_vm0, %v1245_v53  ;;  %1342 = vst.msk [vmem:[#allocation2 + $0x1c0] sm:$0xff] %vm291_vm0, %v1277_v54  ;;  %v1246_v63 = vadd.f32 %v1065_v59, %v381_v51  ;;  %v1278_v0 = vadd.f32 %v1193_v60, %v413_v52  ;;  %v1067_v1 = vpop.f32.mrb[51].mxu0  ;;  %v1195_v2 = vpop.f32.mrb[51].mxu1  ;;  %v387_v60 = vld [vmem:[#allocation2 + $0xf8] sm:$0xff] }
 0x188   : > { %v1478_v62 = vadd.f32 %v2274_v36, %v1407_v58  ;;  %v1376_v3 = vld [vmem:[#allocation2 + $0xb8] sm:$0xff]  ;;  %v386_v56 = vld [vmem:[#allocation2 + $0xf0] sm:$0xff] }
 0x189   : > { %v1408_v4 = vld [vmem:[#allocation2 + $0x1b8] sm:$0xff]  ;;  %1510 = vst.msk [vmem:[%s2281_s29 + $0xb0] sm:$0xff] %vm291_vm0, %v1446_v61  ;;  %v1447_v5 = vadd.f32 %v2274_v36, %v1376_v3  ;;  %1311 = vst.msk [vmem:[#allocation2 + $0xc8] sm:$0xff] %vm291_vm0, %v1246_v63  ;;  %v418_v57 = vld [vmem:[#allocation2 + $0x1f0] sm:$0xff] }
 0x18a   : > { %1542 = vst.msk [vmem:[%s2281_s29 + $0x1b0] sm:$0xff] %vm291_vm0, %v1478_v62  ;;  %v1479_v6 = vadd.f32 %v2274_v36, %v1408_v4  ;;  %1343 = vst.msk [vmem:[#allocation2 + $0x1c8] sm:$0xff] %vm291_vm0, %v1278_v0  ;;  %v419_v61 = vld [vmem:[#allocation2 + $0x1f8] sm:$0xff] }
 0x18b   : > { %1511 = vst.msk [vmem:[%s2281_s29 + $0xb8] sm:$0xff] %vm291_vm0, %v1447_v5 }
 0x18c   : > { %1543 = vst.msk [vmem:[%s2281_s29 + $0x1b8] sm:$0xff] %vm291_vm0, %v1479_v6  ;;  %v1070_v9 = vpop.f32.mrb[52].mxu0  ;;  %v1198_v10 = vpop.f32.mrb[52].mxu1 }
 0x18d   : > { %v1247_v13 = vadd.f32 %v1070_v9, %v382_v7  ;;  %v1279_v14 = vadd.f32 %v1198_v10, %v414_v8  ;;  %v1072_v15 = vpop.f32.mrb[53].mxu0  ;;  %v1200_v16 = vpop.f32.mrb[53].mxu1 }
 0x18e   : > { %v1377_v17 = vld [vmem:[#allocation2 + $0xc0] sm:$0xff]  ;;  %v1073_v19 = vpop.f32.mrb[54].mxu0  ;;  %v1201_v20 = vpop.f32.mrb[54].mxu1 }
 0x18f   : > { %v1409_v18 = vld [vmem:[#allocation2 + $0x1c0] sm:$0xff]  ;;  %v1448_v21 = vadd.f32 %v2274_v36, %v1377_v17  ;;  %1312 = vst.msk [vmem:[#allocation2 + $0xd0] sm:$0xff] %vm291_vm0, %v1247_v13  ;;  %1344 = vst.msk [vmem:[#allocation2 + $0x1d0] sm:$0xff] %vm291_vm0, %v1279_v14  ;;  %v1248_v23 = vadd.f32 %v1073_v19, %v383_v11  ;;  %v1280_v24 = vadd.f32 %v1201_v20, %v415_v12  ;;  %v1075_v25 = vpop.f32.mrb[55].mxu0  ;;  %v1203_v26 = vpop.f32.mrb[55].mxu1 }
 0x190   : > { %v1480_v22 = vadd.f32 %v2274_v36, %v1409_v18  ;;  %v1378_v27 = vld [vmem:[#allocation2 + $0xc8] sm:$0xff] }
 0x191   : > { %v1410_v28 = vld [vmem:[#allocation2 + $0x1c8] sm:$0xff]  ;;  %1512 = vst.msk [vmem:[%s2281_s29 + $0xc0] sm:$0xff] %vm291_vm0, %v1448_v21  ;;  %v1449_v29 = vadd.f32 %v2274_v36, %v1378_v27  ;;  %1313 = vst.msk [vmem:[#allocation2 + $0xd8] sm:$0xff] %vm291_vm0, %v1248_v23 }
 0x192   : > { %1544 = vst.msk [vmem:[%s2281_s29 + $0x1c0] sm:$0xff] %vm291_vm0, %v1480_v22  ;;  %v1481_v30 = vadd.f32 %v2274_v36, %v1410_v28  ;;  %1345 = vst.msk [vmem:[#allocation2 + $0x1d8] sm:$0xff] %vm291_vm0, %v1280_v24 }
 0x193   : > { %1513 = vst.msk [vmem:[%s2281_s29 + $0xc8] sm:$0xff] %vm291_vm0, %v1449_v29 }
 0x194   : > { %1545 = vst.msk [vmem:[%s2281_s29 + $0x1c8] sm:$0xff] %vm291_vm0, %v1481_v30  ;;  %v1078_v33 = vpop.f32.mrb[56].mxu0  ;;  %v1206_v34 = vpop.f32.mrb[56].mxu1 }
 0x195   : > { %v1249_v38 = vadd.f32 %v1078_v33, %v384_v31  ;;  %v1281_v39 = vadd.f32 %v1206_v34, %v416_v32  ;;  %v1080_v40 = vpop.f32.mrb[57].mxu0  ;;  %v1208_v41 = vpop.f32.mrb[57].mxu1 }
 0x196   : > { %v1379_v42 = vld [vmem:[#allocation2 + $0xd0] sm:$0xff]  ;;  %v1081_v44 = vpop.f32.mrb[58].mxu0  ;;  %v1209_v45 = vpop.f32.mrb[58].mxu1 }
 0x197   : > { %v1411_v43 = vld [vmem:[#allocation2 + $0x1d0] sm:$0xff]  ;;  %v1450_v46 = vadd.f32 %v2274_v36, %v1379_v42  ;;  %1314 = vst.msk [vmem:[#allocation2 + $0xe0] sm:$0xff] %vm291_vm0, %v1249_v38  ;;  %1346 = vst.msk [vmem:[#allocation2 + $0x1e0] sm:$0xff] %vm291_vm0, %v1281_v39  ;;  %v1250_v48 = vadd.f32 %v1081_v44, %v385_v35  ;;  %v1282_v49 = vadd.f32 %v1209_v45, %v417_v37  ;;  %v1083_v50 = vpop.f32.mrb[59].mxu0  ;;  %v1211_v51 = vpop.f32.mrb[59].mxu1 }
 0x198   : > { %v1482_v47 = vadd.f32 %v2274_v36, %v1411_v43  ;;  %v1380_v52 = vld [vmem:[#allocation2 + $0xd8] sm:$0xff] }
 0x199   : > { %v1412_v53 = vld [vmem:[#allocation2 + $0x1d8] sm:$0xff]  ;;  %1514 = vst.msk [vmem:[%s2281_s29 + $0xd0] sm:$0xff] %vm291_vm0, %v1450_v46  ;;  %v1451_v54 = vadd.f32 %v2274_v36, %v1380_v52  ;;  %1315 = vst.msk [vmem:[#allocation2 + $0xe8] sm:$0xff] %vm291_vm0, %v1250_v48 }
 0x19a   : > { %1546 = vst.msk [vmem:[%s2281_s29 + $0x1d0] sm:$0xff] %vm291_vm0, %v1482_v47  ;;  %v1483_v55 = vadd.f32 %v2274_v36, %v1412_v53  ;;  %1347 = vst.msk [vmem:[#allocation2 + $0x1e8] sm:$0xff] %vm291_vm0, %v1282_v49 }
 0x19b   : > { %1515 = vst.msk [vmem:[%s2281_s29 + $0xd8] sm:$0xff] %vm291_vm0, %v1451_v54 }
 0x19c   : > { %1547 = vst.msk [vmem:[%s2281_s29 + $0x1d8] sm:$0xff] %vm291_vm0, %v1483_v55  ;;  %v1086_v58 = vpop.f32.mrb[60].mxu0  ;;  %v1214_v59 = vpop.f32.mrb[60].mxu1 }
 0x19d   : > { %v1251_v62 = vadd.f32 %v1086_v58, %v386_v56  ;;  %v1283_v63 = vadd.f32 %v1214_v59, %v418_v57  ;;  %v1088_v0 = vpop.f32.mrb[61].mxu0  ;;  %v1216_v1 = vpop.f32.mrb[61].mxu1 }
 0x19e   : > { %v1381_v2 = vld [vmem:[#allocation2 + $0xe0] sm:$0xff]  ;;  %v1089_v4 = vpop.f32.mrb[62].mxu0  ;;  %v1217_v5 = vpop.f32.mrb[62].mxu1 }
 0x19f   : > { %v1413_v3 = vld [vmem:[#allocation2 + $0x1e0] sm:$0xff]  ;;  %v1452_v6 = vadd.f32 %v2274_v36, %v1381_v2  ;;  %1316 = vst.msk [vmem:[#allocation2 + $0xf0] sm:$0xff] %vm291_vm0, %v1251_v62  ;;  %1348 = vst.msk [vmem:[#allocation2 + $0x1f0] sm:$0xff] %vm291_vm0, %v1283_v63  ;;  %v1252_v8 = vadd.f32 %v1089_v4, %v387_v60  ;;  %v1284_v9 = vadd.f32 %v1217_v5, %v419_v61  ;;  %v1091_v10 = vpop.f32.mrb[63].mxu0  ;;  %v1219_v11 = vpop.f32.mrb[63].mxu1 }
 0x1a0   : > { %v1484_v7 = vadd.f32 %v2274_v36, %v1413_v3  ;;  %v1382_v12 = vld [vmem:[#allocation2 + $0xe8] sm:$0xff] }
 0x1a1   : > { %v1414_v13 = vld [vmem:[#allocation2 + $0x1e8] sm:$0xff]  ;;  %1516 = vst.msk [vmem:[%s2281_s29 + $0xe0] sm:$0xff] %vm291_vm0, %v1452_v6  ;;  %v1453_v14 = vadd.f32 %v2274_v36, %v1382_v12  ;;  %1317 = vst.msk [vmem:[#allocation2 + $0xf8] sm:$0xff] %vm291_vm0, %v1252_v8 }
 0x1a2   : > { %1548 = vst.msk [vmem:[%s2281_s29 + $0x1e0] sm:$0xff] %vm291_vm0, %v1484_v7  ;;  %v1485_v15 = vadd.f32 %v2274_v36, %v1414_v13  ;;  %1349 = vst.msk [vmem:[#allocation2 + $0x1f8] sm:$0xff] %vm291_vm0, %v1284_v9 }
 0x1a3   : > { %1517 = vst.msk [vmem:[%s2281_s29 + $0xe8] sm:$0xff] %vm291_vm0, %v1453_v14 }
 0x1a4   : > { %1549 = vst.msk [vmem:[%s2281_s29 + $0x1e8] sm:$0xff] %vm291_vm0, %v1485_v15 }
 0x1a6   : > { %v1383_v16 = vld [vmem:[#allocation2 + $0xf0] sm:$0xff] }
 0x1a7   : > { %v1415_v17 = vld [vmem:[#allocation2 + $0x1f0] sm:$0xff]  ;;  %v1454_v18 = vadd.f32 %v2274_v36, %v1383_v16 }
 0x1a8   : > { %v1486_v19 = vadd.f32 %v2274_v36, %v1415_v17  ;;  %v1384_v20 = vld [vmem:[#allocation2 + $0xf8] sm:$0xff] }
 0x1a9   : > { %v1416_v21 = vld [vmem:[#allocation2 + $0x1f8] sm:$0xff]  ;;  %1518 = vst.msk [vmem:[%s2281_s29 + $0xf0] sm:$0xff] %vm291_vm0, %v1454_v18  ;;  %v1455_v22 = vadd.f32 %v2274_v36, %v1384_v20 }
 0x1aa   : > { %1550 = vst.msk [vmem:[%s2281_s29 + $0x1f0] sm:$0xff] %vm291_vm0, %v1486_v19  ;;  %v1487_v23 = vadd.f32 %v2274_v36, %v1416_v21 }
 0x1ab   : > { %1519 = vst.msk [vmem:[%s2281_s29 + $0xf8] sm:$0xff] %vm291_vm0, %v1455_v22 }
 0x1ac   : > { %1551 = vst.msk [vmem:[%s2281_s29 + $0x1f8] sm:$0xff] %vm291_vm0, %v1487_v23 }
 0x1ad PF: > { %s13_s14 = sadd.s32 1, %s1964_s14   ;;  %s2548_s12 = smov %s1960_s13 }
 0x1ae   : > { %p10_p5 = scmp.ge.s32.totalorder %s13_s14, 4   ;;  %s2549_s13 = smov %s2551_s15 }
 0x1b0   :  { %12 = sbr.rel (!%p10_p5) target bundleno = 2 (0x2), region = 76 }

// kernel: _lambda_.19
= control target key start
LH: loop header
LB: loop body
LE: loop exit
PB: predicated region body
PF: predicated region fallthrough
CT: control target
= control target key end

     0   :  { %v3832_v1 = vmov 0   ;;  %vm803_vm0 = vcmask 261120   ;;  %v2379_v35 = vlaneseq  ;;  %s5141_s1 = inlined_call_operand.vmem [shape: bf16[1,32,512], index: 1, kind: input, shape index: {}]   ;;  %s5142_s0 = inlined_call_operand.vmem [shape: bf16[1,512,32], index: 0, kind: input, shape index: {}]   ;;  %s5143_s2 = inlined_call_operand.vmem [shape: f32[1,1,512], index: 2, kind: input, shape index: {}]   ;;  %s5144_s3 = inlined_call_operand.vmem [shape: f32[1,512,512], index: 3, kind: output, shape index: {}]  }
   0x1   :  { %v3788_v0 = vld [vmem:[%s5141_s1 + $0x4] ss:$16 sps:$4 sm:$0xff]   ;;  %932 = vmatprep.mubr.bf16.mxu0 %v3832_v1  ;;  %1285 = vmatprep.mubr.bf16.mxu1 %v3832_v1  ;;  %v3790_v2 = vld [vmem:[%s5141_s1 + $0xc] ss:$16 sps:$4 sm:$0xff]   ;;  %v3792_v3 = vld [vmem:[%s5141_s1] ss:$16 sps:$4 sm:$0xff]  }
   0x2   :  { %900 = vmatprep.subr.bf16.mxu0 %v3788_v0  ;;  %v3793_v4 = vld [vmem:[%s5141_s1 + $0x8] ss:$16 sps:$4 sm:$0xff]   ;;  %1253 = vmatprep.subr.bf16.mxu1 %v3790_v2  ;;  %v3794_v5 = vld [vmem:[%s5141_s1 + $0x24] ss:$16 sps:$4 sm:$0xff]   ;;  %v3796_v6 = vld [vmem:[%s5141_s1 + $0x2c] ss:$16 sps:$4 sm:$0xff]  }
   0x3   :  { %901 = vmatpush1.bf16.msra.mxu0 %v3792_v3  ;;  %1254 = vmatpush1.bf16.msra.mxu1 %v3793_v4  ;;  %v3798_v7 = vld [vmem:[%s5141_s1 + $0x20] ss:$16 sps:$4 sm:$0xff]   ;;  %v3799_v8 = vld [vmem:[%s5141_s1 + $0x28] ss:$16 sps:$4 sm:$0xff]   ;;  %v2380_v36 = vshrl.u32 %v2379_v35, 7 }
   0x4   :  { %902 = vmatprep.subr.bf16.mxu0 %v3794_v5  ;;  %1255 = vmatprep.subr.bf16.mxu1 %v3796_v6  ;;  %v3800_v9 = vld [vmem:[%s5142_s0] sm:$0xff]   ;;  %v3801_v10 = vld [vmem:[%s5142_s0 + $0x8] sm:$0xff]   ;;  %v3802_v11 = vld [vmem:[%s5142_s0 + $0x10] sm:$0xff]  }
   0x5   :  { %v3803_v12 = vld [vmem:[%s5142_s0 + $0x18] sm:$0xff]   ;;  %v3804_v13 = vld [vmem:[%s5142_s0 + $0x20] sm:$0xff]   ;;  %v3805_v14 = vld [vmem:[%s5142_s0 + $0x28] sm:$0xff]   ;;  %v2381_v38 = vsub.s32 0, %v2380_v36  ;;  %v2389_v39 = vsub.s32 2, %v2380_v36  ;;  %v2385_v41 = vsub.s32 1, %v2380_v36 }
   0x6   :  { %v3806_v15 = vld [vmem:[%s5142_s0 + $0x30] sm:$0xff]   ;;  %v3807_v16 = vld [vmem:[%s5142_s0 + $0x38] sm:$0xff]   ;;  %v3808_v17 = vld [vmem:[%s5142_s0 + $0x40] sm:$0xff]   ;;  %v2393_v42 = vsub.s32 3, %v2380_v36 }
   0x7   :  { %903 = vmatpush1.bf16.msra.mxu0 %v3798_v7  ;;  %1256 = vmatpush1.bf16.msra.mxu1 %v3799_v8  ;;  %v3809_v18 = vld [vmem:[%s5142_s0 + $0x48] sm:$0xff]   ;;  %v3810_v19 = vld [vmem:[%s5142_s0 + $0x50] sm:$0xff]   ;;  %v3811_v20 = vld [vmem:[%s5142_s0 + $0x58] sm:$0xff]  }
   0x8   :  { %v3812_v21 = vld [vmem:[%s5142_s0 + $0x60] sm:$0xff]   ;;  %v3813_v22 = vld [vmem:[%s5142_s0 + $0x68] sm:$0xff]   ;;  %v3814_v23 = vld [vmem:[%s5142_s0 + $0x70] sm:$0xff]  }
   0x9   :  { %v3815_v24 = vld [vmem:[%s5142_s0 + $0x78] sm:$0xff]   ;;  %v3816_v25 = vld [vmem:[%s5142_s0 + $0x80] sm:$0xff]   ;;  %v3817_v26 = vld [vmem:[%s5142_s0 + $0x88] sm:$0xff]  }
   0xa   :  { %3723 = vmatmul.mubr.msk.bf16.vlgmr.msra.gmra.mrb[0].mxu0 %vm803_vm0, %v3800_v9  ;;  %3755 = vmatmul.mubr.msk.bf16.vlgmr.msra.gmra.mrb[0].mxu1 %vm803_vm0, %v3800_v9  ;;  %v3818_v27 = vld [vmem:[%s5142_s0 + $0x90] sm:$0xff]   ;;  %v3819_v28 = vld [vmem:[%s5142_s0 + $0x98] sm:$0xff]   ;;  %v3820_v29 = vld [vmem:[%s5142_s0 + $0xa0] sm:$0xff]  }
   0xb   :  { %942 = vmatprep.mubr.bf16.mxu0 %v3832_v1  ;;  %1295 = vmatprep.mubr.bf16.mxu1 %v3832_v1  ;;  %v3821_v30 = vld [vmem:[%s5142_s0 + $0xa8] sm:$0xff]   ;;  %v3822_v31 = vld [vmem:[%s5142_s0 + $0xb0] sm:$0xff]   ;;  %v3823_v32 = vld [vmem:[%s5142_s0 + $0xb8] sm:$0xff]  }
   0xc   :  { %v3824_v33 = vld [vmem:[%s5142_s0 + $0xc0] sm:$0xff]   ;;  %v3825_v34 = vld [vmem:[%s5142_s0 + $0xc8] sm:$0xff]   ;;  %v3826_v37 = vld [vmem:[%s5142_s0 + $0xd0] sm:$0xff]  }
   0xd   :  { %v2377_v40 = vld [vmem:[%s5143_s2] sm:$0xf]  ;;  %v3827_v53 = vld [vmem:[%s5142_s0 + $0xd8] sm:$0xff]  }
   0xe   :  { %v4069_v43 = vrot.slane %v2377_v40, %v2381_v38  ;;  %v4071_v44 = vrot.slane %v2377_v40, %v2389_v39  ;;  %v4073_v45 = vrot.slane %v2377_v40, %v2385_v41  ;;  %v4075_v46 = vrot.slane %v2377_v40, %v2393_v42  ;;  %v3829_v42 = vld [vmem:[%s5142_s0 + $0xe8] sm:$0xff]  }
  0x12   :  { %3724 = vmatmul.mubr.msk.bf16.gmra.mrb[4].mxu0 %vm803_vm0, %v3801_v10  ;;  %3756 = vmatmul.mubr.msk.bf16.gmra.mrb[4].mxu1 %vm803_vm0, %v3801_v10 }
  0x13   :  { %952 = vmatprep.mubr.bf16.mxu0 %v3832_v1  ;;  %1305 = vmatprep.mubr.bf16.mxu1 %v3832_v1 }
  0x1a   :  { %3725 = vmatmul.mubr.msk.bf16.gmra.mrb[8].mxu0 %vm803_vm0, %v3802_v11  ;;  %3757 = vmatmul.mubr.msk.bf16.gmra.mrb[8].mxu1 %vm803_vm0, %v3802_v11 }
  0x1b   :  { %962 = vmatprep.mubr.bf16.mxu0 %v3832_v1  ;;  %1315 = vmatprep.mubr.bf16.mxu1 %v3832_v1 }
  0x22   :  { %3726 = vmatmul.mubr.msk.bf16.gmra.mrb[12].mxu0 %vm803_vm0, %v3803_v12  ;;  %3758 = vmatmul.mubr.msk.bf16.gmra.mrb[12].mxu1 %vm803_vm0, %v3803_v12 }
  0x23   :  { %972 = vmatprep.mubr.bf16.mxu0 %v3832_v1  ;;  %1325 = vmatprep.mubr.bf16.mxu1 %v3832_v1 }
  0x2a   :  { %3727 = vmatmul.mubr.msk.bf16.gmra.mrb[16].mxu0 %vm803_vm0, %v3804_v13  ;;  %3759 = vmatmul.mubr.msk.bf16.gmra.mrb[16].mxu1 %vm803_vm0, %v3804_v13 }
  0x2b   :  { %982 = vmatprep.mubr.bf16.mxu0 %v3832_v1  ;;  %1335 = vmatprep.mubr.bf16.mxu1 %v3832_v1 }
  0x32   :  { %3728 = vmatmul.mubr.msk.bf16.gmra.mrb[20].mxu0 %vm803_vm0, %v3805_v14  ;;  %3760 = vmatmul.mubr.msk.bf16.gmra.mrb[20].mxu1 %vm803_vm0, %v3805_v14 }
  0x33   :  { %992 = vmatprep.mubr.bf16.mxu0 %v3832_v1  ;;  %1345 = vmatprep.mubr.bf16.mxu1 %v3832_v1 }
  0x3a   :  { %3729 = vmatmul.mubr.msk.bf16.gmra.mrb[24].mxu0 %vm803_vm0, %v3806_v15  ;;  %3761 = vmatmul.mubr.msk.bf16.gmra.mrb[24].mxu1 %vm803_vm0, %v3806_v15 }
  0x3b   :  { %1002 = vmatprep.mubr.bf16.mxu0 %v3832_v1  ;;  %1355 = vmatprep.mubr.bf16.mxu1 %v3832_v1 }
  0x42   :  { %3730 = vmatmul.mubr.msk.bf16.gmra.mrb[28].mxu0 %vm803_vm0, %v3807_v16  ;;  %3762 = vmatmul.mubr.msk.bf16.gmra.mrb[28].mxu1 %vm803_vm0, %v3807_v16 }
  0x43   :  { %1012 = vmatprep.mubr.bf16.mxu0 %v3832_v1  ;;  %1365 = vmatprep.mubr.bf16.mxu1 %v3832_v1 }
  0x4a   :  { %3731 = vmatmul.mubr.msk.bf16.gmra.mrb[32].mxu0 %vm803_vm0, %v3808_v17  ;;  %3763 = vmatmul.mubr.msk.bf16.gmra.mrb[32].mxu1 %vm803_vm0, %v3808_v17  ;;  %v3828_v17 = vld [vmem:[%s5142_s0 + $0xe0] sm:$0xff]  }
  0x4b   :  { %1022 = vmatprep.mubr.bf16.mxu0 %v3832_v1  ;;  %1375 = vmatprep.mubr.bf16.mxu1 %v3832_v1 }
  0x52   :  { %3732 = vmatmul.mubr.msk.bf16.gmra.mrb[36].mxu0 %vm803_vm0, %v3809_v18  ;;  %3764 = vmatmul.mubr.msk.bf16.gmra.mrb[36].mxu1 %vm803_vm0, %v3809_v18 }
  0x53   :  { %1032 = vmatprep.mubr.bf16.mxu0 %v3832_v1  ;;  %1385 = vmatprep.mubr.bf16.mxu1 %v3832_v1 }
  0x5a   :  { %3733 = vmatmul.mubr.msk.bf16.gmra.mrb[40].mxu0 %vm803_vm0, %v3810_v19  ;;  %3765 = vmatmul.mubr.msk.bf16.gmra.mrb[40].mxu1 %vm803_vm0, %v3810_v19 }
  0x5b   :  { %1042 = vmatprep.mubr.bf16.mxu0 %v3832_v1  ;;  %1395 = vmatprep.mubr.bf16.mxu1 %v3832_v1 }
  0x62   :  { %3734 = vmatmul.mubr.msk.bf16.gmra.mrb[44].mxu0 %vm803_vm0, %v3811_v20  ;;  %3766 = vmatmul.mubr.msk.bf16.gmra.mrb[44].mxu1 %vm803_vm0, %v3811_v20 }
  0x63   :  { %1052 = vmatprep.mubr.bf16.mxu0 %v3832_v1  ;;  %1405 = vmatprep.mubr.bf16.mxu1 %v3832_v1 }
  0x6a   :  { %3735 = vmatmul.mubr.msk.bf16.gmra.mrb[48].mxu0 %vm803_vm0, %v3812_v21  ;;  %3767 = vmatmul.mubr.msk.bf16.gmra.mrb[48].mxu1 %vm803_vm0, %v3812_v21 }
  0x6b   :  { %1062 = vmatprep.mubr.bf16.mxu0 %v3832_v1  ;;  %1415 = vmatprep.mubr.bf16.mxu1 %v3832_v1 }
  0x72   :  { %3736 = vmatmul.mubr.msk.bf16.gmra.mrb[52].mxu0 %vm803_vm0, %v3813_v22  ;;  %3768 = vmatmul.mubr.msk.bf16.gmra.mrb[52].mxu1 %vm803_vm0, %v3813_v22 }
  0x73   :  { %1072 = vmatprep.mubr.bf16.mxu0 %v3832_v1  ;;  %1425 = vmatprep.mubr.bf16.mxu1 %v3832_v1 }
  0x7a   :  { %3737 = vmatmul.mubr.msk.bf16.gmra.mrb[56].mxu0 %vm803_vm0, %v3814_v23  ;;  %3769 = vmatmul.mubr.msk.bf16.gmra.mrb[56].mxu1 %vm803_vm0, %v3814_v23 }
  0x7b   :  { %1082 = vmatprep.mubr.bf16.mxu0 %v3832_v1  ;;  %1435 = vmatprep.mubr.bf16.mxu1 %v3832_v1 }
  0x82   :  { %3738 = vmatmul.mubr.msk.bf16.gmra.mrb[60].mxu0 %vm803_vm0, %v3815_v24  ;;  %3770 = vmatmul.mubr.msk.bf16.gmra.mrb[60].mxu1 %vm803_vm0, %v3815_v24 }
  0x83   :  { %1092 = vmatprep.mubr.bf16.mxu0 %v3832_v1  ;;  %1445 = vmatprep.mubr.bf16.mxu1 %v3832_v1 }
  0x8a   :  { %3739 = vmatmul.mubr.msk.bf16.gmra.mrb[64].mxu0 %vm803_vm0, %v3816_v25  ;;  %3771 = vmatmul.mubr.msk.bf16.gmra.mrb[64].mxu1 %vm803_vm0, %v3816_v25 }
  0x8b   :  { %1102 = vmatprep.mubr.bf16.mxu0 %v3832_v1  ;;  %1455 = vmatprep.mubr.bf16.mxu1 %v3832_v1 }
  0x92   :  { %3740 = vmatmul.mubr.msk.bf16.gmra.mrb[68].mxu0 %vm803_vm0, %v3817_v26  ;;  %3772 = vmatmul.mubr.msk.bf16.gmra.mrb[68].mxu1 %vm803_vm0, %v3817_v26 }
  0x93   :  { %1112 = vmatprep.mubr.bf16.mxu0 %v3832_v1  ;;  %1465 = vmatprep.mubr.bf16.mxu1 %v3832_v1 }
  0x9a   :  { %3741 = vmatmul.mubr.msk.bf16.gmra.mrb[72].mxu0 %vm803_vm0, %v3818_v27  ;;  %3773 = vmatmul.mubr.msk.bf16.gmra.mrb[72].mxu1 %vm803_vm0, %v3818_v27 }
  0x9b   :  { %1122 = vmatprep.mubr.bf16.mxu0 %v3832_v1  ;;  %1475 = vmatprep.mubr.bf16.mxu1 %v3832_v1 }
  0xa2   :  { %3742 = vmatmul.mubr.msk.bf16.gmra.mrb[76].mxu0 %vm803_vm0, %v3819_v28  ;;  %3774 = vmatmul.mubr.msk.bf16.gmra.mrb[76].mxu1 %vm803_vm0, %v3819_v28 }
  0xa3   :  { %1132 = vmatprep.mubr.bf16.mxu0 %v3832_v1  ;;  %1485 = vmatprep.mubr.bf16.mxu1 %v3832_v1 }
  0xaa   :  { %3743 = vmatmul.mubr.msk.bf16.gmra.mrb[80].mxu0 %vm803_vm0, %v3820_v29  ;;  %3775 = vmatmul.mubr.msk.bf16.gmra.mrb[80].mxu1 %vm803_vm0, %v3820_v29 }
  0xab   :  { %1142 = vmatprep.mubr.bf16.mxu0 %v3832_v1  ;;  %1495 = vmatprep.mubr.bf16.mxu1 %v3832_v1 }
  0xb2   :  { %3744 = vmatmul.mubr.msk.bf16.gmra.mrb[84].mxu0 %vm803_vm0, %v3821_v30  ;;  %3776 = vmatmul.mubr.msk.bf16.gmra.mrb[84].mxu1 %vm803_vm0, %v3821_v30 }
  0xb3   :  { %1152 = vmatprep.mubr.bf16.mxu0 %v3832_v1  ;;  %1505 = vmatprep.mubr.bf16.mxu1 %v3832_v1 }
  0xba   :  { %3745 = vmatmul.mubr.msk.bf16.gmra.mrb[88].mxu0 %vm803_vm0, %v3822_v31  ;;  %3777 = vmatmul.mubr.msk.bf16.gmra.mrb[88].mxu1 %vm803_vm0, %v3822_v31 }
  0xbb   :  { %1162 = vmatprep.mubr.bf16.mxu0 %v3832_v1  ;;  %1515 = vmatprep.mubr.bf16.mxu1 %v3832_v1 }
  0xc2   :  { %3746 = vmatmul.mubr.msk.bf16.gmra.mrb[92].mxu0 %vm803_vm0, %v3823_v32  ;;  %3778 = vmatmul.mubr.msk.bf16.gmra.mrb[92].mxu1 %vm803_vm0, %v3823_v32 }
  0xc3   :  { %1172 = vmatprep.mubr.bf16.mxu0 %v3832_v1  ;;  %1525 = vmatprep.mubr.bf16.mxu1 %v3832_v1 }
  0xca   :  { %3747 = vmatmul.mubr.msk.bf16.gmra.mrb[96].mxu0 %vm803_vm0, %v3824_v33  ;;  %3779 = vmatmul.mubr.msk.bf16.gmra.mrb[96].mxu1 %vm803_vm0, %v3824_v33 }
  0xcb   :  { %1182 = vmatprep.mubr.bf16.mxu0 %v3832_v1  ;;  %1535 = vmatprep.mubr.bf16.mxu1 %v3832_v1 }
  0xd2   :  { %3748 = vmatmul.mubr.msk.bf16.gmra.mrb[100].mxu0 %vm803_vm0, %v3825_v34  ;;  %3780 = vmatmul.mubr.msk.bf16.gmra.mrb[100].mxu1 %vm803_vm0, %v3825_v34 }
  0xd3   :  { %1192 = vmatprep.mubr.bf16.mxu0 %v3832_v1  ;;  %1545 = vmatprep.mubr.bf16.mxu1 %v3832_v1 }
  0xda   :  { %3749 = vmatmul.mubr.msk.bf16.gmra.mrb[104].mxu0 %vm803_vm0, %v3826_v37  ;;  %3781 = vmatmul.mubr.msk.bf16.gmra.mrb[104].mxu1 %vm803_vm0, %v3826_v37 }
  0xdb   :  { %1202 = vmatprep.mubr.bf16.mxu0 %v3832_v1  ;;  %1555 = vmatprep.mubr.bf16.mxu1 %v3832_v1 }
  0xdd   :  { %v934_v47 = vpop.f32.mrb[0].mxu0  ;;  %v1287_v48 = vpop.f32.mrb[0].mxu1 }
  0xde   :  { %v2399_v49 = vadd.f32 %v4069_v43, %v934_v47  ;;  %v2401_v50 = vadd.f32 %v4071_v44, %v1287_v48  ;;  %v936_v51 = vpop.f32.mrb[1].mxu0  ;;  %v1289_v52 = vpop.f32.mrb[1].mxu1 }
  0xdf   :  { %v2400_v54 = vadd.f32 %v4073_v45, %v936_v51  ;;  %v2402_v55 = vadd.f32 %v4075_v46, %v1289_v52  ;;  %v938_v56 = vpop.f32.mrb[2].mxu0  ;;  %v1291_v57 = vpop.f32.mrb[2].mxu1 }
  0xe0   :  { %vm2655_vm1 = vcmp.ge.f32.partialorder %v2399_v49, 0.0  ;;  %v2911_v58 = vmul.f32 0.2, %v2399_v49  ;;  %vm2657_vm2 = vcmp.ge.f32.partialorder %v2401_v50, 0.0  ;;  %v2913_v59 = vmul.f32 0.2, %v2401_v50 }
  0xe1   :  { %vm2656_vm3 = vcmp.ge.f32.partialorder %v2400_v54, 0.0  ;;  %v2912_v60 = vmul.f32 0.2, %v2400_v54  ;;  %vm2658_vm4 = vcmp.ge.f32.partialorder %v2402_v55, 0.0  ;;  %v2914_v61 = vmul.f32 0.2, %v2402_v55 }
  0xe2   :  { %v3167_v62 = vsel %vm2655_vm1, %v2399_v49, %v2911_v58  ;;  %v3169_v63 = vsel %vm2657_vm2, %v2401_v50, %v2913_v59  ;;  %v2403_v0 = vadd.f32 %v4069_v43, %v938_v56  ;;  %v2405_v2 = vadd.f32 %v4071_v44, %v1291_v57  ;;  %v940_v3 = vpop.f32.mrb[3].mxu0  ;;  %v1293_v4 = vpop.f32.mrb[3].mxu1  ;;  %3750 = vmatmul.mubr.msk.bf16.gmra.mrb[108].mxu0 %vm803_vm0, %v3827_v53 }
  0xe3   :  { %3423 = vst [vmem:[%s5144_s3] sm:$0xff] %v3167_v62  ;;  %3425 = vst [vmem:[%s5144_s3 + $0x10] sm:$0xff] %v3169_v63  ;;  %v3168_v5 = vsel %vm2656_vm3, %v2400_v54, %v2912_v60  ;;  %v3170_v6 = vsel %vm2658_vm4, %v2402_v55, %v2914_v61  ;;  %v2404_v7 = vadd.f32 %v4073_v45, %v940_v3  ;;  %3782 = vmatmul.mubr.msk.bf16.gmra.mrb[108].mxu1 %vm803_vm0, %v3827_v53 }
  0xe4   :  { %v2406_v8 = vadd.f32 %v4075_v46, %v1293_v4  ;;  %3424 = vst [vmem:[%s5144_s3 + $0x8] sm:$0xff] %v3168_v5  ;;  %3426 = vst [vmem:[%s5144_s3 + $0x18] sm:$0xff] %v3170_v6  ;;  %vm2659_vm5 = vcmp.ge.f32.partialorder %v2403_v0, 0.0  ;;  %v2915_v9 = vmul.f32 0.2, %v2403_v0  ;;  %vm2661_vm6 = vcmp.ge.f32.partialorder %v2405_v2, 0.0  ;;  %1212 = vmatprep.mubr.bf16.mxu0 %v3832_v1  ;;  %1565 = vmatprep.mubr.bf16.mxu1 %v3832_v1 }
  0xe5   :  { %v2917_v10 = vmul.f32 0.2, %v2405_v2  ;;  %vm2660_vm7 = vcmp.ge.f32.partialorder %v2404_v7, 0.0  ;;  %v2916_v11 = vmul.f32 0.2, %v2404_v7  ;;  %v944_v15 = vpop.f32.mrb[4].mxu0 }
  0xe6   :  { %vm2662_vm8 = vcmp.ge.f32.partialorder %v2406_v8, 0.0  ;;  %v2918_v12 = vmul.f32 0.2, %v2406_v8  ;;  %v3171_v13 = vsel %vm2659_vm5, %v2403_v0, %v2915_v9  ;;  %v1297_v16 = vpop.f32.mrb[4].mxu1  ;;  %v2407_v20 = vadd.f32 %v4069_v43, %v944_v15  ;;  %v946_v22 = vpop.f32.mrb[5].mxu0 }
  0xe7   :  { %v3173_v14 = vsel %vm2661_vm6, %v2405_v2, %v2917_v10  ;;  %3427 = vst [vmem:[%s5144_s3 + $0x20] sm:$0xff] %v3171_v13  ;;  %v3172_v18 = vsel %vm2660_vm7, %v2404_v7, %v2916_v11  ;;  %v2409_v21 = vadd.f32 %v4071_v44, %v1297_v16  ;;  %v1299_v23 = vpop.f32.mrb[5].mxu1  ;;  %v2408_v24 = vadd.f32 %v4073_v45, %v946_v22  ;;  %v948_v26 = vpop.f32.mrb[6].mxu0 }
  0xe8   :  { %3429 = vst [vmem:[%s5144_s3 + $0x30] sm:$0xff] %v3173_v14  ;;  %v3174_v19 = vsel %vm2662_vm8, %v2406_v8, %v2918_v12  ;;  %3428 = vst [vmem:[%s5144_s3 + $0x28] sm:$0xff] %v3172_v18  ;;  %v2410_v25 = vadd.f32 %v4075_v46, %v1299_v23  ;;  %v1301_v27 = vpop.f32.mrb[6].mxu1  ;;  %vm2663_vm9 = vcmp.ge.f32.partialorder %v2407_v20, 0.0  ;;  %v2919_v28 = vmul.f32 0.2, %v2407_v20 }
  0xe9   :  { %3430 = vst [vmem:[%s5144_s3 + $0x38] sm:$0xff] %v3174_v19  ;;  %vm2665_vm10 = vcmp.ge.f32.partialorder %v2409_v21, 0.0  ;;  %v2921_v29 = vmul.f32 0.2, %v2409_v21  ;;  %vm2664_vm11 = vcmp.ge.f32.partialorder %v2408_v24, 0.0  ;;  %v2411_v34 = vadd.f32 %v4069_v43, %v948_v26  ;;  %v950_v36 = vpop.f32.mrb[7].mxu0 }
  0xea   :  { %v2920_v30 = vmul.f32 0.2, %v2408_v24  ;;  %vm2666_vm12 = vcmp.ge.f32.partialorder %v2410_v25, 0.0  ;;  %v2922_v31 = vmul.f32 0.2, %v2410_v25  ;;  %3751 = vmatmul.mubr.msk.bf16.gmra.mrb[112].mxu0 %vm803_vm0, %v3828_v17  ;;  %v3175_v32 = vsel %vm2663_vm9, %v2407_v20, %v2919_v28  ;;  %v1303_v37 = vpop.f32.mrb[7].mxu1 }
  0xeb   :  { %v3177_v33 = vsel %vm2665_vm10, %v2409_v21, %v2921_v29  ;;  %v2413_v35 = vadd.f32 %v4071_v44, %v1301_v27  ;;  %3783 = vmatmul.mubr.msk.bf16.gmra.mrb[112].mxu1 %vm803_vm0, %v3828_v17  ;;  %3431 = vst [vmem:[%s5144_s3 + $0x40] sm:$0xff] %v3175_v32  ;;  %v2412_v40 = vadd.f32 %v4073_v45, %v950_v36  ;;  %vm2667_vm13 = vcmp.ge.f32.partialorder %v2411_v34, 0.0  ;;  %v3830_v18 = vld [vmem:[%s5142_s0 + $0xf0] sm:$0xff]  }
  0xec   :  { %3433 = vst [vmem:[%s5144_s3 + $0x50] sm:$0xff] %v3177_v33  ;;  %v3176_v38 = vsel %vm2664_vm11, %v2408_v24, %v2920_v30  ;;  %v3178_v39 = vsel %vm2666_vm12, %v2410_v25, %v2922_v31  ;;  %v2414_v41 = vadd.f32 %v4075_v46, %v1303_v37  ;;  %1222 = vmatprep.mubr.bf16.mxu0 %v3832_v1  ;;  %v2923_v47 = vmul.f32 0.2, %v2411_v34 }
  0xed   :  { %3432 = vst [vmem:[%s5144_s3 + $0x48] sm:$0xff] %v3176_v38  ;;  %3434 = vst [vmem:[%s5144_s3 + $0x58] sm:$0xff] %v3178_v39  ;;  %vm2669_vm14 = vcmp.ge.f32.partialorder %v2413_v35, 0.0  ;;  %v2925_v48 = vmul.f32 0.2, %v2413_v35  ;;  %1575 = vmatprep.mubr.bf16.mxu1 %v3832_v1  ;;  %vm2668_vm15 = vcmp.ge.f32.partialorder %v2412_v40, 0.0 }
  0xee   :  { %v2924_v49 = vmul.f32 0.2, %v2412_v40  ;;  %vm2670_vm1 = vcmp.ge.f32.partialorder %v2414_v41, 0.0  ;;  %v2926_v50 = vmul.f32 0.2, %v2414_v41  ;;  %v3179_v51 = vsel %vm2667_vm13, %v2411_v34, %v2923_v47  ;;  %v954_v53 = vpop.f32.mrb[8].mxu0 }
  0xef   :  { %v3181_v52 = vsel %vm2669_vm14, %v2413_v35, %v2925_v48  ;;  %v1307_v54 = vpop.f32.mrb[8].mxu1  ;;  %3435 = vst [vmem:[%s5144_s3 + $0x60] sm:$0xff] %v3179_v51  ;;  %v2415_v57 = vadd.f32 %v4069_v43, %v954_v53  ;;  %v956_v59 = vpop.f32.mrb[9].mxu0 }
  0xf0   :  { %3437 = vst [vmem:[%s5144_s3 + $0x70] sm:$0xff] %v3181_v52  ;;  %v3180_v55 = vsel %vm2668_vm15, %v2412_v40, %v2924_v49  ;;  %v3182_v56 = vsel %vm2670_vm1, %v2414_v41, %v2926_v50  ;;  %v2417_v58 = vadd.f32 %v4071_v44, %v1307_v54  ;;  %v1309_v60 = vpop.f32.mrb[9].mxu1  ;;  %v2416_v61 = vadd.f32 %v4073_v45, %v956_v59  ;;  %v958_v63 = vpop.f32.mrb[10].mxu0 }
  0xf1   :  { %3436 = vst [vmem:[%s5144_s3 + $0x68] sm:$0xff] %v3180_v55  ;;  %3438 = vst [vmem:[%s5144_s3 + $0x78] sm:$0xff] %v3182_v56  ;;  %v2418_v62 = vadd.f32 %v4075_v46, %v1309_v60  ;;  %v1311_v0 = vpop.f32.mrb[10].mxu1  ;;  %vm2671_vm2 = vcmp.ge.f32.partialorder %v2415_v57, 0.0  ;;  %v2927_v2 = vmul.f32 0.2, %v2415_v57  ;;  %v2419_v8 = vadd.f32 %v4069_v43, %v958_v63 }
  0xf2   :  { %vm2673_vm3 = vcmp.ge.f32.partialorder %v2417_v58, 0.0  ;;  %v2929_v3 = vmul.f32 0.2, %v2417_v58  ;;  %3752 = vmatmul.mubr.msk.bf16.gmra.mrb[116].mxu0 %vm803_vm0, %v3829_v42  ;;  %vm2672_vm4 = vcmp.ge.f32.partialorder %v2416_v61, 0.0  ;;  %v2928_v4 = vmul.f32 0.2, %v2416_v61 }
  0xf3   :  { %vm2674_vm5 = vcmp.ge.f32.partialorder %v2418_v62, 0.0  ;;  %v2930_v5 = vmul.f32 0.2, %v2418_v62  ;;  %3784 = vmatmul.mubr.msk.bf16.gmra.mrb[116].mxu1 %vm803_vm0, %v3829_v42  ;;  %1232 = vmatprep.mubr.bf16.mxu0 %v3832_v1  ;;  %v3183_v6 = vsel %vm2671_vm2, %v2415_v57, %v2927_v2  ;;  %v2421_v9 = vadd.f32 %v4071_v44, %v1311_v0  ;;  %v960_v10 = vpop.f32.mrb[11].mxu0  ;;  %v1313_v11 = vpop.f32.mrb[11].mxu1 }
  0xf4   :  { %v3185_v7 = vsel %vm2673_vm3, %v2417_v58, %v2929_v3  ;;  %1585 = vmatprep.mubr.bf16.mxu1 %v3832_v1  ;;  %3439 = vst [vmem:[%s5144_s3 + $0x80] sm:$0xff] %v3183_v6  ;;  %v3184_v12 = vsel %vm2672_vm4, %v2416_v61, %v2928_v4  ;;  %v2420_v14 = vadd.f32 %v4073_v45, %v960_v10  ;;  %vm2675_vm6 = vcmp.ge.f32.partialorder %v2419_v8, 0.0 }
  0xf5   :  { %3441 = vst [vmem:[%s5144_s3 + $0x90] sm:$0xff] %v3185_v7  ;;  %v3186_v13 = vsel %vm2674_vm5, %v2418_v62, %v2930_v5  ;;  %v2422_v15 = vadd.f32 %v4075_v46, %v1313_v11  ;;  %v964_v16 = vpop.f32.mrb[12].mxu0  ;;  %v1317_v17 = vpop.f32.mrb[12].mxu1  ;;  %3440 = vst [vmem:[%s5144_s3 + $0x88] sm:$0xff] %v3184_v12  ;;  %v2931_v19 = vmul.f32 0.2, %v2419_v8 }
  0xf6   :  { %3442 = vst [vmem:[%s5144_s3 + $0x98] sm:$0xff] %v3186_v13  ;;  %vm2677_vm7 = vcmp.ge.f32.partialorder %v2421_v9, 0.0  ;;  %v2933_v20 = vmul.f32 0.2, %v2421_v9  ;;  %vm2676_vm8 = vcmp.ge.f32.partialorder %v2420_v14, 0.0  ;;  %v2423_v25 = vadd.f32 %v4069_v43, %v964_v16  ;;  %v966_v27 = vpop.f32.mrb[13].mxu0 }
  0xf7   :  { %v2932_v21 = vmul.f32 0.2, %v2420_v14  ;;  %vm2678_vm9 = vcmp.ge.f32.partialorder %v2422_v15, 0.0  ;;  %v2934_v22 = vmul.f32 0.2, %v2422_v15  ;;  %v3187_v23 = vsel %vm2675_vm6, %v2419_v8, %v2931_v19  ;;  %v1319_v28 = vpop.f32.mrb[13].mxu1 }
  0xf8   :  { %v3189_v24 = vsel %vm2677_vm7, %v2421_v9, %v2933_v20  ;;  %v2425_v26 = vadd.f32 %v4071_v44, %v1317_v17  ;;  %3443 = vst [vmem:[%s5144_s3 + $0xa0] sm:$0xff] %v3187_v23  ;;  %v2424_v31 = vadd.f32 %v4073_v45, %v966_v27  ;;  %v2426_v32 = vadd.f32 %v4075_v46, %v1319_v28  ;;  %v968_v33 = vpop.f32.mrb[14].mxu0  ;;  %v1321_v34 = vpop.f32.mrb[14].mxu1 }
  0xf9   :  { %3445 = vst [vmem:[%s5144_s3 + $0xb0] sm:$0xff] %v3189_v24  ;;  %v3188_v29 = vsel %vm2676_vm8, %v2420_v14, %v2932_v21  ;;  %v3190_v30 = vsel %vm2678_vm9, %v2422_v15, %v2934_v22  ;;  %vm2679_vm10 = vcmp.ge.f32.partialorder %v2423_v25, 0.0  ;;  %v2935_v35 = vmul.f32 0.2, %v2423_v25  ;;  %v970_v47 = vpop.f32.mrb[15].mxu0  ;;  %v1323_v48 = vpop.f32.mrb[15].mxu1 }
  0xfa   :  { %3444 = vst [vmem:[%s5144_s3 + $0xa8] sm:$0xff] %v3188_v29  ;;  %3446 = vst [vmem:[%s5144_s3 + $0xb8] sm:$0xff] %v3190_v30  ;;  %vm2681_vm11 = vcmp.ge.f32.partialorder %v2425_v26, 0.0  ;;  %v2937_v36 = vmul.f32 0.2, %v2425_v26  ;;  %3753 = vmatmul.mubr.msk.bf16.gmra.mrb[120].mxu0 %vm803_vm0, %v3830_v18  ;;  %vm2680_vm12 = vcmp.ge.f32.partialorder %v2424_v31, 0.0  ;;  %v2427_v41 = vadd.f32 %v4069_v43, %v968_v33 }
  0xfb   :  { %v2936_v37 = vmul.f32 0.2, %v2424_v31  ;;  %vm2682_vm13 = vcmp.ge.f32.partialorder %v2426_v32, 0.0  ;;  %v2938_v38 = vmul.f32 0.2, %v2426_v32  ;;  %3785 = vmatmul.mubr.msk.bf16.gmra.mrb[120].mxu1 %vm803_vm0, %v3830_v18  ;;  %1242 = vmatprep.mubr.bf16.mxu0 %v3832_v1  ;;  %v3191_v39 = vsel %vm2679_vm10, %v2423_v25, %v2935_v35 }
  0xfc   :  { %v3193_v40 = vsel %vm2681_vm11, %v2425_v26, %v2937_v36  ;;  %v2429_v42 = vadd.f32 %v4071_v44, %v1321_v34  ;;  %1595 = vmatprep.mubr.bf16.mxu1 %v3832_v1  ;;  %3447 = vst [vmem:[%s5144_s3 + $0xc0] sm:$0xff] %v3191_v39  ;;  %v2428_v51 = vadd.f32 %v4073_v45, %v970_v47  ;;  %v3831_v1 = vld [vmem:[%s5142_s0 + $0xf8] sm:$0xff]   ;;  %vm2683_vm14 = vcmp.ge.f32.partialorder %v2427_v41, 0.0 }
  0xfd   :  { %3449 = vst [vmem:[%s5144_s3 + $0xd0] sm:$0xff] %v3193_v40  ;;  %v3192_v49 = vsel %vm2680_vm12, %v2424_v31, %v2936_v37  ;;  %v3194_v50 = vsel %vm2682_vm13, %v2426_v32, %v2938_v38  ;;  %v2430_v52 = vadd.f32 %v4075_v46, %v1323_v48  ;;  %v974_v53 = vpop.f32.mrb[16].mxu0  ;;  %v1327_v54 = vpop.f32.mrb[16].mxu1  ;;  %v2939_v55 = vmul.f32 0.2, %v2427_v41 }
  0xfe   :  { %3448 = vst [vmem:[%s5144_s3 + $0xc8] sm:$0xff] %v3192_v49  ;;  %3450 = vst [vmem:[%s5144_s3 + $0xd8] sm:$0xff] %v3194_v50  ;;  %vm2685_vm15 = vcmp.ge.f32.partialorder %v2429_v42, 0.0  ;;  %v2941_v56 = vmul.f32 0.2, %v2429_v42  ;;  %vm2684_vm1 = vcmp.ge.f32.partialorder %v2428_v51, 0.0  ;;  %v2431_v61 = vadd.f32 %v4069_v43, %v974_v53 }
  0xff   :  { %v2940_v57 = vmul.f32 0.2, %v2428_v51  ;;  %vm2686_vm2 = vcmp.ge.f32.partialorder %v2430_v52, 0.0  ;;  %v2942_v58 = vmul.f32 0.2, %v2430_v52  ;;  %v3195_v59 = vsel %vm2683_vm14, %v2427_v41, %v2939_v55  ;;  %v976_v63 = vpop.f32.mrb[17].mxu0 }
 0x100   :  { %v3197_v60 = vsel %vm2685_vm15, %v2429_v42, %v2941_v56  ;;  %v2433_v62 = vadd.f32 %v4071_v44, %v1327_v54  ;;  %v1329_v0 = vpop.f32.mrb[17].mxu1  ;;  %3451 = vst [vmem:[%s5144_s3 + $0xe0] sm:$0xff] %v3195_v59  ;;  %v2432_v4 = vadd.f32 %v4073_v45, %v976_v63  ;;  %v978_v6 = vpop.f32.mrb[18].mxu0  ;;  %vm2687_vm3 = vcmp.ge.f32.partialorder %v2431_v61, 0.0 }
 0x101   :  { %3453 = vst [vmem:[%s5144_s3 + $0xf0] sm:$0xff] %v3197_v60  ;;  %v3196_v2 = vsel %vm2684_vm1, %v2428_v51, %v2940_v57  ;;  %v3198_v3 = vsel %vm2686_vm2, %v2430_v52, %v2942_v58  ;;  %v2434_v5 = vadd.f32 %v4075_v46, %v1329_v0  ;;  %v1331_v7 = vpop.f32.mrb[18].mxu1  ;;  %v2943_v8 = vmul.f32 0.2, %v2431_v61  ;;  %v980_v16 = vpop.f32.mrb[19].mxu0 }
 0x102   :  { %3452 = vst [vmem:[%s5144_s3 + $0xe8] sm:$0xff] %v3196_v2  ;;  %3454 = vst [vmem:[%s5144_s3 + $0xf8] sm:$0xff] %v3198_v3  ;;  %vm2689_vm4 = vcmp.ge.f32.partialorder %v2433_v62, 0.0  ;;  %v2945_v9 = vmul.f32 0.2, %v2433_v62  ;;  %3754 = vmatmul.mubr.msk.bf16.gmra.mrb[124].mxu0 %vm803_vm0, %v3831_v1  ;;  %vm2688_vm5 = vcmp.ge.f32.partialorder %v2432_v4, 0.0  ;;  %v2435_v14 = vadd.f32 %v4069_v43, %v978_v6 }
 0x103   :  { %v2944_v10 = vmul.f32 0.2, %v2432_v4  ;;  %vm2690_vm6 = vcmp.ge.f32.partialorder %v2434_v5, 0.0  ;;  %v2946_v11 = vmul.f32 0.2, %v2434_v5  ;;  %3786 = vmatmul.mubr.msk.bf16.gmra.mrb[124].mxu1 %vm803_vm0, %v3831_v1  ;;  %v3199_v12 = vsel %vm2687_vm3, %v2431_v61, %v2943_v8  ;;  %v1333_v17 = vpop.f32.mrb[19].mxu1 }
 0x104   :  { %v3201_v13 = vsel %vm2689_vm4, %v2433_v62, %v2945_v9  ;;  %v2437_v15 = vadd.f32 %v4071_v44, %v1331_v7  ;;  %3455 = vst [vmem:[%s5144_s3 + $0x100] sm:$0xff] %v3199_v12  ;;  %v2436_v20 = vadd.f32 %v4073_v45, %v980_v16  ;;  %v2438_v21 = vadd.f32 %v4075_v46, %v1333_v17 }
 0x105   :  { %3457 = vst [vmem:[%s5144_s3 + $0x110] sm:$0xff] %v3201_v13  ;;  %v3200_v18 = vsel %vm2688_vm5, %v2432_v4, %v2944_v10  ;;  %v3202_v19 = vsel %vm2690_vm6, %v2434_v5, %v2946_v11  ;;  %v984_v22 = vpop.f32.mrb[20].mxu0  ;;  %v1337_v23 = vpop.f32.mrb[20].mxu1  ;;  %vm2691_vm0 = vcmp.ge.f32.partialorder %v2435_v14, 0.0  ;;  %v2947_v24 = vmul.f32 0.2, %v2435_v14 }
 0x106   :  { %3456 = vst [vmem:[%s5144_s3 + $0x108] sm:$0xff] %v3200_v18  ;;  %3458 = vst [vmem:[%s5144_s3 + $0x118] sm:$0xff] %v3202_v19  ;;  %vm2693_vm7 = vcmp.ge.f32.partialorder %v2437_v15, 0.0  ;;  %v2949_v25 = vmul.f32 0.2, %v2437_v15  ;;  %vm2692_vm8 = vcmp.ge.f32.partialorder %v2436_v20, 0.0  ;;  %v2439_v30 = vadd.f32 %v4069_v43, %v984_v22 }
 0x107   :  { %v2948_v26 = vmul.f32 0.2, %v2436_v20  ;;  %vm2694_vm9 = vcmp.ge.f32.partialorder %v2438_v21, 0.0  ;;  %v2950_v27 = vmul.f32 0.2, %v2438_v21  ;;  %v3203_v28 = vsel %vm2691_vm0, %v2435_v14, %v2947_v24  ;;  %v986_v32 = vpop.f32.mrb[21].mxu0 }
 0x108   :  { %v3205_v29 = vsel %vm2693_vm7, %v2437_v15, %v2949_v25  ;;  %v2441_v31 = vadd.f32 %v4071_v44, %v1337_v23  ;;  %v1339_v33 = vpop.f32.mrb[21].mxu1  ;;  %3459 = vst [vmem:[%s5144_s3 + $0x120] sm:$0xff] %v3203_v28  ;;  %v2440_v36 = vadd.f32 %v4073_v45, %v986_v32  ;;  %v988_v38 = vpop.f32.mrb[22].mxu0  ;;  %vm2695_vm10 = vcmp.ge.f32.partialorder %v2439_v30, 0.0 }
 0x109   :  { %3461 = vst [vmem:[%s5144_s3 + $0x130] sm:$0xff] %v3205_v29  ;;  %v3204_v34 = vsel %vm2692_vm8, %v2436_v20, %v2948_v26  ;;  %v3206_v35 = vsel %vm2694_vm9, %v2438_v21, %v2950_v27  ;;  %v2442_v37 = vadd.f32 %v4075_v46, %v1339_v33  ;;  %v1341_v39 = vpop.f32.mrb[22].mxu1  ;;  %v2951_v40 = vmul.f32 0.2, %v2439_v30  ;;  %v990_v52 = vpop.f32.mrb[23].mxu0 }
 0x10a   :  { %3460 = vst [vmem:[%s5144_s3 + $0x128] sm:$0xff] %v3204_v34  ;;  %3462 = vst [vmem:[%s5144_s3 + $0x138] sm:$0xff] %v3206_v35  ;;  %vm2697_vm11 = vcmp.ge.f32.partialorder %v2441_v31, 0.0  ;;  %v2953_v41 = vmul.f32 0.2, %v2441_v31  ;;  %vm2696_vm12 = vcmp.ge.f32.partialorder %v2440_v36, 0.0  ;;  %v2443_v50 = vadd.f32 %v4069_v43, %v988_v38 }
 0x10b   :  { %v2952_v42 = vmul.f32 0.2, %v2440_v36  ;;  %vm2698_vm13 = vcmp.ge.f32.partialorder %v2442_v37, 0.0  ;;  %v2954_v47 = vmul.f32 0.2, %v2442_v37  ;;  %v3207_v48 = vsel %vm2695_vm10, %v2439_v30, %v2951_v40  ;;  %v1343_v53 = vpop.f32.mrb[23].mxu1 }
 0x10c   :  { %v3209_v49 = vsel %vm2697_vm11, %v2441_v31, %v2953_v41  ;;  %v2445_v51 = vadd.f32 %v4071_v44, %v1341_v39  ;;  %3463 = vst [vmem:[%s5144_s3 + $0x140] sm:$0xff] %v3207_v48  ;;  %v2444_v55 = vadd.f32 %v4073_v45, %v990_v52  ;;  %v2446_v56 = vadd.f32 %v4075_v46, %v1343_v53 }
 0x10d   :  { %3465 = vst [vmem:[%s5144_s3 + $0x150] sm:$0xff] %v3209_v49  ;;  %v3208_v54 = vsel %vm2696_vm12, %v2440_v36, %v2952_v42  ;;  %v3210_v1 = vsel %vm2698_vm13, %v2442_v37, %v2954_v47  ;;  %v994_v57 = vpop.f32.mrb[24].mxu0  ;;  %v1347_v58 = vpop.f32.mrb[24].mxu1  ;;  %vm2699_vm14 = vcmp.ge.f32.partialorder %v2443_v50, 0.0  ;;  %v2955_v59 = vmul.f32 0.2, %v2443_v50 }
 0x10e   :  { %3464 = vst [vmem:[%s5144_s3 + $0x148] sm:$0xff] %v3208_v54  ;;  %3466 = vst [vmem:[%s5144_s3 + $0x158] sm:$0xff] %v3210_v1  ;;  %vm2701_vm15 = vcmp.ge.f32.partialorder %v2445_v51, 0.0  ;;  %v2957_v60 = vmul.f32 0.2, %v2445_v51  ;;  %vm2700_vm1 = vcmp.ge.f32.partialorder %v2444_v55, 0.0  ;;  %v2447_v2 = vadd.f32 %v4069_v43, %v994_v57 }
 0x10f   :  { %v2956_v61 = vmul.f32 0.2, %v2444_v55  ;;  %vm2702_vm2 = vcmp.ge.f32.partialorder %v2446_v56, 0.0  ;;  %v2958_v62 = vmul.f32 0.2, %v2446_v56  ;;  %v3211_v63 = vsel %vm2699_vm14, %v2443_v50, %v2955_v59  ;;  %v996_v4 = vpop.f32.mrb[25].mxu0 }
 0x110   :  { %v3213_v0 = vsel %vm2701_vm15, %v2445_v51, %v2957_v60  ;;  %v2449_v3 = vadd.f32 %v4071_v44, %v1347_v58  ;;  %v1349_v5 = vpop.f32.mrb[25].mxu1  ;;  %3467 = vst [vmem:[%s5144_s3 + $0x160] sm:$0xff] %v3211_v63  ;;  %v2448_v8 = vadd.f32 %v4073_v45, %v996_v4  ;;  %v998_v10 = vpop.f32.mrb[26].mxu0  ;;  %vm2703_vm3 = vcmp.ge.f32.partialorder %v2447_v2, 0.0 }
 0x111   :  { %3469 = vst [vmem:[%s5144_s3 + $0x170] sm:$0xff] %v3213_v0  ;;  %v3212_v6 = vsel %vm2700_vm1, %v2444_v55, %v2956_v61  ;;  %v3214_v7 = vsel %vm2702_vm2, %v2446_v56, %v2958_v62  ;;  %v2450_v9 = vadd.f32 %v4075_v46, %v1349_v5  ;;  %v1351_v11 = vpop.f32.mrb[26].mxu1  ;;  %v2959_v12 = vmul.f32 0.2, %v2447_v2  ;;  %v1000_v20 = vpop.f32.mrb[27].mxu0 }
 0x112   :  { %3468 = vst [vmem:[%s5144_s3 + $0x168] sm:$0xff] %v3212_v6  ;;  %3470 = vst [vmem:[%s5144_s3 + $0x178] sm:$0xff] %v3214_v7  ;;  %vm2705_vm4 = vcmp.ge.f32.partialorder %v2449_v3, 0.0  ;;  %v2961_v13 = vmul.f32 0.2, %v2449_v3  ;;  %vm2704_vm5 = vcmp.ge.f32.partialorder %v2448_v8, 0.0  ;;  %v2451_v18 = vadd.f32 %v4069_v43, %v998_v10 }
 0x113   :  { %v2960_v14 = vmul.f32 0.2, %v2448_v8  ;;  %vm2706_vm6 = vcmp.ge.f32.partialorder %v2450_v9, 0.0  ;;  %v2962_v15 = vmul.f32 0.2, %v2450_v9  ;;  %v3215_v16 = vsel %vm2703_vm3, %v2447_v2, %v2959_v12  ;;  %v1353_v21 = vpop.f32.mrb[27].mxu1 }
 0x114   :  { %v3217_v17 = vsel %vm2705_vm4, %v2449_v3, %v2961_v13  ;;  %v2453_v19 = vadd.f32 %v4071_v44, %v1351_v11  ;;  %3471 = vst [vmem:[%s5144_s3 + $0x180] sm:$0xff] %v3215_v16  ;;  %v2452_v24 = vadd.f32 %v4073_v45, %v1000_v20  ;;  %v2454_v25 = vadd.f32 %v4075_v46, %v1353_v21 }
 0x115   :  { %3473 = vst [vmem:[%s5144_s3 + $0x190] sm:$0xff] %v3217_v17  ;;  %v3216_v22 = vsel %vm2704_vm5, %v2448_v8, %v2960_v14  ;;  %v3218_v23 = vsel %vm2706_vm6, %v2450_v9, %v2962_v15  ;;  %v1004_v26 = vpop.f32.mrb[28].mxu0  ;;  %v1357_v27 = vpop.f32.mrb[28].mxu1  ;;  %vm2707_vm0 = vcmp.ge.f32.partialorder %v2451_v18, 0.0  ;;  %v2963_v28 = vmul.f32 0.2, %v2451_v18 }
 0x116   :  { %3472 = vst [vmem:[%s5144_s3 + $0x188] sm:$0xff] %v3216_v22  ;;  %3474 = vst [vmem:[%s5144_s3 + $0x198] sm:$0xff] %v3218_v23  ;;  %vm2709_vm7 = vcmp.ge.f32.partialorder %v2453_v19, 0.0  ;;  %v2965_v29 = vmul.f32 0.2, %v2453_v19  ;;  %vm2708_vm8 = vcmp.ge.f32.partialorder %v2452_v24, 0.0  ;;  %v2455_v34 = vadd.f32 %v4069_v43, %v1004_v26 }
 0x117   :  { %v2964_v30 = vmul.f32 0.2, %v2452_v24  ;;  %vm2710_vm9 = vcmp.ge.f32.partialorder %v2454_v25, 0.0  ;;  %v2966_v31 = vmul.f32 0.2, %v2454_v25  ;;  %v3219_v32 = vsel %vm2707_vm0, %v2451_v18, %v2963_v28  ;;  %v1006_v36 = vpop.f32.mrb[29].mxu0 }
 0x118   :  { %v3221_v33 = vsel %vm2709_vm7, %v2453_v19, %v2965_v29  ;;  %v2457_v35 = vadd.f32 %v4071_v44, %v1357_v27  ;;  %v1359_v37 = vpop.f32.mrb[29].mxu1  ;;  %3475 = vst [vmem:[%s5144_s3 + $0x1a0] sm:$0xff] %v3219_v32  ;;  %v2456_v40 = vadd.f32 %v4073_v45, %v1006_v36  ;;  %v1008_v42 = vpop.f32.mrb[30].mxu0  ;;  %vm2711_vm10 = vcmp.ge.f32.partialorder %v2455_v34, 0.0 }
 0x119   :  { %3477 = vst [vmem:[%s5144_s3 + $0x1b0] sm:$0xff] %v3221_v33  ;;  %v3220_v38 = vsel %vm2708_vm8, %v2452_v24, %v2964_v30  ;;  %v3222_v39 = vsel %vm2710_vm9, %v2454_v25, %v2966_v31  ;;  %v2458_v41 = vadd.f32 %v4075_v46, %v1359_v37  ;;  %v1361_v47 = vpop.f32.mrb[30].mxu1  ;;  %v2967_v48 = vmul.f32 0.2, %v2455_v34  ;;  %v1010_v55 = vpop.f32.mrb[31].mxu0 }
 0x11a   :  { %3476 = vst [vmem:[%s5144_s3 + $0x1a8] sm:$0xff] %v3220_v38  ;;  %3478 = vst [vmem:[%s5144_s3 + $0x1b8] sm:$0xff] %v3222_v39  ;;  %vm2713_vm11 = vcmp.ge.f32.partialorder %v2457_v35, 0.0  ;;  %v2969_v49 = vmul.f32 0.2, %v2457_v35  ;;  %vm2712_vm12 = vcmp.ge.f32.partialorder %v2456_v40, 0.0  ;;  %v2459_v54 = vadd.f32 %v4069_v43, %v1008_v42 }
 0x11b   :  { %v2968_v50 = vmul.f32 0.2, %v2456_v40  ;;  %vm2714_vm13 = vcmp.ge.f32.partialorder %v2458_v41, 0.0  ;;  %v2970_v51 = vmul.f32 0.2, %v2458_v41  ;;  %v3223_v52 = vsel %vm2711_vm10, %v2455_v34, %v2967_v48  ;;  %v1363_v56 = vpop.f32.mrb[31].mxu1 }
 0x11c   :  { %v3225_v53 = vsel %vm2713_vm11, %v2457_v35, %v2969_v49  ;;  %v2461_v1 = vadd.f32 %v4071_v44, %v1361_v47  ;;  %3479 = vst [vmem:[%s5144_s3 + $0x1c0] sm:$0xff] %v3223_v52  ;;  %v2460_v59 = vadd.f32 %v4073_v45, %v1010_v55  ;;  %v2462_v60 = vadd.f32 %v4075_v46, %v1363_v56 }
 0x11d   :  { %3481 = vst [vmem:[%s5144_s3 + $0x1d0] sm:$0xff] %v3225_v53  ;;  %v3224_v57 = vsel %vm2712_vm12, %v2456_v40, %v2968_v50  ;;  %v3226_v58 = vsel %vm2714_vm13, %v2458_v41, %v2970_v51  ;;  %v1014_v61 = vpop.f32.mrb[32].mxu0  ;;  %v1367_v62 = vpop.f32.mrb[32].mxu1  ;;  %vm2715_vm14 = vcmp.ge.f32.partialorder %v2459_v54, 0.0  ;;  %v2971_v63 = vmul.f32 0.2, %v2459_v54 }
 0x11e   :  { %3480 = vst [vmem:[%s5144_s3 + $0x1c8] sm:$0xff] %v3224_v57  ;;  %3482 = vst [vmem:[%s5144_s3 + $0x1d8] sm:$0xff] %v3226_v58  ;;  %vm2717_vm15 = vcmp.ge.f32.partialorder %v2461_v1, 0.0  ;;  %v2973_v0 = vmul.f32 0.2, %v2461_v1  ;;  %vm2716_vm1 = vcmp.ge.f32.partialorder %v2460_v59, 0.0  ;;  %v2463_v6 = vadd.f32 %v4069_v43, %v1014_v61 }
 0x11f   :  { %v2972_v2 = vmul.f32 0.2, %v2460_v59  ;;  %vm2718_vm2 = vcmp.ge.f32.partialorder %v2462_v60, 0.0  ;;  %v2974_v3 = vmul.f32 0.2, %v2462_v60  ;;  %v3227_v4 = vsel %vm2715_vm14, %v2459_v54, %v2971_v63  ;;  %v1016_v8 = vpop.f32.mrb[33].mxu0 }
 0x120   :  { %v3229_v5 = vsel %vm2717_vm15, %v2461_v1, %v2973_v0  ;;  %v2465_v7 = vadd.f32 %v4071_v44, %v1367_v62  ;;  %v1369_v9 = vpop.f32.mrb[33].mxu1  ;;  %3483 = vst [vmem:[%s5144_s3 + $0x1e0] sm:$0xff] %v3227_v4  ;;  %v2464_v12 = vadd.f32 %v4073_v45, %v1016_v8  ;;  %v1018_v14 = vpop.f32.mrb[34].mxu0  ;;  %vm2719_vm3 = vcmp.ge.f32.partialorder %v2463_v6, 0.0 }
 0x121   :  { %3485 = vst [vmem:[%s5144_s3 + $0x1f0] sm:$0xff] %v3229_v5  ;;  %v3228_v10 = vsel %vm2716_vm1, %v2460_v59, %v2972_v2  ;;  %v3230_v11 = vsel %vm2718_vm2, %v2462_v60, %v2974_v3  ;;  %v2466_v13 = vadd.f32 %v4075_v46, %v1369_v9  ;;  %v1371_v15 = vpop.f32.mrb[34].mxu1  ;;  %v2975_v16 = vmul.f32 0.2, %v2463_v6  ;;  %v1020_v24 = vpop.f32.mrb[35].mxu0 }
 0x122   :  { %3484 = vst [vmem:[%s5144_s3 + $0x1e8] sm:$0xff] %v3228_v10  ;;  %3486 = vst [vmem:[%s5144_s3 + $0x1f8] sm:$0xff] %v3230_v11  ;;  %vm2721_vm4 = vcmp.ge.f32.partialorder %v2465_v7, 0.0  ;;  %v2977_v17 = vmul.f32 0.2, %v2465_v7  ;;  %vm2720_vm5 = vcmp.ge.f32.partialorder %v2464_v12, 0.0  ;;  %v2467_v22 = vadd.f32 %v4069_v43, %v1018_v14 }
 0x123   :  { %v2976_v18 = vmul.f32 0.2, %v2464_v12  ;;  %vm2722_vm6 = vcmp.ge.f32.partialorder %v2466_v13, 0.0  ;;  %v2978_v19 = vmul.f32 0.2, %v2466_v13  ;;  %v3231_v20 = vsel %vm2719_vm3, %v2463_v6, %v2975_v16  ;;  %v1373_v25 = vpop.f32.mrb[35].mxu1 }
 0x124   :  { %v3233_v21 = vsel %vm2721_vm4, %v2465_v7, %v2977_v17  ;;  %v2469_v23 = vadd.f32 %v4071_v44, %v1371_v15  ;;  %3487 = vst [vmem:[%s5144_s3 + $0x200] sm:$0xff] %v3231_v20  ;;  %v2468_v28 = vadd.f32 %v4073_v45, %v1020_v24  ;;  %v2470_v29 = vadd.f32 %v4075_v46, %v1373_v25 }
 0x125   :  { %3489 = vst [vmem:[%s5144_s3 + $0x210] sm:$0xff] %v3233_v21  ;;  %v3232_v26 = vsel %vm2720_vm5, %v2464_v12, %v2976_v18  ;;  %v3234_v27 = vsel %vm2722_vm6, %v2466_v13, %v2978_v19  ;;  %v1024_v30 = vpop.f32.mrb[36].mxu0  ;;  %v1377_v31 = vpop.f32.mrb[36].mxu1  ;;  %vm2723_vm0 = vcmp.ge.f32.partialorder %v2467_v22, 0.0  ;;  %v2979_v32 = vmul.f32 0.2, %v2467_v22 }
 0x126   :  { %3488 = vst [vmem:[%s5144_s3 + $0x208] sm:$0xff] %v3232_v26  ;;  %3490 = vst [vmem:[%s5144_s3 + $0x218] sm:$0xff] %v3234_v27  ;;  %vm2725_vm7 = vcmp.ge.f32.partialorder %v2469_v23, 0.0  ;;  %v2981_v33 = vmul.f32 0.2, %v2469_v23  ;;  %vm2724_vm8 = vcmp.ge.f32.partialorder %v2468_v28, 0.0  ;;  %v2471_v38 = vadd.f32 %v4069_v43, %v1024_v30 }
 0x127   :  { %v2980_v34 = vmul.f32 0.2, %v2468_v28  ;;  %vm2726_vm9 = vcmp.ge.f32.partialorder %v2470_v29, 0.0  ;;  %v2982_v35 = vmul.f32 0.2, %v2470_v29  ;;  %v3235_v36 = vsel %vm2723_vm0, %v2467_v22, %v2979_v32  ;;  %v1026_v40 = vpop.f32.mrb[37].mxu0 }
 0x128   :  { %v3237_v37 = vsel %vm2725_vm7, %v2469_v23, %v2981_v33  ;;  %v2473_v39 = vadd.f32 %v4071_v44, %v1377_v31  ;;  %v1379_v41 = vpop.f32.mrb[37].mxu1  ;;  %3491 = vst [vmem:[%s5144_s3 + $0x220] sm:$0xff] %v3235_v36  ;;  %v2472_v48 = vadd.f32 %v4073_v45, %v1026_v40  ;;  %v1028_v50 = vpop.f32.mrb[38].mxu0  ;;  %vm2727_vm10 = vcmp.ge.f32.partialorder %v2471_v38, 0.0 }
 0x129   :  { %3493 = vst [vmem:[%s5144_s3 + $0x230] sm:$0xff] %v3237_v37  ;;  %v3236_v42 = vsel %vm2724_vm8, %v2468_v28, %v2980_v34  ;;  %v3238_v47 = vsel %vm2726_vm9, %v2470_v29, %v2982_v35  ;;  %v2474_v49 = vadd.f32 %v4075_v46, %v1379_v41  ;;  %v1381_v51 = vpop.f32.mrb[38].mxu1  ;;  %v2983_v52 = vmul.f32 0.2, %v2471_v38  ;;  %v1030_v59 = vpop.f32.mrb[39].mxu0 }
 0x12a   :  { %3492 = vst [vmem:[%s5144_s3 + $0x228] sm:$0xff] %v3236_v42  ;;  %3494 = vst [vmem:[%s5144_s3 + $0x238] sm:$0xff] %v3238_v47  ;;  %vm2729_vm11 = vcmp.ge.f32.partialorder %v2473_v39, 0.0  ;;  %v2985_v53 = vmul.f32 0.2, %v2473_v39  ;;  %vm2728_vm12 = vcmp.ge.f32.partialorder %v2472_v48, 0.0  ;;  %v2475_v57 = vadd.f32 %v4069_v43, %v1028_v50 }
 0x12b   :  { %v2984_v54 = vmul.f32 0.2, %v2472_v48  ;;  %vm2730_vm13 = vcmp.ge.f32.partialorder %v2474_v49, 0.0  ;;  %v2986_v1 = vmul.f32 0.2, %v2474_v49  ;;  %v3239_v55 = vsel %vm2727_vm10, %v2471_v38, %v2983_v52  ;;  %v1383_v60 = vpop.f32.mrb[39].mxu1 }
 0x12c   :  { %v3241_v56 = vsel %vm2729_vm11, %v2473_v39, %v2985_v53  ;;  %v2477_v58 = vadd.f32 %v4071_v44, %v1381_v51  ;;  %3495 = vst [vmem:[%s5144_s3 + $0x240] sm:$0xff] %v3239_v55  ;;  %v2476_v63 = vadd.f32 %v4073_v45, %v1030_v59  ;;  %v2478_v0 = vadd.f32 %v4075_v46, %v1383_v60 }
 0x12d   :  { %3497 = vst [vmem:[%s5144_s3 + $0x250] sm:$0xff] %v3241_v56  ;;  %v3240_v61 = vsel %vm2728_vm12, %v2472_v48, %v2984_v54  ;;  %v3242_v62 = vsel %vm2730_vm13, %v2474_v49, %v2986_v1  ;;  %v1034_v2 = vpop.f32.mrb[40].mxu0  ;;  %v1387_v3 = vpop.f32.mrb[40].mxu1  ;;  %vm2731_vm14 = vcmp.ge.f32.partialorder %v2475_v57, 0.0  ;;  %v2987_v4 = vmul.f32 0.2, %v2475_v57 }
 0x12e   :  { %3496 = vst [vmem:[%s5144_s3 + $0x248] sm:$0xff] %v3240_v61  ;;  %3498 = vst [vmem:[%s5144_s3 + $0x258] sm:$0xff] %v3242_v62  ;;  %vm2733_vm15 = vcmp.ge.f32.partialorder %v2477_v58, 0.0  ;;  %v2989_v5 = vmul.f32 0.2, %v2477_v58  ;;  %vm2732_vm1 = vcmp.ge.f32.partialorder %v2476_v63, 0.0  ;;  %v2479_v10 = vadd.f32 %v4069_v43, %v1034_v2 }
 0x12f   :  { %v2988_v6 = vmul.f32 0.2, %v2476_v63  ;;  %vm2734_vm2 = vcmp.ge.f32.partialorder %v2478_v0, 0.0  ;;  %v2990_v7 = vmul.f32 0.2, %v2478_v0  ;;  %v3243_v8 = vsel %vm2731_vm14, %v2475_v57, %v2987_v4  ;;  %v1036_v12 = vpop.f32.mrb[41].mxu0 }
 0x130   :  { %v3245_v9 = vsel %vm2733_vm15, %v2477_v58, %v2989_v5  ;;  %v2481_v11 = vadd.f32 %v4071_v44, %v1387_v3  ;;  %v1389_v13 = vpop.f32.mrb[41].mxu1  ;;  %3499 = vst [vmem:[%s5144_s3 + $0x260] sm:$0xff] %v3243_v8  ;;  %v2480_v16 = vadd.f32 %v4073_v45, %v1036_v12  ;;  %v1038_v18 = vpop.f32.mrb[42].mxu0  ;;  %vm2735_vm3 = vcmp.ge.f32.partialorder %v2479_v10, 0.0 }
 0x131   :  { %3501 = vst [vmem:[%s5144_s3 + $0x270] sm:$0xff] %v3245_v9  ;;  %v3244_v14 = vsel %vm2732_vm1, %v2476_v63, %v2988_v6  ;;  %v3246_v15 = vsel %vm2734_vm2, %v2478_v0, %v2990_v7  ;;  %v2482_v17 = vadd.f32 %v4075_v46, %v1389_v13  ;;  %v1391_v19 = vpop.f32.mrb[42].mxu1  ;;  %v2991_v20 = vmul.f32 0.2, %v2479_v10  ;;  %v1040_v28 = vpop.f32.mrb[43].mxu0 }
 0x132   :  { %3500 = vst [vmem:[%s5144_s3 + $0x268] sm:$0xff] %v3244_v14  ;;  %3502 = vst [vmem:[%s5144_s3 + $0x278] sm:$0xff] %v3246_v15  ;;  %vm2737_vm4 = vcmp.ge.f32.partialorder %v2481_v11, 0.0  ;;  %v2993_v21 = vmul.f32 0.2, %v2481_v11  ;;  %vm2736_vm5 = vcmp.ge.f32.partialorder %v2480_v16, 0.0  ;;  %v2483_v26 = vadd.f32 %v4069_v43, %v1038_v18 }
 0x133   :  { %v2992_v22 = vmul.f32 0.2, %v2480_v16  ;;  %vm2738_vm6 = vcmp.ge.f32.partialorder %v2482_v17, 0.0  ;;  %v2994_v23 = vmul.f32 0.2, %v2482_v17  ;;  %v3247_v24 = vsel %vm2735_vm3, %v2479_v10, %v2991_v20  ;;  %v1393_v29 = vpop.f32.mrb[43].mxu1 }
 0x134   :  { %v3249_v25 = vsel %vm2737_vm4, %v2481_v11, %v2993_v21  ;;  %v2485_v27 = vadd.f32 %v4071_v44, %v1391_v19  ;;  %3503 = vst [vmem:[%s5144_s3 + $0x280] sm:$0xff] %v3247_v24  ;;  %v2484_v32 = vadd.f32 %v4073_v45, %v1040_v28  ;;  %v2486_v33 = vadd.f32 %v4075_v46, %v1393_v29 }
 0x135   :  { %3505 = vst [vmem:[%s5144_s3 + $0x290] sm:$0xff] %v3249_v25  ;;  %v3248_v30 = vsel %vm2736_vm5, %v2480_v16, %v2992_v22  ;;  %v3250_v31 = vsel %vm2738_vm6, %v2482_v17, %v2994_v23  ;;  %v1044_v34 = vpop.f32.mrb[44].mxu0  ;;  %v1397_v35 = vpop.f32.mrb[44].mxu1  ;;  %vm2739_vm0 = vcmp.ge.f32.partialorder %v2483_v26, 0.0  ;;  %v2995_v36 = vmul.f32 0.2, %v2483_v26 }
 0x136   :  { %3504 = vst [vmem:[%s5144_s3 + $0x288] sm:$0xff] %v3248_v30  ;;  %3506 = vst [vmem:[%s5144_s3 + $0x298] sm:$0xff] %v3250_v31  ;;  %vm2741_vm7 = vcmp.ge.f32.partialorder %v2485_v27, 0.0  ;;  %v2997_v37 = vmul.f32 0.2, %v2485_v27  ;;  %vm2740_vm8 = vcmp.ge.f32.partialorder %v2484_v32, 0.0  ;;  %v2487_v42 = vadd.f32 %v4069_v43, %v1044_v34 }
 0x137   :  { %v2996_v38 = vmul.f32 0.2, %v2484_v32  ;;  %vm2742_vm9 = vcmp.ge.f32.partialorder %v2486_v33, 0.0  ;;  %v2998_v39 = vmul.f32 0.2, %v2486_v33  ;;  %v3251_v40 = vsel %vm2739_vm0, %v2483_v26, %v2995_v36  ;;  %v1046_v48 = vpop.f32.mrb[45].mxu0 }
 0x138   :  { %v3253_v41 = vsel %vm2741_vm7, %v2485_v27, %v2997_v37  ;;  %v2489_v47 = vadd.f32 %v4071_v44, %v1397_v35  ;;  %v1399_v49 = vpop.f32.mrb[45].mxu1  ;;  %3507 = vst [vmem:[%s5144_s3 + $0x2a0] sm:$0xff] %v3251_v40  ;;  %v2488_v52 = vadd.f32 %v4073_v45, %v1046_v48  ;;  %v1048_v54 = vpop.f32.mrb[46].mxu0  ;;  %vm2743_vm10 = vcmp.ge.f32.partialorder %v2487_v42, 0.0 }
 0x139   :  { %3509 = vst [vmem:[%s5144_s3 + $0x2b0] sm:$0xff] %v3253_v41  ;;  %v3252_v50 = vsel %vm2740_vm8, %v2484_v32, %v2996_v38  ;;  %v3254_v51 = vsel %vm2742_vm9, %v2486_v33, %v2998_v39  ;;  %v2490_v53 = vadd.f32 %v4075_v46, %v1399_v49  ;;  %v1401_v1 = vpop.f32.mrb[46].mxu1  ;;  %v2999_v55 = vmul.f32 0.2, %v2487_v42  ;;  %v1050_v63 = vpop.f32.mrb[47].mxu0 }
 0x13a   :  { %3508 = vst [vmem:[%s5144_s3 + $0x2a8] sm:$0xff] %v3252_v50  ;;  %3510 = vst [vmem:[%s5144_s3 + $0x2b8] sm:$0xff] %v3254_v51  ;;  %vm2745_vm11 = vcmp.ge.f32.partialorder %v2489_v47, 0.0  ;;  %v3001_v56 = vmul.f32 0.2, %v2489_v47  ;;  %vm2744_vm12 = vcmp.ge.f32.partialorder %v2488_v52, 0.0  ;;  %v2491_v61 = vadd.f32 %v4069_v43, %v1048_v54 }
 0x13b   :  { %v3000_v57 = vmul.f32 0.2, %v2488_v52  ;;  %vm2746_vm13 = vcmp.ge.f32.partialorder %v2490_v53, 0.0  ;;  %v3002_v58 = vmul.f32 0.2, %v2490_v53  ;;  %v3255_v59 = vsel %vm2743_vm10, %v2487_v42, %v2999_v55  ;;  %v1403_v0 = vpop.f32.mrb[47].mxu1 }
 0x13c   :  { %v3257_v60 = vsel %vm2745_vm11, %v2489_v47, %v3001_v56  ;;  %v2493_v62 = vadd.f32 %v4071_v44, %v1401_v1  ;;  %3511 = vst [vmem:[%s5144_s3 + $0x2c0] sm:$0xff] %v3255_v59  ;;  %v2492_v4 = vadd.f32 %v4073_v45, %v1050_v63  ;;  %v2494_v5 = vadd.f32 %v4075_v46, %v1403_v0 }
 0x13d   :  { %3513 = vst [vmem:[%s5144_s3 + $0x2d0] sm:$0xff] %v3257_v60  ;;  %v3256_v2 = vsel %vm2744_vm12, %v2488_v52, %v3000_v57  ;;  %v3258_v3 = vsel %vm2746_vm13, %v2490_v53, %v3002_v58  ;;  %v1054_v6 = vpop.f32.mrb[48].mxu0  ;;  %v1407_v7 = vpop.f32.mrb[48].mxu1  ;;  %vm2747_vm14 = vcmp.ge.f32.partialorder %v2491_v61, 0.0  ;;  %v3003_v8 = vmul.f32 0.2, %v2491_v61 }
 0x13e   :  { %3512 = vst [vmem:[%s5144_s3 + $0x2c8] sm:$0xff] %v3256_v2  ;;  %3514 = vst [vmem:[%s5144_s3 + $0x2d8] sm:$0xff] %v3258_v3  ;;  %vm2749_vm15 = vcmp.ge.f32.partialorder %v2493_v62, 0.0  ;;  %v3005_v9 = vmul.f32 0.2, %v2493_v62  ;;  %vm2748_vm1 = vcmp.ge.f32.partialorder %v2492_v4, 0.0  ;;  %v2495_v14 = vadd.f32 %v4069_v43, %v1054_v6 }
 0x13f   :  { %v3004_v10 = vmul.f32 0.2, %v2492_v4  ;;  %vm2750_vm2 = vcmp.ge.f32.partialorder %v2494_v5, 0.0  ;;  %v3006_v11 = vmul.f32 0.2, %v2494_v5  ;;  %v3259_v12 = vsel %vm2747_vm14, %v2491_v61, %v3003_v8  ;;  %v1056_v16 = vpop.f32.mrb[49].mxu0 }
 0x140   :  { %v3261_v13 = vsel %vm2749_vm15, %v2493_v62, %v3005_v9  ;;  %v2497_v15 = vadd.f32 %v4071_v44, %v1407_v7  ;;  %v1409_v17 = vpop.f32.mrb[49].mxu1  ;;  %3515 = vst [vmem:[%s5144_s3 + $0x2e0] sm:$0xff] %v3259_v12  ;;  %v2496_v20 = vadd.f32 %v4073_v45, %v1056_v16  ;;  %v1058_v22 = vpop.f32.mrb[50].mxu0  ;;  %vm2751_vm3 = vcmp.ge.f32.partialorder %v2495_v14, 0.0 }
 0x141   :  { %3517 = vst [vmem:[%s5144_s3 + $0x2f0] sm:$0xff] %v3261_v13  ;;  %v3260_v18 = vsel %vm2748_vm1, %v2492_v4, %v3004_v10  ;;  %v3262_v19 = vsel %vm2750_vm2, %v2494_v5, %v3006_v11  ;;  %v2498_v21 = vadd.f32 %v4075_v46, %v1409_v17  ;;  %v1411_v23 = vpop.f32.mrb[50].mxu1  ;;  %v3007_v24 = vmul.f32 0.2, %v2495_v14  ;;  %v1060_v32 = vpop.f32.mrb[51].mxu0 }
 0x142   :  { %3516 = vst [vmem:[%s5144_s3 + $0x2e8] sm:$0xff] %v3260_v18  ;;  %3518 = vst [vmem:[%s5144_s3 + $0x2f8] sm:$0xff] %v3262_v19  ;;  %vm2753_vm4 = vcmp.ge.f32.partialorder %v2497_v15, 0.0  ;;  %v3009_v25 = vmul.f32 0.2, %v2497_v15  ;;  %vm2752_vm5 = vcmp.ge.f32.partialorder %v2496_v20, 0.0  ;;  %v2499_v30 = vadd.f32 %v4069_v43, %v1058_v22 }
 0x143   :  { %v3008_v26 = vmul.f32 0.2, %v2496_v20  ;;  %vm2754_vm6 = vcmp.ge.f32.partialorder %v2498_v21, 0.0  ;;  %v3010_v27 = vmul.f32 0.2, %v2498_v21  ;;  %v3263_v28 = vsel %vm2751_vm3, %v2495_v14, %v3007_v24  ;;  %v1413_v33 = vpop.f32.mrb[51].mxu1 }
 0x144   :  { %v3265_v29 = vsel %vm2753_vm4, %v2497_v15, %v3009_v25  ;;  %v2501_v31 = vadd.f32 %v4071_v44, %v1411_v23  ;;  %3519 = vst [vmem:[%s5144_s3 + $0x300] sm:$0xff] %v3263_v28  ;;  %v2500_v36 = vadd.f32 %v4073_v45, %v1060_v32  ;;  %v2502_v37 = vadd.f32 %v4075_v46, %v1413_v33 }
 0x145   :  { %3521 = vst [vmem:[%s5144_s3 + $0x310] sm:$0xff] %v3265_v29  ;;  %v3264_v34 = vsel %vm2752_vm5, %v2496_v20, %v3008_v26  ;;  %v3266_v35 = vsel %vm2754_vm6, %v2498_v21, %v3010_v27  ;;  %v1064_v38 = vpop.f32.mrb[52].mxu0  ;;  %v1417_v39 = vpop.f32.mrb[52].mxu1  ;;  %vm2755_vm0 = vcmp.ge.f32.partialorder %v2499_v30, 0.0  ;;  %v3011_v40 = vmul.f32 0.2, %v2499_v30 }
 0x146   :  { %3520 = vst [vmem:[%s5144_s3 + $0x308] sm:$0xff] %v3264_v34  ;;  %3522 = vst [vmem:[%s5144_s3 + $0x318] sm:$0xff] %v3266_v35  ;;  %vm2757_vm7 = vcmp.ge.f32.partialorder %v2501_v31, 0.0  ;;  %v3013_v41 = vmul.f32 0.2, %v2501_v31  ;;  %vm2756_vm8 = vcmp.ge.f32.partialorder %v2500_v36, 0.0  ;;  %v2503_v50 = vadd.f32 %v4069_v43, %v1064_v38 }
 0x147   :  { %v3012_v42 = vmul.f32 0.2, %v2500_v36  ;;  %vm2758_vm9 = vcmp.ge.f32.partialorder %v2502_v37, 0.0  ;;  %v3014_v47 = vmul.f32 0.2, %v2502_v37  ;;  %v3267_v48 = vsel %vm2755_vm0, %v2499_v30, %v3011_v40  ;;  %v1066_v52 = vpop.f32.mrb[53].mxu0 }
 0x148   :  { %v3269_v49 = vsel %vm2757_vm7, %v2501_v31, %v3013_v41  ;;  %v2505_v51 = vadd.f32 %v4071_v44, %v1417_v39  ;;  %v1419_v53 = vpop.f32.mrb[53].mxu1  ;;  %3523 = vst [vmem:[%s5144_s3 + $0x320] sm:$0xff] %v3267_v48  ;;  %v2504_v55 = vadd.f32 %v4073_v45, %v1066_v52  ;;  %v1068_v57 = vpop.f32.mrb[54].mxu0  ;;  %vm2759_vm10 = vcmp.ge.f32.partialorder %v2503_v50, 0.0 }
 0x149   :  { %3525 = vst [vmem:[%s5144_s3 + $0x330] sm:$0xff] %v3269_v49  ;;  %v3268_v54 = vsel %vm2756_vm8, %v2500_v36, %v3012_v42  ;;  %v3270_v1 = vsel %vm2758_vm9, %v2502_v37, %v3014_v47  ;;  %v2506_v56 = vadd.f32 %v4075_v46, %v1419_v53  ;;  %v1421_v58 = vpop.f32.mrb[54].mxu1  ;;  %v3015_v59 = vmul.f32 0.2, %v2503_v50  ;;  %v1070_v4 = vpop.f32.mrb[55].mxu0 }
 0x14a   :  { %3524 = vst [vmem:[%s5144_s3 + $0x328] sm:$0xff] %v3268_v54  ;;  %3526 = vst [vmem:[%s5144_s3 + $0x338] sm:$0xff] %v3270_v1  ;;  %vm2761_vm11 = vcmp.ge.f32.partialorder %v2505_v51, 0.0  ;;  %v3017_v60 = vmul.f32 0.2, %v2505_v51  ;;  %vm2760_vm12 = vcmp.ge.f32.partialorder %v2504_v55, 0.0  ;;  %v2507_v2 = vadd.f32 %v4069_v43, %v1068_v57 }
 0x14b   :  { %v3016_v61 = vmul.f32 0.2, %v2504_v55  ;;  %vm2762_vm13 = vcmp.ge.f32.partialorder %v2506_v56, 0.0  ;;  %v3018_v62 = vmul.f32 0.2, %v2506_v56  ;;  %v3271_v63 = vsel %vm2759_vm10, %v2503_v50, %v3015_v59  ;;  %v1423_v5 = vpop.f32.mrb[55].mxu1 }
 0x14c   :  { %v3273_v0 = vsel %vm2761_vm11, %v2505_v51, %v3017_v60  ;;  %v2509_v3 = vadd.f32 %v4071_v44, %v1421_v58  ;;  %3527 = vst [vmem:[%s5144_s3 + $0x340] sm:$0xff] %v3271_v63  ;;  %v2508_v8 = vadd.f32 %v4073_v45, %v1070_v4  ;;  %v2510_v9 = vadd.f32 %v4075_v46, %v1423_v5 }
 0x14d   :  { %3529 = vst [vmem:[%s5144_s3 + $0x350] sm:$0xff] %v3273_v0  ;;  %v3272_v6 = vsel %vm2760_vm12, %v2504_v55, %v3016_v61  ;;  %v3274_v7 = vsel %vm2762_vm13, %v2506_v56, %v3018_v62  ;;  %v1074_v10 = vpop.f32.mrb[56].mxu0  ;;  %v1427_v11 = vpop.f32.mrb[56].mxu1  ;;  %vm2763_vm14 = vcmp.ge.f32.partialorder %v2507_v2, 0.0  ;;  %v3019_v12 = vmul.f32 0.2, %v2507_v2 }
 0x14e   :  { %3528 = vst [vmem:[%s5144_s3 + $0x348] sm:$0xff] %v3272_v6  ;;  %3530 = vst [vmem:[%s5144_s3 + $0x358] sm:$0xff] %v3274_v7  ;;  %vm2765_vm15 = vcmp.ge.f32.partialorder %v2509_v3, 0.0  ;;  %v3021_v13 = vmul.f32 0.2, %v2509_v3  ;;  %vm2764_vm1 = vcmp.ge.f32.partialorder %v2508_v8, 0.0  ;;  %v2511_v18 = vadd.f32 %v4069_v43, %v1074_v10 }
 0x14f   :  { %v3020_v14 = vmul.f32 0.2, %v2508_v8  ;;  %vm2766_vm2 = vcmp.ge.f32.partialorder %v2510_v9, 0.0  ;;  %v3022_v15 = vmul.f32 0.2, %v2510_v9  ;;  %v3275_v16 = vsel %vm2763_vm14, %v2507_v2, %v3019_v12  ;;  %v1076_v20 = vpop.f32.mrb[57].mxu0 }
 0x150   :  { %v3277_v17 = vsel %vm2765_vm15, %v2509_v3, %v3021_v13  ;;  %v2513_v19 = vadd.f32 %v4071_v44, %v1427_v11  ;;  %v1429_v21 = vpop.f32.mrb[57].mxu1  ;;  %3531 = vst [vmem:[%s5144_s3 + $0x360] sm:$0xff] %v3275_v16  ;;  %v2512_v24 = vadd.f32 %v4073_v45, %v1076_v20  ;;  %v1078_v26 = vpop.f32.mrb[58].mxu0  ;;  %vm2767_vm3 = vcmp.ge.f32.partialorder %v2511_v18, 0.0 }
 0x151   :  { %3533 = vst [vmem:[%s5144_s3 + $0x370] sm:$0xff] %v3277_v17  ;;  %v3276_v22 = vsel %vm2764_vm1, %v2508_v8, %v3020_v14  ;;  %v3278_v23 = vsel %vm2766_vm2, %v2510_v9, %v3022_v15  ;;  %v2514_v25 = vadd.f32 %v4075_v46, %v1429_v21  ;;  %v1431_v27 = vpop.f32.mrb[58].mxu1  ;;  %v3023_v28 = vmul.f32 0.2, %v2511_v18  ;;  %v1080_v36 = vpop.f32.mrb[59].mxu0 }
 0x152   :  { %3532 = vst [vmem:[%s5144_s3 + $0x368] sm:$0xff] %v3276_v22  ;;  %3534 = vst [vmem:[%s5144_s3 + $0x378] sm:$0xff] %v3278_v23  ;;  %vm2769_vm4 = vcmp.ge.f32.partialorder %v2513_v19, 0.0  ;;  %v3025_v29 = vmul.f32 0.2, %v2513_v19  ;;  %vm2768_vm5 = vcmp.ge.f32.partialorder %v2512_v24, 0.0  ;;  %v2515_v34 = vadd.f32 %v4069_v43, %v1078_v26 }
 0x153   :  { %v3024_v30 = vmul.f32 0.2, %v2512_v24  ;;  %vm2770_vm6 = vcmp.ge.f32.partialorder %v2514_v25, 0.0  ;;  %v3026_v31 = vmul.f32 0.2, %v2514_v25  ;;  %v3279_v32 = vsel %vm2767_vm3, %v2511_v18, %v3023_v28  ;;  %v1433_v37 = vpop.f32.mrb[59].mxu1 }
 0x154   :  { %v3281_v33 = vsel %vm2769_vm4, %v2513_v19, %v3025_v29  ;;  %v2517_v35 = vadd.f32 %v4071_v44, %v1431_v27  ;;  %3535 = vst [vmem:[%s5144_s3 + $0x380] sm:$0xff] %v3279_v32  ;;  %v2516_v40 = vadd.f32 %v4073_v45, %v1080_v36  ;;  %v2518_v41 = vadd.f32 %v4075_v46, %v1433_v37 }
 0x155   :  { %3537 = vst [vmem:[%s5144_s3 + $0x390] sm:$0xff] %v3281_v33  ;;  %v3280_v38 = vsel %vm2768_vm5, %v2512_v24, %v3024_v30  ;;  %v3282_v39 = vsel %vm2770_vm6, %v2514_v25, %v3026_v31  ;;  %v1084_v42 = vpop.f32.mrb[60].mxu0  ;;  %v1437_v47 = vpop.f32.mrb[60].mxu1  ;;  %vm2771_vm0 = vcmp.ge.f32.partialorder %v2515_v34, 0.0  ;;  %v3027_v48 = vmul.f32 0.2, %v2515_v34 }
 0x156   :  { %3536 = vst [vmem:[%s5144_s3 + $0x388] sm:$0xff] %v3280_v38  ;;  %3538 = vst [vmem:[%s5144_s3 + $0x398] sm:$0xff] %v3282_v39  ;;  %vm2773_vm7 = vcmp.ge.f32.partialorder %v2517_v35, 0.0  ;;  %v3029_v49 = vmul.f32 0.2, %v2517_v35  ;;  %vm2772_vm8 = vcmp.ge.f32.partialorder %v2516_v40, 0.0  ;;  %v2519_v54 = vadd.f32 %v4069_v43, %v1084_v42 }
 0x157   :  { %v3028_v50 = vmul.f32 0.2, %v2516_v40  ;;  %vm2774_vm9 = vcmp.ge.f32.partialorder %v2518_v41, 0.0  ;;  %v3030_v51 = vmul.f32 0.2, %v2518_v41  ;;  %v3283_v52 = vsel %vm2771_vm0, %v2515_v34, %v3027_v48  ;;  %v1086_v55 = vpop.f32.mrb[61].mxu0 }
 0x158   :  { %v3285_v53 = vsel %vm2773_vm7, %v2517_v35, %v3029_v49  ;;  %v2521_v1 = vadd.f32 %v4071_v44, %v1437_v47  ;;  %v1439_v56 = vpop.f32.mrb[61].mxu1  ;;  %3539 = vst [vmem:[%s5144_s3 + $0x3a0] sm:$0xff] %v3283_v52  ;;  %v2520_v59 = vadd.f32 %v4073_v45, %v1086_v55  ;;  %v1088_v61 = vpop.f32.mrb[62].mxu0  ;;  %vm2775_vm10 = vcmp.ge.f32.partialorder %v2519_v54, 0.0 }
 0x159   :  { %3541 = vst [vmem:[%s5144_s3 + $0x3b0] sm:$0xff] %v3285_v53  ;;  %v3284_v57 = vsel %vm2772_vm8, %v2516_v40, %v3028_v50  ;;  %v3286_v58 = vsel %vm2774_vm9, %v2518_v41, %v3030_v51  ;;  %v2522_v60 = vadd.f32 %v4075_v46, %v1439_v56  ;;  %v1441_v62 = vpop.f32.mrb[62].mxu1  ;;  %v3031_v63 = vmul.f32 0.2, %v2519_v54  ;;  %v1090_v8 = vpop.f32.mrb[63].mxu0 }
 0x15a   :  { %3540 = vst [vmem:[%s5144_s3 + $0x3a8] sm:$0xff] %v3284_v57  ;;  %3542 = vst [vmem:[%s5144_s3 + $0x3b8] sm:$0xff] %v3286_v58  ;;  %vm2777_vm11 = vcmp.ge.f32.partialorder %v2521_v1, 0.0  ;;  %v3033_v0 = vmul.f32 0.2, %v2521_v1  ;;  %vm2776_vm12 = vcmp.ge.f32.partialorder %v2520_v59, 0.0  ;;  %v2523_v6 = vadd.f32 %v4069_v43, %v1088_v61 }
 0x15b   :  { %v3032_v2 = vmul.f32 0.2, %v2520_v59  ;;  %vm2778_vm13 = vcmp.ge.f32.partialorder %v2522_v60, 0.0  ;;  %v3034_v3 = vmul.f32 0.2, %v2522_v60  ;;  %v3287_v4 = vsel %vm2775_vm10, %v2519_v54, %v3031_v63  ;;  %v1443_v9 = vpop.f32.mrb[63].mxu1 }
 0x15c   :  { %v3289_v5 = vsel %vm2777_vm11, %v2521_v1, %v3033_v0  ;;  %v2525_v7 = vadd.f32 %v4071_v44, %v1441_v62  ;;  %3543 = vst [vmem:[%s5144_s3 + $0x3c0] sm:$0xff] %v3287_v4  ;;  %v2524_v12 = vadd.f32 %v4073_v45, %v1090_v8  ;;  %v2526_v13 = vadd.f32 %v4075_v46, %v1443_v9 }
 0x15d   :  { %3545 = vst [vmem:[%s5144_s3 + $0x3d0] sm:$0xff] %v3289_v5  ;;  %v3288_v10 = vsel %vm2776_vm12, %v2520_v59, %v3032_v2  ;;  %v3290_v11 = vsel %vm2778_vm13, %v2522_v60, %v3034_v3  ;;  %v1094_v14 = vpop.f32.mrb[64].mxu0  ;;  %v1447_v15 = vpop.f32.mrb[64].mxu1  ;;  %vm2779_vm14 = vcmp.ge.f32.partialorder %v2523_v6, 0.0  ;;  %v3035_v16 = vmul.f32 0.2, %v2523_v6 }
 0x15e   :  { %3544 = vst [vmem:[%s5144_s3 + $0x3c8] sm:$0xff] %v3288_v10  ;;  %3546 = vst [vmem:[%s5144_s3 + $0x3d8] sm:$0xff] %v3290_v11  ;;  %vm2781_vm15 = vcmp.ge.f32.partialorder %v2525_v7, 0.0  ;;  %v3037_v17 = vmul.f32 0.2, %v2525_v7  ;;  %vm2780_vm1 = vcmp.ge.f32.partialorder %v2524_v12, 0.0  ;;  %v2527_v22 = vadd.f32 %v4069_v43, %v1094_v14 }
 0x15f   :  { %v3036_v18 = vmul.f32 0.2, %v2524_v12  ;;  %vm2782_vm2 = vcmp.ge.f32.partialorder %v2526_v13, 0.0  ;;  %v3038_v19 = vmul.f32 0.2, %v2526_v13  ;;  %v3291_v20 = vsel %vm2779_vm14, %v2523_v6, %v3035_v16  ;;  %v1096_v24 = vpop.f32.mrb[65].mxu0 }
 0x160   :  { %v3293_v21 = vsel %vm2781_vm15, %v2525_v7, %v3037_v17  ;;  %v2529_v23 = vadd.f32 %v4071_v44, %v1447_v15  ;;  %v1449_v25 = vpop.f32.mrb[65].mxu1  ;;  %3547 = vst [vmem:[%s5144_s3 + $0x3e0] sm:$0xff] %v3291_v20  ;;  %v2528_v28 = vadd.f32 %v4073_v45, %v1096_v24  ;;  %v1098_v30 = vpop.f32.mrb[66].mxu0  ;;  %vm2783_vm3 = vcmp.ge.f32.partialorder %v2527_v22, 0.0 }
 0x161   :  { %3549 = vst [vmem:[%s5144_s3 + $0x3f0] sm:$0xff] %v3293_v21  ;;  %v3292_v26 = vsel %vm2780_vm1, %v2524_v12, %v3036_v18  ;;  %v3294_v27 = vsel %vm2782_vm2, %v2526_v13, %v3038_v19  ;;  %v2530_v29 = vadd.f32 %v4075_v46, %v1449_v25  ;;  %v1451_v31 = vpop.f32.mrb[66].mxu1  ;;  %v3039_v32 = vmul.f32 0.2, %v2527_v22  ;;  %v1100_v40 = vpop.f32.mrb[67].mxu0 }
 0x162   :  { %3548 = vst [vmem:[%s5144_s3 + $0x3e8] sm:$0xff] %v3292_v26  ;;  %3550 = vst [vmem:[%s5144_s3 + $0x3f8] sm:$0xff] %v3294_v27  ;;  %vm2785_vm4 = vcmp.ge.f32.partialorder %v2529_v23, 0.0  ;;  %v3041_v33 = vmul.f32 0.2, %v2529_v23  ;;  %vm2784_vm5 = vcmp.ge.f32.partialorder %v2528_v28, 0.0  ;;  %v2531_v38 = vadd.f32 %v4069_v43, %v1098_v30 }
 0x163   :  { %v3040_v34 = vmul.f32 0.2, %v2528_v28  ;;  %vm2786_vm6 = vcmp.ge.f32.partialorder %v2530_v29, 0.0  ;;  %v3042_v35 = vmul.f32 0.2, %v2530_v29  ;;  %v3295_v36 = vsel %vm2783_vm3, %v2527_v22, %v3039_v32  ;;  %v1453_v41 = vpop.f32.mrb[67].mxu1 }
 0x164   :  { %v3297_v37 = vsel %vm2785_vm4, %v2529_v23, %v3041_v33  ;;  %v2533_v39 = vadd.f32 %v4071_v44, %v1451_v31  ;;  %3551 = vst [vmem:[%s5144_s3 + $0x400] sm:$0xff] %v3295_v36  ;;  %v2532_v48 = vadd.f32 %v4073_v45, %v1100_v40  ;;  %v2534_v49 = vadd.f32 %v4075_v46, %v1453_v41 }
 0x165   :  { %3553 = vst [vmem:[%s5144_s3 + $0x410] sm:$0xff] %v3297_v37  ;;  %v3296_v42 = vsel %vm2784_vm5, %v2528_v28, %v3040_v34  ;;  %v3298_v47 = vsel %vm2786_vm6, %v2530_v29, %v3042_v35  ;;  %v1104_v50 = vpop.f32.mrb[68].mxu0  ;;  %v1457_v51 = vpop.f32.mrb[68].mxu1  ;;  %vm2787_vm0 = vcmp.ge.f32.partialorder %v2531_v38, 0.0  ;;  %v3043_v52 = vmul.f32 0.2, %v2531_v38 }
 0x166   :  { %3552 = vst [vmem:[%s5144_s3 + $0x408] sm:$0xff] %v3296_v42  ;;  %3554 = vst [vmem:[%s5144_s3 + $0x418] sm:$0xff] %v3298_v47  ;;  %vm2789_vm7 = vcmp.ge.f32.partialorder %v2533_v39, 0.0  ;;  %v3045_v53 = vmul.f32 0.2, %v2533_v39  ;;  %vm2788_vm8 = vcmp.ge.f32.partialorder %v2532_v48, 0.0  ;;  %v2535_v57 = vadd.f32 %v4069_v43, %v1104_v50 }
 0x167   :  { %v3044_v54 = vmul.f32 0.2, %v2532_v48  ;;  %vm2790_vm9 = vcmp.ge.f32.partialorder %v2534_v49, 0.0  ;;  %v3046_v1 = vmul.f32 0.2, %v2534_v49  ;;  %v3299_v55 = vsel %vm2787_vm0, %v2531_v38, %v3043_v52  ;;  %v1106_v59 = vpop.f32.mrb[69].mxu0 }
 0x168   :  { %v3301_v56 = vsel %vm2789_vm7, %v2533_v39, %v3045_v53  ;;  %v2537_v58 = vadd.f32 %v4071_v44, %v1457_v51  ;;  %v1459_v60 = vpop.f32.mrb[69].mxu1  ;;  %3555 = vst [vmem:[%s5144_s3 + $0x420] sm:$0xff] %v3299_v55  ;;  %v2536_v63 = vadd.f32 %v4073_v45, %v1106_v59  ;;  %v1108_v2 = vpop.f32.mrb[70].mxu0  ;;  %vm2791_vm10 = vcmp.ge.f32.partialorder %v2535_v57, 0.0 }
 0x169   :  { %3557 = vst [vmem:[%s5144_s3 + $0x430] sm:$0xff] %v3301_v56  ;;  %v3300_v61 = vsel %vm2788_vm8, %v2532_v48, %v3044_v54  ;;  %v3302_v62 = vsel %vm2790_vm9, %v2534_v49, %v3046_v1  ;;  %v2538_v0 = vadd.f32 %v4075_v46, %v1459_v60  ;;  %v1461_v3 = vpop.f32.mrb[70].mxu1  ;;  %v3047_v4 = vmul.f32 0.2, %v2535_v57  ;;  %v1110_v12 = vpop.f32.mrb[71].mxu0 }
 0x16a   :  { %3556 = vst [vmem:[%s5144_s3 + $0x428] sm:$0xff] %v3300_v61  ;;  %3558 = vst [vmem:[%s5144_s3 + $0x438] sm:$0xff] %v3302_v62  ;;  %vm2793_vm11 = vcmp.ge.f32.partialorder %v2537_v58, 0.0  ;;  %v3049_v5 = vmul.f32 0.2, %v2537_v58  ;;  %vm2792_vm12 = vcmp.ge.f32.partialorder %v2536_v63, 0.0  ;;  %v2539_v10 = vadd.f32 %v4069_v43, %v1108_v2 }
 0x16b   :  { %v3048_v6 = vmul.f32 0.2, %v2536_v63  ;;  %vm2794_vm13 = vcmp.ge.f32.partialorder %v2538_v0, 0.0  ;;  %v3050_v7 = vmul.f32 0.2, %v2538_v0  ;;  %v3303_v8 = vsel %vm2791_vm10, %v2535_v57, %v3047_v4  ;;  %v1463_v13 = vpop.f32.mrb[71].mxu1 }
 0x16c   :  { %v3305_v9 = vsel %vm2793_vm11, %v2537_v58, %v3049_v5  ;;  %v2541_v11 = vadd.f32 %v4071_v44, %v1461_v3  ;;  %3559 = vst [vmem:[%s5144_s3 + $0x440] sm:$0xff] %v3303_v8  ;;  %v2540_v16 = vadd.f32 %v4073_v45, %v1110_v12  ;;  %v2542_v17 = vadd.f32 %v4075_v46, %v1463_v13 }
 0x16d   :  { %3561 = vst [vmem:[%s5144_s3 + $0x450] sm:$0xff] %v3305_v9  ;;  %v3304_v14 = vsel %vm2792_vm12, %v2536_v63, %v3048_v6  ;;  %v3306_v15 = vsel %vm2794_vm13, %v2538_v0, %v3050_v7  ;;  %v1114_v18 = vpop.f32.mrb[72].mxu0  ;;  %v1467_v19 = vpop.f32.mrb[72].mxu1  ;;  %vm2795_vm14 = vcmp.ge.f32.partialorder %v2539_v10, 0.0  ;;  %v3051_v20 = vmul.f32 0.2, %v2539_v10 }
 0x16e   :  { %3560 = vst [vmem:[%s5144_s3 + $0x448] sm:$0xff] %v3304_v14  ;;  %3562 = vst [vmem:[%s5144_s3 + $0x458] sm:$0xff] %v3306_v15  ;;  %vm2797_vm15 = vcmp.ge.f32.partialorder %v2541_v11, 0.0  ;;  %v3053_v21 = vmul.f32 0.2, %v2541_v11  ;;  %vm2796_vm1 = vcmp.ge.f32.partialorder %v2540_v16, 0.0  ;;  %v2543_v26 = vadd.f32 %v4069_v43, %v1114_v18 }
 0x16f   :  { %v3052_v22 = vmul.f32 0.2, %v2540_v16  ;;  %vm2798_vm2 = vcmp.ge.f32.partialorder %v2542_v17, 0.0  ;;  %v3054_v23 = vmul.f32 0.2, %v2542_v17  ;;  %v3307_v24 = vsel %vm2795_vm14, %v2539_v10, %v3051_v20  ;;  %v1116_v28 = vpop.f32.mrb[73].mxu0 }
 0x170   :  { %v3309_v25 = vsel %vm2797_vm15, %v2541_v11, %v3053_v21  ;;  %v2545_v27 = vadd.f32 %v4071_v44, %v1467_v19  ;;  %v1469_v29 = vpop.f32.mrb[73].mxu1  ;;  %3563 = vst [vmem:[%s5144_s3 + $0x460] sm:$0xff] %v3307_v24  ;;  %v2544_v32 = vadd.f32 %v4073_v45, %v1116_v28  ;;  %v1118_v34 = vpop.f32.mrb[74].mxu0  ;;  %vm2799_vm3 = vcmp.ge.f32.partialorder %v2543_v26, 0.0 }
 0x171   :  { %3565 = vst [vmem:[%s5144_s3 + $0x470] sm:$0xff] %v3309_v25  ;;  %v3308_v30 = vsel %vm2796_vm1, %v2540_v16, %v3052_v22  ;;  %v3310_v31 = vsel %vm2798_vm2, %v2542_v17, %v3054_v23  ;;  %v2546_v33 = vadd.f32 %v4075_v46, %v1469_v29  ;;  %v1471_v35 = vpop.f32.mrb[74].mxu1  ;;  %v3055_v36 = vmul.f32 0.2, %v2543_v26  ;;  %v1120_v48 = vpop.f32.mrb[75].mxu0 }
 0x172   :  { %3564 = vst [vmem:[%s5144_s3 + $0x468] sm:$0xff] %v3308_v30  ;;  %3566 = vst [vmem:[%s5144_s3 + $0x478] sm:$0xff] %v3310_v31  ;;  %vm2801_vm4 = vcmp.ge.f32.partialorder %v2545_v27, 0.0  ;;  %v3057_v37 = vmul.f32 0.2, %v2545_v27  ;;  %vm2800_vm5 = vcmp.ge.f32.partialorder %v2544_v32, 0.0  ;;  %v2547_v42 = vadd.f32 %v4069_v43, %v1118_v34 }
 0x173   :  { %v3056_v38 = vmul.f32 0.2, %v2544_v32  ;;  %vm2802_vm6 = vcmp.ge.f32.partialorder %v2546_v33, 0.0  ;;  %v3058_v39 = vmul.f32 0.2, %v2546_v33  ;;  %v3311_v40 = vsel %vm2799_vm3, %v2543_v26, %v3055_v36  ;;  %v1473_v49 = vpop.f32.mrb[75].mxu1 }
 0x174   :  { %v3313_v41 = vsel %vm2801_vm4, %v2545_v27, %v3057_v37  ;;  %v2549_v47 = vadd.f32 %v4071_v44, %v1471_v35  ;;  %3567 = vst [vmem:[%s5144_s3 + $0x480] sm:$0xff] %v3311_v40  ;;  %v2548_v52 = vadd.f32 %v4073_v45, %v1120_v48  ;;  %v2550_v53 = vadd.f32 %v4075_v46, %v1473_v49 }
 0x175   :  { %3569 = vst [vmem:[%s5144_s3 + $0x490] sm:$0xff] %v3313_v41  ;;  %v3312_v50 = vsel %vm2800_vm5, %v2544_v32, %v3056_v38  ;;  %v3314_v51 = vsel %vm2802_vm6, %v2546_v33, %v3058_v39  ;;  %v1124_v54 = vpop.f32.mrb[76].mxu0  ;;  %v1477_v1 = vpop.f32.mrb[76].mxu1  ;;  %vm2803_vm0 = vcmp.ge.f32.partialorder %v2547_v42, 0.0  ;;  %v3059_v55 = vmul.f32 0.2, %v2547_v42 }
 0x176   :  { %3568 = vst [vmem:[%s5144_s3 + $0x488] sm:$0xff] %v3312_v50  ;;  %3570 = vst [vmem:[%s5144_s3 + $0x498] sm:$0xff] %v3314_v51  ;;  %vm2805_vm7 = vcmp.ge.f32.partialorder %v2549_v47, 0.0  ;;  %v3061_v56 = vmul.f32 0.2, %v2549_v47  ;;  %vm2804_vm8 = vcmp.ge.f32.partialorder %v2548_v52, 0.0  ;;  %v2551_v61 = vadd.f32 %v4069_v43, %v1124_v54 }
 0x177   :  { %v3060_v57 = vmul.f32 0.2, %v2548_v52  ;;  %vm2806_vm9 = vcmp.ge.f32.partialorder %v2550_v53, 0.0  ;;  %v3062_v58 = vmul.f32 0.2, %v2550_v53  ;;  %v3315_v59 = vsel %vm2803_vm0, %v2547_v42, %v3059_v55  ;;  %v1126_v63 = vpop.f32.mrb[77].mxu0 }
 0x178   :  { %v3317_v60 = vsel %vm2805_vm7, %v2549_v47, %v3061_v56  ;;  %v2553_v62 = vadd.f32 %v4071_v44, %v1477_v1  ;;  %v1479_v0 = vpop.f32.mrb[77].mxu1  ;;  %3571 = vst [vmem:[%s5144_s3 + $0x4a0] sm:$0xff] %v3315_v59  ;;  %v2552_v4 = vadd.f32 %v4073_v45, %v1126_v63  ;;  %v1128_v6 = vpop.f32.mrb[78].mxu0  ;;  %vm2807_vm10 = vcmp.ge.f32.partialorder %v2551_v61, 0.0 }
 0x179   :  { %3573 = vst [vmem:[%s5144_s3 + $0x4b0] sm:$0xff] %v3317_v60  ;;  %v3316_v2 = vsel %vm2804_vm8, %v2548_v52, %v3060_v57  ;;  %v3318_v3 = vsel %vm2806_vm9, %v2550_v53, %v3062_v58  ;;  %v2554_v5 = vadd.f32 %v4075_v46, %v1479_v0  ;;  %v1481_v7 = vpop.f32.mrb[78].mxu1  ;;  %v3063_v8 = vmul.f32 0.2, %v2551_v61  ;;  %v1130_v16 = vpop.f32.mrb[79].mxu0 }
 0x17a   :  { %3572 = vst [vmem:[%s5144_s3 + $0x4a8] sm:$0xff] %v3316_v2  ;;  %3574 = vst [vmem:[%s5144_s3 + $0x4b8] sm:$0xff] %v3318_v3  ;;  %vm2809_vm11 = vcmp.ge.f32.partialorder %v2553_v62, 0.0  ;;  %v3065_v9 = vmul.f32 0.2, %v2553_v62  ;;  %vm2808_vm12 = vcmp.ge.f32.partialorder %v2552_v4, 0.0  ;;  %v2555_v14 = vadd.f32 %v4069_v43, %v1128_v6 }
 0x17b   :  { %v3064_v10 = vmul.f32 0.2, %v2552_v4  ;;  %vm2810_vm13 = vcmp.ge.f32.partialorder %v2554_v5, 0.0  ;;  %v3066_v11 = vmul.f32 0.2, %v2554_v5  ;;  %v3319_v12 = vsel %vm2807_vm10, %v2551_v61, %v3063_v8  ;;  %v1483_v17 = vpop.f32.mrb[79].mxu1 }
 0x17c   :  { %v3321_v13 = vsel %vm2809_vm11, %v2553_v62, %v3065_v9  ;;  %v2557_v15 = vadd.f32 %v4071_v44, %v1481_v7  ;;  %3575 = vst [vmem:[%s5144_s3 + $0x4c0] sm:$0xff] %v3319_v12  ;;  %v2556_v20 = vadd.f32 %v4073_v45, %v1130_v16  ;;  %v2558_v21 = vadd.f32 %v4075_v46, %v1483_v17 }
 0x17d   :  { %3577 = vst [vmem:[%s5144_s3 + $0x4d0] sm:$0xff] %v3321_v13  ;;  %v3320_v18 = vsel %vm2808_vm12, %v2552_v4, %v3064_v10  ;;  %v3322_v19 = vsel %vm2810_vm13, %v2554_v5, %v3066_v11  ;;  %v1134_v22 = vpop.f32.mrb[80].mxu0  ;;  %v1487_v23 = vpop.f32.mrb[80].mxu1  ;;  %vm2811_vm14 = vcmp.ge.f32.partialorder %v2555_v14, 0.0  ;;  %v3067_v24 = vmul.f32 0.2, %v2555_v14 }
 0x17e   :  { %3576 = vst [vmem:[%s5144_s3 + $0x4c8] sm:$0xff] %v3320_v18  ;;  %3578 = vst [vmem:[%s5144_s3 + $0x4d8] sm:$0xff] %v3322_v19  ;;  %vm2813_vm15 = vcmp.ge.f32.partialorder %v2557_v15, 0.0  ;;  %v3069_v25 = vmul.f32 0.2, %v2557_v15  ;;  %vm2812_vm1 = vcmp.ge.f32.partialorder %v2556_v20, 0.0  ;;  %v2559_v30 = vadd.f32 %v4069_v43, %v1134_v22 }
 0x17f   :  { %v3068_v26 = vmul.f32 0.2, %v2556_v20  ;;  %vm2814_vm2 = vcmp.ge.f32.partialorder %v2558_v21, 0.0  ;;  %v3070_v27 = vmul.f32 0.2, %v2558_v21  ;;  %v3323_v28 = vsel %vm2811_vm14, %v2555_v14, %v3067_v24  ;;  %v1136_v32 = vpop.f32.mrb[81].mxu0 }
 0x180   :  { %v3325_v29 = vsel %vm2813_vm15, %v2557_v15, %v3069_v25  ;;  %v2561_v31 = vadd.f32 %v4071_v44, %v1487_v23  ;;  %v1489_v33 = vpop.f32.mrb[81].mxu1  ;;  %3579 = vst [vmem:[%s5144_s3 + $0x4e0] sm:$0xff] %v3323_v28  ;;  %v2560_v36 = vadd.f32 %v4073_v45, %v1136_v32  ;;  %v1138_v38 = vpop.f32.mrb[82].mxu0  ;;  %vm2815_vm3 = vcmp.ge.f32.partialorder %v2559_v30, 0.0 }
 0x181   :  { %3581 = vst [vmem:[%s5144_s3 + $0x4f0] sm:$0xff] %v3325_v29  ;;  %v3324_v34 = vsel %vm2812_vm1, %v2556_v20, %v3068_v26  ;;  %v3326_v35 = vsel %vm2814_vm2, %v2558_v21, %v3070_v27  ;;  %v2562_v37 = vadd.f32 %v4075_v46, %v1489_v33  ;;  %v1491_v39 = vpop.f32.mrb[82].mxu1  ;;  %v3071_v40 = vmul.f32 0.2, %v2559_v30  ;;  %v1140_v52 = vpop.f32.mrb[83].mxu0 }
 0x182   :  { %3580 = vst [vmem:[%s5144_s3 + $0x4e8] sm:$0xff] %v3324_v34  ;;  %3582 = vst [vmem:[%s5144_s3 + $0x4f8] sm:$0xff] %v3326_v35  ;;  %vm2817_vm4 = vcmp.ge.f32.partialorder %v2561_v31, 0.0  ;;  %v3073_v41 = vmul.f32 0.2, %v2561_v31  ;;  %vm2816_vm5 = vcmp.ge.f32.partialorder %v2560_v36, 0.0  ;;  %v2563_v50 = vadd.f32 %v4069_v43, %v1138_v38 }
 0x183   :  { %v3072_v42 = vmul.f32 0.2, %v2560_v36  ;;  %vm2818_vm6 = vcmp.ge.f32.partialorder %v2562_v37, 0.0  ;;  %v3074_v47 = vmul.f32 0.2, %v2562_v37  ;;  %v3327_v48 = vsel %vm2815_vm3, %v2559_v30, %v3071_v40  ;;  %v1493_v53 = vpop.f32.mrb[83].mxu1 }
 0x184   :  { %v3329_v49 = vsel %vm2817_vm4, %v2561_v31, %v3073_v41  ;;  %v2565_v51 = vadd.f32 %v4071_v44, %v1491_v39  ;;  %3583 = vst [vmem:[%s5144_s3 + $0x500] sm:$0xff] %v3327_v48  ;;  %v2564_v55 = vadd.f32 %v4073_v45, %v1140_v52  ;;  %v2566_v56 = vadd.f32 %v4075_v46, %v1493_v53 }
 0x185   :  { %3585 = vst [vmem:[%s5144_s3 + $0x510] sm:$0xff] %v3329_v49  ;;  %v3328_v54 = vsel %vm2816_vm5, %v2560_v36, %v3072_v42  ;;  %v3330_v1 = vsel %vm2818_vm6, %v2562_v37, %v3074_v47  ;;  %v1144_v57 = vpop.f32.mrb[84].mxu0  ;;  %v1497_v58 = vpop.f32.mrb[84].mxu1  ;;  %vm2819_vm0 = vcmp.ge.f32.partialorder %v2563_v50, 0.0  ;;  %v3075_v59 = vmul.f32 0.2, %v2563_v50 }
 0x186   :  { %3584 = vst [vmem:[%s5144_s3 + $0x508] sm:$0xff] %v3328_v54  ;;  %3586 = vst [vmem:[%s5144_s3 + $0x518] sm:$0xff] %v3330_v1  ;;  %vm2821_vm7 = vcmp.ge.f32.partialorder %v2565_v51, 0.0  ;;  %v3077_v60 = vmul.f32 0.2, %v2565_v51  ;;  %vm2820_vm8 = vcmp.ge.f32.partialorder %v2564_v55, 0.0  ;;  %v2567_v2 = vadd.f32 %v4069_v43, %v1144_v57 }
 0x187   :  { %v3076_v61 = vmul.f32 0.2, %v2564_v55  ;;  %vm2822_vm9 = vcmp.ge.f32.partialorder %v2566_v56, 0.0  ;;  %v3078_v62 = vmul.f32 0.2, %v2566_v56  ;;  %v3331_v63 = vsel %vm2819_vm0, %v2563_v50, %v3075_v59  ;;  %v1146_v4 = vpop.f32.mrb[85].mxu0 }
 0x188   :  { %v3333_v0 = vsel %vm2821_vm7, %v2565_v51, %v3077_v60  ;;  %v2569_v3 = vadd.f32 %v4071_v44, %v1497_v58  ;;  %v1499_v5 = vpop.f32.mrb[85].mxu1  ;;  %3587 = vst [vmem:[%s5144_s3 + $0x520] sm:$0xff] %v3331_v63  ;;  %v2568_v8 = vadd.f32 %v4073_v45, %v1146_v4  ;;  %v1148_v10 = vpop.f32.mrb[86].mxu0  ;;  %vm2823_vm10 = vcmp.ge.f32.partialorder %v2567_v2, 0.0 }
 0x189   :  { %3589 = vst [vmem:[%s5144_s3 + $0x530] sm:$0xff] %v3333_v0  ;;  %v3332_v6 = vsel %vm2820_vm8, %v2564_v55, %v3076_v61  ;;  %v3334_v7 = vsel %vm2822_vm9, %v2566_v56, %v3078_v62  ;;  %v2570_v9 = vadd.f32 %v4075_v46, %v1499_v5  ;;  %v1501_v11 = vpop.f32.mrb[86].mxu1  ;;  %v3079_v12 = vmul.f32 0.2, %v2567_v2  ;;  %v1150_v20 = vpop.f32.mrb[87].mxu0 }
 0x18a   :  { %3588 = vst [vmem:[%s5144_s3 + $0x528] sm:$0xff] %v3332_v6  ;;  %3590 = vst [vmem:[%s5144_s3 + $0x538] sm:$0xff] %v3334_v7  ;;  %vm2825_vm11 = vcmp.ge.f32.partialorder %v2569_v3, 0.0  ;;  %v3081_v13 = vmul.f32 0.2, %v2569_v3  ;;  %vm2824_vm12 = vcmp.ge.f32.partialorder %v2568_v8, 0.0  ;;  %v2571_v18 = vadd.f32 %v4069_v43, %v1148_v10 }
 0x18b   :  { %v3080_v14 = vmul.f32 0.2, %v2568_v8  ;;  %vm2826_vm13 = vcmp.ge.f32.partialorder %v2570_v9, 0.0  ;;  %v3082_v15 = vmul.f32 0.2, %v2570_v9  ;;  %v3335_v16 = vsel %vm2823_vm10, %v2567_v2, %v3079_v12  ;;  %v1503_v21 = vpop.f32.mrb[87].mxu1 }
 0x18c   :  { %v3337_v17 = vsel %vm2825_vm11, %v2569_v3, %v3081_v13  ;;  %v2573_v19 = vadd.f32 %v4071_v44, %v1501_v11  ;;  %3591 = vst [vmem:[%s5144_s3 + $0x540] sm:$0xff] %v3335_v16  ;;  %v2572_v24 = vadd.f32 %v4073_v45, %v1150_v20  ;;  %v2574_v25 = vadd.f32 %v4075_v46, %v1503_v21 }
 0x18d   :  { %3593 = vst [vmem:[%s5144_s3 + $0x550] sm:$0xff] %v3337_v17  ;;  %v3336_v22 = vsel %vm2824_vm12, %v2568_v8, %v3080_v14  ;;  %v3338_v23 = vsel %vm2826_vm13, %v2570_v9, %v3082_v15  ;;  %v1154_v26 = vpop.f32.mrb[88].mxu0  ;;  %v1507_v27 = vpop.f32.mrb[88].mxu1  ;;  %vm2827_vm14 = vcmp.ge.f32.partialorder %v2571_v18, 0.0  ;;  %v3083_v28 = vmul.f32 0.2, %v2571_v18 }
 0x18e   :  { %3592 = vst [vmem:[%s5144_s3 + $0x548] sm:$0xff] %v3336_v22  ;;  %3594 = vst [vmem:[%s5144_s3 + $0x558] sm:$0xff] %v3338_v23  ;;  %vm2829_vm15 = vcmp.ge.f32.partialorder %v2573_v19, 0.0  ;;  %v3085_v29 = vmul.f32 0.2, %v2573_v19  ;;  %vm2828_vm1 = vcmp.ge.f32.partialorder %v2572_v24, 0.0  ;;  %v2575_v34 = vadd.f32 %v4069_v43, %v1154_v26 }
 0x18f   :  { %v3084_v30 = vmul.f32 0.2, %v2572_v24  ;;  %vm2830_vm2 = vcmp.ge.f32.partialorder %v2574_v25, 0.0  ;;  %v3086_v31 = vmul.f32 0.2, %v2574_v25  ;;  %v3339_v32 = vsel %vm2827_vm14, %v2571_v18, %v3083_v28  ;;  %v1156_v36 = vpop.f32.mrb[89].mxu0 }
 0x190   :  { %v3341_v33 = vsel %vm2829_vm15, %v2573_v19, %v3085_v29  ;;  %v2577_v35 = vadd.f32 %v4071_v44, %v1507_v27  ;;  %v1509_v37 = vpop.f32.mrb[89].mxu1  ;;  %3595 = vst [vmem:[%s5144_s3 + $0x560] sm:$0xff] %v3339_v32  ;;  %v2576_v40 = vadd.f32 %v4073_v45, %v1156_v36  ;;  %v1158_v42 = vpop.f32.mrb[90].mxu0  ;;  %vm2831_vm3 = vcmp.ge.f32.partialorder %v2575_v34, 0.0 }
 0x191   :  { %3597 = vst [vmem:[%s5144_s3 + $0x570] sm:$0xff] %v3341_v33  ;;  %v3340_v38 = vsel %vm2828_vm1, %v2572_v24, %v3084_v30  ;;  %v3342_v39 = vsel %vm2830_vm2, %v2574_v25, %v3086_v31  ;;  %v2578_v41 = vadd.f32 %v4075_v46, %v1509_v37  ;;  %v1511_v47 = vpop.f32.mrb[90].mxu1  ;;  %v3087_v48 = vmul.f32 0.2, %v2575_v34  ;;  %v1160_v55 = vpop.f32.mrb[91].mxu0 }
 0x192   :  { %3596 = vst [vmem:[%s5144_s3 + $0x568] sm:$0xff] %v3340_v38  ;;  %3598 = vst [vmem:[%s5144_s3 + $0x578] sm:$0xff] %v3342_v39  ;;  %vm2833_vm4 = vcmp.ge.f32.partialorder %v2577_v35, 0.0  ;;  %v3089_v49 = vmul.f32 0.2, %v2577_v35  ;;  %vm2832_vm5 = vcmp.ge.f32.partialorder %v2576_v40, 0.0  ;;  %v2579_v54 = vadd.f32 %v4069_v43, %v1158_v42 }
 0x193   :  { %v3088_v50 = vmul.f32 0.2, %v2576_v40  ;;  %vm2834_vm6 = vcmp.ge.f32.partialorder %v2578_v41, 0.0  ;;  %v3090_v51 = vmul.f32 0.2, %v2578_v41  ;;  %v3343_v52 = vsel %vm2831_vm3, %v2575_v34, %v3087_v48  ;;  %v1513_v56 = vpop.f32.mrb[91].mxu1 }
 0x194   :  { %v3345_v53 = vsel %vm2833_vm4, %v2577_v35, %v3089_v49  ;;  %v2581_v1 = vadd.f32 %v4071_v44, %v1511_v47  ;;  %3599 = vst [vmem:[%s5144_s3 + $0x580] sm:$0xff] %v3343_v52  ;;  %v2580_v59 = vadd.f32 %v4073_v45, %v1160_v55  ;;  %v2582_v60 = vadd.f32 %v4075_v46, %v1513_v56 }
 0x195   :  { %3601 = vst [vmem:[%s5144_s3 + $0x590] sm:$0xff] %v3345_v53  ;;  %v3344_v57 = vsel %vm2832_vm5, %v2576_v40, %v3088_v50  ;;  %v3346_v58 = vsel %vm2834_vm6, %v2578_v41, %v3090_v51  ;;  %v1164_v61 = vpop.f32.mrb[92].mxu0  ;;  %v1517_v62 = vpop.f32.mrb[92].mxu1  ;;  %vm2835_vm0 = vcmp.ge.f32.partialorder %v2579_v54, 0.0  ;;  %v3091_v63 = vmul.f32 0.2, %v2579_v54 }
 0x196   :  { %3600 = vst [vmem:[%s5144_s3 + $0x588] sm:$0xff] %v3344_v57  ;;  %3602 = vst [vmem:[%s5144_s3 + $0x598] sm:$0xff] %v3346_v58  ;;  %vm2837_vm7 = vcmp.ge.f32.partialorder %v2581_v1, 0.0  ;;  %v3093_v0 = vmul.f32 0.2, %v2581_v1  ;;  %vm2836_vm8 = vcmp.ge.f32.partialorder %v2580_v59, 0.0  ;;  %v2583_v6 = vadd.f32 %v4069_v43, %v1164_v61 }
 0x197   :  { %v3092_v2 = vmul.f32 0.2, %v2580_v59  ;;  %vm2838_vm9 = vcmp.ge.f32.partialorder %v2582_v60, 0.0  ;;  %v3094_v3 = vmul.f32 0.2, %v2582_v60  ;;  %v3347_v4 = vsel %vm2835_vm0, %v2579_v54, %v3091_v63  ;;  %v1166_v8 = vpop.f32.mrb[93].mxu0 }
 0x198   :  { %v3349_v5 = vsel %vm2837_vm7, %v2581_v1, %v3093_v0  ;;  %v2585_v7 = vadd.f32 %v4071_v44, %v1517_v62  ;;  %v1519_v9 = vpop.f32.mrb[93].mxu1  ;;  %3603 = vst [vmem:[%s5144_s3 + $0x5a0] sm:$0xff] %v3347_v4  ;;  %v2584_v12 = vadd.f32 %v4073_v45, %v1166_v8  ;;  %v1168_v14 = vpop.f32.mrb[94].mxu0  ;;  %vm2839_vm10 = vcmp.ge.f32.partialorder %v2583_v6, 0.0 }
 0x199   :  { %3605 = vst [vmem:[%s5144_s3 + $0x5b0] sm:$0xff] %v3349_v5  ;;  %v3348_v10 = vsel %vm2836_vm8, %v2580_v59, %v3092_v2  ;;  %v3350_v11 = vsel %vm2838_vm9, %v2582_v60, %v3094_v3  ;;  %v2586_v13 = vadd.f32 %v4075_v46, %v1519_v9  ;;  %v1521_v15 = vpop.f32.mrb[94].mxu1  ;;  %v3095_v16 = vmul.f32 0.2, %v2583_v6  ;;  %v1170_v24 = vpop.f32.mrb[95].mxu0 }
 0x19a   :  { %3604 = vst [vmem:[%s5144_s3 + $0x5a8] sm:$0xff] %v3348_v10  ;;  %3606 = vst [vmem:[%s5144_s3 + $0x5b8] sm:$0xff] %v3350_v11  ;;  %vm2841_vm11 = vcmp.ge.f32.partialorder %v2585_v7, 0.0  ;;  %v3097_v17 = vmul.f32 0.2, %v2585_v7  ;;  %vm2840_vm12 = vcmp.ge.f32.partialorder %v2584_v12, 0.0  ;;  %v2587_v22 = vadd.f32 %v4069_v43, %v1168_v14 }
 0x19b   :  { %v3096_v18 = vmul.f32 0.2, %v2584_v12  ;;  %vm2842_vm13 = vcmp.ge.f32.partialorder %v2586_v13, 0.0  ;;  %v3098_v19 = vmul.f32 0.2, %v2586_v13  ;;  %v3351_v20 = vsel %vm2839_vm10, %v2583_v6, %v3095_v16  ;;  %v1523_v25 = vpop.f32.mrb[95].mxu1 }
 0x19c   :  { %v3353_v21 = vsel %vm2841_vm11, %v2585_v7, %v3097_v17  ;;  %v2589_v23 = vadd.f32 %v4071_v44, %v1521_v15  ;;  %3607 = vst [vmem:[%s5144_s3 + $0x5c0] sm:$0xff] %v3351_v20  ;;  %v2588_v28 = vadd.f32 %v4073_v45, %v1170_v24  ;;  %v2590_v29 = vadd.f32 %v4075_v46, %v1523_v25 }
 0x19d   :  { %3609 = vst [vmem:[%s5144_s3 + $0x5d0] sm:$0xff] %v3353_v21  ;;  %v3352_v26 = vsel %vm2840_vm12, %v2584_v12, %v3096_v18  ;;  %v3354_v27 = vsel %vm2842_vm13, %v2586_v13, %v3098_v19  ;;  %v1174_v30 = vpop.f32.mrb[96].mxu0  ;;  %v1527_v31 = vpop.f32.mrb[96].mxu1  ;;  %vm2843_vm14 = vcmp.ge.f32.partialorder %v2587_v22, 0.0  ;;  %v3099_v32 = vmul.f32 0.2, %v2587_v22 }
 0x19e   :  { %3608 = vst [vmem:[%s5144_s3 + $0x5c8] sm:$0xff] %v3352_v26  ;;  %3610 = vst [vmem:[%s5144_s3 + $0x5d8] sm:$0xff] %v3354_v27  ;;  %vm2845_vm15 = vcmp.ge.f32.partialorder %v2589_v23, 0.0  ;;  %v3101_v33 = vmul.f32 0.2, %v2589_v23  ;;  %vm2844_vm1 = vcmp.ge.f32.partialorder %v2588_v28, 0.0  ;;  %v2591_v38 = vadd.f32 %v4069_v43, %v1174_v30 }
 0x19f   :  { %v3100_v34 = vmul.f32 0.2, %v2588_v28  ;;  %vm2846_vm2 = vcmp.ge.f32.partialorder %v2590_v29, 0.0  ;;  %v3102_v35 = vmul.f32 0.2, %v2590_v29  ;;  %v3355_v36 = vsel %vm2843_vm14, %v2587_v22, %v3099_v32  ;;  %v1176_v40 = vpop.f32.mrb[97].mxu0 }
 0x1a0   :  { %v3357_v37 = vsel %vm2845_vm15, %v2589_v23, %v3101_v33  ;;  %v2593_v39 = vadd.f32 %v4071_v44, %v1527_v31  ;;  %v1529_v41 = vpop.f32.mrb[97].mxu1  ;;  %3611 = vst [vmem:[%s5144_s3 + $0x5e0] sm:$0xff] %v3355_v36  ;;  %v2592_v48 = vadd.f32 %v4073_v45, %v1176_v40  ;;  %v1178_v50 = vpop.f32.mrb[98].mxu0  ;;  %vm2847_vm3 = vcmp.ge.f32.partialorder %v2591_v38, 0.0 }
 0x1a1   :  { %3613 = vst [vmem:[%s5144_s3 + $0x5f0] sm:$0xff] %v3357_v37  ;;  %v3356_v42 = vsel %vm2844_vm1, %v2588_v28, %v3100_v34  ;;  %v3358_v47 = vsel %vm2846_vm2, %v2590_v29, %v3102_v35  ;;  %v2594_v49 = vadd.f32 %v4075_v46, %v1529_v41  ;;  %v1531_v51 = vpop.f32.mrb[98].mxu1  ;;  %v3103_v52 = vmul.f32 0.2, %v2591_v38  ;;  %v1180_v59 = vpop.f32.mrb[99].mxu0 }
 0x1a2   :  { %3612 = vst [vmem:[%s5144_s3 + $0x5e8] sm:$0xff] %v3356_v42  ;;  %3614 = vst [vmem:[%s5144_s3 + $0x5f8] sm:$0xff] %v3358_v47  ;;  %vm2849_vm4 = vcmp.ge.f32.partialorder %v2593_v39, 0.0  ;;  %v3105_v53 = vmul.f32 0.2, %v2593_v39  ;;  %vm2848_vm5 = vcmp.ge.f32.partialorder %v2592_v48, 0.0  ;;  %v2595_v57 = vadd.f32 %v4069_v43, %v1178_v50 }
 0x1a3   :  { %v3104_v54 = vmul.f32 0.2, %v2592_v48  ;;  %vm2850_vm6 = vcmp.ge.f32.partialorder %v2594_v49, 0.0  ;;  %v3106_v1 = vmul.f32 0.2, %v2594_v49  ;;  %v3359_v55 = vsel %vm2847_vm3, %v2591_v38, %v3103_v52  ;;  %v1533_v60 = vpop.f32.mrb[99].mxu1 }
 0x1a4   :  { %v3361_v56 = vsel %vm2849_vm4, %v2593_v39, %v3105_v53  ;;  %v2597_v58 = vadd.f32 %v4071_v44, %v1531_v51  ;;  %3615 = vst [vmem:[%s5144_s3 + $0x600] sm:$0xff] %v3359_v55  ;;  %v2596_v63 = vadd.f32 %v4073_v45, %v1180_v59  ;;  %v2598_v0 = vadd.f32 %v4075_v46, %v1533_v60 }
 0x1a5   :  { %3617 = vst [vmem:[%s5144_s3 + $0x610] sm:$0xff] %v3361_v56  ;;  %v3360_v61 = vsel %vm2848_vm5, %v2592_v48, %v3104_v54  ;;  %v3362_v62 = vsel %vm2850_vm6, %v2594_v49, %v3106_v1  ;;  %v1184_v2 = vpop.f32.mrb[100].mxu0  ;;  %v1537_v3 = vpop.f32.mrb[100].mxu1  ;;  %vm2851_vm0 = vcmp.ge.f32.partialorder %v2595_v57, 0.0  ;;  %v3107_v4 = vmul.f32 0.2, %v2595_v57 }
 0x1a6   :  { %3616 = vst [vmem:[%s5144_s3 + $0x608] sm:$0xff] %v3360_v61  ;;  %3618 = vst [vmem:[%s5144_s3 + $0x618] sm:$0xff] %v3362_v62  ;;  %vm2853_vm7 = vcmp.ge.f32.partialorder %v2597_v58, 0.0  ;;  %v3109_v5 = vmul.f32 0.2, %v2597_v58  ;;  %vm2852_vm8 = vcmp.ge.f32.partialorder %v2596_v63, 0.0  ;;  %v2599_v10 = vadd.f32 %v4069_v43, %v1184_v2 }
 0x1a7   :  { %v3108_v6 = vmul.f32 0.2, %v2596_v63  ;;  %vm2854_vm9 = vcmp.ge.f32.partialorder %v2598_v0, 0.0  ;;  %v3110_v7 = vmul.f32 0.2, %v2598_v0  ;;  %v3363_v8 = vsel %vm2851_vm0, %v2595_v57, %v3107_v4  ;;  %v1186_v12 = vpop.f32.mrb[101].mxu0 }
 0x1a8   :  { %v3365_v9 = vsel %vm2853_vm7, %v2597_v58, %v3109_v5  ;;  %v2601_v11 = vadd.f32 %v4071_v44, %v1537_v3  ;;  %v1539_v13 = vpop.f32.mrb[101].mxu1  ;;  %3619 = vst [vmem:[%s5144_s3 + $0x620] sm:$0xff] %v3363_v8  ;;  %v2600_v16 = vadd.f32 %v4073_v45, %v1186_v12  ;;  %v1188_v18 = vpop.f32.mrb[102].mxu0  ;;  %vm2855_vm10 = vcmp.ge.f32.partialorder %v2599_v10, 0.0 }
 0x1a9   :  { %3621 = vst [vmem:[%s5144_s3 + $0x630] sm:$0xff] %v3365_v9  ;;  %v3364_v14 = vsel %vm2852_vm8, %v2596_v63, %v3108_v6  ;;  %v3366_v15 = vsel %vm2854_vm9, %v2598_v0, %v3110_v7  ;;  %v2602_v17 = vadd.f32 %v4075_v46, %v1539_v13  ;;  %v1541_v19 = vpop.f32.mrb[102].mxu1  ;;  %v3111_v20 = vmul.f32 0.2, %v2599_v10  ;;  %v1190_v28 = vpop.f32.mrb[103].mxu0 }
 0x1aa   :  { %3620 = vst [vmem:[%s5144_s3 + $0x628] sm:$0xff] %v3364_v14  ;;  %3622 = vst [vmem:[%s5144_s3 + $0x638] sm:$0xff] %v3366_v15  ;;  %vm2857_vm11 = vcmp.ge.f32.partialorder %v2601_v11, 0.0  ;;  %v3113_v21 = vmul.f32 0.2, %v2601_v11  ;;  %vm2856_vm12 = vcmp.ge.f32.partialorder %v2600_v16, 0.0  ;;  %v2603_v26 = vadd.f32 %v4069_v43, %v1188_v18 }
 0x1ab   :  { %v3112_v22 = vmul.f32 0.2, %v2600_v16  ;;  %vm2858_vm13 = vcmp.ge.f32.partialorder %v2602_v17, 0.0  ;;  %v3114_v23 = vmul.f32 0.2, %v2602_v17  ;;  %v3367_v24 = vsel %vm2855_vm10, %v2599_v10, %v3111_v20  ;;  %v1543_v29 = vpop.f32.mrb[103].mxu1 }
 0x1ac   :  { %v3369_v25 = vsel %vm2857_vm11, %v2601_v11, %v3113_v21  ;;  %v2605_v27 = vadd.f32 %v4071_v44, %v1541_v19  ;;  %3623 = vst [vmem:[%s5144_s3 + $0x640] sm:$0xff] %v3367_v24  ;;  %v2604_v32 = vadd.f32 %v4073_v45, %v1190_v28  ;;  %v2606_v33 = vadd.f32 %v4075_v46, %v1543_v29 }
 0x1ad   :  { %3625 = vst [vmem:[%s5144_s3 + $0x650] sm:$0xff] %v3369_v25  ;;  %v3368_v30 = vsel %vm2856_vm12, %v2600_v16, %v3112_v22  ;;  %v3370_v31 = vsel %vm2858_vm13, %v2602_v17, %v3114_v23  ;;  %v1194_v34 = vpop.f32.mrb[104].mxu0  ;;  %v1547_v35 = vpop.f32.mrb[104].mxu1  ;;  %vm2859_vm14 = vcmp.ge.f32.partialorder %v2603_v26, 0.0  ;;  %v3115_v36 = vmul.f32 0.2, %v2603_v26 }
 0x1ae   :  { %3624 = vst [vmem:[%s5144_s3 + $0x648] sm:$0xff] %v3368_v30  ;;  %3626 = vst [vmem:[%s5144_s3 + $0x658] sm:$0xff] %v3370_v31  ;;  %vm2861_vm15 = vcmp.ge.f32.partialorder %v2605_v27, 0.0  ;;  %v3117_v37 = vmul.f32 0.2, %v2605_v27  ;;  %vm2860_vm1 = vcmp.ge.f32.partialorder %v2604_v32, 0.0  ;;  %v2607_v42 = vadd.f32 %v4069_v43, %v1194_v34 }
 0x1af   :  { %v3116_v38 = vmul.f32 0.2, %v2604_v32  ;;  %vm2862_vm2 = vcmp.ge.f32.partialorder %v2606_v33, 0.0  ;;  %v3118_v39 = vmul.f32 0.2, %v2606_v33  ;;  %v3371_v40 = vsel %vm2859_vm14, %v2603_v26, %v3115_v36  ;;  %v1196_v48 = vpop.f32.mrb[105].mxu0 }
 0x1b0   :  { %v3373_v41 = vsel %vm2861_vm15, %v2605_v27, %v3117_v37  ;;  %v2609_v47 = vadd.f32 %v4071_v44, %v1547_v35  ;;  %v1549_v49 = vpop.f32.mrb[105].mxu1  ;;  %3627 = vst [vmem:[%s5144_s3 + $0x660] sm:$0xff] %v3371_v40  ;;  %v2608_v52 = vadd.f32 %v4073_v45, %v1196_v48  ;;  %v1198_v54 = vpop.f32.mrb[106].mxu0  ;;  %vm2863_vm3 = vcmp.ge.f32.partialorder %v2607_v42, 0.0 }
 0x1b1   :  { %3629 = vst [vmem:[%s5144_s3 + $0x670] sm:$0xff] %v3373_v41  ;;  %v3372_v50 = vsel %vm2860_vm1, %v2604_v32, %v3116_v38  ;;  %v3374_v51 = vsel %vm2862_vm2, %v2606_v33, %v3118_v39  ;;  %v2610_v53 = vadd.f32 %v4075_v46, %v1549_v49  ;;  %v1551_v1 = vpop.f32.mrb[106].mxu1  ;;  %v3119_v55 = vmul.f32 0.2, %v2607_v42  ;;  %v1200_v63 = vpop.f32.mrb[107].mxu0 }
 0x1b2   :  { %3628 = vst [vmem:[%s5144_s3 + $0x668] sm:$0xff] %v3372_v50  ;;  %3630 = vst [vmem:[%s5144_s3 + $0x678] sm:$0xff] %v3374_v51  ;;  %vm2865_vm4 = vcmp.ge.f32.partialorder %v2609_v47, 0.0  ;;  %v3121_v56 = vmul.f32 0.2, %v2609_v47  ;;  %vm2864_vm5 = vcmp.ge.f32.partialorder %v2608_v52, 0.0  ;;  %v2611_v61 = vadd.f32 %v4069_v43, %v1198_v54 }
 0x1b3   :  { %v3120_v57 = vmul.f32 0.2, %v2608_v52  ;;  %vm2866_vm6 = vcmp.ge.f32.partialorder %v2610_v53, 0.0  ;;  %v3122_v58 = vmul.f32 0.2, %v2610_v53  ;;  %v3375_v59 = vsel %vm2863_vm3, %v2607_v42, %v3119_v55  ;;  %v1553_v0 = vpop.f32.mrb[107].mxu1 }
 0x1b4   :  { %v3377_v60 = vsel %vm2865_vm4, %v2609_v47, %v3121_v56  ;;  %v2613_v62 = vadd.f32 %v4071_v44, %v1551_v1  ;;  %3631 = vst [vmem:[%s5144_s3 + $0x680] sm:$0xff] %v3375_v59  ;;  %v2612_v4 = vadd.f32 %v4073_v45, %v1200_v63  ;;  %v2614_v5 = vadd.f32 %v4075_v46, %v1553_v0 }
 0x1b5   :  { %3633 = vst [vmem:[%s5144_s3 + $0x690] sm:$0xff] %v3377_v60  ;;  %v3376_v2 = vsel %vm2864_vm5, %v2608_v52, %v3120_v57  ;;  %v3378_v3 = vsel %vm2866_vm6, %v2610_v53, %v3122_v58  ;;  %v1204_v6 = vpop.f32.mrb[108].mxu0  ;;  %vm2867_vm0 = vcmp.ge.f32.partialorder %v2611_v61, 0.0  ;;  %v3123_v7 = vmul.f32 0.2, %v2611_v61 }
 0x1b6   :  { %3632 = vst [vmem:[%s5144_s3 + $0x688] sm:$0xff] %v3376_v2  ;;  %3634 = vst [vmem:[%s5144_s3 + $0x698] sm:$0xff] %v3378_v3  ;;  %vm2869_vm7 = vcmp.ge.f32.partialorder %v2613_v62, 0.0  ;;  %v3125_v8 = vmul.f32 0.2, %v2613_v62  ;;  %vm2868_vm8 = vcmp.ge.f32.partialorder %v2612_v4, 0.0  ;;  %v2615_v13 = vadd.f32 %v4069_v43, %v1204_v6 }
 0x1b7   :  { %v3124_v9 = vmul.f32 0.2, %v2612_v4  ;;  %vm2870_vm9 = vcmp.ge.f32.partialorder %v2614_v5, 0.0  ;;  %v3126_v10 = vmul.f32 0.2, %v2614_v5  ;;  %v3379_v11 = vsel %vm2867_vm0, %v2611_v61, %v3123_v7  ;;  %v1557_v14 = vpop.f32.mrb[108].mxu1 }
 0x1b8   :  { %v3381_v12 = vsel %vm2869_vm7, %v2613_v62, %v3125_v8  ;;  %v1206_v15 = vpop.f32.mrb[109].mxu0  ;;  %3635 = vst [vmem:[%s5144_s3 + $0x6a0] sm:$0xff] %v3379_v11  ;;  %v2617_v18 = vadd.f32 %v4071_v44, %v1557_v14  ;;  %v1559_v20 = vpop.f32.mrb[109].mxu1  ;;  %vm2871_vm10 = vcmp.ge.f32.partialorder %v2615_v13, 0.0  ;;  %v3127_v22 = vmul.f32 0.2, %v2615_v13 }
 0x1b9   :  { %3637 = vst [vmem:[%s5144_s3 + $0x6b0] sm:$0xff] %v3381_v12  ;;  %v3380_v16 = vsel %vm2868_vm8, %v2612_v4, %v3124_v9  ;;  %v3382_v17 = vsel %vm2870_vm9, %v2614_v5, %v3126_v10  ;;  %v2616_v19 = vadd.f32 %v4073_v45, %v1206_v15  ;;  %v1208_v21 = vpop.f32.mrb[110].mxu0  ;;  %v2618_v23 = vadd.f32 %v4075_v46, %v1559_v20  ;;  %v1561_v25 = vpop.f32.mrb[110].mxu1 }
 0x1ba   :  { %3636 = vst [vmem:[%s5144_s3 + $0x6a8] sm:$0xff] %v3380_v16  ;;  %3638 = vst [vmem:[%s5144_s3 + $0x6b8] sm:$0xff] %v3382_v17  ;;  %v2619_v24 = vadd.f32 %v4069_v43, %v1208_v21  ;;  %v1210_v26 = vpop.f32.mrb[111].mxu0  ;;  %vm2873_vm11 = vcmp.ge.f32.partialorder %v2617_v18, 0.0  ;;  %v3129_v27 = vmul.f32 0.2, %v2617_v18  ;;  %v3383_v29 = vsel %vm2871_vm10, %v2615_v13, %v3127_v22 }
 0x1bb   :  { %vm2872_vm12 = vcmp.ge.f32.partialorder %v2616_v19, 0.0  ;;  %v3128_v28 = vmul.f32 0.2, %v2616_v19  ;;  %vm2874_vm13 = vcmp.ge.f32.partialorder %v2618_v23, 0.0  ;;  %v3130_v30 = vmul.f32 0.2, %v2618_v23 }
 0x1bc   :  { %vm2875_vm14 = vcmp.ge.f32.partialorder %v2619_v24, 0.0  ;;  %v1563_v31 = vpop.f32.mrb[111].mxu1  ;;  %3639 = vst [vmem:[%s5144_s3 + $0x6c0] sm:$0xff] %v3383_v29  ;;  %v3385_v32 = vsel %vm2873_vm11, %v2617_v18, %v3129_v27  ;;  %v3131_v34 = vmul.f32 0.2, %v2619_v24  ;;  %v2621_v35 = vadd.f32 %v4071_v44, %v1561_v25 }
 0x1bd   :  { %v3384_v33 = vsel %vm2872_vm12, %v2616_v19, %v3128_v28  ;;  %v1214_v36 = vpop.f32.mrb[112].mxu0  ;;  %3641 = vst [vmem:[%s5144_s3 + $0x6d0] sm:$0xff] %v3385_v32  ;;  %v3386_v37 = vsel %vm2874_vm13, %v2618_v23, %v3130_v30  ;;  %v2620_v38 = vadd.f32 %v4073_v45, %v1210_v26  ;;  %v2622_v39 = vadd.f32 %v4075_v46, %v1563_v31 }
 0x1be   :  { %3640 = vst [vmem:[%s5144_s3 + $0x6c8] sm:$0xff] %v3384_v33  ;;  %v2623_v40 = vadd.f32 %v4069_v43, %v1214_v36  ;;  %v1567_v41 = vpop.f32.mrb[112].mxu1  ;;  %v1216_v42 = vpop.f32.mrb[113].mxu0  ;;  %3642 = vst [vmem:[%s5144_s3 + $0x6d8] sm:$0xff] %v3386_v37  ;;  %v3387_v47 = vsel %vm2875_vm14, %v2619_v24, %v3131_v34  ;;  %vm2877_vm15 = vcmp.ge.f32.partialorder %v2621_v35, 0.0 }
 0x1bf   :  { %v3133_v48 = vmul.f32 0.2, %v2621_v35  ;;  %v2625_v49 = vadd.f32 %v4071_v44, %v1567_v41  ;;  %v1569_v50 = vpop.f32.mrb[113].mxu1  ;;  %v1218_v51 = vpop.f32.mrb[114].mxu0  ;;  %3643 = vst [vmem:[%s5144_s3 + $0x6e0] sm:$0xff] %v3387_v47  ;;  %vm2876_vm1 = vcmp.ge.f32.partialorder %v2620_v38, 0.0  ;;  %v2624_v60 = vadd.f32 %v4073_v45, %v1216_v42 }
 0x1c0   :  { %v3132_v52 = vmul.f32 0.2, %v2620_v38  ;;  %vm2878_vm2 = vcmp.ge.f32.partialorder %v2622_v39, 0.0  ;;  %v3134_v53 = vmul.f32 0.2, %v2622_v39  ;;  %vm2879_vm3 = vcmp.ge.f32.partialorder %v2623_v40, 0.0 }
 0x1c1   :  { %v3389_v54 = vsel %vm2877_vm15, %v2621_v35, %v3133_v48  ;;  %v3135_v1 = vmul.f32 0.2, %v2623_v40  ;;  %vm2881_vm4 = vcmp.ge.f32.partialorder %v2625_v49, 0.0  ;;  %v1571_v55 = vpop.f32.mrb[114].mxu1  ;;  %v1220_v56 = vpop.f32.mrb[115].mxu0  ;;  %v2626_v63 = vadd.f32 %v4075_v46, %v1569_v50 }
 0x1c2   :  { %3645 = vst [vmem:[%s5144_s3 + $0x6f0] sm:$0xff] %v3389_v54  ;;  %v3388_v57 = vsel %vm2876_vm1, %v2620_v38, %v3132_v52  ;;  %v3390_v58 = vsel %vm2878_vm2, %v2622_v39, %v3134_v53  ;;  %v3137_v59 = vmul.f32 0.2, %v2625_v49  ;;  %v1573_v61 = vpop.f32.mrb[115].mxu1  ;;  %v2627_v0 = vadd.f32 %v4069_v43, %v1218_v51 }
 0x1c3   :  { %3644 = vst [vmem:[%s5144_s3 + $0x6e8] sm:$0xff] %v3388_v57  ;;  %3646 = vst [vmem:[%s5144_s3 + $0x6f8] sm:$0xff] %v3390_v58  ;;  %v3391_v62 = vsel %vm2879_vm3, %v2623_v40, %v3135_v1  ;;  %v2629_v2 = vadd.f32 %v4071_v44, %v1571_v55  ;;  %vm2880_vm5 = vcmp.ge.f32.partialorder %v2624_v60, 0.0  ;;  %v3136_v4 = vmul.f32 0.2, %v2624_v60 }
 0x1c4   :  { %3647 = vst [vmem:[%s5144_s3 + $0x700] sm:$0xff] %v3391_v62  ;;  %v3393_v3 = vsel %vm2881_vm4, %v2625_v49, %v3137_v59  ;;  %v2628_v5 = vadd.f32 %v4073_v45, %v1220_v56  ;;  %vm2882_vm6 = vcmp.ge.f32.partialorder %v2626_v63, 0.0  ;;  %v3138_v6 = vmul.f32 0.2, %v2626_v63 }
 0x1c5   :  { %3649 = vst [vmem:[%s5144_s3 + $0x710] sm:$0xff] %v3393_v3  ;;  %vm2883_vm0 = vcmp.ge.f32.partialorder %v2627_v0, 0.0  ;;  %v3139_v7 = vmul.f32 0.2, %v2627_v0  ;;  %v3392_v8 = vsel %vm2880_vm5, %v2624_v60, %v3136_v4  ;;  %vm2885_vm7 = vcmp.ge.f32.partialorder %v2629_v2, 0.0  ;;  %v1224_v10 = vpop.f32.mrb[116].mxu0 }
 0x1c6   :  { %v3141_v9 = vmul.f32 0.2, %v2629_v2  ;;  %vm2884_vm8 = vcmp.ge.f32.partialorder %v2628_v5, 0.0  ;;  %v1577_v11 = vpop.f32.mrb[116].mxu1  ;;  %3648 = vst [vmem:[%s5144_s3 + $0x708] sm:$0xff] %v3392_v8  ;;  %v3394_v12 = vsel %vm2882_vm6, %v2626_v63, %v3138_v6  ;;  %v2630_v15 = vadd.f32 %v4075_v46, %v1573_v61  ;;  %v1226_v16 = vpop.f32.mrb[117].mxu0 }
 0x1c7   :  { %v3395_v13 = vsel %vm2883_vm0, %v2627_v0, %v3139_v7  ;;  %v3140_v14 = vmul.f32 0.2, %v2628_v5  ;;  %v1579_v17 = vpop.f32.mrb[117].mxu1  ;;  %3650 = vst [vmem:[%s5144_s3 + $0x718] sm:$0xff] %v3394_v12  ;;  %v2631_v19 = vadd.f32 %v4069_v43, %v1224_v10  ;;  %v2633_v20 = vadd.f32 %v4071_v44, %v1577_v11  ;;  %v1228_v22 = vpop.f32.mrb[118].mxu0 }
 0x1c8   :  { %3651 = vst [vmem:[%s5144_s3 + $0x720] sm:$0xff] %v3395_v13  ;;  %v3397_v18 = vsel %vm2885_vm7, %v2629_v2, %v3141_v9  ;;  %v2632_v21 = vadd.f32 %v4073_v45, %v1226_v16  ;;  %v1581_v23 = vpop.f32.mrb[118].mxu1  ;;  %vm2886_vm9 = vcmp.ge.f32.partialorder %v2630_v15, 0.0  ;;  %v3142_v25 = vmul.f32 0.2, %v2630_v15  ;;  %v1230_v27 = vpop.f32.mrb[119].mxu0 }
 0x1c9   :  { %3653 = vst [vmem:[%s5144_s3 + $0x730] sm:$0xff] %v3397_v18  ;;  %v3396_v24 = vsel %vm2884_vm8, %v2628_v5, %v3140_v14  ;;  %v2634_v26 = vadd.f32 %v4075_v46, %v1579_v17  ;;  %v1583_v28 = vpop.f32.mrb[119].mxu1  ;;  %vm2887_vm10 = vcmp.ge.f32.partialorder %v2631_v19, 0.0  ;;  %v3143_v29 = vmul.f32 0.2, %v2631_v19 }
 0x1ca   :  { %3652 = vst [vmem:[%s5144_s3 + $0x728] sm:$0xff] %v3396_v24  ;;  %vm2889_vm11 = vcmp.ge.f32.partialorder %v2633_v20, 0.0  ;;  %v3145_v30 = vmul.f32 0.2, %v2633_v20  ;;  %v3398_v31 = vsel %vm2886_vm9, %v2630_v15, %v3142_v25  ;;  %vm2888_vm12 = vcmp.ge.f32.partialorder %v2632_v21, 0.0 }
 0x1cb   :  { %v3144_v32 = vmul.f32 0.2, %v2632_v21  ;;  %vm2890_vm13 = vcmp.ge.f32.partialorder %v2634_v26, 0.0  ;;  %3654 = vst [vmem:[%s5144_s3 + $0x738] sm:$0xff] %v3398_v31  ;;  %v3399_v33 = vsel %vm2887_vm10, %v2631_v19, %v3143_v29  ;;  %v3146_v35 = vmul.f32 0.2, %v2634_v26 }
 0x1cc   :  { %v3401_v34 = vsel %vm2889_vm11, %v2633_v20, %v3145_v30  ;;  %v2635_v36 = vadd.f32 %v4069_v43, %v1228_v22  ;;  %3655 = vst [vmem:[%s5144_s3 + $0x740] sm:$0xff] %v3399_v33  ;;  %v2637_v38 = vadd.f32 %v4071_v44, %v1581_v23  ;;  %v2636_v39 = vadd.f32 %v4073_v45, %v1230_v27 }
 0x1cd   :  { %3657 = vst [vmem:[%s5144_s3 + $0x750] sm:$0xff] %v3401_v34  ;;  %v3400_v37 = vsel %vm2888_vm12, %v2632_v21, %v3144_v32  ;;  %v2638_v40 = vadd.f32 %v4075_v46, %v1583_v28  ;;  %v1234_v41 = vpop.f32.mrb[120].mxu0  ;;  %v3402_v42 = vsel %vm2890_vm13, %v2634_v26, %v3146_v35 }
 0x1ce   :  { %3656 = vst [vmem:[%s5144_s3 + $0x748] sm:$0xff] %v3400_v37  ;;  %vm2891_vm14 = vcmp.ge.f32.partialorder %v2635_v36, 0.0  ;;  %v3147_v47 = vmul.f32 0.2, %v2635_v36  ;;  %v2639_v48 = vadd.f32 %v4069_v43, %v1234_v41  ;;  %v1587_v49 = vpop.f32.mrb[120].mxu1  ;;  %v1236_v50 = vpop.f32.mrb[121].mxu0 }
 0x1cf   :  { %3658 = vst [vmem:[%s5144_s3 + $0x758] sm:$0xff] %v3402_v42  ;;  %vm2893_vm15 = vcmp.ge.f32.partialorder %v2637_v38, 0.0  ;;  %v3149_v51 = vmul.f32 0.2, %v2637_v38  ;;  %vm2892_vm1 = vcmp.ge.f32.partialorder %v2636_v39, 0.0  ;;  %vm2894_vm2 = vcmp.ge.f32.partialorder %v2638_v40, 0.0 }
 0x1d0   :  { %v3148_v52 = vmul.f32 0.2, %v2636_v39  ;;  %v3403_v53 = vsel %vm2891_vm14, %v2635_v36, %v3147_v47  ;;  %v3150_v54 = vmul.f32 0.2, %v2638_v40  ;;  %vm2895_vm3 = vcmp.ge.f32.partialorder %v2639_v48, 0.0  ;;  %v1589_v1 = vpop.f32.mrb[121].mxu1 }
 0x1d1   :  { %v1238_v55 = vpop.f32.mrb[122].mxu0  ;;  %3659 = vst [vmem:[%s5144_s3 + $0x760] sm:$0xff] %v3403_v53  ;;  %v3405_v56 = vsel %vm2893_vm15, %v2637_v38, %v3149_v51  ;;  %v3151_v58 = vmul.f32 0.2, %v2639_v48  ;;  %v2641_v59 = vadd.f32 %v4071_v44, %v1587_v49  ;;  %v1591_v60 = vpop.f32.mrb[122].mxu1  ;;  %v2640_v63 = vadd.f32 %v4073_v45, %v1236_v50 }
 0x1d2   :  { %v3404_v57 = vsel %vm2892_vm1, %v2636_v39, %v3148_v52  ;;  %v1240_v61 = vpop.f32.mrb[123].mxu0  ;;  %3661 = vst [vmem:[%s5144_s3 + $0x770] sm:$0xff] %v3405_v56  ;;  %v3406_v62 = vsel %vm2894_vm2, %v2638_v40, %v3150_v54  ;;  %v2642_v0 = vadd.f32 %v4075_v46, %v1589_v1  ;;  %v2643_v2 = vadd.f32 %v4069_v43, %v1238_v55  ;;  %v1593_v3 = vpop.f32.mrb[123].mxu1 }
 0x1d3   :  { %3660 = vst [vmem:[%s5144_s3 + $0x768] sm:$0xff] %v3404_v57  ;;  %3662 = vst [vmem:[%s5144_s3 + $0x778] sm:$0xff] %v3406_v62  ;;  %v3407_v4 = vsel %vm2895_vm3, %v2639_v48, %v3151_v58  ;;  %vm2897_vm4 = vcmp.ge.f32.partialorder %v2641_v59, 0.0  ;;  %v3153_v5 = vmul.f32 0.2, %v2641_v59  ;;  %v2645_v6 = vadd.f32 %v4071_v44, %v1591_v60 }
 0x1d4   :  { %3663 = vst [vmem:[%s5144_s3 + $0x780] sm:$0xff] %v3407_v4  ;;  %vm2896_vm5 = vcmp.ge.f32.partialorder %v2640_v63, 0.0  ;;  %v3152_v7 = vmul.f32 0.2, %v2640_v63  ;;  %vm2898_vm6 = vcmp.ge.f32.partialorder %v2642_v0, 0.0  ;;  %vm2899_vm0 = vcmp.ge.f32.partialorder %v2643_v2, 0.0 }
 0x1d5   :  { %v3154_v8 = vmul.f32 0.2, %v2642_v0  ;;  %v3409_v9 = vsel %vm2897_vm4, %v2641_v59, %v3153_v5  ;;  %v3155_v10 = vmul.f32 0.2, %v2643_v2  ;;  %vm2901_vm7 = vcmp.ge.f32.partialorder %v2645_v6, 0.0  ;;  %v1244_v11 = vpop.f32.mrb[124].mxu0 }
 0x1d6   :  { %3665 = vst [vmem:[%s5144_s3 + $0x790] sm:$0xff] %v3409_v9  ;;  %v3408_v12 = vsel %vm2896_vm5, %v2640_v63, %v3152_v7  ;;  %v3157_v14 = vmul.f32 0.2, %v2645_v6  ;;  %v2644_v15 = vadd.f32 %v4073_v45, %v1240_v61  ;;  %v1597_v16 = vpop.f32.mrb[124].mxu1  ;;  %v1246_v17 = vpop.f32.mrb[125].mxu0  ;;  %v2646_v19 = vadd.f32 %v4075_v46, %v1593_v3 }
 0x1d7   :  { %v3410_v13 = vsel %vm2898_vm6, %v2642_v0, %v3154_v8  ;;  %3664 = vst [vmem:[%s5144_s3 + $0x788] sm:$0xff] %v3408_v12  ;;  %v3411_v18 = vsel %vm2899_vm0, %v2643_v2, %v3155_v10  ;;  %v2647_v20 = vadd.f32 %v4069_v43, %v1244_v11  ;;  %v2649_v21 = vadd.f32 %v4071_v44, %v1597_v16  ;;  %v1599_v22 = vpop.f32.mrb[125].mxu1  ;;  %v1248_v23 = vpop.f32.mrb[126].mxu0 }
 0x1d8   :  { %3666 = vst [vmem:[%s5144_s3 + $0x798] sm:$0xff] %v3410_v13  ;;  %3667 = vst [vmem:[%s5144_s3 + $0x7a0] sm:$0xff] %v3411_v18  ;;  %v3413_v24 = vsel %vm2901_vm7, %v2645_v6, %v3157_v14  ;;  %vm2900_vm8 = vcmp.ge.f32.partialorder %v2644_v15, 0.0  ;;  %v3156_v25 = vmul.f32 0.2, %v2644_v15  ;;  %v2648_v26 = vadd.f32 %v4073_v45, %v1246_v17  ;;  %v1601_v27 = vpop.f32.mrb[126].mxu1 }
 0x1d9   :  { %v1250_v28 = vpop.f32.mrb[127].mxu0  ;;  %3669 = vst [vmem:[%s5144_s3 + $0x7b0] sm:$0xff] %v3413_v24  ;;  %vm2902_vm9 = vcmp.ge.f32.partialorder %v2646_v19, 0.0  ;;  %v3158_v29 = vmul.f32 0.2, %v2646_v19  ;;  %vm2903_vm10 = vcmp.ge.f32.partialorder %v2647_v20, 0.0  ;;  %v2650_v37 = vadd.f32 %v4075_v46, %v1599_v22 }
 0x1da   :  { %v3159_v30 = vmul.f32 0.2, %v2647_v20  ;;  %v3412_v31 = vsel %vm2900_vm8, %v2644_v15, %v3156_v25  ;;  %vm2905_vm11 = vcmp.ge.f32.partialorder %v2649_v21, 0.0  ;;  %v3161_v32 = vmul.f32 0.2, %v2649_v21  ;;  %v1603_v33 = vpop.f32.mrb[127].mxu1 }
 0x1db   :  { %vm2904_vm12 = vcmp.ge.f32.partialorder %v2648_v26, 0.0  ;;  %3668 = vst [vmem:[%s5144_s3 + $0x7a8] sm:$0xff] %v3412_v31  ;;  %v3414_v34 = vsel %vm2902_vm9, %v2646_v19, %v3158_v29  ;;  %v3160_v36 = vmul.f32 0.2, %v2648_v26  ;;  %v2651_v39 = vadd.f32 %v4069_v43, %v1248_v23 }
 0x1dc   :  { %v3415_v35 = vsel %vm2903_vm10, %v2647_v20, %v3159_v30  ;;  %3670 = vst [vmem:[%s5144_s3 + $0x7b8] sm:$0xff] %v3414_v34  ;;  %v3417_v38 = vsel %vm2905_vm11, %v2649_v21, %v3161_v32  ;;  %v2653_v40 = vadd.f32 %v4071_v44, %v1601_v27  ;;  %v2652_v41 = vadd.f32 %v4073_v45, %v1250_v28 }
 0x1dd   :  { %3671 = vst [vmem:[%s5144_s3 + $0x7c0] sm:$0xff] %v3415_v35  ;;  %3673 = vst [vmem:[%s5144_s3 + $0x7d0] sm:$0xff] %v3417_v38  ;;  %v3416_v42 = vsel %vm2904_vm12, %v2648_v26, %v3160_v36  ;;  %vm2906_vm13 = vcmp.ge.f32.partialorder %v2650_v37, 0.0  ;;  %v3162_v47 = vmul.f32 0.2, %v2650_v37  ;;  %v2654_v48 = vadd.f32 %v4075_v46, %v1603_v33 }
 0x1de   :  { %3672 = vst [vmem:[%s5144_s3 + $0x7c8] sm:$0xff] %v3416_v42  ;;  %vm2907_vm14 = vcmp.ge.f32.partialorder %v2651_v39, 0.0  ;;  %v3163_v49 = vmul.f32 0.2, %v2651_v39  ;;  %vm2909_vm15 = vcmp.ge.f32.partialorder %v2653_v40, 0.0  ;;  %vm2908_vm1 = vcmp.ge.f32.partialorder %v2652_v41, 0.0 }
 0x1df   :  { %v3165_v43 = vmul.f32 0.2, %v2653_v40  ;;  %v3418_v44 = vsel %vm2906_vm13, %v2650_v37, %v3162_v47  ;;  %v3164_v45 = vmul.f32 0.2, %v2652_v41  ;;  %vm2910_vm2 = vcmp.ge.f32.partialorder %v2654_v48, 0.0 }
 0x1e0   :  { %3674 = vst [vmem:[%s5144_s3 + $0x7d8] sm:$0xff] %v3418_v44  ;;  %v3419_v50 = vsel %vm2907_vm14, %v2651_v39, %v3163_v49  ;;  %v3166_v52 = vmul.f32 0.2, %v2654_v48 }
 0x1e1   :  { %v3421_v51 = vsel %vm2909_vm15, %v2653_v40, %v3165_v43  ;;  %3675 = vst [vmem:[%s5144_s3 + $0x7e0] sm:$0xff] %v3419_v50  ;;  %v3420_v46 = vsel %vm2908_vm1, %v2652_v41, %v3164_v45 }
 0x1e2   :  { %3677 = vst [vmem:[%s5144_s3 + $0x7f0] sm:$0xff] %v3421_v51  ;;  %3676 = vst [vmem:[%s5144_s3 + $0x7e8] sm:$0xff] %v3420_v46  ;;  %v3422_v53 = vsel %vm2910_vm2, %v2654_v48, %v3166_v52 }
 0x1e3   :  { %3678 = vst [vmem:[%s5144_s3 + $0x7f8] sm:$0xff] %v3422_v53 }

</bundles_post_ra>
